<compile_context>
chip_gen: v5e
topology: v5e:2x2
jax: 0.10.0
libtpu: 0.0.40
codegen_flags: <defaults>
</compile_context>

<pallas_src>
import jax
import jax.numpy as jnp
from jax.experimental import pallas as pl
from jax.experimental.pallas import tpu as pltpu

INPUT_SIZE = 5
HIDDEN_LAYERS = [90, 100, 80, 80, 80, 80, 60]
OUTPUT_SIZE = 1

LAYER_DIMS = [INPUT_SIZE] + HIDDEN_LAYERS + [OUTPUT_SIZE]   # 9 dims -> 8 linears
NUM_LAYERS = len(LAYER_DIMS) - 1                            # 8
NUM_HID_MM = NUM_LAYERS - 2                                 # 6 full 128x128 MXU layers

PAD = 128          # lane width: hidden feature dims zero-padded to 128
TILE_B = 512       # batch tile; sweep {256, 512, 1024}. Keep grid even & >=2 on v7x.


def _mlp_kernel(x_ref, w0_ref, b0_ref, wh_ref, bh_ref, wl_ref, bl_ref, o_ref):
    # x_ref : (TILE_B, INPUT_SIZE)     f32   unpadded input tile
    # w0_ref: (INPUT_SIZE, PAD)        f32   layer-0 weight (zero-padded cols)
    # b0_ref: (1, PAD)                 f32   layer-0 bias
    # wh_ref: (NUM_HID_MM, PAD, PAD)   bf16  layers 1..6 weights (zero-padded)
    # bh_ref: (NUM_HID_MM, 1, PAD)     bf16  layers 1..6 biases
    # wl_ref: (1, PAD)                 f32   last-layer (60->1) weight row
    # bl_ref: (1, 1)                   f32   last-layer bias
    # o_ref : (TILE_B, 1)              f32
    x = x_ref[...]                                            # (TILE_B, 5) f32

    # Layer 0: fan_in = 5 -> broadcasted VPU multiply-adds in f32 (no padded
    # input, no degenerate K=5 matmul).
    h = b0_ref[...] + x[:, 0:1] * w0_ref[0:1, :]              # (TILE_B, PAD) f32
    for j in range(1, INPUT_SIZE):
        h = h + x[:, j:j + 1] * w0_ref[j:j + 1, :]
    h = jnp.maximum(h, 0.0).astype(jnp.bfloat16)              # ReLU, bf16 activations

    # Layers 1..6: (TILE_B,128)x(128,128) bf16 MXU matmuls with f32
    # accumulation; bias-add + ReLU in bf16 (v6e/v7x VPU-friendly).
    for l in range(NUM_HID_MM):
        acc = jnp.dot(h, wh_ref[l], preferred_element_type=jnp.float32)
        h = jnp.maximum(acc.astype(jnp.bfloat16) + bh_ref[l], 0)

    # Layer 7 (60 -> 1): only column 0 of the padded weight would be non-zero,
    # so do an elementwise multiply by the stored weight row and an XLU lane
    # reduce instead of a padded MXU matmul. Padded lanes of h and wl are 0.
    prod = h.astype(jnp.float32) * wl_ref[...]                # (TILE_B, PAD) f32
    o_ref[...] = jnp.sum(prod, axis=-1, keepdims=True) + bl_ref[...]


def prepare_params(weights, biases):
    """One-time preprocessing (hoisted out of the per-call path).
    weights[i]: (in_i, out_i) f32; biases[i]: (out_i,) f32."""
    h0 = LAYER_DIMS[1]
    w0 = jnp.zeros((INPUT_SIZE, PAD), jnp.float32).at[:, :h0].set(
        weights[0].astype(jnp.float32))
    b0 = jnp.zeros((1, PAD), jnp.float32).at[0, :h0].set(
        biases[0].astype(jnp.float32))

    w_hid = jnp.zeros((NUM_HID_MM, PAD, PAD), jnp.float32)
    b_hid = jnp.zeros((NUM_HID_MM, 1, PAD), jnp.float32)
    for l in range(1, NUM_LAYERS - 1):
        din, dout = LAYER_DIMS[l], LAYER_DIMS[l + 1]
        w_hid = w_hid.at[l - 1, :din, :dout].set(weights[l].astype(jnp.float32))
        b_hid = b_hid.at[l - 1, 0, :dout].set(biases[l].astype(jnp.float32))

    d_last = LAYER_DIMS[-2]
    w_last = jnp.zeros((1, PAD), jnp.float32).at[0, :d_last].set(
        weights[-1][:, 0].astype(jnp.float32))
    b_last = jnp.asarray(biases[-1], jnp.float32).reshape(1, 1)

    # Hidden-layer weights & biases in bf16 (MXU/VPU-native); layer 0 and the
    # last layer stay f32.
    return (w0, b0, w_hid.astype(jnp.bfloat16), b_hid.astype(jnp.bfloat16),
            w_last, b_last)


@jax.jit
def mlp_forward(x, w0, b0, w_hid, b_hid, w_last, b_last):
    """x: (B, INPUT_SIZE). Returns (B, OUTPUT_SIZE) float32."""
    B = x.shape[0]
    assert x.shape[1] == INPUT_SIZE
    Bp = pl.cdiv(B, TILE_B) * TILE_B

    x_f32 = x.astype(jnp.float32)
    x_p = x_f32 if Bp == B else jnp.pad(x_f32, ((0, Bp - B), (0, 0)))

    out_p = pl.pallas_call(
        _mlp_kernel,
        out_shape=jax.ShapeDtypeStruct((Bp, OUTPUT_SIZE), jnp.float32),
        grid_spec=pltpu.PrefetchScalarGridSpec(
            num_scalar_prefetch=0,
            grid=(Bp // TILE_B,),
            in_specs=[
                pl.BlockSpec((TILE_B, INPUT_SIZE), lambda i: (i, 0)),       # x
                pl.BlockSpec((INPUT_SIZE, PAD), lambda i: (0, 0)),          # w0
                pl.BlockSpec((1, PAD), lambda i: (0, 0)),                   # b0
                pl.BlockSpec((NUM_HID_MM, PAD, PAD),
                             lambda i: (0, 0, 0)),                          # w_hid bf16
                pl.BlockSpec((NUM_HID_MM, 1, PAD),
                             lambda i: (0, 0, 0)),                          # b_hid bf16
                pl.BlockSpec((1, PAD), lambda i: (0, 0)),                   # w_last
                pl.BlockSpec((1, 1), lambda i: (0, 0)),                     # b_last
            ],
            out_specs=pl.BlockSpec((TILE_B, OUTPUT_SIZE), lambda i: (i, 0)),
        ),
        compiler_params=pltpu.CompilerParams(
            dimension_semantics=("parallel",),
        ),
    )(x_p, w0, b0, w_hid, b_hid, w_last, b_last)

    return out_p[:B]   # only the first B rows are valid


def init_params(key):
    """Deterministic init mimicking PyTorch Linear default (uniform ±1/sqrt(fan_in)).
    Weights stored (in, out), i.e. torch weight (out, in) transposed."""
    weights, biases = [], []
    for i in range(NUM_LAYERS):
        din, dout = LAYER_DIMS[i], LAYER_DIMS[i + 1]
        key, kw, kb = jax.random.split(key, 3)
        bound = 1.0 / jnp.sqrt(jnp.float32(din))
        weights.append(jax.random.uniform(kw, (din, dout), jnp.float32, -bound, bound))
        biases.append(jax.random.uniform(kb, (dout,), jnp.float32, -bound, bound))
    return weights, biases


def reference_forward_f32(x, weights, biases):
    """Pure fp32 reference (matches the PyTorch module at eval)."""
    h = x.astype(jnp.float32)
    for l in range(NUM_LAYERS):
        h = h @ weights[l] + biases[l]
        if l < NUM_LAYERS - 1:
            h = jnp.maximum(h, 0.0)
    return h


def reference_forward_matched(x, weights, biases):
    """Reference mirroring the kernel's precision: f32 layer 0, bf16 matmul
    operands with f32 accumulation, bf16 bias-add/ReLU, f32 final reduce."""
    h = x.astype(jnp.float32) @ weights[0] + biases[0]
    h = jnp.maximum(h, 0.0).astype(jnp.bfloat16)
    for l in range(1, NUM_LAYERS - 1):
        acc = jnp.dot(h, weights[l].astype(jnp.bfloat16),
                      preferred_element_type=jnp.float32)
        h = jnp.maximum(acc.astype(jnp.bfloat16) + biases[l].astype(jnp.bfloat16), 0)
    return (jnp.sum(h.astype(jnp.float32) * weights[-1][:, 0][None, :],
                    axis=-1, keepdims=True) + biases[-1])


if __name__ == "__main__":
    key = jax.random.PRNGKey(0)
    key, kx = jax.random.split(key)

    # B=600 with TILE_B=512 -> Bp=1024, grid=(2,): even, >= 2 steps (both v7x
    # TensorCores usable) and exercises the non-multiple-of-tile padding path.
    B = 600
    x = jax.random.normal(kx, (B, INPUT_SIZE), jnp.float32)

    weights, biases = init_params(key)
    params = prepare_params(weights, biases)         # one-time prep

    out = mlp_forward(x, *params)
    out = jax.block_until_ready(out)
    assert out.shape == (B, OUTPUT_SIZE)

    # Authoritative check: precision-matched (bf16) reference.
    ref_m = reference_forward_matched(x, weights, biases)
    err_m = jnp.max(jnp.abs(out - ref_m))
    assert jnp.allclose(out, ref_m, atol=1e-2, rtol=1e-2), (
        f"mismatch vs precision-matched reference: max abs err {err_m}")

    # Loose sanity check against the pure-fp32 reference (module semantics).
    ref_f32 = reference_forward_f32(x, weights, biases)
    err_f32 = jnp.max(jnp.abs(out - ref_f32))
    assert jnp.allclose(out, ref_f32, atol=5e-2, rtol=5e-2), (
        f"mismatch vs fp32 reference: max abs err {err_f32}")

    print("KERNEL_OK")
</pallas_src>

<mosaic_0001>
module attributes {stable_mosaic.version = 11 : i64} {
  func.func @_mlp_kernel(%arg0: i32, %arg1: memref<512x5xf32, #tpu.memory_space<vmem>>, %arg2: memref<5x128xf32, #tpu.memory_space<vmem>>, %arg3: memref<1x128xf32, #tpu.memory_space<vmem>>, %arg4: memref<6x128x128xbf16, #tpu.memory_space<vmem>>, %arg5: memref<6x1x128xbf16, #tpu.memory_space<vmem>>, %arg6: memref<1x128xf32, #tpu.memory_space<vmem>>, %arg7: memref<1x1xf32, #tpu.memory_space<vmem>>, %arg8: memref<512x1xf32, #tpu.memory_space<vmem>>) attributes {dimension_semantics = [#tpu.dimension_semantics<parallel>], iteration_bounds = array<i64: 2>, scalar_prefetch = 0 : i64, scratch_operands = 0 : i64, tpu.core_type = #tpu.core_type<tc>, window_params = [{transform_indices = @transform_0, window_bounds = array<i64: 512, 5>}, {pipeline_mode = #tpu.pipeline_mode<synchronous>, transform_indices = @transform_1, window_bounds = array<i64: 5, 128>}, {pipeline_mode = #tpu.pipeline_mode<synchronous>, transform_indices = @transform_2, window_bounds = array<i64: 1, 128>}, {pipeline_mode = #tpu.pipeline_mode<synchronous>, transform_indices = @transform_3, window_bounds = array<i64: 6, 128, 128>}, {pipeline_mode = #tpu.pipeline_mode<synchronous>, transform_indices = @transform_4, window_bounds = array<i64: 6, 1, 128>}, {pipeline_mode = #tpu.pipeline_mode<synchronous>, transform_indices = @transform_5, window_bounds = array<i64: 1, 128>}, {pipeline_mode = #tpu.pipeline_mode<synchronous>, transform_indices = @transform_6, window_bounds = array<i64: 1, 1>}, {transform_indices = @transform_7, window_bounds = array<i64: 512, 1>}]} {
    %c0 = arith.constant 0 : index
    %c0_0 = arith.constant 0 : index
    %0 = vector.load %arg1[%c0, %c0_0] : memref<512x5xf32, #tpu.memory_space<vmem>>, vector<512x5xf32>
    %c0_1 = arith.constant 0 : index
    %c0_2 = arith.constant 0 : index
    %1 = vector.load %arg3[%c0_1, %c0_2] : memref<1x128xf32, #tpu.memory_space<vmem>>, vector<1x128xf32>
    %2 = vector.extract_strided_slice %0 {offsets = [0, 0], sizes = [512, 1], strides = [1, 1]} : vector<512x5xf32> to vector<512x1xf32>
    %c0_3 = arith.constant 0 : index
    %c0_4 = arith.constant 0 : index
    %3 = vector.load %arg2[%c0_3, %c0_4] : memref<5x128xf32, #tpu.memory_space<vmem>>, vector<1x128xf32>
    %4 = vector.broadcast %2 : vector<512x1xf32> to vector<512x128xf32>
    %5 = vector.broadcast %3 : vector<1x128xf32> to vector<512x128xf32>
    %6 = arith.mulf %4, %5 : vector<512x128xf32>
    %7 = vector.broadcast %1 : vector<1x128xf32> to vector<512x128xf32>
    %8 = arith.addf %7, %6 : vector<512x128xf32>
    %9 = vector.extract_strided_slice %0 {offsets = [0, 1], sizes = [512, 1], strides = [1, 1]} : vector<512x5xf32> to vector<512x1xf32>
    %c1 = arith.constant 1 : index
    %c0_5 = arith.constant 0 : index
    %10 = vector.load %arg2[%c1, %c0_5] : memref<5x128xf32, #tpu.memory_space<vmem>>, vector<1x128xf32>
    %11 = vector.broadcast %9 : vector<512x1xf32> to vector<512x128xf32>
    %12 = vector.broadcast %10 : vector<1x128xf32> to vector<512x128xf32>
    %13 = arith.mulf %11, %12 : vector<512x128xf32>
    %14 = arith.addf %8, %13 : vector<512x128xf32>
    %15 = vector.extract_strided_slice %0 {offsets = [0, 2], sizes = [512, 1], strides = [1, 1]} : vector<512x5xf32> to vector<512x1xf32>
    %c2 = arith.constant 2 : index
    %c0_6 = arith.constant 0 : index
    %16 = vector.load %arg2[%c2, %c0_6] : memref<5x128xf32, #tpu.memory_space<vmem>>, vector<1x128xf32>
    %17 = vector.broadcast %15 : vector<512x1xf32> to vector<512x128xf32>
    %18 = vector.broadcast %16 : vector<1x128xf32> to vector<512x128xf32>
    %19 = arith.mulf %17, %18 : vector<512x128xf32>
    %20 = arith.addf %14, %19 : vector<512x128xf32>
    %21 = vector.extract_strided_slice %0 {offsets = [0, 3], sizes = [512, 1], strides = [1, 1]} : vector<512x5xf32> to vector<512x1xf32>
    %c3 = arith.constant 3 : index
    %c0_7 = arith.constant 0 : index
    %22 = vector.load %arg2[%c3, %c0_7] : memref<5x128xf32, #tpu.memory_space<vmem>>, vector<1x128xf32>
    %23 = vector.broadcast %21 : vector<512x1xf32> to vector<512x128xf32>
    %24 = vector.broadcast %22 : vector<1x128xf32> to vector<512x128xf32>
    %25 = arith.mulf %23, %24 : vector<512x128xf32>
    %26 = arith.addf %20, %25 : vector<512x128xf32>
    %27 = vector.extract_strided_slice %0 {offsets = [0, 4], sizes = [512, 1], strides = [1, 1]} : vector<512x5xf32> to vector<512x1xf32>
    %c4 = arith.constant 4 : index
    %c0_8 = arith.constant 0 : index
    %28 = vector.load %arg2[%c4, %c0_8] : memref<5x128xf32, #tpu.memory_space<vmem>>, vector<1x128xf32>
    %29 = vector.broadcast %27 : vector<512x1xf32> to vector<512x128xf32>
    %30 = vector.broadcast %28 : vector<1x128xf32> to vector<512x128xf32>
    %31 = arith.mulf %29, %30 : vector<512x128xf32>
    %32 = arith.addf %26, %31 : vector<512x128xf32>
    %cst = arith.constant 0.000000e+00 : f32
    %33 = vector.broadcast %cst : f32 to vector<512x128xf32>
    %34 = arith.maximumf %32, %33 : vector<512x128xf32>
    %35 = arith.truncf %34 : vector<512x128xf32> to vector<512x128xbf16>
    %c0_9 = arith.constant 0 : index
    %c0_10 = arith.constant 0 : index
    %c0_11 = arith.constant 0 : index
    %36 = vector.load %arg4[%c0_9, %c0_10, %c0_11] : memref<6x128x128xbf16, #tpu.memory_space<vmem>>, vector<1x128x128xbf16>
    %37 = vector.shape_cast %36 : vector<1x128x128xbf16> to vector<128x128xbf16>
    %cst_12 = arith.constant dense<0.000000e+00> : vector<512x128xf32>
    %38 = tpu.matmul %35, %37, %cst_12 {dimension_numbers = #tpu.dot_dimension_numbers<[1], [0], [0], [1], [0, 0, 1, 1], [], []>} : vector<512x128xbf16>, vector<128x128xbf16>, vector<512x128xf32> -> vector<512x128xf32>
    %39 = arith.truncf %38 : vector<512x128xf32> to vector<512x128xbf16>
    %c0_13 = arith.constant 0 : index
    %c0_14 = arith.constant 0 : index
    %c0_15 = arith.constant 0 : index
    %40 = vector.load %arg5[%c0_13, %c0_14, %c0_15] : memref<6x1x128xbf16, #tpu.memory_space<vmem>>, vector<1x1x128xbf16>
    %41 = vector.shape_cast %40 : vector<1x1x128xbf16> to vector<1x128xbf16>
    %42 = vector.broadcast %41 : vector<1x128xbf16> to vector<512x128xbf16>
    %43 = arith.addf %39, %42 : vector<512x128xbf16>
    %cst_16 = arith.constant 0.000000e+00 : bf16
    %44 = vector.broadcast %cst_16 : bf16 to vector<512x128xbf16>
    %45 = arith.maximumf %43, %44 : vector<512x128xbf16>
    %c1_17 = arith.constant 1 : index
    %c0_18 = arith.constant 0 : index
    %c0_19 = arith.constant 0 : index
    %46 = vector.load %arg4[%c1_17, %c0_18, %c0_19] : memref<6x128x128xbf16, #tpu.memory_space<vmem>>, vector<1x128x128xbf16>
    %47 = vector.shape_cast %46 : vector<1x128x128xbf16> to vector<128x128xbf16>
    %cst_20 = arith.constant dense<0.000000e+00> : vector<512x128xf32>
    %48 = tpu.matmul %45, %47, %cst_20 {dimension_numbers = #tpu.dot_dimension_numbers<[1], [0], [0], [1], [0, 0, 1, 1], [], []>} : vector<512x128xbf16>, vector<128x128xbf16>, vector<512x128xf32> -> vector<512x128xf32>
    %49 = arith.truncf %48 : vector<512x128xf32> to vector<512x128xbf16>
    %c1_21 = arith.constant 1 : index
    %c0_22 = arith.constant 0 : index
    %c0_23 = arith.constant 0 : index
    %50 = vector.load %arg5[%c1_21, %c0_22, %c0_23] : memref<6x1x128xbf16, #tpu.memory_space<vmem>>, vector<1x1x128xbf16>
    %51 = vector.shape_cast %50 : vector<1x1x128xbf16> to vector<1x128xbf16>
    %52 = vector.broadcast %51 : vector<1x128xbf16> to vector<512x128xbf16>
    %53 = arith.addf %49, %52 : vector<512x128xbf16>
    %cst_24 = arith.constant 0.000000e+00 : bf16
    %54 = vector.broadcast %cst_24 : bf16 to vector<512x128xbf16>
    %55 = arith.maximumf %53, %54 : vector<512x128xbf16>
    %c2_25 = arith.constant 2 : index
    %c0_26 = arith.constant 0 : index
    %c0_27 = arith.constant 0 : index
    %56 = vector.load %arg4[%c2_25, %c0_26, %c0_27] : memref<6x128x128xbf16, #tpu.memory_space<vmem>>, vector<1x128x128xbf16>
    %57 = vector.shape_cast %56 : vector<1x128x128xbf16> to vector<128x128xbf16>
    %cst_28 = arith.constant dense<0.000000e+00> : vector<512x128xf32>
    %58 = tpu.matmul %55, %57, %cst_28 {dimension_numbers = #tpu.dot_dimension_numbers<[1], [0], [0], [1], [0, 0, 1, 1], [], []>} : vector<512x128xbf16>, vector<128x128xbf16>, vector<512x128xf32> -> vector<512x128xf32>
    %59 = arith.truncf %58 : vector<512x128xf32> to vector<512x128xbf16>
    %c2_29 = arith.constant 2 : index
    %c0_30 = arith.constant 0 : index
    %c0_31 = arith.constant 0 : index
    %60 = vector.load %arg5[%c2_29, %c0_30, %c0_31] : memref<6x1x128xbf16, #tpu.memory_space<vmem>>, vector<1x1x128xbf16>
    %61 = vector.shape_cast %60 : vector<1x1x128xbf16> to vector<1x128xbf16>
    %62 = vector.broadcast %61 : vector<1x128xbf16> to vector<512x128xbf16>
    %63 = arith.addf %59, %62 : vector<512x128xbf16>
    %cst_32 = arith.constant 0.000000e+00 : bf16
    %64 = vector.broadcast %cst_32 : bf16 to vector<512x128xbf16>
    %65 = arith.maximumf %63, %64 : vector<512x128xbf16>
    %c3_33 = arith.constant 3 : index
    %c0_34 = arith.constant 0 : index
    %c0_35 = arith.constant 0 : index
    %66 = vector.load %arg4[%c3_33, %c0_34, %c0_35] : memref<6x128x128xbf16, #tpu.memory_space<vmem>>, vector<1x128x128xbf16>
    %67 = vector.shape_cast %66 : vector<1x128x128xbf16> to vector<128x128xbf16>
    %cst_36 = arith.constant dense<0.000000e+00> : vector<512x128xf32>
    %68 = tpu.matmul %65, %67, %cst_36 {dimension_numbers = #tpu.dot_dimension_numbers<[1], [0], [0], [1], [0, 0, 1, 1], [], []>} : vector<512x128xbf16>, vector<128x128xbf16>, vector<512x128xf32> -> vector<512x128xf32>
    %69 = arith.truncf %68 : vector<512x128xf32> to vector<512x128xbf16>
    %c3_37 = arith.constant 3 : index
    %c0_38 = arith.constant 0 : index
    %c0_39 = arith.constant 0 : index
    %70 = vector.load %arg5[%c3_37, %c0_38, %c0_39] : memref<6x1x128xbf16, #tpu.memory_space<vmem>>, vector<1x1x128xbf16>
    %71 = vector.shape_cast %70 : vector<1x1x128xbf16> to vector<1x128xbf16>
    %72 = vector.broadcast %71 : vector<1x128xbf16> to vector<512x128xbf16>
    %73 = arith.addf %69, %72 : vector<512x128xbf16>
    %cst_40 = arith.constant 0.000000e+00 : bf16
    %74 = vector.broadcast %cst_40 : bf16 to vector<512x128xbf16>
    %75 = arith.maximumf %73, %74 : vector<512x128xbf16>
    %c4_41 = arith.constant 4 : index
    %c0_42 = arith.constant 0 : index
    %c0_43 = arith.constant 0 : index
    %76 = vector.load %arg4[%c4_41, %c0_42, %c0_43] : memref<6x128x128xbf16, #tpu.memory_space<vmem>>, vector<1x128x128xbf16>
    %77 = vector.shape_cast %76 : vector<1x128x128xbf16> to vector<128x128xbf16>
    %cst_44 = arith.constant dense<0.000000e+00> : vector<512x128xf32>
    %78 = tpu.matmul %75, %77, %cst_44 {dimension_numbers = #tpu.dot_dimension_numbers<[1], [0], [0], [1], [0, 0, 1, 1], [], []>} : vector<512x128xbf16>, vector<128x128xbf16>, vector<512x128xf32> -> vector<512x128xf32>
    %79 = arith.truncf %78 : vector<512x128xf32> to vector<512x128xbf16>
    %c4_45 = arith.constant 4 : index
    %c0_46 = arith.constant 0 : index
    %c0_47 = arith.constant 0 : index
    %80 = vector.load %arg5[%c4_45, %c0_46, %c0_47] : memref<6x1x128xbf16, #tpu.memory_space<vmem>>, vector<1x1x128xbf16>
    %81 = vector.shape_cast %80 : vector<1x1x128xbf16> to vector<1x128xbf16>
    %82 = vector.broadcast %81 : vector<1x128xbf16> to vector<512x128xbf16>
    %83 = arith.addf %79, %82 : vector<512x128xbf16>
    %cst_48 = arith.constant 0.000000e+00 : bf16
    %84 = vector.broadcast %cst_48 : bf16 to vector<512x128xbf16>
    %85 = arith.maximumf %83, %84 : vector<512x128xbf16>
    %c5 = arith.constant 5 : index
    %c0_49 = arith.constant 0 : index
    %c0_50 = arith.constant 0 : index
    %86 = vector.load %arg4[%c5, %c0_49, %c0_50] : memref<6x128x128xbf16, #tpu.memory_space<vmem>>, vector<1x128x128xbf16>
    %87 = vector.shape_cast %86 : vector<1x128x128xbf16> to vector<128x128xbf16>
    %cst_51 = arith.constant dense<0.000000e+00> : vector<512x128xf32>
    %88 = tpu.matmul %85, %87, %cst_51 {dimension_numbers = #tpu.dot_dimension_numbers<[1], [0], [0], [1], [0, 0, 1, 1], [], []>} : vector<512x128xbf16>, vector<128x128xbf16>, vector<512x128xf32> -> vector<512x128xf32>
    %89 = arith.truncf %88 : vector<512x128xf32> to vector<512x128xbf16>
    %c5_52 = arith.constant 5 : index
    %c0_53 = arith.constant 0 : index
    %c0_54 = arith.constant 0 : index
    %90 = vector.load %arg5[%c5_52, %c0_53, %c0_54] : memref<6x1x128xbf16, #tpu.memory_space<vmem>>, vector<1x1x128xbf16>
    %91 = vector.shape_cast %90 : vector<1x1x128xbf16> to vector<1x128xbf16>
    %92 = vector.broadcast %91 : vector<1x128xbf16> to vector<512x128xbf16>
    %93 = arith.addf %89, %92 : vector<512x128xbf16>
    %cst_55 = arith.constant 0.000000e+00 : bf16
    %94 = vector.broadcast %cst_55 : bf16 to vector<512x128xbf16>
    %95 = arith.maximumf %93, %94 : vector<512x128xbf16>
    %96 = arith.extf %95 : vector<512x128xbf16> to vector<512x128xf32>
    %c0_56 = arith.constant 0 : index
    %c0_57 = arith.constant 0 : index
    %97 = vector.load %arg6[%c0_56, %c0_57] : memref<1x128xf32, #tpu.memory_space<vmem>>, vector<1x128xf32>
    %98 = vector.broadcast %97 : vector<1x128xf32> to vector<512x128xf32>
    %99 = arith.mulf %96, %98 : vector<512x128xf32>
    %cst_58 = arith.constant dense<0.000000e+00> : vector<512xf32>
    %100 = vector.multi_reduction <add>, %99, %cst_58 [1] : vector<512x128xf32> to vector<512xf32>
    %101 = vector.shape_cast %100 : vector<512xf32> to vector<512x1xf32>
    %c0_59 = arith.constant 0 : index
    %c0_60 = arith.constant 0 : index
    %102 = vector.load %arg7[%c0_59, %c0_60] : memref<1x1xf32, #tpu.memory_space<vmem>>, vector<1x1xf32>
    %103 = vector.broadcast %102 : vector<1x1xf32> to vector<512x1xf32>
    %104 = arith.addf %101, %103 : vector<512x1xf32>
    %c0_61 = arith.constant 0 : index
    %c0_62 = arith.constant 0 : index
    %105 = vector.load %arg8[%c0_61, %c0_62] : memref<512x1xf32, #tpu.memory_space<vmem>>, vector<512x1xf32>
    tpu.vector_store %arg8[%c0_61, %c0_62], %104 {strides = array<i32>} : memref<512x1xf32, #tpu.memory_space<vmem>>, vector<512x1xf32>,
    return
  }
  func.func @transform_0(%arg0: i32) -> (i32, i32) {
    %c0_i32 = arith.constant 0 : i32
    %c0_i32_0 = arith.constant 0 : i32
    return %arg0, %c0_i32 : i32, i32
  }
  func.func @transform_1(%arg0: i32) -> (i32, i32) {
    %c0_i32 = arith.constant 0 : i32
    %c0_i32_0 = arith.constant 0 : i32
    %c0_i32_1 = arith.constant 0 : i32
    return %c0_i32, %c0_i32_0 : i32, i32
  }
  func.func @transform_2(%arg0: i32) -> (i32, i32) {
    %c0_i32 = arith.constant 0 : i32
    %c0_i32_0 = arith.constant 0 : i32
    %c0_i32_1 = arith.constant 0 : i32
    return %c0_i32, %c0_i32_0 : i32, i32
  }
  func.func @transform_3(%arg0: i32) -> (i32, i32, i32) {
    %c0_i32 = arith.constant 0 : i32
    %c0_i32_0 = arith.constant 0 : i32
    %c0_i32_1 = arith.constant 0 : i32
    %c0_i32_2 = arith.constant 0 : i32
    return %c0_i32, %c0_i32_0, %c0_i32_1 : i32, i32, i32
  }
  func.func @transform_4(%arg0: i32) -> (i32, i32, i32) {
    %c0_i32 = arith.constant 0 : i32
    %c0_i32_0 = arith.constant 0 : i32
    %c0_i32_1 = arith.constant 0 : i32
    %c0_i32_2 = arith.constant 0 : i32
    return %c0_i32, %c0_i32_0, %c0_i32_1 : i32, i32, i32
  }
  func.func @transform_5(%arg0: i32) -> (i32, i32) {
    %c0_i32 = arith.constant 0 : i32
    %c0_i32_0 = arith.constant 0 : i32
    %c0_i32_1 = arith.constant 0 : i32
    return %c0_i32, %c0_i32_0 : i32, i32
  }
  func.func @transform_6(%arg0: i32) -> (i32, i32) {
    %c0_i32 = arith.constant 0 : i32
    %c0_i32_0 = arith.constant 0 : i32
    %c0_i32_1 = arith.constant 0 : i32
    return %c0_i32, %c0_i32_0 : i32, i32
  }
  func.func @transform_7(%arg0: i32) -> (i32, i32) {
    %c0_i32 = arith.constant 0 : i32
    %c0_i32_0 = arith.constant 0 : i32
    return %arg0, %c0_i32 : i32, i32
  }
}

</mosaic_0001>

<bundles_post_ra>
// kernel: mlp_forward.1
= control target key start
LH: loop header
LB: loop body
LE: loop exit
PB: predicated region body
PF: predicated region fallthrough
CT: control target
= control target key end

     0   :  { %s7506_s26 = smov 0   ;;  %s10187_s0 = inlined_call_operand.vmem [shape: f32[1024,5], index: 0, kind: input, shape index: {}]   ;;  %s10188_s1 = inlined_call_operand.vmem [shape: f32[5,128], index: 1, kind: input, shape index: {}]   ;;  %s10189_s2 = inlined_call_operand.vmem [shape: f32[1,128], index: 2, kind: input, shape index: {}]   ;;  %s10190_s3 = inlined_call_operand.vmem [shape: bf16[6,128,128], index: 3, kind: input, shape index: {}]   ;;  %s10191_s4 = inlined_call_operand.vmem [shape: bf16[6,1,128], index: 4, kind: input, shape index: {}]   ;;  %s10192_s5 = inlined_call_operand.vmem [shape: f32[1,128], index: 5, kind: input, shape index: {}]   ;;  %s10193_s6 = inlined_call_operand.<no memory space> [shape: f32[1,1], index: 6, kind: input, shape index: {}]   ;;  %s10194_s7 = inlined_call_operand.vmem [shape: f32[1024,1], index: 7, kind: output, shape index: {}]  }
   0x1   :  { %v12_v0 = vstv %s10193_s6 }
   0x2   :  { %13 = vst [vmem:[#allocation2] sm:$0x1] %v12_v0 }
   0x3 LB: > { %s6863_s27 = sadd.s32 4294967295, %s7456_s26   ;;  %p6867_p0 = scmp.ge.s32.totalorder %s7456_s26, 1  ;;  %s7456_s26 = sphi %s7506_s26, %s19_s26  }
   0x4   : > { %p240_p1 = scmp.lt.s32.totalorder %s7456_s26, 3 }
   0x6   : > { %p241_p2 = pnand %p6867_p0, %p240_p1 }
   0x8   : > { %244 = sbr.rel (%p241_p2) target bundleno = 2389 (0x955), region = 48 }
   0xd   : > { %s6868_s28 = sshll.u32 %s6863_s27, 6  ;;  %v7458_v1 = vmov 0   ;;  %vm6742_vm0 = vcmask 7168  }
   0xe   : > { %7230 = vset.pattern.permute.xlu2 %v7458_v1  ;;  %7229 = vset.pattern.permute.xlu1 %v7458_v1  ;;  %p273_p3 = scmp.lt.s32.totalorder %s6868_s28, 127 }
   0xf   : > { %7228 = vset.pattern.permute.xlu0 %v7458_v1 }
  0x10   : > { %s10395_s28 = smov (!%p273_p3, %s6868_s28), 127 }
  0x11   : > { %s6869_s6 = sshll.u32 %s10395_s28, 3 }
  0x12   : > { %s7522_s8 = scalar_lea.vmem %s10187_s0, %s6869_s6  ;;  %s9839_s25 = scalar_lea.vmem %s10194_s7, %s6869_s6 }
  0x13   : > { %v7525_v2 = vld [vmem:[%s7522_s8 + $0x20] sm:$0xff]  ;;  %v7528_v3 = vld [vmem:[%s7522_s8 + $0x10] sm:$0xff]  ;;  %v7537_v5 = vld [vmem:[%s7522_s8 + $0x28] sm:$0xff] }
  0x14   : > { %v7531_v4 = vld [vmem:[%s7522_s8] sm:$0xff]  ;;  %372 = vperm.xlu2 %7230, %v7525_v2   ;;  %362 = vperm.xlu1 %7229, %v7528_v3   ;;  %v7540_v6 = vld [vmem:[%s7522_s8 + $0x18] sm:$0xff]  ;;  %v7543_v7 = vld [vmem:[%s7522_s8 + $0x8] sm:$0xff] }
  0x15   : > { %352 = vperm.xlu0 %7228, %v7531_v4   ;;  %v7549_v8 = vld [vmem:[%s7522_s8 + $0x40] sm:$0xff]  ;;  %v7552_v9 = vld [vmem:[%s7522_s8 + $0x38] sm:$0xff]  ;;  %v7555_v10 = vld [vmem:[%s7522_s8 + $0x30] sm:$0xff] }
  0x16   : > { %v7561_v11 = vld [vmem:[%s7522_s8 + $0x58] sm:$0xff]  ;;  %v7564_v12 = vld [vmem:[%s7522_s8 + $0x50] sm:$0xff]  ;;  %v7567_v13 = vld [vmem:[%s7522_s8 + $0x48] sm:$0xff] }
  0x17   : > { %v7573_v14 = vld [vmem:[%s7522_s8 + $0x70] sm:$0xff]  ;;  %v7576_v15 = vld [vmem:[%s7522_s8 + $0x68] sm:$0xff]  ;;  %v7579_v16 = vld [vmem:[%s7522_s8 + $0x60] sm:$0xff] }
  0x18   : > { %v7585_v17 = vld [vmem:[%s7522_s8 + $0x88] sm:$0xff]  ;;  %v7588_v18 = vld [vmem:[%s7522_s8 + $0x80] sm:$0xff]  ;;  %v7591_v19 = vld [vmem:[%s7522_s8 + $0x78] sm:$0xff] }
  0x19   : > { %v7597_v20 = vld [vmem:[%s7522_s8 + $0xa0] sm:$0xff]  ;;  %v7600_v21 = vld [vmem:[%s7522_s8 + $0x98] sm:$0xff]  ;;  %v7603_v22 = vld [vmem:[%s7522_s8 + $0x90] sm:$0xff] }
  0x1a   : > { %v7609_v23 = vld [vmem:[%s7522_s8 + $0xb8] sm:$0xff]  ;;  %v7612_v24 = vld [vmem:[%s7522_s8 + $0xb0] sm:$0xff]  ;;  %v7615_v25 = vld [vmem:[%s7522_s8 + $0xa8] sm:$0xff] }
  0x1b   : > { %v7621_v26 = vld [vmem:[%s7522_s8 + $0xd0] sm:$0xff]  ;;  %v7624_v27 = vld [vmem:[%s7522_s8 + $0xc8] sm:$0xff]  ;;  %v7627_v28 = vld [vmem:[%s7522_s8 + $0xc0] sm:$0xff] }
  0x1c   : > { %377 = vperm.xlu2 %7230, %v7537_v5   ;;  %367 = vperm.xlu1 %7229, %v7540_v6   ;;  %v7633_v29 = vld [vmem:[%s7522_s8 + $0xe8] sm:$0xff]  ;;  %v7636_v30 = vld [vmem:[%s7522_s8 + $0xe0] sm:$0xff]  ;;  %v7639_v31 = vld [vmem:[%s7522_s8 + $0xd8] sm:$0xff] }
  0x1d   : > { %357 = vperm.xlu0 %7228, %v7543_v7   ;;  %v7645_v32 = vld [vmem:[%s7522_s8 + $0x100] sm:$0xff]  ;;  %v7648_v33 = vld [vmem:[%s7522_s8 + $0xf8] sm:$0xff]  ;;  %v7651_v34 = vld [vmem:[%s7522_s8 + $0xf0] sm:$0xff] }
  0x1e   : > { %v7657_v35 = vld [vmem:[%s7522_s8 + $0x118] sm:$0xff]  ;;  %v7660_v36 = vld [vmem:[%s7522_s8 + $0x110] sm:$0xff]  ;;  %v7663_v37 = vld [vmem:[%s7522_s8 + $0x108] sm:$0xff] }
  0x1f   : > { %v7671_v39 = vld [vmem:[%s7522_s8 + $0x130] sm:$0xff]  ;;  %v7674_v40 = vld [vmem:[%s7522_s8 + $0x128] sm:$0xff]  ;;  %v7677_v41 = vld [vmem:[%s7522_s8 + $0x120] sm:$0xff] }
  0x20   : > { %v7685_v43 = vld [vmem:[%s7522_s8 + $0x148] sm:$0xff]  ;;  %v7688_v44 = vld [vmem:[%s7522_s8 + $0x140] sm:$0xff]  ;;  %v7691_v45 = vld [vmem:[%s7522_s8 + $0x138] sm:$0xff] }
  0x21   : > { %v7699_v47 = vld [vmem:[%s7522_s8 + $0x160] sm:$0xff]  ;;  %v7702_v48 = vld [vmem:[%s7522_s8 + $0x158] sm:$0xff]  ;;  %v7705_v49 = vld [vmem:[%s7522_s8 + $0x150] sm:$0xff] }
  0x22   : > { %v331_v53 = vld [vmem:[%s7522_s8 + $0x178] sm:$0xff]  ;;  %v7718_v54 = vld [vmem:[%s7522_s8 + $0x170] sm:$0xff]  ;;  %v7721_v55 = vld [vmem:[%s7522_s8 + $0x168] sm:$0xff] }
  0x23   : > { %v334_v59 = vld [vmem:[%s7522_s8 + $0x190] sm:$0xff]  ;;  %v7733_v60 = vld [vmem:[%s7522_s8 + $0x188] sm:$0xff]  ;;  %v7736_v61 = vld [vmem:[%s7522_s8 + $0x180] sm:$0xff] }
  0x24   : > { %392 = vperm.xlu2 %7230, %v7549_v8   ;;  %387 = vperm.xlu1 %7229, %v7552_v9   ;;  %10212 = vst [vmem:[#allocation8_spill] sm:$0xff] %v7736_v61  ;;  %v337_v1 = vld [vmem:[%s7522_s8 + $0x1a8] sm:$0xff] }
  0x25   : > { %382 = vperm.xlu0 %7228, %v7555_v10  }
  0x2c   : > { %407 = vperm.xlu2 %7230, %v7561_v11   ;;  %402 = vperm.xlu1 %7229, %v7564_v12  }
  0x2d   : > { %397 = vperm.xlu0 %7228, %v7567_v13  }
  0x34   : > { %422 = vperm.xlu2 %7230, %v7573_v14   ;;  %417 = vperm.xlu1 %7229, %v7576_v15  }
  0x35   : > { %412 = vperm.xlu0 %7228, %v7579_v16  }
  0x3c   : > { %437 = vperm.xlu2 %7230, %v7585_v17   ;;  %432 = vperm.xlu1 %7229, %v7588_v18  }
  0x3d   : > { %427 = vperm.xlu0 %7228, %v7591_v19  }
  0x44   : > { %452 = vperm.xlu2 %7230, %v7597_v20   ;;  %447 = vperm.xlu1 %7229, %v7600_v21  }
  0x45   : > { %442 = vperm.xlu0 %7228, %v7603_v22  }
  0x4c   : > { %467 = vperm.xlu2 %7230, %v7609_v23   ;;  %462 = vperm.xlu1 %7229, %v7612_v24  }
  0x4d   : > { %457 = vperm.xlu0 %7228, %v7615_v25  }
  0x54   : > { %482 = vperm.xlu2 %7230, %v7621_v26   ;;  %477 = vperm.xlu1 %7229, %v7624_v27  }
  0x55   : > { %472 = vperm.xlu0 %7228, %v7627_v28  }
  0x5c   : > { %497 = vperm.xlu2 %7230, %v7633_v29   ;;  %492 = vperm.xlu1 %7229, %v7636_v30  }
  0x5d   : > { %487 = vperm.xlu0 %7228, %v7639_v31  }
  0x64   : > { %512 = vperm.xlu2 %7230, %v7645_v32   ;;  %507 = vperm.xlu1 %7229, %v7648_v33  }
  0x65   : > { %502 = vperm.xlu0 %7228, %v7651_v34  }
  0x6c   : > { %527 = vperm.xlu2 %7230, %v7657_v35   ;;  %522 = vperm.xlu1 %7229, %v7660_v36  }
  0x6d   : > { %517 = vperm.xlu0 %7228, %v7663_v37  }
  0x6e   : > { %v7668_v38 = vpop.permute.xlu2 %372 }
  0x6f   : > { %10207 = vst [vmem:[#allocation3_spill] sm:$0xff] %v7668_v38 }
  0x74   : > { %542 = vperm.xlu2 %7230, %v7671_v39   ;;  %537 = vperm.xlu1 %7229, %v7674_v40  }
  0x75   : > { %532 = vperm.xlu0 %7228, %v7677_v41  }
  0x76   : > { %v7682_v42 = vpop.permute.xlu2 %377 }
  0x77   : > { %10208 = vst [vmem:[#allocation4_spill] sm:$0xff] %v7682_v42 }
  0x7c   : > { %557 = vperm.xlu2 %7230, %v7685_v43   ;;  %552 = vperm.xlu1 %7229, %v7688_v44  }
  0x7d   : > { %547 = vperm.xlu0 %7228, %v7691_v45  }
  0x7e   : > { %v7696_v46 = vpop.permute.xlu2 %392 }
  0x7f   : > { %10209 = vst [vmem:[#allocation5_spill] sm:$0xff] %v7696_v46  ;;  %v340_v46 = vld [vmem:[%s7522_s8 + $0x1c0] sm:$0xff] }
  0x84   : > { %572 = vperm.xlu2 %7230, %v7699_v47   ;;  %567 = vperm.xlu1 %7229, %v7702_v48  }
  0x85   : > { %562 = vperm.xlu0 %7228, %v7705_v49  }
  0x86   : > { %v7710_v50 = vpop.permute.xlu2 %407  ;;  %v7712_v51 = vpop.permute.xlu1 %362 }
  0x87   : > { %10210 = vst [vmem:[#allocation6_spill] sm:$0xff] %v7710_v50  ;;  %v7714_v52 = vpop.permute.xlu0 %352 }
  0x8c   : > { %587 = vperm.xlu2 %7230, %v331_v53   ;;  %582 = vperm.xlu1 %7229, %v7718_v54   ;;  %v7748_v53 = vld [vmem:[%s7522_s8 + $0x1a0] sm:$0xff] }
  0x8d   : > { %577 = vperm.xlu0 %7228, %v7721_v55   ;;  %10216 = vst [vmem:[#allocation12_spill] sm:$0xff] %v7748_v53 }
  0x8e   : > { %v7725_v56 = vpop.permute.xlu2 %422  ;;  %v7727_v57 = vpop.permute.xlu1 %367 }
  0x8f   : > { %10211 = vst [vmem:[#allocation7_spill] sm:$0xff] %v7725_v56  ;;  %v7729_v58 = vpop.permute.xlu0 %357  ;;  %v7751_v56 = vld [vmem:[%s7522_s8 + $0x198] sm:$0xff] }
  0x90   : > { %10217 = vst [vmem:[#allocation13_spill] sm:$0xff] %v7751_v56 }
  0x94   : > { %602 = vperm.xlu2 %7230, %v334_v59   ;;  %597 = vperm.xlu1 %7229, %v7733_v60  }
  0x95   : > { %592 = vperm.xlu0 %7228, %v7736_v61   ;;  %v342_v61 = vld [vmem:[%s7522_s8 + $0x1d0] sm:$0xff] }
  0x96   : > { %v7740_v62 = vpop.permute.xlu2 %437  ;;  %v7742_v63 = vpop.permute.xlu1 %387 }
  0x97   : > { %10213 = vst [vmem:[#allocation9_spill] sm:$0xff] %v7740_v62  ;;  %v7744_v0 = vpop.permute.xlu0 %382 }
  0x98   : > { %10214 = vst [vmem:[#allocation10_spill] sm:$0xff] %v7742_v63  ;;  %v338_v63 = vld [vmem:[%s7522_s8 + $0x1b0] sm:$0xff] }
  0x99   : > { %10215 = vst [vmem:[#allocation11_spill] sm:$0xff] %v7744_v0  ;;  %v7763_v0 = vld [vmem:[%s7522_s8 + $0x1b8] sm:$0xff] }
  0x9a   : > { %10221 = vst [vmem:[#allocation17_spill] sm:$0xff] %v7763_v0 }
  0x9c   : > { %617 = vperm.xlu2 %7230, %v337_v1   ;;  %612 = vperm.xlu1 %7229, %v7748_v53  }
  0x9d   : > { %607 = vperm.xlu0 %7228, %v7751_v56  }
  0x9e   : > { %v7755_v59 = vpop.permute.xlu2 %452  ;;  %v7757_v62 = vpop.permute.xlu1 %402 }
  0x9f   : > { %10218 = vst [vmem:[#allocation14_spill] sm:$0xff] %v7755_v59  ;;  %v7759_v50 = vpop.permute.xlu0 %397 }
  0xa0   : > { %10219 = vst [vmem:[#allocation15_spill] sm:$0xff] %v7757_v62  ;;  %v343_v62 = vld [vmem:[%s7522_s8 + $0x1d8] sm:$0xff] }
  0xa1   : > { %10220 = vst [vmem:[#allocation16_spill] sm:$0xff] %v7759_v50  ;;  %v341_v50 = vld [vmem:[%s7522_s8 + $0x1c8] sm:$0xff] }
  0xa4   : > { %632 = vperm.xlu2 %7230, %v340_v46   ;;  %627 = vperm.xlu1 %7229, %v7763_v0   ;;  %v345_v0 = vld [vmem:[%s7522_s8 + $0x1e8] sm:$0xff] }
  0xa5   : > { %622 = vperm.xlu0 %7228, %v338_v63   ;;  %v346_v63 = vld [vmem:[%s7522_s8 + $0x1f0] sm:$0xff] }
  0xa6   : > { %v7767_v1 = vpop.permute.xlu2 %467  ;;  %v7769_v56 = vpop.permute.xlu1 %417 }
  0xa7   : > { %10222 = vst [vmem:[#allocation18_spill] sm:$0xff] %v7767_v1  ;;  %v7771_v59 = vpop.permute.xlu0 %412  ;;  %v344_v1 = vld [vmem:[%s7522_s8 + $0x1e0] sm:$0xff] }
  0xa8   : > { %10223 = vst [vmem:[#allocation19_spill] sm:$0xff] %v7769_v56 }
  0xa9   : > { %10224 = vst [vmem:[#allocation20_spill] sm:$0xff] %v7771_v59 }
  0xac   : > { %647 = vperm.xlu2 %7230, %v343_v62   ;;  %642 = vperm.xlu1 %7229, %v342_v61   ;;  %v347_v61 = vld [vmem:[%s7522_s8 + $0x1f8] sm:$0xff] }
  0xad   : > { %637 = vperm.xlu0 %7228, %v341_v50   ;;  %v10199_v50 = vmov 1  }
  0xae   : > { %v7776_v38 = vpop.permute.xlu2 %482  ;;  %v7778_v46 = vpop.permute.xlu1 %432 }
  0xaf   : > { %10225 = vst [vmem:[#allocation21_spill] sm:$0xff] %v7776_v38  ;;  %v7780_v42 = vpop.permute.xlu0 %427 }
  0xb0   : > { %10226 = vst [vmem:[#allocation22_spill] sm:$0xff] %v7778_v46 }
  0xb1   : > { %10227 = vst [vmem:[#allocation23_spill] sm:$0xff] %v7780_v42 }
  0xb4   : > { %662 = vperm.xlu2 %7230, %v346_v63   ;;  %657 = vperm.xlu1 %7229, %v345_v0   ;;  %v10201_v63 = vmov 3  }
  0xb5   : > { %652 = vperm.xlu0 %7228, %v344_v1  }
  0xb6   : > { %v7785_v56 = vpop.permute.xlu2 %497  ;;  %v7787_v59 = vpop.permute.xlu1 %447 }
  0xb7   : > { %10228 = vst [vmem:[#allocation24_spill] sm:$0xff] %v7785_v56  ;;  %v7789_v53 = vpop.permute.xlu0 %442 }
  0xb8   : > { %10229 = vst [vmem:[#allocation25_spill] sm:$0xff] %v7787_v59 }
  0xb9   : > { %10230 = vst [vmem:[#allocation26_spill] sm:$0xff] %v7789_v53  ;;  %v10203_v53 = vmov 2  }
  0xbc   : > { %7232 = vset.pattern.permute.xlu2 %v10199_v50  ;;  %7231 = vset.pattern.permute.xlu1 %v10199_v50 }
  0xbd   : > { %667 = vperm.xlu0 %7228, %v347_v61   ;;  %808 = vperm.xlu2 %7232, %v7543_v7  }
  0xbe   : > { %804 = vperm.xlu1 %7231, %v7531_v4   ;;  %v7796_v62 = vpop.permute.xlu2 %512  ;;  %v7798_v0 = vpop.permute.xlu1 %462 }
  0xbf   : > { %10231 = vst [vmem:[#allocation27_spill] sm:$0xff] %v7798_v0  ;;  %v7800_v1 = vpop.permute.xlu0 %457 }
  0xc0   : > { %10232 = vst [vmem:[#allocation28_spill] sm:$0xff] %v7800_v1 }
  0xc5   : > { %7240 = vset.pattern.permute.xlu0 %v10201_v63  ;;  %820 = vperm.xlu2 %7232, %v7525_v2  }
  0xc6   : > { %816 = vperm.xlu1 %7231, %v7540_v6   ;;  %1588 = vperm.xlu0 %7240, %v7540_v6   ;;  %v7806_v61 = vpop.permute.xlu2 %527  ;;  %v7808_v50 = vpop.permute.xlu1 %477 }
  0xc7   : > { %10233 = vst [vmem:[#allocation29_spill] sm:$0xff] %v7808_v50  ;;  %v7810_v56 = vpop.permute.xlu0 %472 }
  0xc8   : > { %10234 = vst [vmem:[#allocation30_spill] sm:$0xff] %v7810_v56 }
  0xcd   : > { %828 = vperm.xlu2 %7232, %v7555_v10  }
  0xce   : > { %824 = vperm.xlu1 %7231, %v7537_v5   ;;  %1708 = vperm.xlu0 %7240, %v7663_v37   ;;  %v7815_v38 = vpop.permute.xlu2 %542  ;;  %v7817_v63 = vpop.permute.xlu1 %492 }
  0xcf   : > { %10235 = vst [vmem:[#allocation31_spill] sm:$0xff] %v7815_v38  ;;  %v7819_v0 = vpop.permute.xlu0 %487 }
  0xd0   : > { %10236 = vst [vmem:[#allocation32_spill] sm:$0xff] %v7817_v63 }
  0xd1   : > { %10237 = vst [vmem:[#allocation33_spill] sm:$0xff] %v7819_v0 }
  0xd5   : > { %840 = vperm.xlu2 %7232, %v7567_v13  }
  0xd6   : > { %836 = vperm.xlu1 %7231, %v7549_v8   ;;  %1604 = vperm.xlu0 %7240, %v7552_v9   ;;  %v7824_v50 = vpop.permute.xlu2 %557  ;;  %v7826_v56 = vpop.permute.xlu1 %507 }
  0xd7   : > { %10238 = vst [vmem:[#allocation34_spill] sm:$0xff] %v7824_v50  ;;  %v7828_v1 = vpop.permute.xlu0 %502  ;;  %v10277_v50 = vmov 1  }
  0xd8   : > { %10239 = vst [vmem:[#allocation35_spill] sm:$0xff] %v7826_v56 }
  0xd9   : > { %10240 = vst [vmem:[#allocation36_spill] sm:$0xff] %v7828_v1 }
  0xdd   : > { %852 = vperm.xlu2 %7232, %v7579_v16  }
  0xde   : > { %848 = vperm.xlu1 %7231, %v7561_v11   ;;  %7252 = vset.pattern.permute.xlu0 %v10203_v53  ;;  %v7833_v63 = vpop.permute.xlu2 %572  ;;  %v7835_v0 = vpop.permute.xlu1 %522 }
  0xdf   : > { %10241 = vst [vmem:[#allocation37_spill] sm:$0xff] %v7833_v63  ;;  %1194 = vperm.xlu0 %7252, %v7543_v7   ;;  %v7838_v59 = vpop.permute.xlu0 %517 }
  0xe5   : > { %864 = vperm.xlu2 %7232, %v7591_v19  }
  0xe6   : > { %860 = vperm.xlu1 %7231, %v7573_v14   ;;  %v7842_v56 = vpop.permute.xlu2 %587  ;;  %v7844_v1 = vpop.permute.xlu1 %537 }
  0xe7   : > { %10242 = vst [vmem:[#allocation38_spill] sm:$0xff] %v7842_v56  ;;  %1198 = vperm.xlu0 %7252, %v7528_v3   ;;  %v7847_v46 = vpop.permute.xlu0 %532 }
  0xe8   : > { %10243 = vst [vmem:[#allocation39_spill] sm:$0xff] %v7844_v1 }
  0xe9   : > { %10244 = vst [vmem:[#allocation40_spill] sm:$0xff] %v7847_v46 }
  0xed   : > { %876 = vperm.xlu2 %7232, %v7603_v22  }
  0xee   : > { %872 = vperm.xlu1 %7231, %v7585_v17   ;;  %v7851_v53 = vpop.permute.xlu2 %602  ;;  %v7853_v63 = vpop.permute.xlu1 %552 }
  0xef   : > { %10245 = vst [vmem:[#allocation41_spill] sm:$0xff] %v7851_v53  ;;  %1318 = vperm.xlu0 %7252, %v7645_v32   ;;  %v7856_v19 = vpop.permute.xlu0 %547 }
  0xf0   : > { %10246 = vst [vmem:[#allocation42_spill] sm:$0xff] %v7853_v63 }
  0xf1   : > { %10247 = vst [vmem:[#allocation43_spill] sm:$0xff] %v7856_v19 }
  0xf5   : > { %888 = vperm.xlu2 %7232, %v7615_v25  }
  0xf6   : > { %884 = vperm.xlu1 %7231, %v7597_v20   ;;  %v7860_v14 = vpop.permute.xlu2 %617  ;;  %v7862_v56 = vpop.permute.xlu1 %567 }
  0xf7   : > { %10248 = vst [vmem:[#allocation44_spill] sm:$0xff] %v7860_v14  ;;  %1214 = vperm.xlu0 %7252, %v7555_v10   ;;  %v7865_v22 = vpop.permute.xlu0 %562 }
  0xf8   : > { %10249 = vst [vmem:[#allocation45_spill] sm:$0xff] %v7862_v56 }
  0xf9   : > { %10250 = vst [vmem:[#allocation46_spill] sm:$0xff] %v7865_v22  ;;  %v10272_v22 = vmov 4  }
  0xfd   : > { %900 = vperm.xlu2 %7232, %v7627_v28  }
  0xfe   : > { %896 = vperm.xlu1 %7231, %v7609_v23   ;;  %v7869_v53 = vpop.permute.xlu2 %632  ;;  %v7871_v42 = vpop.permute.xlu1 %582 }
  0xff   : > { %10251 = vst [vmem:[#allocation47_spill] sm:$0xff] %v7869_v53  ;;  %1338 = vperm.xlu0 %7252, %v7674_v40   ;;  %v7874_v25 = vpop.permute.xlu0 %577 }
 0x100   : > { %10252 = vst [vmem:[#allocation48_spill] sm:$0xff] %v7871_v42  ;;  %v10270_v42 = vmov 3  }
 0x101   : > { %10253 = vst [vmem:[#allocation49_spill] sm:$0xff] %v7874_v25 }
 0x105   : > { %912 = vperm.xlu2 %7232, %v7639_v31  }
 0x106   : > { %908 = vperm.xlu1 %7231, %v7621_v26   ;;  %v7878_v20 = vpop.permute.xlu2 %647  ;;  %v7880_v14 = vpop.permute.xlu1 %597 }
 0x107   : > { %10254 = vst [vmem:[#allocation50_spill] sm:$0xff] %v7878_v20  ;;  %1234 = vperm.xlu0 %7252, %v7561_v11   ;;  %v7883_v28 = vpop.permute.xlu0 %592  ;;  %v10205_v20 = vmov 4  }
 0x108   : > { %10255 = vst [vmem:[#allocation51_spill] sm:$0xff] %v7880_v14 }
 0x109   : > { %10256 = vst [vmem:[#allocation52_spill] sm:$0xff] %v7883_v28  ;;  %v10268_v28 = vmov 2  }
 0x10d   : > { %924 = vperm.xlu2 %7232, %v7651_v34  }
 0x10e   : > { %920 = vperm.xlu1 %7231, %v7633_v29   ;;  %v7887_v23 = vpop.permute.xlu2 %662  ;;  %v7889_v53 = vpop.permute.xlu1 %612 }
 0x10f   : > { %10257 = vst [vmem:[#allocation53_spill] sm:$0xff] %v7887_v23  ;;  %1358 = vperm.xlu0 %7252, %v7705_v49   ;;  %v7892_v31 = vpop.permute.xlu0 %607 }
 0x110   : > { %10258 = vst [vmem:[#allocation54_spill] sm:$0xff] %v7889_v53 }
 0x111   : > { %10259 = vst [vmem:[#allocation55_spill] sm:$0xff] %v7892_v31 }
 0x115   : > { %936 = vperm.xlu2 %7232, %v7663_v37  }
 0x116   : > { %932 = vperm.xlu1 %7231, %v7645_v32   ;;  %v7896_v26 = vpop.permute.xlu1 %627 }
 0x117   : > { %10260 = vst [vmem:[#allocation56_spill] sm:$0xff] %v7896_v26  ;;  %7276 = vset.pattern.permute.xlu0 %v10205_v20  ;;  %v7899_v34 = vpop.permute.xlu2 %808  ;;  %v7901_v29 = vpop.permute.xlu0 %622 }
 0x118   : > { %10261 = vst [vmem:[#allocation57_spill] sm:$0xff] %v7901_v29  ;;  %2098 = vperm.xlu0 %7276, %v7660_v36  }
 0x11d   : > { %948 = vperm.xlu2 %7232, %v7677_v41  }
 0x11e   : > { %944 = vperm.xlu1 %7231, %v7657_v35   ;;  %v7906_v23 = vpop.permute.xlu1 %642 }
 0x11f   : > { %10262 = vst [vmem:[#allocation58_spill] sm:$0xff] %v7906_v23  ;;  %v7908_v53 = vpop.permute.xlu2 %820  ;;  %v7910_v31 = vpop.permute.xlu0 %637 }
 0x120   : > { %10263 = vst [vmem:[#allocation59_spill] sm:$0xff] %v7910_v31  ;;  %1994 = vperm.xlu0 %7276, %v7549_v8  }
 0x125   : > { %960 = vperm.xlu2 %7232, %v7691_v45  }
 0x126   : > { %956 = vperm.xlu1 %7231, %v7671_v39   ;;  %v7915_v20 = vpop.permute.xlu1 %657 }
 0x127   : > { %10264 = vst [vmem:[#allocation60_spill] sm:$0xff] %v7915_v20  ;;  %v7917_v29 = vpop.permute.xlu2 %828  ;;  %v7919_v26 = vpop.permute.xlu0 %652 }
 0x128   : > { %10265 = vst [vmem:[#allocation61_spill] sm:$0xff] %v7919_v26  ;;  %2118 = vperm.xlu0 %7276, %v7691_v45  }
 0x12d   : > { %972 = vperm.xlu2 %7232, %v7705_v49  }
 0x12e   : > { %968 = vperm.xlu1 %7231, %v7685_v43  }
 0x12f   : > { %v7924_v23 = vpop.permute.xlu2 %840  ;;  %v7926_v31 = vpop.permute.xlu0 %667 }
 0x130   : > { %10266 = vst [vmem:[#allocation62_spill] sm:$0xff] %v7924_v23  ;;  %v7928_v14 = vpop.permute.xlu1 %804  ;;  %2014 = vperm.xlu0 %7276, %v7576_v15  }
 0x131   : > { %10267 = vst [vmem:[#allocation63_spill] sm:$0xff] %v7926_v31 }
 0x135   : > { %7233 = vset.pattern.permute.xlu2 %v10268_v28 }
 0x136   : > { %980 = vperm.xlu1 %7231, %v7699_v47   ;;  %1190 = vperm.xlu2 %7233, %v7531_v4  }
 0x137   : > { %v7934_v20 = vpop.permute.xlu2 %852 }
 0x138   : > { %10269 = vst [vmem:[#allocation64_spill] sm:$0xff] %v7934_v20  ;;  %v7936_v26 = vpop.permute.xlu1 %816  ;;  %2030 = vperm.xlu0 %7276, %v7585_v17   ;;  %v7939_v49 = vpop.permute.xlu0 %1588 }
 0x13e   : > { %7234 = vset.pattern.permute.xlu1 %v10270_v42  ;;  %7235 = vset.pattern.permute.xlu2 %v10270_v42 }
 0x13f   : > { %1576 = vperm.xlu1 %7234, %v7531_v4   ;;  %v7944_v31 = vpop.permute.xlu2 %864  ;;  %1580 = vperm.xlu2 %7235, %v7543_v7  }
 0x140   : > { %10271 = vst [vmem:[#allocation65_spill] sm:$0xff] %v7944_v31  ;;  %v7947_v47 = vpop.permute.xlu1 %824  ;;  %2146 = vperm.xlu0 %7276, %v7718_v54   ;;  %v7950_v25 = vpop.permute.xlu0 %1708 }
 0x147   : > { %7236 = vset.pattern.permute.xlu1 %v10272_v22  ;;  %v7953_v17 = vpop.permute.xlu2 %876  ;;  %7237 = vset.pattern.permute.xlu2 %v10272_v22 }
 0x148   : > { %10273 = vst [vmem:[#allocation66_spill] sm:$0xff] %v7953_v17  ;;  %1962 = vperm.xlu1 %7236, %v7531_v4   ;;  %v7957_v56 = vpop.permute.xlu1 %836  ;;  %2158 = vperm.xlu0 %7276, %v7733_v60   ;;  %v7960_v31 = vpop.permute.xlu0 %1604 }
 0x149   : > { %10274 = vst [vmem:[#allocation67_spill] sm:$0xff] %v7957_v56  ;;  %1966 = vperm.xlu2 %7237, %v7543_v7  }
 0x14f   : > { %v7963_v63 = vpop.permute.xlu2 %888 }
 0x150   : > { %10275 = vst [vmem:[#allocation68_spill] sm:$0xff] %v7963_v63  ;;  %7238 = vset.pattern.permute.xlu1 %v10268_v28  ;;  %v7966_v54 = vpop.permute.xlu1 %848  ;;  %7303 = vset.pattern.permute.xlu0 %v10277_v50 }
 0x151   : > { %10276 = vst [vmem:[#allocation69_spill] sm:$0xff] %v7966_v54  ;;  %7239 = vset.pattern.permute.xlu2 %v10270_v42  ;;  %1202 = vperm.xlu1 %7238, %v7540_v6   ;;  %v7971_v4 = vpop.permute.xlu0 %1194 }
 0x152   : > { %812 = vperm.xlu0 %7303, %v7528_v3   ;;  %1584 = vperm.xlu2 %7239, %v7528_v3  }
 0x157   : > { %v7975_v60 = vpop.permute.xlu2 %900 }
 0x158   : > { %10278 = vst [vmem:[#allocation70_spill] sm:$0xff] %v7975_v60  ;;  %v7977_v7 = vpop.permute.xlu1 %860 }
 0x159   : > { %10279 = vst [vmem:[#allocation71_spill] sm:$0xff] %v7977_v7  ;;  %7241 = vset.pattern.permute.xlu1 %v10272_v22  ;;  %v7980_v63 = vpop.permute.xlu0 %1198 }
 0x15a   : > { %832 = vperm.xlu0 %7303, %v7552_v9   ;;  %7242 = vset.pattern.permute.xlu2 %v10272_v22 }
 0x15b   : > { %1970 = vperm.xlu1 %7241, %v7528_v3   ;;  %1974 = vperm.xlu2 %7242, %v7540_v6  }
 0x15f   : > { %v7986_v17 = vpop.permute.xlu2 %912 }
 0x160   : > { %10280 = vst [vmem:[#allocation72_spill] sm:$0xff] %v7986_v17  ;;  %v7988_v50 = vpop.permute.xlu1 %872 }
 0x161   : > { %10281 = vst [vmem:[#allocation73_spill] sm:$0xff] %v7988_v50  ;;  %v7990_v20 = vpop.permute.xlu0 %1318 }
 0x162   : > { %844 = vperm.xlu0 %7303, %v7564_v12  }
 0x163   : > { %7243 = vset.pattern.permute.xlu1 %v10268_v28  ;;  %7244 = vset.pattern.permute.xlu2 %v10268_v28 }
 0x164   : > { %1206 = vperm.xlu1 %7243, %v7525_v2   ;;  %1210 = vperm.xlu2 %7244, %v7537_v5  }
 0x167   : > { %v7997_v60 = vpop.permute.xlu2 %924 }
 0x168   : > { %10282 = vst [vmem:[#allocation74_spill] sm:$0xff] %v7997_v60  ;;  %v7999_v3 = vpop.permute.xlu1 %884 }
 0x169   : > { %10283 = vst [vmem:[#allocation75_spill] sm:$0xff] %v7999_v3  ;;  %v8001_v6 = vpop.permute.xlu0 %1214 }
 0x16a   : > { %856 = vperm.xlu0 %7303, %v7576_v15  }
 0x16c   : > { %1322 = vperm.xlu1 %7243, %v7663_v37   ;;  %7245 = vset.pattern.permute.xlu2 %v10270_v42 }
 0x16d   : > { %1592 = vperm.xlu2 %7245, %v7525_v2  }
 0x16f   : > { %v8007_v17 = vpop.permute.xlu2 %936 }
 0x170   : > { %v8009_v50 = vpop.permute.xlu1 %896 }
 0x171   : > { %10284 = vst [vmem:[#allocation76_spill] sm:$0xff] %v8009_v50  ;;  %v8011_v7 = vpop.permute.xlu0 %1338 }
 0x172   : > { %10285 = vst [vmem:[#allocation77_spill] sm:$0xff] %v8011_v7  ;;  %868 = vperm.xlu0 %7303, %v7588_v18  }
 0x174   : > { %7246 = vset.pattern.permute.xlu1 %v10270_v42 }
 0x175   : > { %1596 = vperm.xlu1 %7246, %v7537_v5   ;;  %1704 = vperm.xlu2 %7245, %v7645_v32  }
 0x177   : > { %v8017_v15 = vpop.permute.xlu2 %948 }
 0x178   : > { %10286 = vst [vmem:[#allocation78_spill] sm:$0xff] %v8017_v15  ;;  %v8019_v60 = vpop.permute.xlu1 %908 }
 0x179   : > { %10287 = vst [vmem:[#allocation79_spill] sm:$0xff] %v8019_v60  ;;  %v8021_v3 = vpop.permute.xlu0 %1234  ;;  %v7158_v60 = vld [vmem:[%s10190_s3 + $0x38] sm:$0xff] }
 0x17a   : > { %10288 = vst [vmem:[#allocation80_spill] sm:$0xff] %v8021_v3  ;;  %880 = vperm.xlu0 %7303, %v7600_v21   ;;  %2506 = vmatpush.bf16.msra.mxu0 %v7158_v60  ;;  %v7151_v3 = vld [vmem:[%s10190_s3] sm:$0xff] }
 0x17b   : > { %7199 = vmatpush.bf16.msra.mxu2 %v7158_v60 }
 0x17d   : > { %7247 = vset.pattern.permute.xlu1 %v10272_v22  ;;  %7248 = vset.pattern.permute.xlu2 %v10272_v22 }
 0x17e   : > { %1978 = vperm.xlu1 %7247, %v7525_v2   ;;  %1982 = vperm.xlu2 %7248, %v7537_v5   ;;  %v7157_v5 = vld [vmem:[%s10190_s3 + $0x30] sm:$0xff] }
 0x17f   : > { %v8028_v50 = vpop.permute.xlu2 %960  ;;  %2507 = vmatpush.bf16.msra.mxu0 %v7157_v5  ;;  %7200 = vmatpush.bf16.msra.mxu2 %v7157_v5 }
 0x180   : > { %10289 = vst [vmem:[#allocation81_spill] sm:$0xff] %v8028_v50  ;;  %v8030_v54 = vpop.permute.xlu1 %920 }
 0x181   : > { %10290 = vst [vmem:[#allocation82_spill] sm:$0xff] %v8030_v54  ;;  %v8032_v19 = vpop.permute.xlu0 %1358 }
 0x182   : > { %10291 = vst [vmem:[#allocation83_spill] sm:$0xff] %v8032_v19  ;;  %892 = vperm.xlu0 %7303, %v7612_v24   ;;  %v7153_v19 = vld [vmem:[%s10190_s3 + $0x10] sm:$0xff] }
 0x186   : > { %2090 = vperm.xlu1 %7247, %v7645_v32   ;;  %2094 = vperm.xlu2 %7248, %v7663_v37   ;;  %v7156_v32 = vld [vmem:[%s10190_s3 + $0x28] sm:$0xff]  ;;  %v7155_v37 = vld [vmem:[%s10190_s3 + $0x20] sm:$0xff] }
 0x187   : > { %v8040_v2 = vpop.permute.xlu2 %972  ;;  %2508 = vmatpush.bf16.msra.mxu0 %v7156_v32  ;;  %7201 = vmatpush.bf16.msra.mxu2 %v7156_v32  ;;  %v7154_v32 = vld [vmem:[%s10190_s3 + $0x18] sm:$0xff] }
 0x188   : > { %10292 = vst [vmem:[#allocation84_spill] sm:$0xff] %v8040_v2  ;;  %v8045_v54 = vpop.permute.xlu1 %932 }
 0x18a   : > { %904 = vperm.xlu0 %7303, %v7624_v27   ;;  %v8048_v24 = vpop.permute.xlu0 %2098 }
 0x18b   : > { %10293 = vst [vmem:[#allocation85_spill] sm:$0xff] %v8048_v24  ;;  %2509 = vmatpush.bf16.msra.mxu0 %v7155_v37  ;;  %7202 = vmatpush.bf16.msra.mxu2 %v7155_v37 }
 0x18e   : > { %7249 = vset.pattern.permute.xlu1 %v10268_v28  ;;  %7250 = vset.pattern.permute.xlu2 %v10268_v28 }
 0x18f   : > { %1218 = vperm.xlu1 %7249, %v7552_v9   ;;  %1326 = vperm.xlu2 %7250, %v7660_v36  }
 0x190   : > { %v8060_v27 = vpop.permute.xlu1 %944  ;;  %v1191_v60 = vpop.permute.xlu2 %1190  ;;  %2510 = vmatpush.bf16.msra.mxu0 %v7154_v32  ;;  %7203 = vmatpush.bf16.msra.mxu2 %v7154_v32  ;;  %v7152_v32 = vld [vmem:[%s10190_s3 + $0x8] sm:$0xff] }
 0x192   : > { %916 = vperm.xlu0 %7303, %v7636_v30   ;;  %v8063_v5 = vpop.permute.xlu0 %1994 }
 0x193   : > { %10294 = vst [vmem:[#allocation86_spill] sm:$0xff] %v8063_v5 }
 0x194   : > { %2511 = vmatpush.bf16.msra.mxu0 %v7153_v19  ;;  %7204 = vmatpush.bf16.msra.mxu2 %v7153_v19 }
 0x197   : > { %1330 = vperm.xlu1 %7249, %v7657_v35   ;;  %7251 = vset.pattern.permute.xlu2 %v10270_v42 }
 0x198   : > { %1600 = vperm.xlu2 %7251, %v7555_v10   ;;  %v8074_v37 = vpop.permute.xlu1 %956  ;;  %2512 = vmatpush.bf16.msra.mxu0 %v7152_v32 }
 0x199   : > { %10295 = vst [vmem:[#allocation87_spill] sm:$0xff] %v8074_v37  ;;  %v1581_v30 = vpop.permute.xlu2 %1580  ;;  %7205 = vmatpush.bf16.msra.mxu2 %v7152_v32  ;;  %v8134_v37 = vld [vmem:[%s10188_s1 + $0x3] ss:$0 sm:$0xff] }
 0x19a   : > { %928 = vperm.xlu0 %7303, %v7648_v33   ;;  %v8077_v2 = vpop.permute.xlu0 %2118  ;;  %v1833_v1 = vmul.f32 %v8134_v37, %v1581_v30 }
 0x19b   : > { %10296 = vst [vmem:[#allocation88_spill] sm:$0xff] %v8077_v2 }
 0x19c   : > { %2513 = vmatpush.bf16.msra.mxu0 %v7151_v3 }
 0x19d   : > { %7206 = vmatpush.bf16.msra.mxu2 %v7151_v3 }
 0x19f   : > { %7253 = vset.pattern.permute.xlu1 %v10270_v42 }
 0x1a0   : > { %1712 = vperm.xlu1 %7253, %v7660_v36   ;;  %1716 = vperm.xlu2 %7251, %v7657_v35   ;;  %v8088_v33 = vpop.permute.xlu1 %968 }
 0x1a1   : > { %10297 = vst [vmem:[#allocation89_spill] sm:$0xff] %v8088_v33 }
 0x1a2   : > { %940 = vperm.xlu0 %7303, %v7660_v36   ;;  %v8091_v19 = vpop.permute.xlu0 %2014  ;;  %v8105_v36 = vld [vmem:[%s10188_s1] ss:$0 sm:$0xff] }
 0x1a3   : > { %10298 = vst [vmem:[#allocation90_spill] sm:$0xff] %v8091_v19  ;;  %v1967_v2 = vpop.permute.xlu2 %1966  ;;  %v672_v19 = vmul.f32 %v8105_v36, %v7729_v58 }
 0x1a8   : > { %7254 = vset.pattern.permute.xlu1 %v10272_v22  ;;  %7255 = vset.pattern.permute.xlu2 %v10272_v22  ;;  %v8095_v32 = vpop.permute.xlu1 %980 }
 0x1a9   : > { %10299 = vst [vmem:[#allocation91_spill] sm:$0xff] %v8095_v32  ;;  %1986 = vperm.xlu1 %7254, %v7555_v10   ;;  %1990 = vperm.xlu2 %7255, %v7552_v9   ;;  %v8114_v10 = vld [vmem:[%s10189_s2] ss:$0 sm:$0xff]  ;;  %v671_v9 = vmul.f32 %v8105_v36, %v7714_v52  ;;  %v8121_v32 = vld [vmem:[%s10188_s1 + $0x1] ss:$0 sm:$0xff] }
 0x1aa   : > { %952 = vperm.xlu0 %7303, %v7674_v40   ;;  %v8100_v33 = vpop.permute.xlu0 %2030  ;;  %v739_v58 = vadd.f32 %v8114_v10, %v672_v19  ;;  %v1061_v50 = vmul.f32 %v8121_v32, %v7899_v34  ;;  %v1060_v34 = vmul.f32 %v8121_v32, %v7928_v14 }
 0x1ab   : > { %10300 = vst [vmem:[#allocation92_spill] sm:$0xff] %v8100_v33  ;;  %v8126_v33 = vld [vmem:[%s10188_s1 + $0x2] ss:$0 sm:$0xff]  ;;  %v738_v19 = vadd.f32 %v8114_v10, %v671_v9 }
 0x1ac   : > { %v8107_v3 = vpop.permute.xlu2 %1584  ;;  %v1447_v7 = vmul.f32 %v8126_v33, %v7971_v4  ;;  %v1125_v5 = vadd.f32 %v1061_v50, %v739_v58  ;;  %v1446_v15 = vmul.f32 %v8126_v33, %v1191_v60  ;;  %v673_v58 = vmul.f32 %v8105_v36, %v7712_v51 }
 0x1ae   : > { %v1511_v23 = vadd.f32 %v1447_v7, %v1125_v5  ;;  %v1063_v5 = vmul.f32 %v8121_v32, %v7936_v26  ;;  %v740_v51 = vadd.f32 %v8114_v10, %v673_v58 }
 0x1b0   : > { %v1897_v24 = vadd.f32 %v1833_v1, %v1511_v23 }
 0x1b1   : > { %2102 = vperm.xlu1 %7254, %v7657_v35   ;;  %7256 = vset.pattern.permute.xlu2 %v10268_v28  ;;  %v1577_v52 = vpop.permute.xlu1 %1576  ;;  %v8150_v35 = vld [vmem:[%s10188_s1 + $0x4] ss:$0 sm:$0xff] }
 0x1b2   : > { %964 = vperm.xlu0 %7303, %v7688_v44   ;;  %1222 = vperm.xlu2 %7256, %v7549_v8   ;;  %v8140_v38 = vpop.permute.xlu0 %2146  ;;  %v2219_v9 = vmul.f32 %v8150_v35, %v1967_v2  ;;  %v1832_v14 = vmul.f32 %v8134_v37, %v1577_v52 }
 0x1b3   : > { %10301 = vst [vmem:[#allocation93_spill] sm:$0xff] %v8140_v38  ;;  %v1124_v38 = vadd.f32 %v1060_v34, %v738_v19 }
 0x1b4   : > { %v2283_v60 = vadd.f32 %v2219_v9, %v1897_v24  ;;  %v1835_v9 = vmul.f32 %v8134_v37, %v7939_v49 }
 0x1b5   : > { %v1975_v46 = vpop.permute.xlu2 %1974  ;;  %v1510_v56 = vadd.f32 %v1446_v15, %v1124_v38  ;;  %v674_v38 = vmul.f32 %v8105_v36, %v7727_v57 }
 0x1b6   : > { %v2347_v15 = vmax.f32 %v2283_v60, 0.0  ;;  %v1834_v60 = vmul.f32 %v8134_v37, %v8107_v3  ;;  %v10303_v3 = vld [vmem:[#allocation17_spill] sm:$0xff] }
 0x1b7   : > { %v1896_v30 = vadd.f32 %v1832_v14, %v1510_v56  ;;  %v741_v56 = vadd.f32 %v8114_v10, %v674_v38  ;;  %v10302_v38 = vld [vmem:[#allocation12_spill] sm:$0xff] }
 0x1b9   : > { %7257 = vset.pattern.permute.xlu1 %v10268_v28  ;;  %v1127_v52 = vadd.f32 %v1063_v5, %v741_v56 }
 0x1ba   : > { %1226 = vperm.xlu1 %7257, %v7567_v13   ;;  %976 = vperm.xlu0 %7303, %v7702_v48   ;;  %v1963_v50 = vpop.permute.xlu1 %1962  ;;  %v8159_v4 = vpop.permute.xlu0 %2158 }
 0x1bb   : > { %1334 = vperm.xlu2 %7256, %v7677_v41   ;;  %v2218_v7 = vmul.f32 %v8150_v35, %v1963_v50 }
 0x1bd   : > { %v2282_v2 = vadd.f32 %v2218_v7, %v1896_v30  ;;  %v2221_v30 = vmul.f32 %v8150_v35, %v1975_v46 }
 0x1be   : > { %v8165_v1 = vpop.permute.xlu2 %1210 }
 0x1bf   : > { %v2346_v23 = vmax.f32 %v2282_v2, 0.0 }
 0x1c1   : > { %v2410_v24 = vpack.c.bf16 %v2347_v15, %v2346_v23 }
 0x1c2   : > { %7258 = vset.pattern.permute.xlu1 %v10270_v42  ;;  %984 = vperm.xlu0 %7303, %v7721_v55   ;;  %v1448_v55 = vmul.f32 %v8126_v33, %v7980_v63 }
 0x1c3   : > { %7259 = vset.pattern.permute.xlu2 %v10270_v42  ;;  %1608 = vperm.xlu1 %7258, %v7549_v8   ;;  %v1203_v57 = vpop.permute.xlu1 %1202 }
 0x1c4   : > { %1612 = vperm.xlu2 %7259, %v7567_v13   ;;  %v1449_v26 = vmul.f32 %v8126_v33, %v1203_v57  ;;  %2514 = vmatmul.bf16.vlgmr.msra.gmra.mxu0 %v2410_v24  ;;  %v813_v19 = vpop.permute.xlu0 %812 }
 0x1c5   : > { %v1062_v34 = vmul.f32 %v8121_v32, %v813_v19 }
 0x1c6   : > { %v1513_v14 = vadd.f32 %v1449_v26, %v1127_v52 }
 0x1c7   : > { %v1126_v8 = vadd.f32 %v1062_v34, %v740_v51  ;;  %v1593_v50 = vpop.permute.xlu2 %1592 }
 0x1c8   : > { %v1899_v7 = vadd.f32 %v1835_v9, %v1513_v14  ;;  %v10304_v9 = vld [vmem:[#allocation4_spill] sm:$0xff]  ;;  %v10305_v14 = vld [vmem:[#allocation3_spill] sm:$0xff] }
 0x1c9   : > { %v1512_v2 = vadd.f32 %v1448_v55, %v1126_v8  ;;  %v1065_v8 = vmul.f32 %v8121_v32, %v7947_v47 }
 0x1ca   : > { %1012 = vperm.xlu0 %7303, %v10302_v38   ;;  %v2285_v5 = vadd.f32 %v2221_v30, %v1899_v7  ;;  %v704_v30 = vmul.f32 %v8105_v36, %v7838_v59  ;;  %v1451_v7 = vmul.f32 %v8126_v33, %v8165_v1  ;;  %v1093_v59 = vmul.f32 %v8121_v32, %v8007_v17 }
 0x1cb   : > { %1720 = vperm.xlu1 %7258, %v7677_v41   ;;  %v1898_v63 = vadd.f32 %v1834_v60, %v1512_v2  ;;  %v703_v1 = vmul.f32 %v8105_v36, %v7796_v62  ;;  %v1092_v62 = vmul.f32 %v8121_v32, %v8045_v54 }
 0x1cc   : > { %1724 = vperm.xlu2 %7259, %v7674_v40   ;;  %v8190_v49 = vpop.permute.xlu0 %832  ;;  %v2349_v56 = vmax.f32 %v2285_v5, 0.0  ;;  %v771_v5 = vadd.f32 %v8114_v10, %v704_v30 }
 0x1cd   : > { %v1971_v23 = vpop.permute.xlu1 %1970  ;;  %v770_v17 = vadd.f32 %v8114_v10, %v703_v1 }
 0x1ce   : > { %v2220_v15 = vmul.f32 %v8150_v35, %v1971_v23 }
 0x1cf   : > { %v8193_v24 = vpop.permute.xlu2 %1704  ;;  %v1156_v54 = vadd.f32 %v1092_v62, %v770_v17  ;;  %v10307_v62 = vld [vmem:[#allocation13_spill] sm:$0xff] }
 0x1d0   : > { %v2284_v58 = vadd.f32 %v2220_v15, %v1898_v63 }
 0x1d2   : > { %1024 = vperm.xlu0 %7303, %v10303_v3   ;;  %v2348_v46 = vmax.f32 %v2284_v58, 0.0  ;;  %v1836_v3 = vmul.f32 %v8134_v37, %v1593_v50  ;;  %v1865_v50 = vmul.f32 %v8134_v37, %v7950_v25 }
 0x1d3   : > { %7260 = vset.pattern.permute.xlu1 %v10272_v22 }
 0x1d4   : > { %7261 = vset.pattern.permute.xlu2 %v10272_v22  ;;  %1998 = vperm.xlu1 %7260, %v7567_v13   ;;  %v8199_v57 = vpop.permute.xlu0 %844  ;;  %v2411_v52 = vpack.c.bf16 %v2349_v56, %v2348_v46 }
 0x1d5   : > { %2106 = vperm.xlu2 %7261, %v7677_v41   ;;  %v676_v41 = vmul.f32 %v8105_v36, %v10304_v9 }
 0x1d6   : > { %v1207_v26 = vpop.permute.xlu1 %1206  ;;  %2519 = vmatmul.bf16.gmra.mxu0 %v2411_v52 }
 0x1d7   : > { %v743_v60 = vadd.f32 %v8114_v10, %v676_v41  ;;  %v1450_v47 = vmul.f32 %v8126_v33, %v1207_v26 }
 0x1d8   : > { %v1983_v19 = vpop.permute.xlu2 %1982 }
 0x1d9   : > { %v1129_v23 = vadd.f32 %v1065_v8, %v743_v60  ;;  %v2223_v52 = vmul.f32 %v8150_v35, %v1983_v19 }
 0x1da   : > { %7320 = vset.pattern.permute.xlu0 %v10270_v42 }
 0x1db   : > { %1728 = vperm.xlu0 %7320, %v7671_v39  }
 0x1dc   : > { %2110 = vperm.xlu1 %7260, %v7674_v40   ;;  %v8205_v51 = vpop.permute.xlu0 %856  ;;  %v675_v40 = vmul.f32 %v8105_v36, %v10305_v14 }
 0x1dd   : > { %7262 = vset.pattern.permute.xlu2 %v10268_v28 }
 0x1de   : > { %1230 = vperm.xlu2 %7262, %v7564_v12   ;;  %v1323_v13 = vpop.permute.xlu1 %1322  ;;  %v742_v38 = vadd.f32 %v8114_v10, %v675_v40 }
 0x1df   : > { %v1479_v26 = vmul.f32 %v8126_v33, %v1323_v13 }
 0x1e0   : > { %v2095_v34 = vpop.permute.xlu2 %2094 }
 0x1e3   : > { %1624 = vperm.xlu0 %7320, %v7579_v16   ;;  %v1064_v16 = vmul.f32 %v8121_v32, %v7908_v53  ;;  %v1515_v53 = vadd.f32 %v1451_v7, %v1129_v23  ;;  %v7369_v23 = vld [vmem:[%s7522_s8 + $0x50] sm:$0xff] }
 0x1e4   : > { %7263 = vset.pattern.permute.xlu1 %v10268_v28  ;;  %v8213_v55 = vpop.permute.xlu0 %868 }
 0x1e5   : > { %1342 = vperm.xlu1 %7263, %v7671_v39   ;;  %v1128_v58 = vadd.f32 %v1064_v16, %v742_v38  ;;  %v2251_v16 = vmul.f32 %v8150_v35, %v2095_v34 }
 0x1e6   : > { %1346 = vperm.xlu2 %7262, %v7691_v45  }
 0x1e7   : > { %v1597_v2 = vpop.permute.xlu1 %1596  ;;  %v1514_v56 = vadd.f32 %v1450_v47, %v1128_v58 }
 0x1e8   : > { %v1837_v63 = vmul.f32 %v8134_v37, %v1597_v2 }
 0x1e9   : > { %v8231_v15 = vpop.permute.xlu2 %1326  ;;  %v1900_v41 = vadd.f32 %v1836_v3, %v1514_v56  ;;  %v10306_v56 = vld [vmem:[#allocation8_spill] sm:$0xff] }
 0x1ea   : > { %v1901_v9 = vadd.f32 %v1837_v63, %v1515_v53  ;;  %v7370_v53 = vld [vmem:[%s7522_s8 + $0x58] sm:$0xff] }
 0x1eb   : > { %1748 = vperm.xlu0 %7320, %v7702_v48   ;;  %v1157_v48 = vadd.f32 %v1093_v59, %v771_v5 }
 0x1ec   : > { %v8240_v46 = vpop.permute.xlu0 %880  ;;  %v2287_v40 = vadd.f32 %v2223_v52, %v1901_v9  ;;  %v7372_v9 = vld [vmem:[%s7522_s8 + $0x68] sm:$0xff] }
 0x1ed   : > { %7264 = vset.pattern.permute.xlu1 %v10270_v42  ;;  %v1543_v13 = vadd.f32 %v1479_v26, %v1157_v48 }
 0x1ee   : > { %7265 = vset.pattern.permute.xlu2 %v10270_v42  ;;  %1616 = vperm.xlu1 %7264, %v7564_v12   ;;  %v1478_v12 = vmul.f32 %v8126_v33, %v7990_v20  ;;  %v2351_v2 = vmax.f32 %v2287_v40, 0.0 }
 0x1ef   : > { %1620 = vperm.xlu2 %7265, %v7561_v11   ;;  %v1864_v11 = vmul.f32 %v8134_v37, %v8193_v24  ;;  %v1929_v30 = vadd.f32 %v1865_v50, %v1543_v13  ;;  %v1067_v13 = vmul.f32 %v8121_v32, %v8190_v49  ;;  %v1066_v49 = vmul.f32 %v8121_v32, %v7917_v29 }
 0x1f0   : > { %v1979_v19 = vpop.permute.xlu1 %1978  ;;  %v1542_v38 = vadd.f32 %v1478_v12, %v1156_v54  ;;  %v705_v54 = vmul.f32 %v8105_v36, %v7835_v0  ;;  %v1452_v0 = vmul.f32 %v8126_v33, %v8001_v6  ;;  %v7165_v6 = vld [vmem:[%s10190_s3 + $0x70] sm:$0xff] }
 0x1f1   : > { %v2222_v14 = vmul.f32 %v8150_v35, %v1979_v19  ;;  %v2315_v63 = vadd.f32 %v2251_v16, %v1929_v30  ;;  %v7373_v16 = vld [vmem:[%s7522_s8 + $0xd0] sm:$0xff] }
 0x1f2   : > { %v8254_v8 = vpop.permute.xlu2 %1600  ;;  %v1928_v47 = vadd.f32 %v1864_v11, %v1542_v38  ;;  %v772_v29 = vadd.f32 %v8114_v10, %v705_v54 }
 0x1f3   : > { %v2286_v60 = vadd.f32 %v2222_v14, %v1900_v41  ;;  %1640 = vperm.xlu0 %7320, %v7588_v18   ;;  %v2379_v59 = vmax.f32 %v2315_v63, 0.0  ;;  %v10309_v41 = vld [vmem:[#allocation11_spill] sm:$0xff] }
 0x1f4   : > { %v8261_v25 = vpop.permute.xlu0 %892  ;;  %v677_v14 = vmul.f32 %v8105_v36, %v10309_v41  ;;  %v10310_v41 = vld [vmem:[#allocation85_spill] sm:$0xff] }
 0x1f5   : > { %v2350_v7 = vmax.f32 %v2286_v60, 0.0 }
 0x1f6   : > { %1732 = vperm.xlu1 %7264, %v7691_v45   ;;  %v744_v30 = vadd.f32 %v8114_v10, %v677_v14  ;;  %v2252_v14 = vmul.f32 %v8150_v35, %v10310_v41 }
 0x1f7   : > { %7266 = vset.pattern.permute.xlu2 %v10272_v22  ;;  %v2412_v20 = vpack.c.bf16 %v2351_v2, %v2350_v7  ;;  %v7166_v7 = vld [vmem:[%s10190_s3 + $0x78] sm:$0xff] }
 0x1f8   : > { %2002 = vperm.xlu2 %7266, %v7369_v23   ;;  %v2091_v18 = vpop.permute.xlu1 %2090  ;;  %3162 = vmatpush.bf16.msra.mxu1 %v7166_v7  ;;  %v706_v23 = vmul.f32 %v8105_v36, %v7806_v61  ;;  %v1095_v61 = vmul.f32 %v8121_v32, %v8060_v27 }
 0x1f9   : > { %v2250_v24 = vmul.f32 %v8150_v35, %v2091_v18  ;;  %2524 = vmatmul.bf16.gmra.mxu0 %v2412_v20  ;;  %7207 = vmatpush.bf16.msra.mxu3 %v7166_v7  ;;  %v1130_v18 = vadd.f32 %v1066_v49, %v744_v30  ;;  %v7376_v30 = vld [vmem:[%s7522_s8 + $0x148] sm:$0xff] }
 0x1fa   : > { %v8268_v5 = vpop.permute.xlu2 %1716 }
 0x1fb   : > { %v2314_v34 = vadd.f32 %v2250_v24, %v1928_v47  ;;  %1652 = vperm.xlu0 %7320, %v7600_v21   ;;  %v8282_v21 = vld [vmem:[%s7522_s8 + $0x60] sm:$0xff] }
 0x1fc   : > { %v8271_v45 = vpop.permute.xlu0 %904  ;;  %3163 = vmatpush.bf16.msra.mxu1 %v7165_v6 }
 0x1fd   : > { %v2378_v58 = vmax.f32 %v2314_v34, 0.0  ;;  %v1516_v34 = vadd.f32 %v1452_v0, %v1130_v18  ;;  %7208 = vmatpush.bf16.msra.mxu3 %v7165_v6  ;;  %v7160_v6 = vld [vmem:[%s10190_s3 + $0x48] sm:$0xff] }
 0x1fe   : > { %7267 = vset.pattern.permute.xlu1 %v10272_v22 }
 0x1ff   : > { %2006 = vperm.xlu1 %7267, %v7370_v53   ;;  %v2426_v1 = vpack.c.bf16 %v2379_v59, %v2378_v58  ;;  %v7374_v58 = vld [vmem:[%s7522_s8 + $0x140] sm:$0xff]  ;;  %v773_v59 = vadd.f32 %v8114_v10, %v706_v23 }
 0x200   : > { %2114 = vperm.xlu2 %7266, %v7671_v39   ;;  %v10308_v39 = vld [vmem:[#allocation10_spill] sm:$0xff] }
 0x201   : > { %v1219_v3 = vpop.permute.xlu1 %1218  ;;  %2594 = vmatmul.bf16.vlgmr.msra.gmra.mxu2 %v2426_v1  ;;  %v678_v17 = vmul.f32 %v8105_v36, %v10308_v39 }
 0x202   : > { %v1453_v12 = vmul.f32 %v8126_v33, %v1219_v3  ;;  %v7375_v3 = vld [vmem:[%s7522_s8 + $0xe8] sm:$0xff] }
 0x203   : > { %1768 = vperm.xlu0 %7320, %v10306_v56   ;;  %v1991_v52 = vpop.permute.xlu2 %1990  ;;  %v745_v40 = vadd.f32 %v8114_v10, %v678_v17  ;;  %v7164_v56 = vld [vmem:[%s10190_s3 + $0x68] sm:$0xff] }
 0x204   : > { %v8277_v26 = vpop.permute.xlu0 %916  ;;  %v2225_v63 = vmul.f32 %v8150_v35, %v1991_v52  ;;  %3164 = vmatpush.bf16.msra.mxu1 %v7164_v56  ;;  %7209 = vmatpush.bf16.msra.mxu3 %v7164_v56 }
 0x205   : > { %v1131_v60 = vadd.f32 %v1067_v13, %v745_v40  ;;  %v1867_v40 = vmul.f32 %v8134_v37, %v8268_v5  ;;  %v7162_v5 = vld [vmem:[%s10190_s3 + $0x58] sm:$0xff] }
 0x207   : > { %7268 = vset.pattern.permute.xlu1 %v10268_v28 }
 0x208   : > { %7269 = vset.pattern.permute.xlu2 %v10268_v28  ;;  %1238 = vperm.xlu1 %7268, %v8282_v21  }
 0x209   : > { %1242 = vperm.xlu2 %7269, %v7372_v9   ;;  %v1331_v48 = vpop.permute.xlu1 %1330 }
 0x20a   : > { %v1481_v27 = vmul.f32 %v8126_v33, %v1331_v48  ;;  %v7163_v48 = vld [vmem:[%s10190_s3 + $0x60] sm:$0xff] }
 0x20b   : > { %1780 = vperm.xlu0 %7320, %v10307_v62   ;;  %v1159_v62 = vadd.f32 %v1095_v61, %v773_v59  ;;  %3165 = vmatpush.bf16.msra.mxu1 %v7163_v48  ;;  %v8395_v59 = vld [vmem:[%s7522_s8 + $0x190] sm:$0xff] }
 0x20c   : > { %v8289_v50 = vpop.permute.xlu0 %928  ;;  %v8291_v19 = vpop.permute.xlu2 %1222  ;;  %7210 = vmatpush.bf16.msra.mxu3 %v7163_v48 }
 0x20f   : > { %3166 = vmatpush.bf16.msra.mxu1 %v7162_v5 }
 0x210   : > { %1350 = vperm.xlu1 %7268, %v7688_v44   ;;  %v1839_v44 = vmul.f32 %v8134_v37, %v7960_v31  ;;  %v1838_v31 = vmul.f32 %v8134_v37, %v8254_v8  ;;  %v1480_v8 = vmul.f32 %v8126_v33, %v8231_v15  ;;  %7211 = vmatpush.bf16.msra.mxu3 %v7162_v5 }
 0x211   : > { %1354 = vperm.xlu2 %7269, %v7685_v43   ;;  %v1517_v43 = vadd.f32 %v1453_v12, %v1131_v60  ;;  %v1545_v12 = vadd.f32 %v1481_v27, %v1159_v62  ;;  %v8407_v62 = vld [vmem:[%s7522_s8 + $0x158] sm:$0xff] }
 0x212   : > { %v1713_v11 = vpop.permute.xlu1 %1712  ;;  %v1902_v53 = vadd.f32 %v1838_v31, %v1516_v34  ;;  %v7159_v34 = vld [vmem:[%s10190_s3 + $0x40] sm:$0xff] }
 0x213   : > { %1680 = vperm.xlu0 %7320, %v7373_v16   ;;  %v1903_v47 = vadd.f32 %v1839_v44, %v1517_v43  ;;  %v1866_v39 = vmul.f32 %v8134_v37, %v1713_v11  ;;  %v1931_v7 = vadd.f32 %v1867_v40, %v1545_v12  ;;  %v8359_v43 = vld [vmem:[%s7522_s8 + $0x90] sm:$0xff]  ;;  %v10314_v40 = vld [vmem:[#allocation62_spill] sm:$0xff]  ;;  %v1454_v12 = vmul.f32 %v8126_v33, %v8291_v19 }
 0x214   : > { %v941_v2 = vpop.permute.xlu0 %940  ;;  %v1069_v48 = vmul.f32 %v8121_v32, %v10314_v40 }
 0x215   : > { %v1094_v38 = vmul.f32 %v8121_v32, %v941_v2  ;;  %v8315_v20 = vpop.permute.xlu2 %1334  ;;  %v2289_v52 = vadd.f32 %v2225_v63, %v1903_v47  ;;  %v8374_v63 = vld [vmem:[%s7522_s8 + $0xa8] sm:$0xff] }
 0x217   : > { %v1158_v24 = vadd.f32 %v1094_v38, %v772_v29  ;;  %v2353_v60 = vmax.f32 %v2289_v52, 0.0  ;;  %v7161_v38 = vld [vmem:[%s10190_s3 + $0x50] sm:$0xff] }
 0x218   : > { %7270 = vset.pattern.permute.xlu1 %v10270_v42  ;;  %3167 = vmatpush.bf16.msra.mxu1 %v7161_v38  ;;  %v10312_v52 = vld [vmem:[#allocation16_spill] sm:$0xff] }
 0x219   : > { %7271 = vset.pattern.permute.xlu2 %v10270_v42  ;;  %1628 = vperm.xlu1 %7270, %v7372_v9   ;;  %v1544_v9 = vadd.f32 %v1480_v8, %v1158_v24  ;;  %v8387_v8 = vld [vmem:[%s7522_s8 + $0x70] sm:$0xff]  ;;  %v680_v27 = vmul.f32 %v8105_v36, %v10312_v52 }
 0x21a   : > { %1736 = vperm.xlu2 %7271, %v7374_v58   ;;  %7212 = vmatpush.bf16.msra.mxu3 %v7161_v38  ;;  %v10316_v38 = vld [vmem:[#allocation39_spill] sm:$0xff] }
 0x21b   : > { %v1987_v1 = vpop.permute.xlu1 %1986  ;;  %1692 = vperm.xlu0 %7320, %v7375_v3   ;;  %v1930_v11 = vadd.f32 %v1866_v39, %v1544_v9  ;;  %v10311_v3 = vld [vmem:[#allocation5_spill] sm:$0xff]  ;;  %v10313_v9 = vld [vmem:[#allocation67_spill] sm:$0xff] }
 0x21c   : > { %v2224_v15 = vmul.f32 %v8150_v35, %v1987_v1  ;;  %v8367_v29 = vpop.permute.xlu0 %952  ;;  %3168 = vmatpush.bf16.msra.mxu1 %v7160_v6  ;;  %v679_v56 = vmul.f32 %v8105_v36, %v10311_v3 }
 0x21d   : > { %v2316_v2 = vadd.f32 %v2252_v14, %v1930_v11  ;;  %v747_v14 = vadd.f32 %v8114_v10, %v680_v27  ;;  %v10315_v11 = vld [vmem:[#allocation40_spill] sm:$0xff] }
 0x21e   : > { %v2288_v17 = vadd.f32 %v2224_v15, %v1902_v53  ;;  %v8341_v13 = vpop.permute.xlu2 %1612  ;;  %7213 = vmatpush.bf16.msra.mxu3 %v7160_v6  ;;  %v1068_v15 = vmul.f32 %v8121_v32, %v10313_v9  ;;  %v746_v41 = vadd.f32 %v8114_v10, %v679_v56  ;;  %v7384_v9 = vld [vmem:[%s7522_s8 + $0xe0] sm:$0xff] }
 0x21f   : > { %v2380_v23 = vmax.f32 %v2316_v2, 0.0  ;;  %v1133_v19 = vadd.f32 %v1069_v48, %v747_v14 }
 0x220   : > { %v2352_v54 = vmax.f32 %v2288_v17, 0.0  ;;  %3169 = vmatpush.bf16.msra.mxu1 %v7159_v34  ;;  %v7383_v17 = vld [vmem:[%s7522_s8 + $0x1a8] sm:$0xff] }
 0x221   : > { %1740 = vperm.xlu1 %7270, %v7376_v30  }
 0x222   : > { %7272 = vset.pattern.permute.xlu2 %v10272_v22  ;;  %v2413_v49 = vpack.c.bf16 %v2353_v60, %v2352_v54  ;;  %7214 = vmatpush.bf16.msra.mxu3 %v7159_v34  ;;  %v2739_v60 = vld [vmem:[%s10191_s4] sm:$0x1] }
 0x223   : > { %2010 = vperm.xlu2 %7272, %v8282_v21   ;;  %v2103_v16 = vpop.permute.xlu1 %2102  ;;  %7332 = vset.pattern.permute.xlu0 %v10268_v28  ;;  %v10318_v34 = vld [vmem:[#allocation86_spill] sm:$0xff] }
 0x224   : > { %v2253_v44 = vmul.f32 %v8150_v35, %v2103_v16  ;;  %1262 = vperm.xlu0 %7332, %v8359_v43   ;;  %2529 = vmatmul.bf16.gmra.mxu0 %v2413_v49  ;;  %v8382_v61 = vpop.permute.xlu0 %964  ;;  %v1132_v49 = vadd.f32 %v1068_v15, %v746_v41  ;;  %v1482_v15 = vmul.f32 %v8126_v33, %v8315_v20  ;;  %v7385_v41 = vld [vmem:[%s7522_s8 + $0x150] sm:$0xff] }
 0x225   : > { %v10319_v20 = vld [vmem:[#allocation77_spill] sm:$0xff] }
 0x226   : > { %v2317_v0 = vadd.f32 %v2253_v44, %v1931_v7  ;;  %v8362_v21 = vpop.permute.xlu2 %1724  ;;  %v2741_v44 = vpack.i.b16 %v2739_v60, %v2739_v60  ;;  %v1518_v2 = vadd.f32 %v1454_v12, %v1132_v49 }
 0x228   : > { %v2381_v18 = vmax.f32 %v2317_v0, 0.0  ;;  %v2743_v27 = vperm.slane %v2741_v44, 0 }
 0x229   : > { %7273 = vset.pattern.permute.xlu1 %v10272_v22 }
 0x22a   : > { %2122 = vperm.xlu1 %7273, %v7374_v58   ;;  %v2427_v31 = vpack.c.bf16 %v2381_v18, %v2380_v23  ;;  %v8391_v58 = vld [vmem:[%s7522_s8 + $0x78] sm:$0xff]  ;;  %v708_v23 = vmul.f32 %v8105_v36, %v10316_v38 }
 0x22b   : > { %2126 = vperm.xlu2 %7272, %v7376_v30   ;;  %v707_v30 = vmul.f32 %v8105_v36, %v10315_v11 }
 0x22c   : > { %v1227_v47 = vpop.permute.xlu1 %1226  ;;  %1274 = vperm.xlu0 %7332, %v8374_v63   ;;  %2599 = vmatmul.bf16.gmra.mxu2 %v2427_v31  ;;  %v8410_v39 = vpop.permute.xlu0 %976  ;;  %v10317_v31 = vld [vmem:[#allocation78_spill] sm:$0xff] }
 0x22d   : > { %v1455_v16 = vmul.f32 %v8126_v33, %v1227_v47  ;;  %v774_v18 = vadd.f32 %v8114_v10, %v707_v30  ;;  %v1096_v6 = vmul.f32 %v8121_v32, %v10317_v31  ;;  %v2226_v47 = vmul.f32 %v8150_v35, %v10318_v34 }
 0x22f   : > { %v8377_v24 = vpop.permute.xlu2 %2106  ;;  %v1519_v3 = vadd.f32 %v1455_v16, %v1133_v19  ;;  %v1160_v14 = vadd.f32 %v1096_v6, %v774_v18  ;;  %v8452_v16 = vunpack.c.l.bf16 %v2743_v27 }
 0x232   : > { %7274 = vset.pattern.permute.xlu1 %v10268_v28 }
 0x233   : > { %7275 = vset.pattern.permute.xlu2 %v10268_v28  ;;  %1246 = vperm.xlu1 %7274, %v8387_v8  }
 0x234   : > { %1250 = vperm.xlu2 %7275, %v8391_v58   ;;  %1390 = vperm.xlu0 %7332, %v8395_v59   ;;  %v8448_v40 = vpop.permute.xlu0 %984 }
 0x235   : > { %v1609_v53 = vpop.permute.xlu1 %1608 }
 0x236   : > { %v1840_v5 = vmul.f32 %v8134_v37, %v1609_v53  ;;  %v1841_v53 = vmul.f32 %v8134_v37, %v8341_v13  ;;  %v775_v13 = vadd.f32 %v8114_v10, %v708_v23  ;;  %v2254_v23 = vmul.f32 %v8150_v35, %v8377_v24 }
 0x238   : > { %v8398_v1 = vpop.permute.xlu2 %1230  ;;  %v1904_v56 = vadd.f32 %v1840_v5, %v1518_v2  ;;  %v1905_v60 = vadd.f32 %v1841_v53, %v1519_v3  ;;  %v1546_v5 = vadd.f32 %v1482_v15, %v1160_v14  ;;  %v7386_v53 = vld [vmem:[%s7522_s8 + $0xf8] sm:$0xff] }
 0x23a   : > { %v2290_v30 = vadd.f32 %v2226_v47, %v1904_v56 }
 0x23b   : > { %1362 = vperm.xlu1 %7274, %v8407_v62  }
 0x23c   : > { %7277 = vset.pattern.permute.xlu2 %v10270_v42  ;;  %1402 = vperm.xlu0 %7332, %v7383_v17   ;;  %v1097_v17 = vmul.f32 %v8121_v32, %v8367_v29  ;;  %v1483_v29 = vmul.f32 %v8126_v33, %v10319_v20  ;;  %v2354_v31 = vmax.f32 %v2290_v30, 0.0  ;;  %v8470_v15 = vpop.permute.xlu0 %1012 }
 0x23d   : > { %1632 = vperm.xlu2 %7277, %v8387_v8   ;;  %v1721_v54 = vpop.permute.xlu1 %1720 }
 0x23e   : > { %v1868_v12 = vmul.f32 %v8134_v37, %v1721_v54  ;;  %v1161_v44 = vadd.f32 %v1097_v17, %v775_v13 }
 0x240   : > { %v8428_v7 = vpop.permute.xlu2 %1346  ;;  %v1932_v18 = vadd.f32 %v1868_v12, %v1546_v5  ;;  %v1547_v3 = vadd.f32 %v1483_v29, %v1161_v44 }
 0x241   : > { %v2515_v0 = vpop.f32.mrf.mxu0 }
 0x242   : > { %v2675_v52 = vpack.c.bf16 %v2515_v0, %v2515_v0  ;;  %v1869_v0 = vmul.f32 %v8134_v37, %v8362_v21 }
 0x243   : > { %7278 = vset.pattern.permute.xlu1 %v10270_v42 }
 0x244   : > { %1636 = vperm.xlu1 %7278, %v8391_v58   ;;  %1302 = vperm.xlu0 %7332, %v7384_v9   ;;  %v2744_v49 = vunpack.c.l.bf16 %v2675_v52  ;;  %v1933_v52 = vadd.f32 %v1869_v0, %v1547_v3  ;;  %v2318_v9 = vadd.f32 %v2254_v23, %v1932_v18  ;;  %v8480_v29 = vpop.permute.xlu0 %1024  ;;  %v7388_v18 = vld [vmem:[%s7522_s8 + $0xd8] sm:$0xff] }
 0x245   : > { %1744 = vperm.xlu2 %7277, %v7385_v41  }
 0x246   : > { %v1999_v48 = vpop.permute.xlu1 %1998  ;;  %v2809_v34 = vadd.f32 %v8452_v16, %v2744_v49 }
 0x247   : > { %v2227_v11 = vmul.f32 %v8150_v35, %v1999_v48 }
 0x248   : > { %v3001_v17 = vmax.f32 %v2809_v34, 0.0 }
 0x249   : > { %v2291_v19 = vadd.f32 %v2227_v11, %v1905_v60  ;;  %v2517_v2 = vpop.f32.mrf.mxu0  ;;  %v8458_v38 = vpop.permute.xlu2 %1620  ;;  %v2382_v60 = vmax.f32 %v2318_v9, 0.0  ;;  %v8476_v11 = vld [vmem:[%s7522_s8 + $0xc0] sm:$0xff] }
 0x24a   : > { %v2676_v54 = vpack.c.bf16 %v2517_v2, %v2517_v2 }
 0x24b   : > { %v2355_v6 = vmax.f32 %v2291_v19, 0.0  ;;  %v10320_v19 = vld [vmem:[#allocation31_spill] sm:$0xff] }
 0x24c   : > { %v2745_v47 = vunpack.c.l.bf16 %v2676_v54  ;;  %7279 = vset.pattern.permute.xlu1 %v10272_v22  ;;  %1314 = vperm.xlu0 %7332, %v7386_v53   ;;  %v10321_v54 = vld [vmem:[#allocation87_spill] sm:$0xff] }
 0x24d   : > { %7280 = vset.pattern.permute.xlu2 %v10272_v22  ;;  %2018 = vperm.xlu1 %7279, %v8387_v8   ;;  %v2414_v21 = vpack.c.bf16 %v2355_v6, %v2354_v31  ;;  %v1098_v23 = vmul.f32 %v8121_v32, %v10321_v54  ;;  %v8491_v6 = vld [vmem:[%s7522_s8 + $0x80] sm:$0xff] }
 0x24e   : > { %2022 = vperm.xlu2 %7280, %v8391_v58   ;;  %v2111_v56 = vpop.permute.xlu1 %2110  ;;  %v2810_v24 = vadd.f32 %v8452_v16, %v2745_v47  ;;  %v10322_v47 = vld [vmem:[#allocation43_spill] sm:$0xff] }
 0x24f   : > { %v2255_v27 = vmul.f32 %v8150_v35, %v2111_v56  ;;  %2534 = vmatmul.bf16.gmra.mxu0 %v2414_v21  ;;  %v710_v53 = vmul.f32 %v8105_v36, %v10322_v47  ;;  %v7390_v21 = vld [vmem:[%s7522_s8 + $0x88] sm:$0xff] }
 0x250   : > { %v3002_v13 = vmax.f32 %v2810_v24, 0.0  ;;  %v10326_v47 = vld [vmem:[#allocation88_spill] sm:$0xff] }
 0x251   : > { %v2319_v14 = vadd.f32 %v2255_v27, %v1933_v52  ;;  %v1729_v27 = vpop.permute.xlu0 %1728 }
 0x252   : > { %v8472_v48 = vpop.permute.xlu2 %2002  ;;  %v3065_v8 = vpack.c.bf16 %v3002_v13, %v3001_v17  ;;  %v777_v13 = vadd.f32 %v8114_v10, %v710_v53  ;;  %v2257_v53 = vmul.f32 %v8150_v35, %v10326_v47 }
 0x253   : > { %v2520_v12 = vpop.f32.mrf.mxu0  ;;  %v2383_v58 = vmax.f32 %v2319_v14, 0.0  ;;  %v10323_v14 = vld [vmem:[#allocation81_spill] sm:$0xff] }
 0x254   : > { %7339 = vset.pattern.permute.xlu0 %v10272_v22  ;;  %3170 = vmatmul.bf16.vlgmr.msra.gmra.mxu1 %v3065_v8  ;;  %v2677_v49 = vpack.c.bf16 %v2520_v12, %v2520_v12  ;;  %v1099_v8 = vmul.f32 %v8121_v32, %v10323_v14  ;;  %v1870_v12 = vmul.f32 %v8134_v37, %v1729_v27 }
 0x255   : > { %2130 = vperm.xlu1 %7279, %v7385_v41   ;;  %2058 = vperm.xlu0 %7339, %v8476_v11   ;;  %v2428_v30 = vpack.c.bf16 %v2383_v58, %v2382_v60  ;;  %v709_v41 = vmul.f32 %v8105_v36, %v10320_v19  ;;  %v7391_v19 = vld [vmem:[%s7522_s8 + $0x1c0] sm:$0xff] }
 0x256   : > { %2134 = vperm.xlu2 %7280, %v8407_v62   ;;  %v2746_v5 = vunpack.c.l.bf16 %v2677_v49 }
 0x257   : > { %v1343_v20 = vpop.permute.xlu1 %1342  ;;  %2604 = vmatmul.bf16.gmra.mxu2 %v2428_v30  ;;  %v776_v34 = vadd.f32 %v8114_v10, %v709_v41  ;;  %v10324_v30 = vld [vmem:[#allocation15_spill] sm:$0xff]  ;;  %v1070_v41 = vmul.f32 %v8121_v32, %v8199_v57  ;;  %v1456_v57 = vmul.f32 %v8126_v33, %v8398_v1 }
 0x258   : > { %v2811_v62 = vadd.f32 %v8452_v16, %v2746_v5  ;;  %v1484_v3 = vmul.f32 %v8126_v33, %v1343_v20  ;;  %v681_v49 = vmul.f32 %v8105_v36, %v10324_v30  ;;  %v1485_v5 = vmul.f32 %v8126_v33, %v8428_v7  ;;  %v7394_v30 = vld [vmem:[%s7522_s8 + $0x1d8] sm:$0xff] }
 0x259   : > { %v1162_v52 = vadd.f32 %v1098_v23, %v776_v34 }
 0x25a   : > { %v2115_v44 = vpop.permute.xlu2 %2114  ;;  %v3003_v9 = vmax.f32 %v2811_v62, 0.0  ;;  %v10325_v62 = vld [vmem:[#allocation6_spill] sm:$0xff] }
 0x25b   : > { %v2522_v2 = vpop.f32.mrf.mxu0  ;;  %v1548_v60 = vadd.f32 %v1484_v3, %v1162_v52  ;;  %v2256_v23 = vmul.f32 %v8150_v35, %v2115_v44  ;;  %v682_v7 = vmul.f32 %v8105_v36, %v10325_v62 }
 0x25c   : > { %v2678_v0 = vpack.c.bf16 %v2522_v2, %v2522_v2  ;;  %v8514_v2 = vld [vmem:[%s7522_s8 + $0x160] sm:$0xff] }
 0x25d   : > { %7281 = vset.pattern.permute.xlu1 %v10268_v28  ;;  %2070 = vperm.xlu0 %7339, %v7388_v18   ;;  %v1934_v54 = vadd.f32 %v1870_v12, %v1548_v60  ;;  %v8519_v18 = vld [vmem:[%s7522_s8 + $0x168] sm:$0xff]  ;;  %v749_v14 = vadd.f32 %v8114_v10, %v682_v7 }
 0x25e   : > { %v2747_v31 = vunpack.c.l.bf16 %v2678_v0  ;;  %7282 = vset.pattern.permute.xlu2 %v10268_v28  ;;  %1254 = vperm.xlu1 %7281, %v8491_v6   ;;  %v1163_v0 = vadd.f32 %v1099_v8, %v777_v13  ;;  %v10328_v8 = vld [vmem:[#allocation80_spill] sm:$0xff] }
 0x25f   : > { %1258 = vperm.xlu2 %7282, %v7390_v21   ;;  %v1457_v1 = vmul.f32 %v8126_v33, %v10328_v8 }
 0x260   : > { %v1617_v56 = vpop.permute.xlu1 %1616  ;;  %v2812_v24 = vadd.f32 %v8452_v16, %v2747_v31  ;;  %v748_v31 = vadd.f32 %v8114_v10, %v681_v49  ;;  %v1549_v3 = vadd.f32 %v1485_v5, %v1163_v0  ;;  %v1843_v5 = vmul.f32 %v8134_v37, %v8458_v38 }
 0x262   : > { %v3004_v17 = vmax.f32 %v2812_v24, 0.0  ;;  %v10327_v24 = vld [vmem:[#allocation69_spill] sm:$0xff]  ;;  %v1134_v27 = vadd.f32 %v1070_v41, %v748_v31 }
 0x263   : > { %v8504_v58 = vpop.permute.xlu2 %1242  ;;  %v1071_v52 = vmul.f32 %v8121_v32, %v10327_v24 }
 0x264   : > { %v3066_v20 = vpack.c.bf16 %v3004_v17, %v3003_v9  ;;  %v1842_v9 = vmul.f32 %v8134_v37, %v1617_v56  ;;  %v2320_v17 = vadd.f32 %v2256_v23, %v1934_v54  ;;  %v1520_v12 = vadd.f32 %v1456_v57, %v1134_v27 }
 0x265   : > { %2186 = vperm.xlu0 %7339, %v7391_v19   ;;  %v2228_v56 = vmul.f32 %v8150_v35, %v8472_v48 }
 0x266   : > { %1366 = vperm.xlu1 %7281, %v8514_v2   ;;  %3175 = vmatmul.bf16.gmra.mxu1 %v3066_v20  ;;  %v1135_v20 = vadd.f32 %v1071_v52, %v749_v14  ;;  %v1906_v19 = vadd.f32 %v1842_v9, %v1520_v12  ;;  %v2384_v41 = vmax.f32 %v2320_v17, 0.0  ;;  %v10329_v52 = vld [vmem:[#allocation20_spill] sm:$0xff] }
 0x267   : > { %1370 = vperm.xlu2 %7282, %v8519_v18   ;;  %v683_v27 = vmul.f32 %v8105_v36, %v10329_v52  ;;  %v10330_v12 = vld [vmem:[#allocation64_spill] sm:$0xff] }
 0x268   : > { %v1733_v34 = vpop.permute.xlu1 %1732  ;;  %v1521_v54 = vadd.f32 %v1457_v1, %v1135_v20  ;;  %v2292_v31 = vadd.f32 %v2228_v56, %v1906_v19  ;;  %v10331_v19 = vld [vmem:[#allocation19_spill] sm:$0xff] }
 0x269   : > { %v1871_v44 = vmul.f32 %v8134_v37, %v1733_v34  ;;  %v7395_v34 = vld [vmem:[%s7522_s8 + $0x1d0] sm:$0xff]  ;;  %v750_v1 = vadd.f32 %v8114_v10, %v683_v27 }
 0x26a   : > { %v1907_v7 = vadd.f32 %v1843_v5, %v1521_v54  ;;  %v2356_v47 = vmax.f32 %v2292_v31, 0.0 }
 0x26b   : > { %v1935_v13 = vadd.f32 %v1871_v44, %v1549_v3  ;;  %v8536_v60 = vpop.permute.xlu2 %1354 }
 0x26d   : > { %2198 = vperm.xlu0 %7339, %v7394_v30   ;;  %v2321_v49 = vadd.f32 %v2257_v53, %v1935_v13  ;;  %v7396_v13 = vld [vmem:[%s7522_s8 + $0x1e0] sm:$0xff]  ;;  %v1072_v30 = vmul.f32 %v8121_v32, %v10330_v12 }
 0x26e   : > { %7283 = vset.pattern.permute.xlu1 %v10270_v42 }
 0x26f   : > { %7284 = vset.pattern.permute.xlu2 %v10270_v42  ;;  %1644 = vperm.xlu1 %7283, %v7390_v21   ;;  %v2385_v0 = vmax.f32 %v2321_v49, 0.0 }
 0x270   : > { %1752 = vperm.xlu2 %7284, %v8514_v2  }
 0x271   : > { %v2007_v23 = vpop.permute.xlu1 %2006  ;;  %v2429_v62 = vpack.c.bf16 %v2385_v0, %v2384_v41  ;;  %v684_v41 = vmul.f32 %v8105_v36, %v10331_v19  ;;  %v1136_v0 = vadd.f32 %v1072_v30, %v750_v1  ;;  %v7401_v19 = vld [vmem:[%s7522_s8 + $0x1f0] sm:$0xff] }
 0x272   : > { %v2229_v38 = vmul.f32 %v8150_v35, %v2007_v23  ;;  %v1625_v23 = vpop.permute.xlu0 %1624 }
 0x273   : > { %2609 = vmatmul.bf16.gmra.mxu2 %v2429_v62 }
 0x274   : > { %v2293_v48 = vadd.f32 %v2229_v38, %v1907_v7  ;;  %v8547_v57 = vpop.permute.xlu2 %1736  ;;  %v1844_v38 = vmul.f32 %v8134_v37, %v1625_v23 }
 0x275   : > { %7345 = vset.pattern.permute.xlu0 %v10270_v42 }
 0x276   : > { %1808 = vperm.xlu0 %7345, %v7395_v34   ;;  %v2525_v21 = vpop.f32.mrf.mxu0  ;;  %v2357_v53 = vmax.f32 %v2293_v48, 0.0  ;;  %v10332_v48 = vmov 1  }
 0x277   : > { %1756 = vperm.xlu1 %7283, %v8519_v18   ;;  %v2679_v44 = vpack.c.bf16 %v2525_v21, %v2525_v21  ;;  %v7397_v21 = vld [vmem:[%s7522_s8 + $0x1f8] sm:$0xff] }
 0x278   : > { %7285 = vset.pattern.permute.xlu2 %v10272_v22  ;;  %v2415_v3 = vpack.c.bf16 %v2357_v53, %v2356_v47  ;;  %v751_v47 = vadd.f32 %v8114_v10, %v684_v41  ;;  %v1459_v53 = vmul.f32 %v8126_v33, %v8504_v58  ;;  %v8611_v41 = vld [vmem:[%s10188_s1 + $0x1] ss:$0 sm:$0xff] }
 0x279   : > { %2026 = vperm.xlu2 %7285, %v8491_v6   ;;  %v2748_v9 = vunpack.c.l.bf16 %v2679_v44 }
 0x27a   : > { %v1239_v24 = vpop.permute.xlu1 %1238  ;;  %2539 = vmatmul.bf16.gmra.mxu0 %v2415_v3 }
 0x27b   : > { %v2813_v6 = vadd.f32 %v8452_v16, %v2748_v9  ;;  %v1458_v20 = vmul.f32 %v8126_v33, %v1239_v24  ;;  %v8588_v24 = vld [vmem:[%s7522_s8 + $0x178] sm:$0xff] }
 0x27c   : > { %v10333_v33 = vld [vmem:[#allocation90_spill] sm:$0xff] }
 0x27d   : > { %v2011_v17 = vpop.permute.xlu2 %2010  ;;  %v3005_v62 = vmax.f32 %v2813_v6, 0.0  ;;  %v1522_v31 = vadd.f32 %v1458_v20, %v1136_v0  ;;  %v2231_v58 = vmul.f32 %v8150_v35, %v10333_v33  ;;  %v10336_v0 = vld [vmem:[#allocation89_spill] sm:$0xff] }
 0x27e   : > { %1816 = vperm.xlu0 %7345, %v7396_v13   ;;  %v2527_v14 = vpop.f32.mrf.mxu0  ;;  %v2230_v44 = vmul.f32 %v8150_v35, %v2011_v17  ;;  %v8597_v17 = vld [vmem:[%s10188_s1] ss:$0 sm:$0xff] }
 0x27f   : > { %v2680_v8 = vpack.c.bf16 %v2527_v14, %v2527_v14  ;;  %7286 = vset.pattern.permute.xlu1 %v10272_v22  ;;  %v1908_v3 = vadd.f32 %v1844_v38, %v1522_v31 }
 0x280   : > { %2138 = vperm.xlu1 %7286, %v8514_v2  }
 0x281   : > { %v2749_v49 = vunpack.c.l.bf16 %v2680_v8  ;;  %2142 = vperm.xlu2 %7285, %v8519_v18   ;;  %v1073_v18 = vmul.f32 %v8121_v32, %v8205_v51  ;;  %v8583_v32 = vld [vmem:[%s7522_s8 + $0x170] sm:$0xff]  ;;  %v10334_v8 = vld [vmem:[#allocation34_spill] sm:$0xff]  ;;  %v2294_v12 = vadd.f32 %v2230_v44, %v1908_v3 }
 0x282   : > { %v8565_v5 = vpop.permute.xlu1 %1350  ;;  %v712_v1 = vmul.f32 %v8597_v17, %v10334_v8 }
 0x283   : > { %v2814_v56 = vadd.f32 %v8452_v16, %v2749_v49  ;;  %v1137_v51 = vadd.f32 %v1073_v18, %v751_v47  ;;  %v7404_v18 = vld [vmem:[%s7522_s8 + $0x98] sm:$0xff]  ;;  %v2358_v38 = vmax.f32 %v2294_v12, 0.0 }
 0x284   : > { %v2595_v54 = vpop.f32.mrf.mxu2 }
 0x285   : > { %v8570_v2 = vpop.permute.xlu2 %2126  ;;  %v3006_v7 = vmax.f32 %v2814_v56, 0.0  ;;  %v2707_v34 = vpack.c.bf16 %v2595_v54, %v2595_v54  ;;  %v1523_v27 = vadd.f32 %v1459_v53, %v1137_v51  ;;  %v1101_v54 = vmul.f32 %v8611_v41, %v10336_v0 }
 0x286   : > { %7354 = vset.pattern.permute.xlu0 %v10332_v48 }
 0x287   : > { %1056 = vperm.xlu0 %7354, %v7397_v21   ;;  %v3067_v36 = vpack.c.bf16 %v3006_v7, %v3005_v62  ;;  %v2776_v10 = vunpack.c.l.bf16 %v2707_v34  ;;  %v8620_v62 = vld [vmem:[%s10189_s2] ss:$0 sm:$0xff]  ;;  %v1100_v34 = vmul.f32 %v8611_v41, %v8382_v61  ;;  %v8630_v21 = vld [vmem:[%s10188_s1 + $0x2] ss:$0 sm:$0xff] }
 0x288   : > { %7287 = vset.pattern.permute.xlu1 %v10332_v48  ;;  %v779_v7 = vadd.f32 %v8620_v62, %v712_v1  ;;  %v1486_v61 = vmul.f32 %v8630_v21, %v8565_v5  ;;  %v8651_v5 = vld [vmem:[%s10188_s1 + $0x4] ss:$0 sm:$0xff] }
 0x289   : > { %7288 = vset.pattern.permute.xlu2 %v10332_v48  ;;  %988 = vperm.xlu1 %7287, %v8583_v32   ;;  %v2841_v35 = vadd.f32 %v8452_v16, %v2776_v10  ;;  %v2259_v8 = vmul.f32 %v8651_v5, %v8570_v2 }
 0x28a   : > { %3180 = vmatmul.bf16.gmra.mxu1 %v3067_v36  ;;  %992 = vperm.xlu2 %7288, %v8588_v24   ;;  %v1487_v36 = vmul.f32 %v8630_v21, %v8536_v60  ;;  %v1165_v10 = vadd.f32 %v1101_v54, %v779_v7 }
 0x28b   : > { %v1629_v52 = vpop.permute.xlu1 %1628  ;;  %v3033_v53 = vmax.f32 %v2841_v35, 0.0 }
 0x28c   : > { %v1845_v9 = vmul.f32 %v8134_v37, %v1629_v52  ;;  %v2597_v13 = vpop.f32.mrf.mxu2  ;;  %v10335_v37 = vld [vmem:[#allocation42_spill] sm:$0xff]  ;;  %v8641_v52 = vld [vmem:[%s10188_s1 + $0x3] ss:$0 sm:$0xff] }
 0x28d   : > { %v2708_v14 = vpack.c.bf16 %v2597_v13, %v2597_v13  ;;  %v711_v20 = vmul.f32 %v8597_v17, %v10335_v37  ;;  %v1872_v13 = vmul.f32 %v8641_v52, %v8547_v57 }
 0x28e   : > { %v1909_v30 = vadd.f32 %v1845_v9, %v1523_v27  ;;  %v8601_v6 = vpop.permute.xlu2 %1250  ;;  %v1551_v27 = vadd.f32 %v1487_v36, %v1165_v10 }
 0x28f   : > { %v2777_v49 = vunpack.c.l.bf16 %v2708_v14  ;;  %7359 = vset.pattern.permute.xlu0 %v10272_v22  ;;  %v778_v3 = vadd.f32 %v8620_v62, %v711_v20 }
 0x290   : > { %v2295_v56 = vadd.f32 %v2231_v58, %v1909_v30  ;;  %2210 = vperm.xlu0 %7359, %v7401_v19  }
 0x291   : > { %7289 = vset.pattern.permute.xlu1 %v10268_v28  ;;  %v2842_v23 = vadd.f32 %v8452_v16, %v2777_v49  ;;  %v1164_v58 = vadd.f32 %v1100_v34, %v778_v3 }
 0x292   : > { %7290 = vset.pattern.permute.xlu2 %v10268_v28  ;;  %1266 = vperm.xlu1 %7289, %v7404_v18   ;;  %v2359_v31 = vmax.f32 %v2295_v56, 0.0 }
 0x293   : > { %1374 = vperm.xlu2 %7290, %v8583_v32   ;;  %v1741_v47 = vpop.permute.xlu1 %1740  ;;  %v3034_v51 = vmax.f32 %v2842_v23, 0.0  ;;  %v1550_v14 = vadd.f32 %v1486_v61, %v1164_v58  ;;  %v10338_v58 = vld [vmem:[#allocation7_spill] sm:$0xff] }
 0x294   : > { %v2416_v44 = vpack.c.bf16 %v2359_v31, %v2358_v38  ;;  %v1873_v33 = vmul.f32 %v8641_v52, %v1741_v47 }
 0x295   : > { %v3081_v60 = vpack.c.bf16 %v3034_v51, %v3033_v53  ;;  %v1936_v30 = vadd.f32 %v1872_v13, %v1550_v14  ;;  %v10337_v51 = vld [vmem:[#allocation23_spill] sm:$0xff] }
 0x296   : > { %2544 = vmatmul.bf16.gmra.mxu0 %v2416_v44  ;;  %v1937_v1 = vadd.f32 %v1873_v33, %v1551_v27  ;;  %v686_v3 = vmul.f32 %v8597_v17, %v10337_v51  ;;  %v685_v27 = vmul.f32 %v8597_v17, %v10338_v58  ;;  %v10340_v14 = vld [vmem:[#allocation71_spill] sm:$0xff] }
 0x297   : > { %v8644_v9 = vpop.permute.xlu2 %1632  ;;  %3250 = vmatmul.bf16.vlgmr.msra.gmra.mxu3 %v3081_v60  ;;  %v7409_v58 = vld [vmem:[%s7522_s8 + $0x188] sm:$0xff] }
 0x298   : > { %v2323_v35 = vadd.f32 %v2259_v8, %v1937_v1  ;;  %v1074_v8 = vmul.f32 %v8611_v41, %v10340_v14  ;;  %v1461_v1 = vmul.f32 %v8630_v21, %v8601_v6  ;;  %v1846_v51 = vmul.f32 %v8641_v52, %v8644_v9  ;;  %v1749_v9 = vpop.permute.xlu0 %1748  ;;  %v7410_v14 = vld [vmem:[%s7522_s8 + $0xa0] sm:$0xff] }
 0x29a   : > { %1378 = vperm.xlu1 %7289, %v8588_v24   ;;  %v2387_v19 = vmax.f32 %v2323_v35, 0.0  ;;  %v752_v35 = vadd.f32 %v8620_v62, %v685_v27  ;;  %v10343_v27 = vld [vmem:[#allocation84_spill] sm:$0xff] }
 0x29b   : > { %7291 = vset.pattern.permute.xlu2 %v10270_v42 }
 0x29c   : > { %1648 = vperm.xlu2 %7291, %v8359_v43   ;;  %v2123_v12 = vpop.permute.xlu1 %2122 }
 0x29d   : > { %v2258_v57 = vmul.f32 %v8651_v5, %v2123_v12 }
 0x29f   : > { %v2322_v49 = vadd.f32 %v2258_v57, %v1936_v30  ;;  %v8659_v37 = vpop.permute.xlu2 %1744  ;;  %v8685_v30 = vld [vmem:[%s7522_s8 + $0x180] sm:$0xff] }
 0x2a1   : > { %v2530_v20 = vpop.f32.mrf.mxu0  ;;  %v2386_v56 = vmax.f32 %v2322_v49, 0.0  ;;  %v10341_v49 = vld [vmem:[#allocation45_spill] sm:$0xff] }
 0x2a2   : > { %7292 = vset.pattern.permute.xlu1 %v10270_v42  ;;  %v2681_v0 = vpack.c.bf16 %v2530_v20, %v2530_v20 }
 0x2a3   : > { %1760 = vperm.xlu1 %7292, %v8583_v32   ;;  %v2430_v2 = vpack.c.bf16 %v2387_v19, %v2386_v56 }
 0x2a4   : > { %1764 = vperm.xlu2 %7291, %v8588_v24   ;;  %v2750_v23 = vunpack.c.l.bf16 %v2681_v0 }
 0x2a5   : > { %v1247_v54 = vpop.permute.xlu1 %1246  ;;  %2614 = vmatmul.bf16.gmra.mxu2 %v2430_v2 }
 0x2a6   : > { %v2815_v34 = vadd.f32 %v8452_v16, %v2750_v23  ;;  %v1460_v20 = vmul.f32 %v8630_v21, %v1247_v54  ;;  %v10342_v23 = vld [vmem:[#allocation46_spill] sm:$0xff] }
 0x2a7   : > { %v713_v6 = vmul.f32 %v8597_v17, %v10342_v23 }
 0x2a8   : > { %v2023_v7 = vpop.permute.xlu2 %2022  ;;  %v3007_v10 = vmax.f32 %v2815_v34, 0.0  ;;  %v1103_v34 = vmul.f32 %v8611_v41, %v8410_v39 }
 0x2a9   : > { %v2532_v38 = vpop.f32.mrf.mxu0 }
 0x2aa   : > { %v2682_v31 = vpack.c.bf16 %v2532_v38, %v2532_v38  ;;  %v1138_v38 = vadd.f32 %v1074_v8, %v752_v35 }
 0x2ab   : > { %7293 = vset.pattern.permute.xlu1 %v10272_v22 }
 0x2ac   : > { %v2751_v36 = vunpack.c.l.bf16 %v2682_v31  ;;  %7294 = vset.pattern.permute.xlu2 %v10272_v22  ;;  %2034 = vperm.xlu1 %7293, %v8359_v43   ;;  %v753_v43 = vadd.f32 %v8620_v62, %v686_v3  ;;  %v1524_v3 = vadd.f32 %v1460_v20, %v1138_v38 }
 0x2ad   : > { %2038 = vperm.xlu2 %7294, %v7404_v18   ;;  %v1363_v32 = vpop.permute.xlu1 %1362  ;;  %v10339_v18 = vld [vmem:[#allocation65_spill] sm:$0xff] }
 0x2ae   : > { %v2816_v47 = vadd.f32 %v8452_v16, %v2751_v36  ;;  %v1075_v13 = vmul.f32 %v8611_v41, %v10339_v18  ;;  %v1910_v8 = vadd.f32 %v1846_v51, %v1524_v3 }
 0x2af   : > { %v2600_v53 = vpop.f32.mrf.mxu2 }
 0x2b0   : > { %v8671_v44 = vpop.permute.xlu2 %2134  ;;  %v3008_v61 = vmax.f32 %v2816_v47, 0.0  ;;  %v2709_v33 = vpack.c.bf16 %v2600_v53, %v2600_v53  ;;  %v1139_v19 = vadd.f32 %v1075_v13, %v753_v43  ;;  %v1102_v43 = vmul.f32 %v8611_v41, %v10343_v27 }
 0x2b2   : > { %v3068_v60 = vpack.c.bf16 %v3008_v61, %v3007_v10  ;;  %v2778_v12 = vunpack.c.l.bf16 %v2709_v33  ;;  %v1525_v36 = vadd.f32 %v1461_v1, %v1139_v19  ;;  %v2233_v10 = vmul.f32 %v8651_v5, %v2023_v7 }
 0x2b3   : > { %v1489_v61 = vmul.f32 %v8630_v21, %v1363_v32  ;;  %v1875_v32 = vmul.f32 %v8641_v52, %v1749_v9  ;;  %v10345_v9 = vld [vmem:[#allocation22_spill] sm:$0xff] }
 0x2b4   : > { %2150 = vperm.xlu1 %7293, %v8588_v24   ;;  %3185 = vmatmul.bf16.gmra.mxu1 %v3068_v60  ;;  %v714_v24 = vmul.f32 %v8597_v17, %v10341_v49  ;;  %v2843_v47 = vadd.f32 %v8452_v16, %v2778_v12  ;;  %v780_v60 = vadd.f32 %v8620_v62, %v713_v6 }
 0x2b5   : > { %7295 = vset.pattern.permute.xlu2 %v10332_v48  ;;  %v2261_v6 = vmul.f32 %v8651_v5, %v8671_v44 }
 0x2b6   : > { %996 = vperm.xlu2 %7295, %v8685_v30   ;;  %v1637_v57 = vpop.permute.xlu1 %1636  ;;  %v781_v54 = vadd.f32 %v8620_v62, %v714_v24  ;;  %v3035_v13 = vmax.f32 %v2843_v47, 0.0  ;;  %v10344_v24 = vld [vmem:[#allocation83_spill] sm:$0xff] }
 0x2b7   : > { %v2602_v56 = vpop.f32.mrf.mxu2  ;;  %v1847_v2 = vmul.f32 %v8641_v52, %v1637_v57  ;;  %v1488_v20 = vmul.f32 %v8630_v21, %v10344_v24  ;;  %v1641_v24 = vpop.permute.xlu0 %1640 }
 0x2b8   : > { %v2710_v0 = vpack.c.bf16 %v2602_v56, %v2602_v56  ;;  %v1167_v18 = vadd.f32 %v1103_v34, %v781_v54  ;;  %v1166_v56 = vadd.f32 %v1102_v43, %v780_v60 }
 0x2b9   : > { %v8695_v31 = vpop.permute.xlu2 %1258  ;;  %v1911_v33 = vadd.f32 %v1847_v2, %v1525_v36 }
 0x2ba   : > { %v2779_v53 = vunpack.c.l.bf16 %v2710_v0  ;;  %v1553_v12 = vadd.f32 %v1489_v61, %v1167_v18  ;;  %v1874_v0 = vmul.f32 %v8641_v52, %v8659_v37  ;;  %v1552_v36 = vadd.f32 %v1488_v20, %v1166_v56  ;;  %v10346_v56 = vld [vmem:[#allocation9_spill] sm:$0xff] }
 0x2bb   : > { %v2297_v49 = vadd.f32 %v2233_v10, %v1911_v33 }
 0x2bc   : > { %7296 = vset.pattern.permute.xlu1 %v10332_v48  ;;  %v2844_v39 = vadd.f32 %v8452_v16, %v2779_v53  ;;  %v1939_v23 = vadd.f32 %v1875_v32, %v1553_v12  ;;  %v1938_v54 = vadd.f32 %v1874_v0, %v1552_v36  ;;  %v1848_v36 = vmul.f32 %v8641_v52, %v1641_v24 }
 0x2bd   : > { %1000 = vperm.xlu1 %7296, %v7409_v58   ;;  %v2361_v34 = vmax.f32 %v2297_v49, 0.0  ;;  %v1105_v24 = vmul.f32 %v8611_v41, %v8448_v40 }
 0x2be   : > { %7297 = vset.pattern.permute.xlu2 %v10268_v28  ;;  %v3036_v7 = vmax.f32 %v2844_v39, 0.0  ;;  %v2325_v51 = vadd.f32 %v2261_v6, %v1939_v23 }
 0x2bf   : > { %1270 = vperm.xlu2 %7297, %v7410_v14   ;;  %v2019_v1 = vpop.permute.xlu1 %2018 }
 0x2c0   : > { %v2232_v57 = vmul.f32 %v8651_v5, %v2019_v1  ;;  %v3082_v35 = vpack.c.bf16 %v3036_v7, %v3035_v13  ;;  %v2389_v33 = vmax.f32 %v2325_v51, 0.0  ;;  %v687_v13 = vmul.f32 %v8597_v17, %v10345_v9  ;;  %v8755_v9 = vpop.permute.xlu0 %1652 }
 0x2c1   : > { %v8717_v2 = vpop.permute.xlu2 %1370  ;;  %v1463_v51 = vmul.f32 %v8630_v21, %v8695_v31 }
 0x2c2   : > { %v2296_v19 = vadd.f32 %v2232_v57, %v1910_v8  ;;  %3255 = vmatmul.bf16.gmra.mxu3 %v3082_v35  ;;  %v1076_v8 = vmul.f32 %v8611_v41, %v8213_v55  ;;  %v754_v57 = vadd.f32 %v8620_v62, %v687_v13 }
 0x2c4   : > { %v2360_v38 = vmax.f32 %v2296_v19, 0.0  ;;  %v688_v19 = vmul.f32 %v8597_v17, %v10346_v56  ;;  %v1140_v0 = vadd.f32 %v1076_v8, %v754_v57 }
 0x2c5   : > { %7298 = vset.pattern.permute.xlu1 %v10268_v28 }
 0x2c6   : > { %1382 = vperm.xlu1 %7298, %v8685_v30   ;;  %v2417_v47 = vpack.c.bf16 %v2361_v34, %v2360_v38 }
 0x2c7   : > { %1386 = vperm.xlu2 %7297, %v7409_v58   ;;  %v2131_v53 = vpop.permute.xlu1 %2130 }
 0x2c8   : > { %v2260_v3 = vmul.f32 %v8651_v5, %v2131_v53  ;;  %2549 = vmatmul.bf16.gmra.mxu0 %v2417_v47 }
 0x2ca   : > { %v2324_v37 = vadd.f32 %v2260_v3, %v1938_v54  ;;  %v8726_v10 = vpop.permute.xlu2 %1752 }
 0x2cc   : > { %v2535_v61 = vpop.f32.mrf.mxu0  ;;  %v2388_v44 = vmax.f32 %v2324_v37, 0.0 }
 0x2cd   : > { %v2683_v60 = vpack.c.bf16 %v2535_v61, %v2535_v61 }
 0x2ce   : > { %7299 = vset.pattern.permute.xlu1 %v10270_v42  ;;  %v2431_v39 = vpack.c.bf16 %v2389_v33, %v2388_v44 }
 0x2cf   : > { %7300 = vset.pattern.permute.xlu2 %v10270_v42  ;;  %1656 = vperm.xlu1 %7299, %v7410_v14   ;;  %v2752_v43 = vunpack.c.l.bf16 %v2683_v60 }
 0x2d0   : > { %1660 = vperm.xlu2 %7300, %v8374_v63   ;;  %v1255_v27 = vpop.permute.xlu1 %1254  ;;  %2619 = vmatmul.bf16.gmra.mxu2 %v2431_v39  ;;  %v10348_v39 = vld [vmem:[#allocation92_spill] sm:$0xff] }
 0x2d1   : > { %v2817_v1 = vadd.f32 %v8452_v16, %v2752_v43  ;;  %v1462_v35 = vmul.f32 %v8630_v21, %v1255_v27  ;;  %v2235_v60 = vmul.f32 %v8651_v5, %v10348_v39 }
 0x2d3   : > { %v2027_v18 = vpop.permute.xlu2 %2026  ;;  %v3009_v6 = vmax.f32 %v2817_v1, 0.0  ;;  %v1526_v47 = vadd.f32 %v1462_v35, %v1140_v0 }
 0x2d4   : > { %v2537_v7 = vpop.f32.mrf.mxu0  ;;  %v2234_v61 = vmul.f32 %v8651_v5, %v2027_v18 }
 0x2d5   : > { %v2684_v32 = vpack.c.bf16 %v2537_v7, %v2537_v7  ;;  %v1912_v37 = vadd.f32 %v1848_v36, %v1526_v47  ;;  %v10349_v7 = vld [vmem:[#allocation49_spill] sm:$0xff] }
 0x2d6   : > { %v8777_v47 = vld [vmem:[%s7522_s8 + $0x198] sm:$0xff] }
 0x2d7   : > { %v2753_v12 = vunpack.c.l.bf16 %v2684_v32  ;;  %1772 = vperm.xlu1 %7299, %v7409_v58   ;;  %v10347_v58 = vld [vmem:[#allocation73_spill] sm:$0xff]  ;;  %v716_v32 = vmul.f32 %v8597_v17, %v10349_v7  ;;  %v2298_v18 = vadd.f32 %v2234_v61, %v1912_v37  ;;  %v8782_v37 = vpop.permute.xlu0 %1768 }
 0x2d8   : > { %7301 = vset.pattern.permute.xlu2 %v10272_v22  ;;  %v1367_v49 = vpop.permute.xlu1 %1366  ;;  %v1077_v34 = vmul.f32 %v8611_v41, %v10347_v58  ;;  %v7413_v7 = vld [vmem:[%s7522_s8 + $0xb8] sm:$0xff] }
 0x2d9   : > { %2042 = vperm.xlu2 %7301, %v7410_v14   ;;  %v2818_v20 = vadd.f32 %v8452_v16, %v2753_v12  ;;  %v755_v14 = vadd.f32 %v8620_v62, %v688_v19  ;;  %v10350_v12 = vld [vmem:[#allocation37_spill] sm:$0xff]  ;;  %v783_v56 = vadd.f32 %v8620_v62, %v716_v32  ;;  %v2362_v19 = vmax.f32 %v2298_v18, 0.0 }
 0x2da   : > { %v2605_v55 = vpop.f32.mrf.mxu2  ;;  %v715_v57 = vmul.f32 %v8597_v17, %v10350_v12 }
 0x2db   : > { %v2143_v23 = vpop.permute.xlu2 %2142  ;;  %v3010_v38 = vmax.f32 %v2818_v20, 0.0  ;;  %v2711_v53 = vpack.c.bf16 %v2605_v55, %v2605_v55  ;;  %v1141_v3 = vadd.f32 %v1077_v34, %v755_v14  ;;  %v10351_v55 = vld [vmem:[#allocation91_spill] sm:$0xff]  ;;  %v1490_v14 = vmul.f32 %v8630_v21, %v1367_v49  ;;  %v7412_v49 = vld [vmem:[%s7522_s8 + $0xb0] sm:$0xff] }
 0x2dc   : > { %v782_v36 = vadd.f32 %v8620_v62, %v715_v57 }
 0x2dd   : > { %v3069_v54 = vpack.c.bf16 %v3010_v38, %v3009_v6  ;;  %v2780_v44 = vunpack.c.l.bf16 %v2711_v53  ;;  %v1527_v27 = vadd.f32 %v1463_v51, %v1141_v3  ;;  %v1104_v6 = vmul.f32 %v8611_v41, %v10351_v55 }
 0x2de   : > { %v1491_v38 = vmul.f32 %v8630_v21, %v8717_v2 }
 0x2df   : > { %7302 = vset.pattern.permute.xlu1 %v10272_v22  ;;  %3190 = vmatmul.bf16.gmra.mxu1 %v3069_v54  ;;  %v1169_v54 = vadd.f32 %v1105_v24, %v783_v56  ;;  %v1168_v3 = vadd.f32 %v1104_v6, %v782_v36 }
 0x2e0   : > { %2046 = vperm.xlu1 %7302, %v8374_v63   ;;  %v2845_v63 = vadd.f32 %v8452_v16, %v2780_v44 }
 0x2e1   : > { %2154 = vperm.xlu2 %7301, %v8685_v30   ;;  %v1645_v33 = vpop.permute.xlu1 %1644  ;;  %v1555_v61 = vadd.f32 %v1491_v38, %v1169_v54  ;;  %v1554_v39 = vadd.f32 %v1490_v14, %v1168_v3 }
 0x2e2   : > { %v1849_v43 = vmul.f32 %v8641_v52, %v1645_v33  ;;  %v2607_v31 = vpop.f32.mrf.mxu2  ;;  %v3037_v40 = vmax.f32 %v2845_v63, 0.0  ;;  %v1876_v33 = vmul.f32 %v8641_v52, %v8726_v10  ;;  %v8796_v63 = vpop.permute.xlu0 %1780 }
 0x2e3   : > { %v2712_v13 = vpack.c.bf16 %v2607_v31, %v2607_v31 }
 0x2e4   : > { %v1913_v8 = vadd.f32 %v1849_v43, %v1527_v27  ;;  %v8760_v30 = vpop.permute.xlu2 %992  ;;  %v1940_v31 = vadd.f32 %v1876_v33, %v1554_v39 }
 0x2e5   : > { %v2781_v1 = vunpack.c.l.bf16 %v2712_v13 }
 0x2e6   : > { %v2299_v35 = vadd.f32 %v2235_v60, %v1913_v8  ;;  %v2263_v60 = vmul.f32 %v8651_v5, %v2143_v23 }
 0x2e7   : > { %v2846_v20 = vadd.f32 %v8452_v16, %v2781_v1 }
 0x2e8   : > { %7304 = vset.pattern.permute.xlu1 %v10332_v48  ;;  %v2363_v0 = vmax.f32 %v2299_v35, 0.0 }
 0x2e9   : > { %7305 = vset.pattern.permute.xlu2 %v10332_v48  ;;  %1004 = vperm.xlu1 %7304, %v8395_v59   ;;  %v1757_v58 = vpop.permute.xlu1 %1756  ;;  %v3038_v34 = vmax.f32 %v2846_v20, 0.0 }
 0x2ea   : > { %1008 = vperm.xlu2 %7305, %v8777_v47   ;;  %v2418_v53 = vpack.c.bf16 %v2363_v0, %v2362_v19  ;;  %v1877_v2 = vmul.f32 %v8641_v52, %v1757_v58 }
 0x2eb   : > { %v3083_v51 = vpack.c.bf16 %v3038_v34, %v3037_v40  ;;  %v8802_v40 = vpop.permute.xlu0 %1680 }
 0x2ec   : > { %2554 = vmatmul.bf16.gmra.mxu0 %v2418_v53  ;;  %v1941_v27 = vadd.f32 %v1877_v2, %v1555_v61 }
 0x2ed   : > { %3260 = vmatmul.bf16.gmra.mxu3 %v3083_v51  ;;  %v8784_v44 = vpop.permute.xlu2 %1374 }
 0x2ee   : > { %v2327_v32 = vadd.f32 %v2263_v60, %v1941_v27 }
 0x2f0   : > { %v2391_v12 = vmax.f32 %v2327_v32, 0.0 }
 0x2f1   : > { %7306 = vset.pattern.permute.xlu1 %v10268_v28 }
 0x2f2   : > { %7307 = vset.pattern.permute.xlu2 %v10268_v28  ;;  %1278 = vperm.xlu1 %7306, %v7412_v49   ;;  %v2139_v43 = vpop.permute.xlu1 %2138 }
 0x2f3   : > { %v2262_v13 = vmul.f32 %v8651_v5, %v2139_v43  ;;  %1282 = vperm.xlu2 %7307, %v7413_v7  }
 0x2f5   : > { %v2326_v18 = vadd.f32 %v2262_v13, %v1940_v31  ;;  %v8810_v31 = vpop.permute.xlu0 %1692  ;;  %v10352_v13 = vld [vmem:[#allocation25_spill] sm:$0xff] }
 0x2f6   : > { %v8794_v8 = vpop.permute.xlu2 %1648  ;;  %v2610_v10 = vpop.f32.mrf.mxu2  ;;  %v690_v32 = vmul.f32 %v8597_v17, %v10352_v13 }
 0x2f7   : > { %v2540_v23 = vpop.f32.mrf.mxu0  ;;  %v2390_v1 = vmax.f32 %v2326_v18, 0.0  ;;  %v2713_v57 = vpack.c.bf16 %v2610_v10, %v2610_v10  ;;  %v1079_v10 = vmul.f32 %v8611_v41, %v8240_v46 }
 0x2f8   : > { %v2685_v24 = vpack.c.bf16 %v2540_v23, %v2540_v23  ;;  %v10353_v23 = vld [vmem:[#allocation26_spill] sm:$0xff] }
 0x2f9   : > { %v2432_v35 = vpack.c.bf16 %v2391_v12, %v2390_v1  ;;  %v2782_v56 = vunpack.c.l.bf16 %v2713_v57  ;;  %v689_v1 = vmul.f32 %v8597_v17, %v10353_v23  ;;  %v757_v12 = vadd.f32 %v8620_v62, %v690_v32 }
 0x2fa   : > { %1394 = vperm.xlu1 %7306, %v8777_v47   ;;  %v2754_v19 = vunpack.c.l.bf16 %v2685_v24  ;;  %v7414_v24 = vld [vmem:[%s7522_s8 + $0x190] sm:$0xff]  ;;  %v1492_v32 = vmul.f32 %v8630_v21, %v8784_v44 }
 0x2fb   : > { %7308 = vset.pattern.permute.xlu2 %v10270_v42  ;;  %v989_v20 = vpop.permute.xlu1 %988  ;;  %2624 = vmatmul.bf16.gmra.mxu2 %v2432_v35  ;;  %v2847_v34 = vadd.f32 %v8452_v16, %v2782_v56 }
 0x2fc   : > { %1664 = vperm.xlu2 %7308, %v7412_v49   ;;  %v2819_v53 = vadd.f32 %v8452_v16, %v2754_v19  ;;  %v756_v19 = vadd.f32 %v8620_v62, %v689_v1 }
 0x2fd   : > { %v3039_v3 = vmax.f32 %v2847_v34, 0.0  ;;  %v1851_v34 = vmul.f32 %v8641_v52, %v8755_v9 }
 0x2fe   : > { %v2612_v0 = vpop.f32.mrf.mxu2  ;;  %v8800_v55 = vpop.permute.xlu2 %1764  ;;  %v3011_v33 = vmax.f32 %v2819_v53, 0.0 }
 0x2ff   : > { %v2714_v6 = vpack.c.bf16 %v2612_v0, %v2612_v0  ;;  %v2542_v38 = vpop.f32.mrf.mxu0  ;;  %v10354_v0 = vld [vmem:[#allocation66_spill] sm:$0xff] }
 0x300   : > { %v2686_v58 = vpack.c.bf16 %v2542_v38, %v2542_v38  ;;  %v1078_v46 = vmul.f32 %v8611_v41, %v10354_v0  ;;  %v10355_v38 = vld [vmem:[#allocation48_spill] sm:$0xff] }
 0x301   : > { %v2783_v36 = vunpack.c.l.bf16 %v2714_v6 }
 0x302   : > { %v2755_v54 = vunpack.c.l.bf16 %v2686_v58  ;;  %7309 = vset.pattern.permute.xlu1 %v10270_v42  ;;  %v717_v58 = vmul.f32 %v8597_v17, %v10355_v38 }
 0x303   : > { %1668 = vperm.xlu1 %7309, %v7413_v7   ;;  %v2848_v14 = vadd.f32 %v8452_v16, %v2783_v36 }
 0x304   : > { %1776 = vperm.xlu2 %7308, %v8395_v59   ;;  %v1267_v2 = vpop.permute.xlu1 %1266  ;;  %v2820_v51 = vadd.f32 %v8452_v16, %v2755_v54  ;;  %v1106_v54 = vmul.f32 %v8611_v41, %v989_v20  ;;  %v1107_v20 = vmul.f32 %v8611_v41, %v8760_v30 }
 0x305   : > { %v3040_v61 = vmax.f32 %v2848_v14, 0.0  ;;  %v1465_v57 = vmul.f32 %v8630_v21, %v1267_v2 }
 0x306   : > { %v3012_v39 = vmax.f32 %v2820_v51, 0.0  ;;  %v1142_v51 = vadd.f32 %v1078_v46, %v756_v19 }
 0x307   : > { %v2039_v60 = vpop.permute.xlu2 %2038  ;;  %v3084_v27 = vpack.c.bf16 %v3040_v61, %v3039_v3  ;;  %v1850_v3 = vmul.f32 %v8641_v52, %v8794_v8  ;;  %v8850_v8 = vld [vmem:[%s7522_s8 + $0x1a8] sm:$0xff] }
 0x308   : > { %v3070_v43 = vpack.c.bf16 %v3012_v39, %v3011_v33  ;;  %v784_v33 = vadd.f32 %v8620_v62, %v717_v58  ;;  %v2237_v9 = vmul.f32 %v8651_v5, %v2039_v60 }
 0x309   : > { %3265 = vmatmul.bf16.gmra.mxu3 %v3084_v27 }
 0x30a   : > { %3195 = vmatmul.bf16.gmra.mxu1 %v3070_v43 }
 0x30b   : > { %7310 = vset.pattern.permute.xlu1 %v10272_v22 }
 0x30c   : > { %7311 = vset.pattern.permute.xlu2 %v10272_v22  ;;  %2050 = vperm.xlu1 %7310, %v7412_v49   ;;  %v1379_v59 = vpop.permute.xlu1 %1378  ;;  %v1143_v49 = vadd.f32 %v1079_v10, %v757_v12  ;;  %v1170_v10 = vadd.f32 %v1106_v54, %v784_v33 }
 0x30d   : > { %2054 = vperm.xlu2 %7311, %v7413_v7   ;;  %v1263_v7 = vpop.permute.xlu0 %1262 }
 0x30e   : > { %v1529_v36 = vadd.f32 %v1465_v57, %v1143_v49  ;;  %v1464_v53 = vmul.f32 %v8630_v21, %v1263_v7  ;;  %v1556_v19 = vadd.f32 %v1492_v32, %v1170_v10 }
 0x310   : > { %v8816_v18 = vpop.permute.xlu2 %996  ;;  %v1915_v39 = vadd.f32 %v1851_v34, %v1529_v36  ;;  %v1528_v43 = vadd.f32 %v1464_v53, %v1142_v51  ;;  %v10357_v53 = vld [vmem:[#allocation93_spill] sm:$0xff]  ;;  %v7417_v51 = vld [vmem:[%s7522_s8 + $0xc8] sm:$0xff] }
 0x311   : > { %v2264_v54 = vmul.f32 %v8651_v5, %v10357_v53 }
 0x312   : > { %v1914_v23 = vadd.f32 %v1850_v3, %v1528_v43  ;;  %v2301_v30 = vadd.f32 %v2237_v9, %v1915_v39 }
 0x313   : > { %v2545_v35 = vpop.f32.mrf.mxu0 }
 0x314   : > { %2162 = vperm.xlu1 %7310, %v7414_v24   ;;  %v2687_v6 = vpack.c.bf16 %v2545_v35, %v2545_v35  ;;  %v1493_v35 = vmul.f32 %v8630_v21, %v1379_v59 }
 0x315   : > { %2166 = vperm.xlu2 %7311, %v8777_v47   ;;  %v1761_v56 = vpop.permute.xlu1 %1760  ;;  %v10356_v47 = vld [vmem:[#allocation38_spill] sm:$0xff] }
 0x316   : > { %v718_v2 = vmul.f32 %v8597_v17, %v10356_v47  ;;  %v2756_v61 = vunpack.c.l.bf16 %v2687_v6  ;;  %v1878_v44 = vmul.f32 %v8641_v52, %v1761_v56  ;;  %v2365_v56 = vmax.f32 %v2301_v30, 0.0 }
 0x318   : > { %v785_v60 = vadd.f32 %v8620_v62, %v718_v2  ;;  %v2821_v1 = vadd.f32 %v8452_v16, %v2756_v61  ;;  %v1942_v59 = vadd.f32 %v1878_v44, %v1556_v19  ;;  %v7416_v2 = vld [vmem:[%s7522_s8 + $0x1a0] sm:$0xff] }
 0x319   : > { %v8835_v14 = vpop.permute.xlu2 %1270 }
 0x31a   : > { %v1171_v7 = vadd.f32 %v1107_v20, %v785_v60  ;;  %v3013_v6 = vmax.f32 %v2821_v1, 0.0  ;;  %v2328_v33 = vadd.f32 %v2264_v54, %v1942_v59  ;;  %v7418_v60 = vld [vmem:[%s7522_s8 + $0xc0] sm:$0xff] }
 0x31b   : > { %v2547_v27 = vpop.f32.mrf.mxu0 }
 0x31c   : > { %v2688_v13 = vpack.c.bf16 %v2547_v27, %v2547_v27  ;;  %7312 = vset.pattern.permute.xlu1 %v10332_v48  ;;  %v1557_v58 = vadd.f32 %v1493_v35, %v1171_v7 }
 0x31d   : > { %7313 = vset.pattern.permute.xlu2 %v10268_v28  ;;  %1016 = vperm.xlu1 %7312, %v8850_v8  }
 0x31e   : > { %v2757_v12 = vunpack.c.l.bf16 %v2688_v13  ;;  %1286 = vperm.xlu2 %7313, %v8476_v11   ;;  %v2035_v57 = vpop.permute.xlu1 %2034  ;;  %v1879_v11 = vmul.f32 %v8641_v52, %v8800_v55  ;;  %v2392_v13 = vmax.f32 %v2328_v33, 0.0 }
 0x31f   : > { %v2236_v24 = vmul.f32 %v8651_v5, %v2035_v57 }
 0x320   : > { %v2822_v49 = vadd.f32 %v8452_v16, %v2757_v12  ;;  %v1943_v61 = vadd.f32 %v1879_v11, %v1557_v58  ;;  %v10358_v11 = vld [vmem:[#allocation52_spill] sm:$0xff]  ;;  %v10359_v58 = vld [vmem:[#allocation51_spill] sm:$0xff] }
 0x321   : > { %v2300_v0 = vadd.f32 %v2236_v24, %v1914_v23  ;;  %v8860_v46 = vpop.permute.xlu2 %1386  ;;  %v720_v59 = vmul.f32 %v8597_v17, %v10359_v58 }
 0x322   : > { %v3014_v38 = vmax.f32 %v2822_v49, 0.0 }
 0x323   : > { %v2364_v34 = vmax.f32 %v2300_v0, 0.0 }
 0x324   : > { %v3071_v36 = vpack.c.bf16 %v3014_v38, %v3013_v6  ;;  %v719_v6 = vmul.f32 %v8597_v17, %v10358_v11  ;;  %v1108_v38 = vmul.f32 %v8611_v41, %v8816_v18  ;;  %v1880_v18 = vmul.f32 %v8641_v52, %v8782_v37 }
 0x325   : > { %7314 = vset.pattern.permute.xlu1 %v10268_v28  ;;  %v2419_v47 = vpack.c.bf16 %v2365_v56, %v2364_v34 }
 0x326   : > { %1398 = vperm.xlu2 %7313, %v7416_v2   ;;  %1290 = vperm.xlu1 %7314, %v7417_v51   ;;  %v2151_v3 = vpop.permute.xlu1 %2150  ;;  %v786_v34 = vadd.f32 %v8620_v62, %v719_v6 }
 0x327   : > { %v2265_v55 = vmul.f32 %v8651_v5, %v2151_v3  ;;  %3200 = vmatmul.bf16.gmra.mxu1 %v3071_v36  ;;  %2559 = vmatmul.bf16.gmra.mxu0 %v2419_v47  ;;  %v787_v47 = vadd.f32 %v8620_v62, %v720_v59 }
 0x328   : > { %v2615_v39 = vpop.f32.mrf.mxu2  ;;  %v1172_v53 = vadd.f32 %v1108_v38, %v786_v34 }
 0x329   : > { %v2329_v9 = vadd.f32 %v2265_v55, %v1943_v61  ;;  %v2715_v27 = vpack.c.bf16 %v2615_v39, %v2615_v39  ;;  %v10360_v55 = vld [vmem:[#allocation14_spill] sm:$0xff] }
 0x32a   : > { %v8870_v43 = vpop.permute.xlu2 %1660  ;;  %v691_v33 = vmul.f32 %v8597_v17, %v10360_v55 }
 0x32b   : > { %v2393_v20 = vmax.f32 %v2329_v9, 0.0  ;;  %v2784_v10 = vunpack.c.l.bf16 %v2715_v27  ;;  %v10361_v9 = vld [vmem:[#allocation28_spill] sm:$0xff] }
 0x32c   : > { %v692_v27 = vmul.f32 %v8597_v17, %v10361_v9 }
 0x32d   : > { %v2433_v32 = vpack.c.bf16 %v2393_v20, %v2392_v13  ;;  %v2849_v57 = vadd.f32 %v8452_v16, %v2784_v10  ;;  %v10362_v13 = vld [vmem:[#allocation75_spill] sm:$0xff] }
 0x32e   : > { %7316 = vset.pattern.permute.xlu2 %v10270_v42  ;;  %7315 = vset.pattern.permute.xlu1 %v10270_v42  ;;  %v1080_v20 = vmul.f32 %v8611_v41, %v10362_v13 }
 0x32f   : > { %1676 = vperm.xlu2 %7316, %v7417_v51   ;;  %1672 = vperm.xlu1 %7315, %v7418_v60   ;;  %v1001_v23 = vpop.permute.xlu1 %1000  ;;  %v3041_v24 = vmax.f32 %v2849_v57, 0.0  ;;  %v758_v60 = vadd.f32 %v8620_v62, %v691_v33 }
 0x330   : > { %2629 = vmatmul.bf16.gmra.mxu2 %v2433_v32  ;;  %v2617_v1 = vpop.f32.mrf.mxu2  ;;  %v1109_v54 = vmul.f32 %v8611_v41, %v1001_v23  ;;  %v8909_v23 = vld [vmem:[%s7522_s8 + $0x1b0] sm:$0xff] }
 0x331   : > { %v2716_v12 = vpack.c.bf16 %v2617_v1, %v2617_v1 }
 0x333   : > { %v2785_v30 = vunpack.c.l.bf16 %v2716_v12  ;;  %v2043_v35 = vpop.permute.xlu2 %2042  ;;  %v1275_v12 = vpop.permute.xlu0 %1274 }
 0x334   : > { %v1467_v6 = vmul.f32 %v8630_v21, %v1275_v12 }
 0x335   : > { %v2850_v44 = vadd.f32 %v8452_v16, %v2785_v30 }
 0x337   : > { %1788 = vperm.xlu2 %7316, %v8850_v8   ;;  %1784 = vperm.xlu1 %7315, %v7416_v2   ;;  %v3042_v49 = vmax.f32 %v2850_v44, 0.0  ;;  %v759_v44 = vadd.f32 %v8620_v62, %v692_v27 }
 0x338   : > { %v1383_v7 = vpop.permute.xlu1 %1382 }
 0x339   : > { %v3085_v19 = vpack.c.bf16 %v3042_v49, %v3041_v24  ;;  %v1494_v56 = vmul.f32 %v8630_v21, %v1383_v7  ;;  %v10363_v24 = vld [vmem:[#allocation68_spill] sm:$0xff] }
 0x33a   : > { %v1081_v49 = vmul.f32 %v8611_v41, %v10363_v24  ;;  %v7422_v24 = vld [vmem:[%s7522_s8 + $0x1b8] sm:$0xff] }
 0x33b   : > { %3270 = vmatmul.bf16.gmra.mxu3 %v3085_v19  ;;  %v2155_v0 = vpop.permute.xlu2 %2154  ;;  %v1558_v3 = vadd.f32 %v1494_v56, %v1172_v53 }
 0x33c   : > { %v2266_v37 = vmul.f32 %v8651_v5, %v2155_v0  ;;  %v1145_v53 = vadd.f32 %v1081_v49, %v759_v44 }
 0x33d   : > { %v1944_v32 = vadd.f32 %v1880_v18, %v1558_v3 }
 0x33e   : > { %v1531_v33 = vadd.f32 %v1467_v6, %v1145_v53 }
 0x33f   : > { %7318 = vset.pattern.permute.xlu2 %v10272_v22  ;;  %7317 = vset.pattern.permute.xlu1 %v10272_v22  ;;  %v2330_v19 = vadd.f32 %v2266_v37, %v1944_v32 }
 0x340   : > { %2170 = vperm.xlu2 %7318, %v7416_v2   ;;  %2062 = vperm.xlu1 %7317, %v7417_v51   ;;  %v1495_v2 = vmul.f32 %v8630_v21, %v8860_v46  ;;  %v1173_v51 = vadd.f32 %v1109_v54, %v787_v47  ;;  %v1466_v46 = vmul.f32 %v8630_v21, %v8835_v14 }
 0x341   : > { %v1657_v36 = vpop.permute.xlu1 %1656  ;;  %v2267_v14 = vmul.f32 %v8651_v5, %v8159_v4  ;;  %v2238_v54 = vmul.f32 %v8651_v5, %v2043_v35  ;;  %v2394_v3 = vmax.f32 %v2330_v19, 0.0 }
 0x342   : > { %v1559_v57 = vadd.f32 %v1495_v2, %v1173_v51  ;;  %v1852_v7 = vmul.f32 %v8641_v52, %v1657_v36  ;;  %v1853_v36 = vmul.f32 %v8641_v52, %v8870_v43  ;;  %v7421_v2 = vld [vmem:[%s7522_s8 + $0xd8] sm:$0xff] }
 0x344   : > { %v8892_v61 = vpop.permute.xlu2 %1008  ;;  %v1917_v35 = vadd.f32 %v1853_v36, %v1531_v33 }
 0x345   : > { %v2550_v39 = vpop.f32.mrf.mxu0 }
 0x346   : > { %v2689_v10 = vpack.c.bf16 %v2550_v39, %v2550_v39  ;;  %v7420_v39 = vld [vmem:[%s7522_s8 + $0xd0] sm:$0xff] }
 0x348   : > { %7319 = vset.pattern.permute.xlu2 %v10332_v48  ;;  %2174 = vperm.xlu1 %7317, %v8850_v8   ;;  %v1144_v8 = vadd.f32 %v1080_v20, %v758_v60  ;;  %v2758_v0 = vunpack.c.l.bf16 %v2689_v10 }
 0x349   : > { %1020 = vperm.xlu2 %7319, %v8909_v23   ;;  %v1773_v1 = vpop.permute.xlu1 %1772 }
 0x34a   : > { %v1881_v30 = vmul.f32 %v8641_v52, %v1773_v1  ;;  %v1530_v38 = vadd.f32 %v1466_v46, %v1144_v8  ;;  %v2823_v47 = vadd.f32 %v8452_v16, %v2758_v0 }
 0x34c   : > { %v1945_v11 = vadd.f32 %v1881_v30, %v1559_v57  ;;  %v1916_v4 = vadd.f32 %v1852_v7, %v1530_v38  ;;  %v3015_v32 = vmax.f32 %v2823_v47, 0.0 }
 0x34d   : > { %v2552_v58 = vpop.f32.mrf.mxu0  ;;  %v8920_v59 = vpop.permute.xlu2 %1282 }
 0x34e   : > { %v2690_v34 = vpack.c.bf16 %v2552_v58, %v2552_v58  ;;  %v2331_v56 = vadd.f32 %v2267_v14, %v1945_v11  ;;  %v2302_v20 = vadd.f32 %v2238_v54, %v1916_v4 }
 0x350   : > { %v2759_v18 = vunpack.c.l.bf16 %v2690_v34  ;;  %7321 = vset.pattern.permute.xlu1 %v10268_v28  ;;  %v2395_v55 = vmax.f32 %v2331_v56, 0.0  ;;  %v2366_v12 = vmax.f32 %v2302_v20, 0.0  ;;  %v1469_v20 = vmul.f32 %v8630_v21, %v8920_v59 }
 0x351   : > { %7322 = vset.pattern.permute.xlu2 %v10268_v28  ;;  %1294 = vperm.xlu1 %7321, %v7420_v39  }
 0x352   : > { %1298 = vperm.xlu2 %7322, %v7421_v2   ;;  %v2047_v51 = vpop.permute.xlu1 %2046  ;;  %v2434_v9 = vpack.c.bf16 %v2395_v55, %v2394_v3  ;;  %v2824_v43 = vadd.f32 %v8452_v16, %v2759_v18  ;;  %v10364_v18 = vld [vmem:[#allocation18_spill] sm:$0xff] }
 0x353   : > { %v2239_v27 = vmul.f32 %v8651_v5, %v2047_v51  ;;  %v2620_v13 = vpop.f32.mrf.mxu2  ;;  %v694_v3 = vmul.f32 %v8597_v17, %v10364_v18 }
 0x354   : > { %2634 = vmatmul.bf16.gmra.mxu2 %v2434_v9  ;;  %v3016_v37 = vmax.f32 %v2824_v43, 0.0  ;;  %v2717_v60 = vpack.c.bf16 %v2620_v13, %v2620_v13  ;;  %v10366_v9 = vld [vmem:[#allocation76_spill] sm:$0xff]  ;;  %v1082_v13 = vmul.f32 %v8611_v41, %v8261_v25 }
 0x355   : > { %v2303_v10 = vadd.f32 %v2239_v27, %v1917_v35  ;;  %v1083_v43 = vmul.f32 %v8611_v41, %v10366_v9  ;;  %v761_v27 = vadd.f32 %v8620_v62, %v694_v3  ;;  %v10368_v41 = vld [vmem:[#allocation41_spill] sm:$0xff]  ;;  %v9020_v9 = vld [vmem:[%s10188_s1 + $0x4] ss:$0 sm:$0xff] }
 0x356   : > { %v8932_v46 = vpop.permute.xlu2 %1664  ;;  %v3072_v1 = vpack.c.bf16 %v3016_v37, %v3015_v32  ;;  %v2786_v44 = vunpack.c.l.bf16 %v2717_v60  ;;  %v10367_v37 = vld [vmem:[#allocation55_spill] sm:$0xff] }
 0x357   : > { %v2367_v57 = vmax.f32 %v2303_v10, 0.0 }
 0x358   : > { %3205 = vmatmul.bf16.gmra.mxu1 %v3072_v1  ;;  %v2851_v14 = vadd.f32 %v8452_v16, %v2786_v44  ;;  %v1147_v1 = vadd.f32 %v1083_v43, %v761_v27 }
 0x359   : > { %1406 = vperm.xlu1 %7321, %v8909_v23   ;;  %v2420_v30 = vpack.c.bf16 %v2367_v57, %v2366_v12 }
 0x35a   : > { %1410 = vperm.xlu2 %7322, %v7422_v24   ;;  %v3043_v6 = vmax.f32 %v2851_v14, 0.0 }
 0x35b   : > { %v1005_v49 = vpop.permute.xlu1 %1004  ;;  %2564 = vmatmul.bf16.gmra.mxu0 %v2420_v30  ;;  %v2622_v8 = vpop.f32.mrf.mxu2 }
 0x35c   : > { %v2718_v7 = vpack.c.bf16 %v2622_v8, %v2622_v8  ;;  %v8978_v8 = vld [vmem:[%s10188_s1 + $0x1] ss:$0 sm:$0xff] }
 0x35e   : > { %v2787_v19 = vunpack.c.l.bf16 %v2718_v7  ;;  %v8937_v0 = vpop.permute.xlu2 %1776  ;;  %v8985_v7 = vld [vmem:[%s10189_s2] ss:$0 sm:$0xff] }
 0x360   : > { %v2852_v11 = vadd.f32 %v8452_v16, %v2787_v19  ;;  %v1854_v19 = vmul.f32 %v8641_v52, %v8932_v46 }
 0x361   : > { %7323 = vset.pattern.permute.xlu1 %v10270_v42 }
 0x362   : > { %7324 = vset.pattern.permute.xlu2 %v10270_v42  ;;  %1684 = vperm.xlu1 %7323, %v7421_v2   ;;  %v3044_v38 = vmax.f32 %v2852_v11, 0.0  ;;  %v10365_v2 = vld [vmem:[#allocation27_spill] sm:$0xff]  ;;  %v1110_v11 = vmul.f32 %v8978_v8, %v1005_v49 }
 0x363   : > { %1792 = vperm.xlu2 %7324, %v8909_v23   ;;  %v693_v51 = vmul.f32 %v8597_v17, %v10365_v2  ;;  %v8963_v17 = vld [vmem:[%s10188_s1] ss:$0 sm:$0xff] }
 0x364   : > { %v1279_v58 = vpop.permute.xlu1 %1278  ;;  %v3086_v34 = vpack.c.bf16 %v3044_v38, %v3043_v6  ;;  %v721_v59 = vmul.f32 %v8963_v17, %v10368_v41  ;;  %v7427_v49 = vld [vmem:[%s7522_s8 + $0x1c0] sm:$0xff] }
 0x365   : > { %v760_v60 = vadd.f32 %v8620_v62, %v693_v51  ;;  %v1468_v12 = vmul.f32 %v8630_v21, %v1279_v58  ;;  %v1111_v62 = vmul.f32 %v8978_v8, %v8892_v61  ;;  %v1533_v21 = vadd.f32 %v1469_v20, %v1147_v1  ;;  %v8995_v61 = vld [vmem:[%s10188_s1 + $0x2] ss:$0 sm:$0xff]  ;;  %v7431_v1 = vld [vmem:[%s7522_s8 + $0xe8] sm:$0xff] }
 0x366   : > { %3275 = vmatmul.bf16.gmra.mxu3 %v3086_v34  ;;  %v788_v46 = vadd.f32 %v8985_v7, %v721_v59 }
 0x367   : > { %v2055_v56 = vpop.permute.xlu2 %2054 }
 0x368   : > { %v2241_v58 = vmul.f32 %v8651_v5, %v2055_v56  ;;  %v1391_v5 = vpop.permute.xlu0 %1390  ;;  %v1174_v3 = vadd.f32 %v1110_v11, %v788_v46 }
 0x369   : > { %v2555_v53 = vpop.f32.mrf.mxu0  ;;  %v1496_v18 = vmul.f32 %v8995_v61, %v1391_v5 }
 0x36a   : > { %1796 = vperm.xlu1 %7323, %v7422_v24   ;;  %v2691_v36 = vpack.c.bf16 %v2555_v53, %v2555_v53 }
 0x36b   : > { %7325 = vset.pattern.permute.xlu2 %v10272_v22 }
 0x36c   : > { %2066 = vperm.xlu2 %7325, %v7420_v39   ;;  %v1395_v54 = vpop.permute.xlu1 %1394  ;;  %v2760_v47 = vunpack.c.l.bf16 %v2691_v36  ;;  %v9006_v36 = vld [vmem:[%s7522_s8 + $0x1c8] sm:$0xff] }
 0x36d   : > { %v1497_v34 = vmul.f32 %v8995_v61, %v1395_v54  ;;  %v9012_v54 = vld [vmem:[%s10188_s1 + $0x3] ss:$0 sm:$0xff] }
 0x36e   : > { %v2825_v39 = vadd.f32 %v8452_v16, %v2760_v47  ;;  %v1883_v47 = vmul.f32 %v9012_v54, %v8796_v63  ;;  %v1882_v20 = vmul.f32 %v9012_v54, %v8937_v0 }
 0x36f   : > { %v8944_v4 = vpop.permute.xlu2 %2166 }
 0x370   : > { %v3017_v30 = vmax.f32 %v2825_v39, 0.0  ;;  %v1403_v5 = vpop.permute.xlu0 %1402 }
 0x371   : > { %v2557_v55 = vpop.f32.mrf.mxu0 }
 0x372   : > { %v2692_v33 = vpack.c.bf16 %v2557_v55, %v2557_v55  ;;  %7326 = vset.pattern.permute.xlu1 %v10272_v22 }
 0x373   : > { %2178 = vperm.xlu1 %7326, %v8909_v23   ;;  %v722_v23 = vmul.f32 %v8963_v17, %v10367_v37  ;;  %v2269_v37 = vmul.f32 %v9020_v9, %v8944_v4 }
 0x374   : > { %v2761_v35 = vunpack.c.l.bf16 %v2692_v33  ;;  %2182 = vperm.xlu2 %7325, %v7422_v24   ;;  %v1146_v24 = vadd.f32 %v1082_v13, %v760_v60  ;;  %v1560_v13 = vadd.f32 %v1496_v18, %v1174_v3  ;;  %v7173_v3 = vld [vmem:[%s10190_s3 + $0xb0] sm:$0xff] }
 0x375   : > { %v1669_v32 = vpop.permute.xlu1 %1668  ;;  %v789_v14 = vadd.f32 %v8985_v7, %v722_v23 }
 0x376   : > { %v2826_v10 = vadd.f32 %v8452_v16, %v2761_v35  ;;  %v1855_v25 = vmul.f32 %v8641_v52, %v1669_v32  ;;  %v1532_v38 = vadd.f32 %v1468_v12, %v1146_v24  ;;  %v7174_v52 = vld [vmem:[%s10190_s3 + $0xb8] sm:$0xff]  ;;  %v1946_v59 = vadd.f32 %v1882_v20, %v1560_v13 }
 0x377   : > { %v1175_v56 = vadd.f32 %v1111_v62, %v789_v14  ;;  %3819 = vmatpush.bf16.msrb.mxu2 %v7174_v52  ;;  %v10371_v13 = vld [vmem:[#allocation70_spill] sm:$0xff] }
 0x378   : > { %v8973_v57 = vpop.permute.xlu2 %1286  ;;  %v3018_v44 = vmax.f32 %v2826_v10, 0.0  ;;  %v1919_v53 = vadd.f32 %v1855_v25, %v1533_v21  ;;  %v1918_v51 = vadd.f32 %v1854_v19, %v1532_v38  ;;  %v9044_v18 = vpop.permute.xlu0 %1302  ;;  %v1084_v20 = vmul.f32 %v8978_v8, %v10371_v13 }
 0x379   : > { %v1561_v2 = vadd.f32 %v1497_v34, %v1175_v56  ;;  %v7432_v34 = vld [vmem:[%s7522_s8 + $0xe0] sm:$0xff] }
 0x37a   : > { %v3073_v6 = vpack.c.bf16 %v3018_v44, %v3017_v30  ;;  %v2305_v39 = vadd.f32 %v2241_v58, %v1919_v53 }
 0x37b   : > { %7327 = vset.pattern.permute.xlu1 %v10332_v48  ;;  %v1947_v32 = vadd.f32 %v1883_v47, %v1561_v2  ;;  %3820 = vmatpush.bf16.msrb.mxu2 %v7173_v3 }
 0x37c   : > { %7328 = vset.pattern.permute.xlu2 %v10332_v48  ;;  %1028 = vperm.xlu1 %7327, %v7427_v49   ;;  %v2369_v10 = vmax.f32 %v2305_v39, 0.0  ;;  %v10370_v39 = vld [vmem:[#allocation29_spill] sm:$0xff] }
 0x37d   : > { %3210 = vmatmul.bf16.gmra.mxu1 %v3073_v6  ;;  %1032 = vperm.xlu2 %7328, %v9006_v36   ;;  %v2333_v30 = vadd.f32 %v2269_v37, %v1947_v32  ;;  %v1085_v37 = vmul.f32 %v8978_v8, %v8271_v45 }
 0x37e   : > { %v2051_v55 = vpop.permute.xlu1 %2050  ;;  %v2625_v33 = vpop.f32.mrf.mxu2 }
 0x37f   : > { %v2240_v43 = vmul.f32 %v9020_v9, %v2051_v55  ;;  %v2719_v27 = vpack.c.bf16 %v2625_v33, %v2625_v33  ;;  %v2397_v19 = vmax.f32 %v2333_v30, 0.0  ;;  %v10373_v30 = vld [vmem:[#allocation54_spill] sm:$0xff] }
 0x380   : > { %v9023_v63 = vpop.permute.xlu2 %1398  ;;  %v723_v45 = vmul.f32 %v8963_v17, %v10373_v30 }
 0x381   : > { %v2304_v35 = vadd.f32 %v2240_v43, %v1918_v51  ;;  %v2788_v60 = vunpack.c.l.bf16 %v2719_v27  ;;  %v9055_v43 = vpop.permute.xlu0 %1314 }
 0x383   : > { %v2368_v23 = vmax.f32 %v2304_v35, 0.0  ;;  %v2853_v4 = vadd.f32 %v8452_v16, %v2788_v60  ;;  %v696_v35 = vmul.f32 %v8963_v17, %v10370_v39 }
 0x384   : > { %7329 = vset.pattern.permute.xlu1 %v10268_v28 }
 0x385   : > { %7330 = vset.pattern.permute.xlu2 %v10268_v28  ;;  %1306 = vperm.xlu1 %7329, %v7431_v1   ;;  %v2421_v12 = vpack.c.bf16 %v2369_v10, %v2368_v23  ;;  %v3045_v38 = vmax.f32 %v2853_v4, 0.0  ;;  %v1470_v23 = vmul.f32 %v8995_v61, %v8973_v57  ;;  %v9069_v10 = vld [vmem:[%s7522_s8 + $0x1d0] sm:$0xff] }
 0x386   : > { %1414 = vperm.xlu2 %7330, %v7427_v49   ;;  %v2163_v25 = vpop.permute.xlu1 %2162  ;;  %v2627_v41 = vpop.f32.mrf.mxu2 }
 0x387   : > { %v2268_v0 = vmul.f32 %v9020_v9, %v2163_v25  ;;  %v2720_v44 = vpack.c.bf16 %v2627_v41, %v2627_v41  ;;  %2569 = vmatmul.bf16.gmra.mxu0 %v2421_v12  ;;  %v10372_v41 = vld [vmem:[#allocation44_spill] sm:$0xff] }
 0x389   : > { %v2332_v24 = vadd.f32 %v2268_v0, %v1946_v59  ;;  %v2789_v62 = vunpack.c.l.bf16 %v2720_v44  ;;  %v1677_v21 = vpop.permute.xlu2 %1676  ;;  %v724_v59 = vmul.f32 %v8963_v17, %v10372_v41 }
 0x38b   : > { %v2396_v14 = vmax.f32 %v2332_v24, 0.0  ;;  %v2854_v11 = vadd.f32 %v8452_v16, %v2789_v62  ;;  %v1112_v62 = vmul.f32 %v8978_v8, %v8470_v15 }
 0x38d   : > { %1418 = vperm.xlu1 %7329, %v9006_v36   ;;  %v2435_v6 = vpack.c.bf16 %v2397_v19, %v2396_v14  ;;  %v3046_v58 = vmax.f32 %v2854_v11, 0.0  ;;  %v2059_v14 = vpop.permute.xlu0 %2058 }
 0x38e   : > { %7331 = vset.pattern.permute.xlu2 %v10270_v42 }
 0x38f   : > { %1688 = vperm.xlu2 %7331, %v7432_v34   ;;  %v1017_v53 = vpop.permute.xlu1 %1016  ;;  %2639 = vmatmul.bf16.gmra.mxu2 %v2435_v6  ;;  %v3087_v52 = vpack.c.bf16 %v3046_v58, %v3045_v38  ;;  %v2242_v6 = vmul.f32 %v9020_v9, %v2059_v14  ;;  %v1857_v38 = vmul.f32 %v9012_v54, %v1677_v21 }
 0x390   : > { %v1113_v19 = vmul.f32 %v8978_v8, %v1017_v53  ;;  %v1498_v53 = vmul.f32 %v8995_v61, %v9023_v63 }
 0x391   : > { %3280 = vmatmul.bf16.gmra.mxu3 %v3087_v52  ;;  %v9038_v46 = vpop.permute.xlu2 %1788  ;;  %v791_v52 = vadd.f32 %v8985_v7, %v724_v59 }
 0x395   : > { %7333 = vset.pattern.permute.xlu1 %v10270_v42 }
 0x396   : > { %1800 = vperm.xlu1 %7333, %v7427_v49   ;;  %v10369_v49 = vld [vmem:[#allocation30_spill] sm:$0xff] }
 0x397   : > { %1804 = vperm.xlu2 %7331, %v9006_v36   ;;  %v695_v33 = vmul.f32 %v8963_v17, %v10369_v49  ;;  %v1499_v49 = vmul.f32 %v8995_v61, %v1403_v5 }
 0x398   : > { %v1291_v56 = vpop.permute.xlu1 %1290 }
 0x399   : > { %v762_v27 = vadd.f32 %v8985_v7, %v695_v33  ;;  %v1471_v25 = vmul.f32 %v8995_v61, %v1291_v56  ;;  %v790_v56 = vadd.f32 %v8985_v7, %v723_v45  ;;  %v1177_v33 = vadd.f32 %v1113_v19, %v791_v52 }
 0x39a   : > { %v9042_v47 = vpop.permute.xlu2 %2170 }
 0x39b   : > { %v1148_v12 = vadd.f32 %v1084_v20, %v762_v27  ;;  %v1176_v21 = vadd.f32 %v1112_v62, %v790_v56  ;;  %v2270_v30 = vmul.f32 %v9020_v9, %v9042_v47  ;;  %v7172_v56 = vld [vmem:[%s10190_s3 + $0xa8] sm:$0xff] }
 0x39c   : > { %3821 = vmatpush.bf16.msrb.mxu2 %v7172_v56 }
 0x39d   : > { %v1534_v4 = vadd.f32 %v1470_v23, %v1148_v12 }
 0x39e   : > { %7334 = vset.pattern.permute.xlu1 %v10272_v22 }
 0x39f   : > { %7335 = vset.pattern.permute.xlu2 %v10272_v22  ;;  %2074 = vperm.xlu1 %7334, %v7432_v34  }
 0x3a0   : > { %2078 = vperm.xlu2 %7335, %v7431_v1   ;;  %v763_v1 = vadd.f32 %v8985_v7, %v696_v35 }
 0x3a1   : > { %v1673_v55 = vpop.permute.xlu1 %1672 }
 0x3a2   : > { %v1149_v44 = vadd.f32 %v1085_v37, %v763_v1  ;;  %v1562_v1 = vadd.f32 %v1498_v53, %v1176_v21 }
 0x3a3   : > { %v9053_v2 = vpop.permute.xlu2 %1020 }
 0x3a4   : > { %v2560_v51 = vpop.f32.mrf.mxu0  ;;  %v1535_v58 = vadd.f32 %v1471_v25, %v1149_v44  ;;  %v1563_v25 = vadd.f32 %v1499_v49, %v1177_v33  ;;  %v7436_v49 = vld [vmem:[%s7522_s8 + $0xf8] sm:$0xff] }
 0x3a5   : > { %v2693_v32 = vpack.c.bf16 %v2560_v51, %v2560_v51  ;;  %v9099_v51 = vld [vmem:[%s7522_s8 + $0xf0] sm:$0xff] }
 0x3a6   : > { %v1921_v20 = vadd.f32 %v1857_v38, %v1535_v58 }
 0x3a7   : > { %2190 = vperm.xlu1 %7334, %v9006_v36   ;;  %v1856_v36 = vmul.f32 %v9012_v54, %v1673_v55  ;;  %v2762_v0 = vunpack.c.l.bf16 %v2693_v32  ;;  %v9091_v55 = vld [vmem:[%s7522_s8 + $0x1d8] sm:$0xff] }
 0x3a8   : > { %7336 = vset.pattern.permute.xlu2 %v10332_v48 }
 0x3a9   : > { %1036 = vperm.xlu2 %7336, %v9069_v10   ;;  %v1785_v60 = vpop.permute.xlu1 %1784  ;;  %v1920_v34 = vadd.f32 %v1856_v36, %v1534_v4  ;;  %v2827_v3 = vadd.f32 %v8452_v16, %v2762_v0  ;;  %v1885_v36 = vmul.f32 %v9012_v54, %v9038_v46 }
 0x3aa   : > { %v1884_v13 = vmul.f32 %v9012_v54, %v1785_v60 }
 0x3ab   : > { %v2306_v27 = vadd.f32 %v2242_v6, %v1920_v34  ;;  %v3019_v37 = vmax.f32 %v2827_v3, 0.0  ;;  %v1949_v62 = vadd.f32 %v1885_v36, %v1563_v25 }
 0x3ac   : > { %v9079_v57 = vpop.permute.xlu2 %1298  ;;  %v2562_v24 = vpop.f32.mrf.mxu0  ;;  %v1948_v45 = vadd.f32 %v1884_v13, %v1562_v1 }
 0x3ad   : > { %v2694_v11 = vpack.c.bf16 %v2562_v24, %v2562_v24  ;;  %v2370_v60 = vmax.f32 %v2306_v27, 0.0  ;;  %v10374_v27 = vld [vmem:[#allocation21_spill] sm:$0xff] }
 0x3ae   : > { %v2334_v19 = vadd.f32 %v2270_v30, %v1948_v45  ;;  %v697_v13 = vmul.f32 %v8963_v17, %v10374_v27  ;;  %v1473_v45 = vmul.f32 %v8995_v61, %v9079_v57  ;;  %v10378_v57 = vld [vmem:[#allocation56_spill] sm:$0xff] }
 0x3af   : > { %7337 = vset.pattern.permute.xlu1 %v10332_v48  ;;  %v2763_v15 = vunpack.c.l.bf16 %v2694_v11 }
 0x3b0   : > { %1040 = vperm.xlu1 %7337, %v9091_v55   ;;  %v2398_v52 = vmax.f32 %v2334_v19, 0.0 }
 0x3b1   : > { %7338 = vset.pattern.permute.xlu2 %v10268_v28  ;;  %v2828_v35 = vadd.f32 %v8452_v16, %v2763_v15 }
 0x3b2   : > { %1310 = vperm.xlu2 %7338, %v9099_v51   ;;  %v2063_v39 = vpop.permute.xlu1 %2062 }
 0x3b3   : > { %v2243_v32 = vmul.f32 %v9020_v9, %v2063_v39  ;;  %v2630_v63 = vpop.f32.mrf.mxu2  ;;  %v3020_v23 = vmax.f32 %v2828_v35, 0.0 }
 0x3b4   : > { %v9105_v5 = vpop.permute.xlu2 %1410  ;;  %v2721_v41 = vpack.c.bf16 %v2630_v63, %v2630_v63  ;;  %v764_v63 = vadd.f32 %v8985_v7, %v697_v13 }
 0x3b5   : > { %v2307_v12 = vadd.f32 %v2243_v32, %v1921_v20  ;;  %v3074_v59 = vpack.c.bf16 %v3020_v23, %v3019_v37  ;;  %v10375_v20 = vld [vmem:[#allocation79_spill] sm:$0xff]  ;;  %v10376_v37 = vld [vmem:[#allocation33_spill] sm:$0xff] }
 0x3b6   : > { %v2790_v4 = vunpack.c.l.bf16 %v2721_v41  ;;  %v1086_v32 = vmul.f32 %v8978_v8, %v10375_v20  ;;  %v698_v23 = vmul.f32 %v8963_v17, %v10376_v37  ;;  %v10377_v41 = vld [vmem:[#allocation72_spill] sm:$0xff] }
 0x3b7   : > { %v2371_v0 = vmax.f32 %v2307_v12, 0.0  ;;  %3215 = vmatmul.bf16.gmra.mxu1 %v3074_v59  ;;  %v1087_v59 = vmul.f32 %v8978_v8, %v10377_v41 }
 0x3b8   : > { %7340 = vset.pattern.permute.xlu1 %v10268_v28  ;;  %v2855_v38 = vadd.f32 %v8452_v16, %v2790_v4  ;;  %v1150_v25 = vadd.f32 %v1086_v32, %v764_v63  ;;  %v765_v36 = vadd.f32 %v8985_v7, %v698_v23  ;;  %v2071_v4 = vpop.permute.xlu0 %2070 }
 0x3b9   : > { %1422 = vperm.xlu1 %7340, %v9069_v10   ;;  %v2422_v44 = vpack.c.bf16 %v2371_v0, %v2370_v60  ;;  %v1858_v60 = vmul.f32 %v9012_v54, %v8802_v40 }
 0x3ba   : > { %1426 = vperm.xlu2 %7338, %v9091_v55   ;;  %v2175_v24 = vpop.permute.xlu1 %2174  ;;  %v3047_v53 = vmax.f32 %v2855_v38, 0.0  ;;  %v1151_v0 = vadd.f32 %v1087_v59, %v765_v36 }
 0x3bb   : > { %v2271_v46 = vmul.f32 %v9020_v9, %v2175_v24  ;;  %v2632_v14 = vpop.f32.mrf.mxu2  ;;  %2574 = vmatmul.bf16.gmra.mxu0 %v2422_v44 }
 0x3bc   : > { %v2722_v47 = vpack.c.bf16 %v2632_v14, %v2632_v14 }
 0x3bd   : > { %v2335_v11 = vadd.f32 %v2271_v46, %v1949_v62  ;;  %v9115_v6 = vpop.permute.xlu2 %1792  ;;  %v2245_v62 = vmul.f32 %v9020_v9, %v2071_v4  ;;  %v1537_v46 = vadd.f32 %v1473_v45, %v1151_v0 }
 0x3be   : > { %v2791_v58 = vunpack.c.l.bf16 %v2722_v47  ;;  %v1886_v59 = vmul.f32 %v9012_v54, %v9115_v6 }
 0x3bf   : > { %v2399_v34 = vmax.f32 %v2335_v11, 0.0  ;;  %v726_v11 = vmul.f32 %v8963_v17, %v10378_v57 }
 0x3c0   : > { %v2856_v3 = vadd.f32 %v8452_v16, %v2791_v58  ;;  %v10379_v58 = vld [vmem:[#allocation57_spill] sm:$0xff] }
 0x3c1   : > { %7341 = vset.pattern.permute.xlu1 %v10270_v42  ;;  %v2436_v15 = vpack.c.bf16 %v2399_v34, %v2398_v52  ;;  %v725_v34 = vmul.f32 %v8963_v17, %v10379_v58 }
 0x3c2   : > { %7342 = vset.pattern.permute.xlu2 %v10270_v42  ;;  %1696 = vperm.xlu1 %7341, %v9099_v51   ;;  %v3048_v21 = vmax.f32 %v2856_v3, 0.0 }
 0x3c3   : > { %1700 = vperm.xlu2 %7342, %v7436_v49   ;;  %v1295_v33 = vpop.permute.xlu1 %1294  ;;  %2644 = vmatmul.bf16.gmra.mxu2 %v2436_v15  ;;  %v1114_v15 = vmul.f32 %v8978_v8, %v9053_v2  ;;  %v792_v27 = vadd.f32 %v8985_v7, %v725_v34  ;;  %v7438_v2 = vld [vmem:[%s7522_s8 + $0x1e8] sm:$0xff] }
 0x3c4   : > { %v3088_v39 = vpack.c.bf16 %v3048_v21, %v3047_v53  ;;  %v1472_v1 = vmul.f32 %v8995_v61, %v1295_v33  ;;  %v793_v33 = vadd.f32 %v8985_v7, %v726_v11 }
 0x3c5   : > { %v1178_v23 = vadd.f32 %v1114_v15, %v792_v27 }
 0x3c6   : > { %3285 = vmatmul.bf16.gmra.mxu3 %v3088_v39  ;;  %v2067_v35 = vpop.permute.xlu2 %2066  ;;  %v1536_v30 = vadd.f32 %v1472_v1, %v1150_v25  ;;  %v1501_v39 = vmul.f32 %v8995_v61, %v9105_v5 }
 0x3c8   : > { %v1922_v44 = vadd.f32 %v1858_v60, %v1536_v30 }
 0x3ca   : > { %1812 = vperm.xlu1 %7341, %v9091_v55  }
 0x3cb   : > { %7343 = vset.pattern.permute.xlu2 %v10272_v22  ;;  %v1407_v12 = vpop.permute.xlu1 %1406 }
 0x3cc   : > { %2082 = vperm.xlu2 %7343, %v9099_v51   ;;  %v2244_v51 = vmul.f32 %v9020_v9, %v2067_v35  ;;  %v1500_v13 = vmul.f32 %v8995_v61, %v1407_v12  ;;  %v7171_v12 = vld [vmem:[%s10190_s3 + $0xa0] sm:$0xff] }
 0x3cd   : > { %3822 = vmatpush.bf16.msrb.mxu2 %v7171_v12 }
 0x3ce   : > { %v2183_v55 = vpop.permute.xlu2 %2182  ;;  %v2308_v40 = vadd.f32 %v2244_v51, %v1922_v44  ;;  %v1564_v30 = vadd.f32 %v1500_v13, %v1178_v23  ;;  %v7440_v13 = vld [vmem:[%s7522_s8 + $0x1f8] sm:$0xff] }
 0x3cf   : > { %v2273_v45 = vmul.f32 %v9020_v9, %v2183_v55 }
 0x3d0   : > { %v2372_v53 = vmax.f32 %v2308_v40, 0.0 }
 0x3d2   : > { %7344 = vset.pattern.permute.xlu1 %v10272_v22 }
 0x3d3   : > { %2086 = vperm.xlu1 %7344, %v7436_v49  }
 0x3d4   : > { %2194 = vperm.xlu2 %7343, %v9069_v10   ;;  %v1685_v24 = vpop.permute.xlu1 %1684  ;;  %v1115_v10 = vmul.f32 %v8978_v8, %v8480_v29  ;;  %v7437_v29 = vld [vmem:[%s7522_s8 + $0x1e0] sm:$0xff] }
 0x3d5   : > { %v1859_v14 = vmul.f32 %v9012_v54, %v1685_v24 }
 0x3d6   : > { %v1179_v32 = vadd.f32 %v1115_v10, %v793_v33 }
 0x3d7   : > { %v1923_v19 = vadd.f32 %v1859_v14, %v1537_v46  ;;  %v2635_v47 = vpop.f32.mrf.mxu2  ;;  %v9155_v56 = vpop.permute.xlu2 %1032  ;;  %v1950_v14 = vadd.f32 %v1886_v59, %v1564_v30  ;;  %v1088_v59 = vmul.f32 %v8978_v8, %v8277_v26  ;;  %v10383_v30 = vld [vmem:[#allocation47_spill] sm:$0xff] }
 0x3d8   : > { %v2565_v38 = vpop.f32.mrf.mxu0  ;;  %v2723_v3 = vpack.c.bf16 %v2635_v47, %v2635_v47  ;;  %v1565_v25 = vadd.f32 %v1501_v39, %v1179_v32  ;;  %v7439_v39 = vld [vmem:[%s7522_s8 + $0x1f0] sm:$0xff] }
 0x3d9   : > { %v2309_v52 = vadd.f32 %v2245_v62, %v1923_v19  ;;  %v2695_v49 = vpack.c.bf16 %v2565_v38, %v2565_v38 }
 0x3da   : > { %v2792_v63 = vunpack.c.l.bf16 %v2723_v3 }
 0x3db   : > { %v2373_v21 = vmax.f32 %v2309_v52, 0.0  ;;  %7346 = vset.pattern.permute.xlu1 %v10332_v48  ;;  %v2764_v1 = vunpack.c.l.bf16 %v2695_v49 }
 0x3dc   : > { %7347 = vset.pattern.permute.xlu2 %v10332_v48  ;;  %1044 = vperm.xlu1 %7346, %v7437_v29   ;;  %v1797_v35 = vpop.permute.xlu1 %1796  ;;  %v2857_v0 = vadd.f32 %v8452_v16, %v2792_v63 }
 0x3dd   : > { %1048 = vperm.xlu2 %7347, %v7438_v2   ;;  %v2423_v20 = vpack.c.bf16 %v2373_v21, %v2372_v53  ;;  %v1887_v37 = vmul.f32 %v9012_v54, %v1797_v35  ;;  %v2829_v24 = vadd.f32 %v8452_v16, %v2764_v1 }
 0x3de   : > { %v3049_v19 = vmax.f32 %v2857_v0, 0.0  ;;  %v1474_v0 = vmul.f32 %v8995_v61, %v9044_v18 }
 0x3df   : > { %2579 = vmatmul.bf16.gmra.mxu0 %v2423_v20  ;;  %v2637_v5 = vpop.f32.mrf.mxu2  ;;  %v1951_v44 = vadd.f32 %v1887_v37, %v1565_v25  ;;  %v3021_v11 = vmax.f32 %v2829_v24, 0.0 }
 0x3e0   : > { %v2724_v36 = vpack.c.bf16 %v2637_v5, %v2637_v5  ;;  %v2567_v41 = vpop.f32.mrf.mxu0  ;;  %v9176_v4 = vpop.permute.xlu2 %1414 }
 0x3e1   : > { %v2696_v60 = vpack.c.bf16 %v2567_v41, %v2567_v41  ;;  %v2337_v57 = vadd.f32 %v2273_v45, %v1951_v44 }
 0x3e2   : > { %v2793_v51 = vunpack.c.l.bf16 %v2724_v36 }
 0x3e3   : > { %v2765_v62 = vunpack.c.l.bf16 %v2696_v60  ;;  %v2401_v3 = vmax.f32 %v2337_v57, 0.0  ;;  %v727_v60 = vmul.f32 %v8963_v17, %v10383_v30 }
 0x3e4   : > { %7348 = vset.pattern.permute.xlu1 %v10268_v28  ;;  %v2858_v6 = vadd.f32 %v8452_v16, %v2793_v51  ;;  %v1861_v51 = vmul.f32 %v9012_v54, %v8810_v31  ;;  %v1117_v31 = vmul.f32 %v8978_v8, %v9155_v56 }
 0x3e5   : > { %7349 = vset.pattern.permute.xlu2 %v10268_v28  ;;  %1430 = vperm.xlu1 %7348, %v7437_v29   ;;  %v2179_v46 = vpop.permute.xlu1 %2178  ;;  %v2830_v55 = vadd.f32 %v8452_v16, %v2765_v62  ;;  %v10384_v62 = vld [vmem:[#allocation59_spill] sm:$0xff] }
 0x3e6   : > { %v2272_v40 = vmul.f32 %v9020_v9, %v2179_v46  ;;  %1434 = vperm.xlu2 %7349, %v7438_v2   ;;  %v3050_v47 = vmax.f32 %v2858_v6, 0.0 }
 0x3e7   : > { %v3022_v38 = vmax.f32 %v2830_v55, 0.0  ;;  %v794_v55 = vadd.f32 %v8985_v7, %v727_v60 }
 0x3e8   : > { %v2336_v58 = vadd.f32 %v2272_v40, %v1950_v14  ;;  %v3089_v34 = vpack.c.bf16 %v3050_v47, %v3049_v19 }
 0x3e9   : > { %v3075_v52 = vpack.c.bf16 %v3022_v38, %v3021_v11  ;;  %v1689_v15 = vpop.permute.xlu2 %1688  ;;  %v1502_v11 = vmul.f32 %v8995_v61, %v9176_v4 }
 0x3ea   : > { %v2400_v10 = vmax.f32 %v2336_v58, 0.0  ;;  %3290 = vmatmul.bf16.gmra.mxu3 %v3089_v34  ;;  %v1860_v46 = vmul.f32 %v9012_v54, %v1689_v15 }
 0x3eb   : > { %3220 = vmatmul.bf16.gmra.mxu1 %v3075_v52 }
 0x3ec   : > { %v2437_v53 = vpack.c.bf16 %v2401_v3, %v2400_v10 }
 0x3ed   : > { %7350 = vset.pattern.permute.xlu1 %v10270_v42 }
 0x3ee   : > { %7351 = vset.pattern.permute.xlu2 %v10272_v22  ;;  %1820 = vperm.xlu1 %7350, %v7438_v2   ;;  %v1029_v21 = vpop.permute.xlu1 %1028 }
 0x3ef   : > { %2649 = vmatmul.bf16.gmra.mxu2 %v2437_v53  ;;  %2202 = vperm.xlu2 %7351, %v7437_v29   ;;  %v10380_v29 = vld [vmem:[#allocation24_spill] sm:$0xff]  ;;  %v1116_v24 = vmul.f32 %v8978_v8, %v1029_v21 }
 0x3f0   : > { %v700_v20 = vmul.f32 %v8963_v17, %v10380_v29 }
 0x3f1   : > { %v9186_v49 = vpop.permute.xlu2 %1804  ;;  %v1180_v38 = vadd.f32 %v1116_v24, %v794_v55  ;;  %v7169_v55 = vld [vmem:[%s10190_s3 + $0x90] sm:$0xff] }
 0x3f2   : > { %v767_v37 = vadd.f32 %v8985_v7, %v700_v20 }
 0x3f3   : > { %v1566_v20 = vadd.f32 %v1502_v11, %v1180_v38  ;;  %v10386_v38 = vld [vmem:[#allocation50_spill] sm:$0xff] }
 0x3f6   : > { %7352 = vset.pattern.permute.xlu1 %v10272_v22 }
 0x3f7   : > { %7353 = vset.pattern.permute.xlu2 %v10332_v48  ;;  %2206 = vperm.xlu1 %7352, %v7438_v2   ;;  %v1307_v33 = vpop.permute.xlu1 %1306  ;;  %v7170_v48 = vld [vmem:[%s10190_s3 + $0x98] sm:$0xff] }
 0x3f8   : > { %1052 = vperm.xlu2 %7353, %v7439_v39   ;;  %v10381_v2 = vld [vmem:[#allocation82_spill] sm:$0xff]  ;;  %3823 = vmatpush.bf16.msrb.mxu2 %v7170_v48  ;;  %v1475_v23 = vmul.f32 %v8995_v61, %v1307_v33 }
 0x3f9   : > { %v1089_v32 = vmul.f32 %v8978_v8, %v10381_v2  ;;  %v7182_v48 = vld [vmem:[%s10190_s3 + $0xf8] sm:$0xff]  ;;  %v1889_v2 = vmul.f32 %v9012_v54, %v9186_v49 }
 0x3fa   : > { %v2079_v35 = vpop.permute.xlu2 %2078  ;;  %4476 = vmatpush.bf16.msrb.mxu3 %v7182_v48 }
 0x3fb   : > { %v1153_v25 = vadd.f32 %v1089_v32, %v767_v37  ;;  %v2247_v19 = vmul.f32 %v9020_v9, %v2079_v35  ;;  %v2187_v35 = vpop.permute.xlu0 %2186 }
 0x3fc   : > { %3824 = vmatpush.bf16.msrb.mxu2 %v7169_v55 }
 0x3fd   : > { %v1539_v12 = vadd.f32 %v1475_v23, %v1153_v25 }
 0x3ff   : > { %7355 = vset.pattern.permute.xlu1 %v10268_v28  ;;  %v1419_v27 = vpop.permute.xlu1 %1418  ;;  %v1925_v40 = vadd.f32 %v1861_v51, %v1539_v12 }
 0x400   : > { %7356 = vset.pattern.permute.xlu2 %v10268_v28  ;;  %1438 = vperm.xlu1 %7355, %v7439_v39   ;;  %v10382_v28 = vld [vmem:[#allocation32_spill] sm:$0xff]  ;;  %v1503_v15 = vmul.f32 %v8995_v61, %v1419_v27  ;;  %v2274_v27 = vmul.f32 %v9020_v9, %v2187_v35 }
 0x401   : > { %1442 = vperm.xlu2 %7356, %v7440_v13   ;;  %v699_v1 = vmul.f32 %v8963_v17, %v10382_v28  ;;  %v2311_v3 = vadd.f32 %v2247_v19, %v1925_v40 }
 0x403   : > { %v9205_v36 = vpop.permute.xlu2 %1036  ;;  %v766_v45 = vadd.f32 %v8985_v7, %v699_v1  ;;  %v2375_v37 = vmax.f32 %v2311_v3, 0.0 }
 0x404   : > { %v2570_v63 = vpop.f32.mrf.mxu0  ;;  %v1118_v11 = vmul.f32 %v8978_v8, %v9205_v36 }
 0x405   : > { %v2697_v5 = vpack.c.bf16 %v2570_v63, %v2570_v63  ;;  %v1152_v6 = vadd.f32 %v1088_v59, %v766_v45 }
 0x407   : > { %v2766_v44 = vunpack.c.l.bf16 %v2697_v5  ;;  %v1538_v18 = vadd.f32 %v1474_v0, %v1152_v6 }
 0x408   : > { %7357 = vset.pattern.permute.xlu1 %v10270_v42  ;;  %v1801_v41 = vpop.permute.xlu1 %1800 }
 0x409   : > { %7358 = vset.pattern.permute.xlu2 %v10270_v42  ;;  %1824 = vperm.xlu1 %7357, %v7439_v39   ;;  %v728_v42 = vmul.f32 %v8963_v17, %v10384_v62  ;;  %v2831_v47 = vadd.f32 %v8452_v16, %v2766_v44  ;;  %v1924_v34 = vadd.f32 %v1860_v46, %v1538_v18  ;;  %v2199_v18 = vpop.permute.xlu0 %2198 }
 0x40a   : > { %1828 = vperm.xlu2 %7358, %v7440_v13   ;;  %v1888_v53 = vmul.f32 %v9012_v54, %v1801_v41 }
 0x40b   : > { %v795_v58 = vadd.f32 %v8985_v7, %v728_v42  ;;  %v3023_v33 = vmax.f32 %v2831_v47, 0.0 }
 0x40c   : > { %v2572_v26 = vpop.f32.mrf.mxu0  ;;  %v9234_v21 = vpop.permute.xlu2 %1310  ;;  %v1952_v23 = vadd.f32 %v1888_v53, %v1566_v20  ;;  %v10387_v53 = vld [vmem:[#allocation36_spill] sm:$0xff] }
 0x40d   : > { %v2698_v14 = vpack.c.bf16 %v2572_v26, %v2572_v26  ;;  %v1181_v29 = vadd.f32 %v1117_v31, %v795_v58  ;;  %v730_v58 = vmul.f32 %v8963_v17, %v10386_v38  ;;  %v7181_v20 = vld [vmem:[%s10190_s3 + $0xf0] sm:$0xff] }
 0x40e   : > { %v2338_v41 = vadd.f32 %v2274_v27, %v1952_v23  ;;  %4477 = vmatpush.bf16.msrb.mxu3 %v7181_v20  ;;  %v10389_v23 = vld [vmem:[#allocation35_spill] sm:$0xff] }
 0x40f   : > { %v2767_v57 = vunpack.c.l.bf16 %v2698_v14 }
 0x410   : > { %v2402_v51 = vmax.f32 %v2338_v41, 0.0 }
 0x411   : > { %7360 = vset.pattern.permute.xlu1 %v10272_v22  ;;  %v2075_v52 = vpop.permute.xlu1 %2074  ;;  %v2832_v10 = vadd.f32 %v8452_v16, %v2767_v57  ;;  %v10385_v57 = vld [vmem:[#allocation58_spill] sm:$0xff] }
 0x412   : > { %v2246_v56 = vmul.f32 %v9020_v9, %v2075_v52  ;;  %2214 = vperm.xlu1 %7360, %v7440_v13   ;;  %v2640_v4 = vpop.f32.mrf.mxu2  ;;  %v1567_v13 = vadd.f32 %v1503_v15, %v1181_v29  ;;  %v729_v31 = vmul.f32 %v8963_v17, %v10385_v57 }
 0x413   : > { %v3024_v39 = vmax.f32 %v2832_v10, 0.0  ;;  %v2725_v32 = vpack.c.bf16 %v2640_v4, %v2640_v4  ;;  %v1809_v4 = vpop.permute.xlu0 %1808 }
 0x414   : > { %v2310_v22 = vadd.f32 %v2246_v56, %v1924_v34  ;;  %v1953_v59 = vadd.f32 %v1889_v2, %v1567_v13  ;;  %v1427_v45 = vpop.permute.xlu2 %1426  ;;  %v796_v34 = vadd.f32 %v8985_v7, %v729_v31  ;;  %v701_v56 = vmul.f32 %v8963_v17, %v10387_v53  ;;  %v10388_v2 = vld [vmem:[#allocation74_spill] sm:$0xff] }
 0x415   : > { %v3076_v63 = vpack.c.bf16 %v3024_v39, %v3023_v33  ;;  %v2794_v5 = vunpack.c.l.bf16 %v2725_v32  ;;  %v797_v33 = vadd.f32 %v8985_v7, %v730_v58  ;;  %v1890_v39 = vmul.f32 %v9012_v54, %v1809_v4 }
 0x416   : > { %v2374_v28 = vmax.f32 %v2310_v22, 0.0  ;;  %v1182_v3 = vadd.f32 %v1118_v11, %v796_v34  ;;  %v1505_v22 = vmul.f32 %v8995_v61, %v1427_v45  ;;  %v768_v27 = vadd.f32 %v8985_v7, %v701_v56 }
 0x417   : > { %3225 = vmatmul.bf16.gmra.mxu1 %v3076_v63  ;;  %v2859_v0 = vadd.f32 %v8452_v16, %v2794_v5  ;;  %v1090_v32 = vmul.f32 %v8978_v8, %v10388_v2 }
 0x418   : > { %v2424_v1 = vpack.c.bf16 %v2375_v37, %v2374_v28  ;;  %v702_v28 = vmul.f32 %v8963_v17, %v10389_v23 }
 0x419   : > { %v2191_v25 = vpop.permute.xlu1 %2190  ;;  %v3051_v42 = vmax.f32 %v2859_v0, 0.0 }
 0x41a   : > { %v2275_v30 = vmul.f32 %v9020_v9, %v2191_v25  ;;  %2584 = vmatmul.bf16.gmra.mxu0 %v2424_v1  ;;  %v2642_v60 = vpop.f32.mrf.mxu2  ;;  %v1476_v1 = vmul.f32 %v8995_v61, %v9234_v21  ;;  %v1477_v21 = vmul.f32 %v8995_v61, %v9055_v43  ;;  %v7168_v43 = vld [vmem:[%s10190_s3 + $0x88] sm:$0xff] }
 0x41b   : > { %v2726_v12 = vpack.c.bf16 %v2642_v60, %v2642_v60  ;;  %3825 = vmatpush.bf16.msrb.mxu2 %v7168_v43 }
 0x41c   : > { %v2339_v49 = vadd.f32 %v2275_v30, %v1953_v59  ;;  %v1154_v59 = vadd.f32 %v1090_v32, %v768_v27  ;;  %v1091_v30 = vmul.f32 %v8978_v8, %v8289_v50 }
 0x41d   : > { %v2795_v44 = vunpack.c.l.bf16 %v2726_v12  ;;  %v1701_v40 = vpop.permute.xlu2 %1700  ;;  %v2277_v12 = vmul.f32 %v9020_v9, %v2199_v18 }
 0x41e   : > { %v2403_v24 = vmax.f32 %v2339_v49, 0.0  ;;  %v1863_v50 = vmul.f32 %v9012_v54, %v1701_v40 }
 0x41f   : > { %v2860_v26 = vadd.f32 %v8452_v16, %v2795_v44  ;;  %v769_v44 = vadd.f32 %v8985_v7, %v702_v28  ;;  %v7180_v28 = vld [vmem:[%s10190_s3 + $0xe8] sm:$0xff] }
 0x420   : > { %v2438_v62 = vpack.c.bf16 %v2403_v24, %v2402_v51  ;;  %v1540_v51 = vadd.f32 %v1476_v1, %v1154_v59  ;;  %4478 = vmatpush.bf16.msrb.mxu3 %v7180_v28  ;;  %v7443_v28 = vld [vmem:[%s10189_s2] ss:$0 sm:$0xff] }
 0x421   : > { %v3052_v6 = vmax.f32 %v2860_v26, 0.0  ;;  %v9282_v26 = vpop.f32.mrf.mxu1 }
 0x422   : > { %v1041_v46 = vpop.permute.xlu1 %1040  ;;  %2654 = vmatmul.bf16.gmra.mxu2 %v2438_v62 }
 0x423   : > { %v3090_v14 = vpack.c.bf16 %v3052_v6, %v3051_v42  ;;  %v1119_v15 = vmul.f32 %v8978_v8, %v1041_v46  ;;  %v1155_v6 = vadd.f32 %v1091_v30, %v769_v44 }
 0x425   : > { %3295 = vmatmul.bf16.gmra.mxu3 %v3090_v14  ;;  %v1183_v48 = vadd.f32 %v1119_v15, %v797_v33  ;;  %v1541_v31 = vadd.f32 %v1477_v21, %v1155_v6 }
 0x426   : > { %v2083_v47 = vpop.permute.xlu2 %2082 }
 0x427   : > { %v1569_v25 = vadd.f32 %v1505_v22, %v1183_v48  ;;  %v2248_v46 = vmul.f32 %v9020_v9, %v2083_v47  ;;  %v1927_v34 = vadd.f32 %v1863_v50, %v1541_v31 }
 0x42b   : > { %v1423_v19 = vpop.permute.xlu1 %1422 }
 0x42c   : > { %v1504_v52 = vmul.f32 %v8995_v61, %v1423_v19 }
 0x42e   : > { %v1568_v36 = vadd.f32 %v1504_v52, %v1182_v3  ;;  %v2195_v35 = vpop.permute.xlu2 %2194 }
 0x42f   : > { %v2276_v37 = vmul.f32 %v9020_v9, %v2195_v35 }
 0x430   : > { %v1954_v63 = vadd.f32 %v1890_v39, %v1568_v36  ;;  %v9292_v39 = vpop.f32.mrf.mxu1 }
 0x432   : > { %v2340_v45 = vadd.f32 %v2276_v37, %v1954_v63 }
 0x434   : > { %v1697_v10 = vpop.permute.xlu1 %1696  ;;  %v2404_v55 = vmax.f32 %v2340_v45, 0.0 }
 0x435   : > { %v1862_v60 = vmul.f32 %v9012_v54, %v1697_v10 }
 0x437   : > { %v1926_v14 = vadd.f32 %v1862_v60, %v1540_v51  ;;  %v1049_v35 = vpop.permute.xlu2 %1048 }
 0x438   : > { %v2575_v29 = vpop.f32.mrf.mxu0 }
 0x439   : > { %v2699_v13 = vpack.c.bf16 %v2575_v29, %v2575_v29  ;;  %v2312_v40 = vadd.f32 %v2248_v46, %v1926_v14 }
 0x43b   : > { %v2768_v49 = vunpack.c.l.bf16 %v2699_v13  ;;  %v2376_v4 = vmax.f32 %v2312_v40, 0.0 }
 0x43c   : > { %v1813_v5 = vpop.permute.xlu1 %1812 }
 0x43d   : > { %v1891_v41 = vmul.f32 %v9012_v54, %v1813_v5  ;;  %v2833_v19 = vadd.f32 %v8452_v16, %v2768_v49  ;;  %v10390_v5 = vld [vmem:[#allocation61_spill] sm:$0xff]  ;;  %v10391_v49 = vld [vmem:[#allocation60_spill] sm:$0xff] }
 0x43f   : > { %v1955_v0 = vadd.f32 %v1891_v41, %v1569_v25  ;;  %v3025_v10 = vmax.f32 %v2833_v19, 0.0  ;;  %v731_v25 = vmul.f32 %v8963_v17, %v10390_v5  ;;  %v9313_v19 = vpop.f32.mrf.mxu1  ;;  %v7444_v5 = vld [vmem:[%s10188_s1 + $0x2] ss:$0 sm:$0xff] }
 0x440   : > { %v2577_v24 = vpop.f32.mrf.mxu0  ;;  %v1435_v1 = vpop.permute.xlu2 %1434 }
 0x441   : > { %v2341_v62 = vadd.f32 %v2277_v12, %v1955_v0  ;;  %v2700_v42 = vpack.c.bf16 %v2577_v24, %v2577_v24  ;;  %v798_v30 = vadd.f32 %v8985_v7, %v731_v25  ;;  %v7167_v12 = vld [vmem:[%s10190_s3 + $0x80] sm:$0xff]  ;;  %v732_v0 = vmul.f32 %v8963_v17, %v10391_v49  ;;  %v1817_v24 = vpop.permute.xlu0 %1816 }
 0x442   : > { %3826 = vmatpush.bf16.msrb.mxu2 %v7167_v12  ;;  %v1507_v14 = vmul.f32 %v8995_v61, %v1435_v1  ;;  %v7445_v49 = vld [vmem:[%s10188_s1 + $0x3] ss:$0 sm:$0xff] }
 0x443   : > { %v2405_v18 = vmax.f32 %v2341_v62, 0.0  ;;  %v2769_v57 = vunpack.c.l.bf16 %v2700_v42  ;;  %v1892_v62 = vmul.f32 %v9012_v54, %v1817_v24  ;;  %v1121_v42 = vmul.f32 %v8978_v8, %v1049_v35 }
 0x444   : > { %v799_v46 = vadd.f32 %v8985_v7, %v732_v0 }
 0x445   : > { %v2834_v11 = vadd.f32 %v8452_v16, %v2769_v57  ;;  %v2087_v38 = vpop.permute.xlu1 %2086  ;;  %v2439_v58 = vpack.c.bf16 %v2405_v18, %v2404_v55 }
 0x446   : > { %v2249_v47 = vmul.f32 %v9020_v9, %v2087_v38  ;;  %v2645_v52 = vpop.f32.mrf.mxu2  ;;  %v1185_v17 = vadd.f32 %v1121_v42, %v799_v46 }
 0x447   : > { %v3026_v3 = vmax.f32 %v2834_v11, 0.0  ;;  %2659 = vmatmul.bf16.gmra.mxu2 %v2439_v58  ;;  %v2727_v53 = vpack.c.bf16 %v2645_v52, %v2645_v52 }
 0x448   : > { %v2313_v15 = vadd.f32 %v2249_v47, %v1927_v34 }
 0x449   : > { %v3077_v56 = vpack.c.bf16 %v3026_v3, %v3025_v10  ;;  %v2796_v29 = vunpack.c.l.bf16 %v2727_v53  ;;  %v2203_v44 = vpop.permute.xlu2 %2202 }
 0x44a   : > { %v2377_v33 = vmax.f32 %v2313_v15, 0.0  ;;  %v2278_v57 = vmul.f32 %v9020_v9, %v2203_v44 }
 0x44b   : > { %3230 = vmatmul.bf16.gmra.mxu1 %v3077_v56  ;;  %v2861_v27 = vadd.f32 %v8452_v16, %v2796_v29  ;;  %v1057_v29 = vpop.permute.xlu0 %1056 }
 0x44c   : > { %v2425_v36 = vpack.c.bf16 %v2377_v33, %v2376_v4  ;;  %v9323_v4 = vpop.f32.mrf.mxu1 }
 0x44d   : > { %v3053_v63 = vmax.f32 %v2861_v27, 0.0 }
 0x44e   : > { %v1045_v20 = vpop.permute.xlu1 %1044  ;;  %2589 = vmatmul.bf16.gmra.mxu0 %v2425_v36  ;;  %v2647_v22 = vpop.f32.mrf.mxu2 }
 0x44f   : > { %v2728_v48 = vpack.c.bf16 %v2647_v22, %v2647_v22  ;;  %v1120_v41 = vmul.f32 %v8978_v8, %v1045_v20  ;;  %v1571_v8 = vadd.f32 %v1507_v14, %v1185_v17  ;;  %v7441_v22 = vld [vmem:[%s10188_s1] ss:$0 sm:$0xff] }
 0x451   : > { %v2797_v2 = vunpack.c.l.bf16 %v2728_v48  ;;  %v1184_v21 = vadd.f32 %v1120_v41, %v798_v30  ;;  %v10392_v48 = vld [vmem:[#allocation53_spill] sm:$0xff] }
 0x452   : > { %v1053_v7 = vpop.permute.xlu2 %1052  ;;  %v733_v27 = vmul.f32 %v7441_v22, %v10392_v48 }
 0x453   : > { %v2862_v32 = vadd.f32 %v8452_v16, %v2797_v2  ;;  %v7442_v2 = vld [vmem:[%s10188_s1 + $0x1] ss:$0 sm:$0xff]  ;;  %v2211_v44 = vpop.permute.xlu0 %2210 }
 0x454   : > { %v800_v1 = vadd.f32 %v7443_v28, %v733_v27  ;;  %v1123_v30 = vmul.f32 %v7442_v2, %v1057_v29 }
 0x455   : > { %v3054_v37 = vmax.f32 %v2862_v32, 0.0  ;;  %v1122_v32 = vmul.f32 %v7442_v2, %v1053_v7 }
 0x457   : > { %v1431_v13 = vpop.permute.xlu1 %1430  ;;  %v3091_v23 = vpack.c.bf16 %v3054_v37, %v3053_v63  ;;  %v10393_v37 = vld [vmem:[#allocation63_spill] sm:$0xff] }
 0x458   : > { %v1506_v60 = vmul.f32 %v8995_v61, %v1431_v13  ;;  %v734_v13 = vmul.f32 %v7441_v22, %v10393_v37 }
 0x459   : > { %3300 = vmatmul.bf16.gmra.mxu3 %v3091_v23 }
 0x45a   : > { %v1570_v6 = vadd.f32 %v1506_v60, %v1184_v21  ;;  %v1186_v60 = vadd.f32 %v1122_v32, %v800_v1  ;;  %v801_v21 = vadd.f32 %v7443_v28, %v734_v13  ;;  %v3334_v32 = vpack.c.bf16 %v9323_v4, %v9323_v4 }
 0x45c   : > { %v2580_v59 = vpop.f32.mrf.mxu0  ;;  %v1956_v43 = vadd.f32 %v1892_v62, %v1570_v6  ;;  %v1187_v6 = vadd.f32 %v1123_v30, %v801_v21  ;;  %v3404_v13 = vunpack.c.l.bf16 %v3334_v32 }
 0x45d   : > { %v2701_v45 = vpack.c.bf16 %v2580_v59, %v2580_v59 }
 0x45e   : > { %v2342_v47 = vadd.f32 %v2278_v57, %v1956_v43 }
 0x45f   : > { %v2770_v50 = vunpack.c.l.bf16 %v2701_v45 }
 0x460   : > { %v1821_v51 = vpop.permute.xlu1 %1820  ;;  %v2406_v56 = vmax.f32 %v2342_v47, 0.0 }
 0x461   : > { %v1893_v31 = vmul.f32 %v9012_v54, %v1821_v51  ;;  %v2835_v11 = vadd.f32 %v8452_v16, %v2770_v50  ;;  %v7179_v54 = vld [vmem:[%s10190_s3 + $0xe0] sm:$0xff] }
 0x462   : > { %4479 = vmatpush.bf16.msrb.mxu3 %v7179_v54  ;;  %v7446_v50 = vld [vmem:[%s10188_s1 + $0x4] ss:$0 sm:$0xff] }
 0x463   : > { %v1957_v40 = vadd.f32 %v1893_v31, %v1571_v8  ;;  %v3027_v52 = vmax.f32 %v2835_v11, 0.0  ;;  %v2280_v46 = vmul.f32 %v7446_v50, %v2211_v44  ;;  %v9347_v31 = vpop.f32.mrf.mxu1 }
 0x464   : > { %v2582_v55 = vpop.f32.mrf.mxu0 }
 0x465   : > { %v2702_v18 = vpack.c.bf16 %v2582_v55, %v2582_v55 }
 0x467   : > { %v2771_v38 = vunpack.c.l.bf16 %v2702_v18 }
 0x469   : > { %v2836_v58 = vadd.f32 %v8452_v16, %v2771_v38  ;;  %v2207_v34 = vpop.permute.xlu1 %2206 }
 0x46a   : > { %v2279_v61 = vmul.f32 %v9020_v9, %v2207_v34  ;;  %v1443_v9 = vpop.permute.xlu2 %1442  ;;  %v6952_v34 = vld [vmem:[%s10191_s4 + $0x1] sm:$0x1] }
 0x46b   : > { %v3028_v10 = vmax.f32 %v2836_v58, 0.0  ;;  %v1509_v24 = vmul.f32 %v7444_v5, %v1443_v9  ;;  %v3183_v54 = vpop.f32.mrf.mxu1 }
 0x46c   : > { %v2343_v3 = vadd.f32 %v2279_v61, %v1957_v40  ;;  %v3398_v40 = vpack.i.b16 %v6952_v34, %v6952_v34 }
 0x46d   : > { %v3078_v15 = vpack.c.bf16 %v3028_v10, %v3027_v52  ;;  %v1573_v57 = vadd.f32 %v1509_v24, %v1187_v6  ;;  %v3332_v52 = vpack.c.bf16 %v9292_v39, %v9292_v39  ;;  %v3336_v24 = vpack.c.bf16 %v3183_v54, %v3183_v54 }
 0x46e   : > { %v2407_v53 = vmax.f32 %v2343_v3, 0.0  ;;  %v3331_v3 = vpack.c.bf16 %v9282_v26, %v9282_v26  ;;  %v7178_v26 = vld [vmem:[%s10190_s3 + $0xd8] sm:$0xff] }
 0x46f   : > { %3235 = vmatmul.bf16.gmra.mxu1 %v3078_v15  ;;  %v3400_v15 = vperm.slane %v3398_v40, 0  ;;  %4480 = vmatpush.bf16.msrb.mxu3 %v7178_v26 }
 0x470   : > { %v2440_v33 = vpack.c.bf16 %v2407_v53, %v2406_v56  ;;  %v3402_v53 = vunpack.c.l.bf16 %v3332_v52  ;;  %v9356_v56 = vpop.f32.mrf.mxu3 }
 0x472   : > { %v2650_v36 = vpop.f32.mrf.mxu2  ;;  %v1439_v35 = vpop.permute.xlu1 %1438  ;;  %2664 = vmatmul.bf16.gmra.mxu2 %v2440_v33  ;;  %v3401_v33 = vunpack.c.l.bf16 %v3331_v3 }
 0x473   : > { %v2729_v20 = vpack.c.bf16 %v2650_v36, %v2650_v36  ;;  %v1508_v25 = vmul.f32 %v7444_v5, %v1439_v35  ;;  %v1829_v51 = vpop.permute.xlu2 %1828  ;;  %v9358_v36 = vunpack.c.l.bf16 %v3400_v15  ;;  %v9362_v29 = vpop.f32.mrf.mxu1 }
 0x474   : > { %v1895_v14 = vmul.f32 %v7445_v49, %v1829_v51  ;;  %v3337_v54 = vpack.c.bf16 %v9362_v29, %v9362_v29  ;;  %v7189_v29 = vld [vmem:[%s10190_s3 + $0x130] sm:$0xff] }
 0x475   : > { %v2798_v63 = vunpack.c.l.bf16 %v2729_v20  ;;  %v1572_v62 = vadd.f32 %v1508_v25, %v1186_v60  ;;  %v3467_v35 = vadd.f32 %v9358_v36, %v3402_v53  ;;  %v3466_v9 = vadd.f32 %v9358_v36, %v3401_v33 }
 0x476   : > { %v1959_v38 = vadd.f32 %v1895_v14, %v1573_v57  ;;  %v3469_v30 = vadd.f32 %v9358_v36, %v3404_v13 }
 0x477   : > { %v2863_v12 = vadd.f32 %v8452_v16, %v2798_v63  ;;  %v3659_v39 = vmax.f32 %v3467_v35, 0.0  ;;  %v3658_v22 = vmax.f32 %v3466_v9, 0.0  ;;  %v3333_v63 = vpack.c.bf16 %v9313_v19, %v9313_v19 }
 0x478   : > { %v9367_v48 = vpop.f32.mrf.mxu3  ;;  %v3407_v35 = vunpack.c.l.bf16 %v3337_v54 }
 0x479   : > { %v3055_v18 = vmax.f32 %v2863_v12, 0.0  ;;  %v3722_v2 = vpack.c.bf16 %v3659_v39, %v3658_v22  ;;  %v3403_v5 = vunpack.c.l.bf16 %v3333_v63 }
 0x47a   : > { %v2652_v23 = vpop.f32.mrf.mxu2 }
 0x47b   : > { %v2730_v41 = vpack.c.bf16 %v2652_v23, %v2652_v23  ;;  %v1825_v59 = vpop.permute.xlu1 %1824  ;;  %v3188_v28 = vpop.f32.mrf.mxu1  ;;  %v3468_v4 = vadd.f32 %v9358_v36, %v3403_v5 }
 0x47c   : > { %v1894_v0 = vmul.f32 %v7445_v49, %v1825_v59  ;;  %v3661_v49 = vmax.f32 %v3469_v30, 0.0  ;;  %v3338_v3 = vpack.c.bf16 %v3188_v28, %v3188_v28 }
 0x47d   : > { %v2799_v45 = vunpack.c.l.bf16 %v2730_v41  ;;  %v3660_v51 = vmax.f32 %v3468_v4, 0.0 }
 0x47e   : > { %v1958_v55 = vadd.f32 %v1894_v0, %v1572_v62  ;;  %v3408_v33 = vunpack.c.l.bf16 %v3338_v3 }
 0x47f   : > { %v2864_v42 = vadd.f32 %v8452_v16, %v2799_v45 }
 0x480   : > { %v2344_v8 = vadd.f32 %v2280_v46, %v1958_v55  ;;  %v9373_v25 = vpop.f32.mrf.mxu3  ;;  %v3406_v55 = vunpack.c.l.bf16 %v3336_v24  ;;  %v3473_v9 = vadd.f32 %v9358_v36, %v3408_v33 }
 0x481   : > { %v3056_v17 = vmax.f32 %v2864_v42, 0.0  ;;  %v3723_v42 = vpack.c.bf16 %v3661_v49, %v3660_v51  ;;  %v7176_v49 = vld [vmem:[%s10190_s3 + $0xc8] sm:$0xff] }
 0x482   : > { %v2408_v61 = vmax.f32 %v2344_v8, 0.0  ;;  %v3471_v8 = vadd.f32 %v9358_v36, %v3406_v55  ;;  %v3665_v22 = vmax.f32 %v3473_v9, 0.0 }
 0x483   : > { %v3092_v43 = vpack.c.bf16 %v3056_v17, %v3055_v18  ;;  %v3191_v0 = vpop.f32.mrf.mxu1  ;;  %v7190_v18 = vld [vmem:[%s10190_s3 + $0x138] sm:$0xff] }
 0x484   : > { %v2215_v11 = vpop.permute.xlu1 %2214  ;;  %5133 = vmatpush.bf16.msrb.mxu0 %v7190_v18 }
 0x485   : > { %v2281_v58 = vmul.f32 %v7446_v50, %v2215_v11  ;;  %3305 = vmatmul.bf16.gmra.mxu3 %v3092_v43  ;;  %v3335_v50 = vpack.c.bf16 %v9347_v31, %v9347_v31 }
 0x487   : > { %v2345_v7 = vadd.f32 %v2281_v58, %v1959_v38  ;;  %v3405_v43 = vunpack.c.l.bf16 %v3335_v50 }
 0x488   : > { %v9379_v62 = vpop.f32.mrf.mxu3  ;;  %5134 = vmatpush.bf16.msrb.mxu0 %v7189_v29 }
 0x489   : > { %v2409_v47 = vmax.f32 %v2345_v7, 0.0  ;;  %v3470_v7 = vadd.f32 %v9358_v36, %v3405_v43 }
 0x48b   : > { %v2441_v10 = vpack.c.bf16 %v2409_v47, %v2408_v61  ;;  %v3193_v11 = vpop.f32.mrf.mxu1  ;;  %v3663_v61 = vmax.f32 %v3471_v8, 0.0  ;;  %v3662_v47 = vmax.f32 %v3470_v7, 0.0 }
 0x48c   : > { %v3340_v32 = vpack.c.bf16 %v3193_v11, %v3193_v11 }
 0x48d   : > { %2669 = vmatmul.bf16.gmra.mxu2 %v2441_v10  ;;  %v7177_v10 = vld [vmem:[%s10190_s3 + $0xd0] sm:$0xff]  ;;  %v3724_v15 = vpack.c.bf16 %v3663_v61, %v3662_v47 }
 0x48e   : > { %4481 = vmatpush.bf16.msrb.mxu3 %v7177_v10  ;;  %v3410_v5 = vunpack.c.l.bf16 %v3340_v32 }
 0x490   : > { %v9389_v58 = vpop.f32.mrf.mxu3 }
 0x492   : > { %4482 = vmatpush.bf16.msrb.mxu3 %v7176_v49 }
 0x493   : > { %v9392_v52 = vpop.f32.mrf.mxu1 }
 0x494   : > { %v3341_v7 = vpack.c.bf16 %v9392_v52, %v9392_v52 }
 0x496   : > { %v3411_v47 = vunpack.c.l.bf16 %v3341_v7 }
 0x497   : > { %v2585_v20 = vpop.f32.mrf.mxu0 }
 0x498   : > { %v2703_v27 = vpack.c.bf16 %v2585_v20, %v2585_v20  ;;  %v9399_v53 = vpop.f32.mrf.mxu3  ;;  %v3472_v20 = vadd.f32 %v9358_v36, %v3407_v35 }
 0x49a   : > { %v2772_v37 = vunpack.c.l.bf16 %v2703_v27  ;;  %v3664_v27 = vmax.f32 %v3472_v20, 0.0 }
 0x49b   : > { %v3198_v39 = vpop.f32.mrf.mxu1 }
 0x49c   : > { %v2837_v41 = vadd.f32 %v8452_v16, %v2772_v37  ;;  %v3725_v37 = vpack.c.bf16 %v3665_v22, %v3664_v27  ;;  %v7188_v27 = vld [vmem:[%s10190_s3 + $0x128] sm:$0xff] }
 0x49d   : > { %3827 = vmatmul.bf16.vlgmr.msrb.gmra.mxu2 %v3722_v2  ;;  %5135 = vmatpush.bf16.msrb.mxu0 %v7188_v27 }
 0x49e   : > { %v3029_v19 = vmax.f32 %v2837_v41, 0.0 }
 0x49f   : > { %v2587_v23 = vpop.f32.mrf.mxu0 }
 0x4a0   : > { %v2704_v1 = vpack.c.bf16 %v2587_v23, %v2587_v23  ;;  %v9403_v26 = vpop.f32.mrf.mxu3  ;;  %v3339_v23 = vpack.c.bf16 %v3191_v0, %v3191_v0 }
 0x4a2   : > { %v2773_v59 = vunpack.c.l.bf16 %v2704_v1 }
 0x4a3   : > { %v3201_v13 = vpop.f32.mrf.mxu1 }
 0x4a4   : > { %v2838_v60 = vadd.f32 %v8452_v16, %v2773_v59  ;;  %v3409_v59 = vunpack.c.l.bf16 %v3339_v23  ;;  %v3343_v52 = vpack.c.bf16 %v3201_v13, %v3201_v13  ;;  %v7175_v13 = vld [vmem:[%s10190_s3 + $0xc0] sm:$0xff] }
 0x4a5   : > { %v2655_v12 = vpop.f32.mrf.mxu2  ;;  %4483 = vmatpush.bf16.msrb.mxu3 %v7175_v13 }
 0x4a6   : > { %v3030_v45 = vmax.f32 %v2838_v60, 0.0  ;;  %v2731_v44 = vpack.c.bf16 %v2655_v12, %v2655_v12  ;;  %v3475_v12 = vadd.f32 %v9358_v36, %v3410_v5  ;;  %v3413_v32 = vunpack.c.l.bf16 %v3343_v52 }
 0x4a8   : > { %v3079_v21 = vpack.c.bf16 %v3030_v45, %v3029_v19  ;;  %v2800_v6 = vunpack.c.l.bf16 %v2731_v44  ;;  %v9408_v41 = vpop.f32.mrf.mxu3  ;;  %v3474_v44 = vadd.f32 %v9358_v36, %v3409_v59  ;;  %v3667_v50 = vmax.f32 %v3475_v12, 0.0 }
 0x4a9   : > { %v3478_v29 = vadd.f32 %v9358_v36, %v3413_v32 }
 0x4aa   : > { %3240 = vmatmul.bf16.gmra.mxu1 %v3079_v21  ;;  %v2865_v17 = vadd.f32 %v8452_v16, %v2800_v6  ;;  %v3666_v18 = vmax.f32 %v3474_v44, 0.0 }
 0x4ab   : > { %v3203_v24 = vpop.f32.mrf.mxu1  ;;  %v3670_v5 = vmax.f32 %v3478_v29, 0.0 }
 0x4ac   : > { %v3057_v31 = vmax.f32 %v2865_v17, 0.0 }
 0x4ad   : > { %v2657_v46 = vpop.f32.mrf.mxu2  ;;  %3832 = vmatmul.bf16.gmra.mxu2 %v3723_v42 }
 0x4ae   : > { %v2732_v14 = vpack.c.bf16 %v2657_v46, %v2657_v46 }
 0x4b0   : > { %v2801_v57 = vunpack.c.l.bf16 %v2732_v14  ;;  %v9417_v46 = vpop.f32.mrf.mxu3 }
 0x4b2   : > { %v2866_v38 = vadd.f32 %v8452_v16, %v2801_v57 }
 0x4b4   : > { %v3058_v34 = vmax.f32 %v2866_v38, 0.0  ;;  %v3342_v38 = vpack.c.bf16 %v3198_v39, %v3198_v39  ;;  %v3344_v39 = vpack.c.bf16 %v3203_v24, %v3203_v24 }
 0x4b6   : > { %v3093_v40 = vpack.c.bf16 %v3058_v34, %v3057_v31  ;;  %v3726_v31 = vpack.c.bf16 %v3667_v50, %v3666_v18  ;;  %v3412_v61 = vunpack.c.l.bf16 %v3342_v38  ;;  %v3414_v22 = vunpack.c.l.bf16 %v3344_v39 }
 0x4b8   : > { %3310 = vmatmul.bf16.gmra.mxu3 %v3093_v40  ;;  %v3206_v40 = vpop.f32.mrf.mxu1  ;;  %v9423_v10 = vpop.f32.mrf.mxu3  ;;  %v3477_v3 = vadd.f32 %v9358_v36, %v3412_v61 }
 0x4ba   : > { %v3669_v54 = vmax.f32 %v3477_v3, 0.0 }
 0x4bd   : > { %3837 = vmatmul.bf16.gmra.mxu2 %v3724_v15  ;;  %v3476_v15 = vadd.f32 %v9358_v36, %v3411_v47  ;;  %v7187_v47 = vld [vmem:[%s10190_s3 + $0x120] sm:$0xff] }
 0x4be   : > { %5136 = vmatpush.bf16.msrb.mxu0 %v7187_v47  ;;  %v7186_v47 = vld [vmem:[%s10190_s3 + $0x118] sm:$0xff] }
 0x4bf   : > { %v3668_v35 = vmax.f32 %v3476_v15, 0.0 }
 0x4c0   : > { %v3208_v33 = vpop.f32.mrf.mxu1  ;;  %v9427_v9 = vpop.f32.mrf.mxu3 }
 0x4c1   : > { %v3727_v20 = vpack.c.bf16 %v3669_v54, %v3668_v35 }
 0x4c2   : > { %5137 = vmatpush.bf16.msrb.mxu0 %v7186_v47 }
 0x4ca   : > { %v2660_v2 = vpop.f32.mrf.mxu2 }
 0x4cb   : > { %v2590_v63 = vpop.f32.mrf.mxu0  ;;  %v2733_v28 = vpack.c.bf16 %v2660_v2, %v2660_v2  ;;  %v3211_v2 = vpop.f32.mrf.mxu1 }
 0x4cc   : > { %v2705_v1 = vpack.c.bf16 %v2590_v63, %v2590_v63  ;;  %v3479_v63 = vadd.f32 %v9358_v36, %v3414_v22 }
 0x4cd   : > { %3842 = vmatmul.bf16.gmra.mxu2 %v3725_v37  ;;  %v2802_v30 = vunpack.c.l.bf16 %v2733_v28  ;;  %v9433_v37 = vpop.f32.mrf.mxu3 }
 0x4ce   : > { %v2774_v60 = vunpack.c.l.bf16 %v2705_v1  ;;  %v3671_v28 = vmax.f32 %v3479_v63, 0.0 }
 0x4cf   : > { %v2867_v21 = vadd.f32 %v8452_v16, %v2802_v30  ;;  %v3346_v30 = vpack.c.bf16 %v3208_v33, %v3208_v33 }
 0x4d0   : > { %v2839_v42 = vadd.f32 %v8452_v16, %v2774_v60 }
 0x4d1   : > { %v3059_v17 = vmax.f32 %v2867_v21, 0.0 }
 0x4d2   : > { %v2662_v4 = vpop.f32.mrf.mxu2  ;;  %v3031_v43 = vmax.f32 %v2839_v42, 0.0 }
 0x4d3   : > { %v2734_v19 = vpack.c.bf16 %v2662_v4, %v2662_v4  ;;  %v2592_v45 = vpop.f32.mrf.mxu0  ;;  %v3213_v59 = vpop.f32.mrf.mxu1  ;;  %v3728_v4 = vpack.c.bf16 %v3671_v28, %v3670_v5 }
 0x4d4   : > { %v2706_v0 = vpack.c.bf16 %v2592_v45, %v2592_v45 }
 0x4d5   : > { %v2803_v51 = vunpack.c.l.bf16 %v2734_v19  ;;  %v9439_v60 = vpop.f32.mrf.mxu3  ;;  %v3345_v19 = vpack.c.bf16 %v3206_v40, %v3206_v40 }
 0x4d6   : > { %v2775_v6 = vunpack.c.l.bf16 %v2706_v0  ;;  %v3416_v0 = vunpack.c.l.bf16 %v3346_v30 }
 0x4d7   : > { %v2868_v14 = vadd.f32 %v8452_v16, %v2803_v51  ;;  %v3415_v51 = vunpack.c.l.bf16 %v3345_v19 }
 0x4d8   : > { %v2840_v55 = vadd.f32 %v8452_v16, %v2775_v6  ;;  %v3481_v6 = vadd.f32 %v9358_v36, %v3416_v0 }
 0x4d9   : > { %v3060_v57 = vmax.f32 %v2868_v14, 0.0 }
 0x4da   : > { %v3032_v11 = vmax.f32 %v2840_v55, 0.0  ;;  %v3480_v55 = vadd.f32 %v9358_v36, %v3415_v51 }
 0x4db   : > { %v3094_v8 = vpack.c.bf16 %v3060_v57, %v3059_v17  ;;  %v3216_v24 = vpop.f32.mrf.mxu1  ;;  %v3673_v57 = vmax.f32 %v3481_v6, 0.0 }
 0x4dc   : > { %v3080_v34 = vpack.c.bf16 %v3032_v11, %v3031_v43  ;;  %v3672_v43 = vmax.f32 %v3480_v55, 0.0  ;;  %v3348_v11 = vpack.c.bf16 %v3213_v59, %v3213_v59  ;;  %v3349_v28 = vpack.c.bf16 %v3216_v24, %v3216_v24 }
 0x4dd   : > { %3315 = vmatmul.bf16.gmra.mxu3 %v3094_v8  ;;  %3847 = vmatmul.bf16.gmra.mxu2 %v3726_v31  ;;  %v9445_v18 = vpop.f32.mrf.mxu3  ;;  %v3347_v31 = vpack.c.bf16 %v3211_v2, %v3211_v2 }
 0x4de   : > { %3245 = vmatmul.bf16.gmra.mxu1 %v3080_v34  ;;  %v3729_v38 = vpack.c.bf16 %v3673_v57, %v3672_v43  ;;  %v3418_v7 = vunpack.c.l.bf16 %v3348_v11 }
 0x4df   : > { %v3417_v61 = vunpack.c.l.bf16 %v3347_v31 }
 0x4e0   : > { %v3483_v3 = vadd.f32 %v9358_v36, %v3418_v7 }
 0x4e1   : > { %v3482_v33 = vadd.f32 %v9358_v36, %v3417_v61 }
 0x4e2   : > { %v3675_v35 = vmax.f32 %v3483_v3, 0.0 }
 0x4e3   : > { %v3218_v8 = vpop.f32.mrf.mxu1  ;;  %v3674_v22 = vmax.f32 %v3482_v33, 0.0 }
 0x4e4   : > { %v3350_v2 = vpack.c.bf16 %v3218_v8, %v3218_v8 }
 0x4e5   : > { %v9447_v34 = vpop.f32.mrf.mxu3  ;;  %v3730_v29 = vpack.c.bf16 %v3675_v35, %v3674_v22 }
 0x4e6   : > { %v3420_v5 = vunpack.c.l.bf16 %v3350_v2 }
 0x4e8   : > { %v3485_v0 = vadd.f32 %v9358_v36, %v3420_v5 }
 0x4eb   : > { %v3221_v54 = vpop.f32.mrf.mxu1 }
 0x4ec   : > { %v3351_v8 = vpack.c.bf16 %v3221_v54, %v3221_v54 }
 0x4ed   : > { %3852 = vmatmul.bf16.gmra.mxu2 %v3727_v20  ;;  %v9454_v39 = vpop.f32.mrf.mxu3 }
 0x4ee   : > { %v3421_v33 = vunpack.c.l.bf16 %v3351_v8 }
 0x4f0   : > { %v3486_v22 = vadd.f32 %v9358_v36, %v3421_v33 }
 0x4f5   : > { %v2665_v23 = vpop.f32.mrf.mxu2  ;;  %v9461_v59 = vpop.f32.mrf.mxu3 }
 0x4f6   : > { %v2735_v1 = vpack.c.bf16 %v2665_v23, %v2665_v23  ;;  %v7001_v23 = vld [vmem:[%s10191_s4 + $0x2] sm:$0x1] }
 0x4f8   : > { %v2804_v12 = vunpack.c.l.bf16 %v2735_v1  ;;  %v3223_v1 = vpop.f32.mrf.mxu1 }
 0x4f9   : > { %v3352_v57 = vpack.c.bf16 %v3223_v1, %v3223_v1 }
 0x4fa   : > { %v2869_v44 = vadd.f32 %v8452_v16, %v2804_v12  ;;  %v4055_v12 = vpack.i.b16 %v7001_v23, %v7001_v23 }
 0x4fb   : > { %v3422_v7 = vunpack.c.l.bf16 %v3352_v57 }
 0x4fc   : > { %v3061_v50 = vmax.f32 %v2869_v44, 0.0 }
 0x4fd   : > { %v2667_v45 = vpop.f32.mrf.mxu2  ;;  %3857 = vmatmul.bf16.gmra.mxu2 %v3728_v4  ;;  %v9467_v55 = vpop.f32.mrf.mxu3 }
 0x4fe   : > { %v2736_v49 = vpack.c.bf16 %v2667_v45, %v2667_v45  ;;  %v3419_v45 = vunpack.c.l.bf16 %v3349_v28 }
 0x500   : > { %v2805_v21 = vunpack.c.l.bf16 %v2736_v49  ;;  %v3484_v51 = vadd.f32 %v9358_v36, %v3419_v45  ;;  %v3226_v24 = vpop.f32.mrf.mxu1 }
 0x502   : > { %v2870_v42 = vadd.f32 %v8452_v16, %v2805_v21  ;;  %v4057_v21 = vperm.slane %v4055_v12, 0 }
 0x504   : > { %v3062_v14 = vmax.f32 %v2870_v42, 0.0  ;;  %v9465_v6 = vunpack.c.l.bf16 %v4057_v21 }
 0x505   : > { %v9474_v35 = vpop.f32.mrf.mxu3 }
 0x506   : > { %v3095_v17 = vpack.c.bf16 %v3062_v14, %v3061_v50  ;;  %v3676_v14 = vmax.f32 %v3484_v51, 0.0 }
 0x508   : > { %3320 = vmatmul.bf16.gmra.mxu3 %v3095_v17  ;;  %v3228_v3 = vpop.f32.mrf.mxu1 }
 0x509   : > { %v3354_v28 = vpack.c.bf16 %v3228_v3, %v3228_v3 }
 0x50d   : > { %3862 = vmatmul.bf16.gmra.mxu2 %v3729_v38 }
 0x510   : > { %v2670_v40 = vpop.f32.mrf.mxu2 }
 0x511   : > { %v2737_v15 = vpack.c.bf16 %v2670_v40, %v2670_v40 }
 0x513   : > { %v2806_v20 = vunpack.c.l.bf16 %v2737_v15 }
 0x515   : > { %v2871_v32 = vadd.f32 %v8452_v16, %v2806_v20 }
 0x517   : > { %v3063_v30 = vmax.f32 %v2871_v32, 0.0  ;;  %v3231_v32 = vpop.f32.mrf.mxu1 }
 0x518   : > { %v2672_v52 = vpop.f32.mrf.mxu2  ;;  %v3355_v47 = vpack.c.bf16 %v3231_v32, %v3231_v32 }
 0x519   : > { %v2738_v27 = vpack.c.bf16 %v2672_v52, %v2672_v52  ;;  %v3487_v52 = vadd.f32 %v9358_v36, %v3422_v7 }
 0x51b   : > { %v2807_v63 = vunpack.c.l.bf16 %v2738_v27  ;;  %v3679_v27 = vmax.f32 %v3487_v52, 0.0 }
 0x51d   : > { %v2872_v13 = vadd.f32 %v8452_v16, %v2807_v63  ;;  %3867 = vmatmul.bf16.gmra.mxu2 %v3730_v29  ;;  %v3677_v16 = vmax.f32 %v3485_v0, 0.0  ;;  %v3678_v29 = vmax.f32 %v3486_v22, 0.0  ;;  %v7198_v0 = vld [vmem:[%s10190_s3 + $0x178] sm:$0xff] }
 0x51e   : > { %5790 = vmatpush.bf16.msrb.mxu1 %v7198_v0 }
 0x51f   : > { %v3064_v4 = vmax.f32 %v2872_v13, 0.0  ;;  %v3731_v38 = vpack.c.bf16 %v3677_v16, %v3676_v14  ;;  %v9478_v13 = vpop.f32.mrf.mxu3  ;;  %v3233_v16 = vpop.f32.mrf.mxu1 }
 0x520   : > { %v3828_v19 = vpop.f32.mrf.mxu2 }
 0x521   : > { %v3096_v49 = vpack.c.bf16 %v3064_v4, %v3063_v30  ;;  %v3988_v44 = vpack.c.bf16 %v3828_v19, %v3828_v19  ;;  %v3732_v30 = vpack.c.bf16 %v3679_v27, %v3678_v29  ;;  %v3353_v4 = vpack.c.bf16 %v3226_v24, %v3226_v24 }
 0x522   : > { %v3424_v19 = vunpack.c.l.bf16 %v3354_v28  ;;  %v3425_v27 = vunpack.c.l.bf16 %v3355_v47 }
 0x523   : > { %3325 = vmatmul.bf16.gmra.mxu3 %v3096_v49  ;;  %v4058_v42 = vunpack.c.l.bf16 %v3988_v44  ;;  %v3423_v21 = vunpack.c.l.bf16 %v3353_v4 }
 0x525   : > { %v4123_v43 = vadd.f32 %v9465_v6, %v4058_v42  ;;  %v3489_v42 = vadd.f32 %v9358_v36, %v3424_v19  ;;  %v3488_v14 = vadd.f32 %v9358_v36, %v3423_v21 }
 0x527   : > { %v4315_v40 = vmax.f32 %v4123_v43, 0.0  ;;  %v3236_v8 = vpop.f32.mrf.mxu1 }
 0x528   : > { %v3830_v50 = vpop.f32.mrf.mxu2  ;;  %v3357_v21 = vpack.c.bf16 %v3236_v8, %v3236_v8 }
 0x529   : > { %v3989_v17 = vpack.c.bf16 %v3830_v50, %v3830_v50  ;;  %v9486_v50 = vpop.f32.mrf.mxu3 }
 0x52b   : > { %v4059_v11 = vunpack.c.l.bf16 %v3989_v17  ;;  %v3681_v17 = vmax.f32 %v3489_v42, 0.0 }
 0x52d   : > { %v4124_v31 = vadd.f32 %v9465_v6, %v4059_v11  ;;  %3872 = vmatmul.bf16.gmra.mxu2 %v3731_v38  ;;  %v3680_v11 = vmax.f32 %v3488_v14, 0.0 }
 0x52f   : > { %v4316_v61 = vmax.f32 %v4124_v31, 0.0  ;;  %v3356_v31 = vpack.c.bf16 %v3233_v16, %v3233_v16  ;;  %v3238_v32 = vpop.f32.mrf.mxu1 }
 0x530   : > { %v3833_v15 = vpop.f32.mrf.mxu2  ;;  %v3358_v19 = vpack.c.bf16 %v3238_v32, %v3238_v32 }
 0x531   : > { %v4379_v20 = vpack.c.bf16 %v4316_v61, %v4315_v40  ;;  %v3990_v54 = vpack.c.bf16 %v3833_v15, %v3833_v15  ;;  %v3733_v61 = vpack.c.bf16 %v3681_v17, %v3680_v11  ;;  %v9490_v3 = vpop.f32.mrf.mxu3  ;;  %v3426_v33 = vunpack.c.l.bf16 %v3356_v31  ;;  %v7197_v17 = vld [vmem:[%s10190_s3 + $0x170] sm:$0xff] }
 0x532   : > { %v3428_v16 = vunpack.c.l.bf16 %v3358_v19  ;;  %5791 = vmatpush.bf16.msrb.mxu1 %v7197_v17 }
 0x533   : > { %4484 = vmatmul.bf16.vlgmr.msrb.gmra.mxu3 %v4379_v20  ;;  %v4060_v2 = vunpack.c.l.bf16 %v3990_v54  ;;  %v7185_v54 = vld [vmem:[%s10190_s3 + $0x110] sm:$0xff] }
 0x534   : > { %5138 = vmatpush.bf16.msrb.mxu0 %v7185_v54 }
 0x535   : > { %v4125_v1 = vadd.f32 %v9465_v6, %v4060_v2 }
 0x537   : > { %v4317_v45 = vmax.f32 %v4125_v1, 0.0 }
 0x538   : > { %v3835_v63 = vpop.f32.mrf.mxu2 }
 0x539   : > { %v3991_v23 = vpack.c.bf16 %v3835_v63, %v3835_v63  ;;  %v3491_v63 = vadd.f32 %v9358_v36, %v3426_v33  ;;  %v9498_v28 = vpop.f32.mrf.mxu3 }
 0x53b   : > { %v4061_v5 = vunpack.c.l.bf16 %v3991_v23  ;;  %v3490_v23 = vadd.f32 %v9358_v36, %v3425_v27  ;;  %v3683_v1 = vmax.f32 %v3491_v63, 0.0 }
 0x53d   : > { %v4126_v12 = vadd.f32 %v9465_v6, %v4061_v5  ;;  %3877 = vmatmul.bf16.gmra.mxu2 %v3732_v30  ;;  %v3682_v4 = vmax.f32 %v3490_v23, 0.0 }
 0x53f   : > { %v4318_v49 = vmax.f32 %v4126_v12, 0.0  ;;  %v3734_v0 = vpack.c.bf16 %v3683_v1, %v3682_v4 }
 0x540   : > { %v3838_v44 = vpop.f32.mrf.mxu2 }
 0x541   : > { %v4380_v51 = vpack.c.bf16 %v4318_v49, %v4317_v45  ;;  %v3992_v24 = vpack.c.bf16 %v3838_v44, %v3838_v44  ;;  %v3241_v44 = vpop.f32.mrf.mxu1  ;;  %v9502_v42 = vpop.f32.mrf.mxu3 }
 0x543   : > { %4489 = vmatmul.bf16.gmra.mxu3 %v4380_v51  ;;  %v4062_v57 = vunpack.c.l.bf16 %v3992_v24 }
 0x545   : > { %v4127_v7 = vadd.f32 %v9465_v6, %v4062_v57 }
 0x547   : > { %v4319_v20 = vmax.f32 %v4127_v7, 0.0 }
 0x548   : > { %v3840_v43 = vpop.f32.mrf.mxu2 }
 0x549   : > { %v3993_v38 = vpack.c.bf16 %v3840_v43, %v3840_v43  ;;  %v3427_v43 = vunpack.c.l.bf16 %v3357_v21  ;;  %v3243_v7 = vpop.f32.mrf.mxu1 }
 0x54b   : > { %v4063_v40 = vunpack.c.l.bf16 %v3993_v38  ;;  %v3493_v38 = vadd.f32 %v9358_v36, %v3428_v16  ;;  %v3492_v8 = vadd.f32 %v9358_v36, %v3427_v43 }
 0x54d   : > { %v4128_v15 = vadd.f32 %v9465_v6, %v4063_v40  ;;  %3882 = vmatmul.bf16.gmra.mxu2 %v3733_v61  ;;  %v3685_v40 = vmax.f32 %v3493_v38, 0.0  ;;  %v9509_v61 = vpop.f32.mrf.mxu3  ;;  %v3684_v33 = vmax.f32 %v3492_v8, 0.0 }
 0x54f   : > { %v4320_v52 = vmax.f32 %v4128_v15, 0.0  ;;  %v3735_v27 = vpack.c.bf16 %v3685_v40, %v3684_v33 }
 0x550   : > { %v3843_v22 = vpop.f32.mrf.mxu2 }
 0x551   : > { %v4381_v2 = vpack.c.bf16 %v4320_v52, %v4319_v20  ;;  %v3994_v29 = vpack.c.bf16 %v3843_v22, %v3843_v22  ;;  %v3360_v52 = vpack.c.bf16 %v3243_v7, %v3243_v7 }
 0x553   : > { %4494 = vmatmul.bf16.gmra.mxu3 %v4381_v2  ;;  %v4064_v5 = vunpack.c.l.bf16 %v3994_v29  ;;  %v3359_v2 = vpack.c.bf16 %v3241_v44, %v3241_v44  ;;  %v3430_v32 = vunpack.c.l.bf16 %v3360_v52 }
 0x555   : > { %v4129_v45 = vadd.f32 %v9465_v6, %v4064_v5  ;;  %v7184_v5 = vld [vmem:[%s10190_s3 + $0x108] sm:$0xff]  ;;  %v3429_v4 = vunpack.c.l.bf16 %v3359_v2 }
 0x556   : > { %5139 = vmatpush.bf16.msrb.mxu0 %v7184_v5  ;;  %v3364_v5 = vpack.c.bf16 %v9367_v48, %v9367_v48 }
 0x557   : > { %v4321_v24 = vmax.f32 %v4129_v45, 0.0  ;;  %v3495_v45 = vadd.f32 %v9358_v36, %v3430_v32 }
 0x558   : > { %v3845_v30 = vpop.f32.mrf.mxu2 }
 0x559   : > { %v3995_v12 = vpack.c.bf16 %v3845_v30, %v3845_v30  ;;  %v3687_v44 = vmax.f32 %v3495_v45, 0.0 }
 0x55b   : > { %v4065_v49 = vunpack.c.l.bf16 %v3995_v12  ;;  %v3246_v29 = vpop.f32.mrf.mxu1  ;;  %v9516_v12 = vpop.f32.mrf.mxu3 }
 0x55d   : > { %v4130_v51 = vadd.f32 %v9465_v6, %v4065_v49  ;;  %3887 = vmatmul.bf16.gmra.mxu2 %v3734_v0  ;;  %v3494_v0 = vadd.f32 %v9358_v36, %v3429_v4 }
 0x55f   : > { %v4322_v14 = vmax.f32 %v4130_v51, 0.0 }
 0x560   : > { %v3848_v57 = vpop.f32.mrf.mxu2 }
 0x561   : > { %v4382_v11 = vpack.c.bf16 %v4322_v14, %v4321_v24  ;;  %v3996_v31 = vpack.c.bf16 %v3848_v57, %v3848_v57  ;;  %v3686_v24 = vmax.f32 %v3494_v0, 0.0 }
 0x563   : > { %4499 = vmatmul.bf16.gmra.mxu3 %v4382_v11  ;;  %v4066_v47 = vunpack.c.l.bf16 %v3996_v31  ;;  %v3248_v51 = vpop.f32.mrf.mxu1  ;;  %v9520_v14 = vpop.f32.mrf.mxu3  ;;  %v3736_v38 = vpack.c.bf16 %v3687_v44, %v3686_v24  ;;  %v3361_v31 = vpack.c.bf16 %v3246_v29, %v3246_v29  ;;  %v7183_v24 = vld [vmem:[%s10190_s3 + $0x100] sm:$0xff] }
 0x564   : > { %v3362_v57 = vpack.c.bf16 %v3248_v51, %v3248_v51  ;;  %5140 = vmatpush.bf16.msrb.mxu0 %v7183_v24 }
 0x565   : > { %v4131_v54 = vadd.f32 %v9465_v6, %v4066_v47 }
 0x566   : > { %v3432_v7 = vunpack.c.l.bf16 %v3362_v57 }
 0x567   : > { %v4323_v23 = vmax.f32 %v4131_v54, 0.0 }
 0x568   : > { %v3850_v15 = vpop.f32.mrf.mxu2  ;;  %v3497_v54 = vadd.f32 %v9358_v36, %v3432_v7 }
 0x569   : > { %v3997_v20 = vpack.c.bf16 %v3850_v15, %v3850_v15  ;;  %v7196_v15 = vld [vmem:[%s10190_s3 + $0x168] sm:$0xff] }
 0x56a   : > { %5792 = vmatpush.bf16.msrb.mxu1 %v7196_v15 }
 0x56b   : > { %v4067_v22 = vunpack.c.l.bf16 %v3997_v20  ;;  %v3431_v20 = vunpack.c.l.bf16 %v3361_v31 }
 0x56d   : > { %v4132_v63 = vadd.f32 %v9465_v6, %v4067_v22  ;;  %3892 = vmatmul.bf16.gmra.mxu2 %v3735_v27  ;;  %v9528_v22 = vpop.f32.mrf.mxu3  ;;  %v3496_v2 = vadd.f32 %v9358_v36, %v3431_v20 }
 0x56f   : > { %v4324_v1 = vmax.f32 %v4132_v63, 0.0  ;;  %v3689_v63 = vmax.f32 %v3497_v54, 0.0 }
 0x570   : > { %v3853_v30 = vpop.f32.mrf.mxu2 }
 0x571   : > { %v4383_v19 = vpack.c.bf16 %v4324_v1, %v4323_v23  ;;  %v3998_v49 = vpack.c.bf16 %v3853_v30, %v3853_v30  ;;  %v3688_v23 = vmax.f32 %v3496_v2, 0.0 }
 0x573   : > { %4504 = vmatmul.bf16.gmra.mxu3 %v4383_v19  ;;  %v4068_v21 = vunpack.c.l.bf16 %v3998_v49  ;;  %v3737_v45 = vpack.c.bf16 %v3689_v63, %v3688_v23  ;;  %v3363_v49 = vpack.c.bf16 %v9356_v56, %v9356_v56  ;;  %v3366_v63 = vpack.c.bf16 %v9379_v62, %v9379_v62 }
 0x575   : > { %v4133_v43 = vadd.f32 %v9465_v6, %v4068_v21  ;;  %v3434_v21 = vunpack.c.l.bf16 %v3364_v5  ;;  %v3365_v5 = vpack.c.bf16 %v9373_v25, %v9373_v25 }
 0x577   : > { %v4325_v40 = vmax.f32 %v4133_v43, 0.0 }
 0x578   : > { %v3855_v16 = vpop.f32.mrf.mxu2 }
 0x579   : > { %v3999_v17 = vpack.c.bf16 %v3855_v16, %v3855_v16 }
 0x57b   : > { %v4069_v11 = vunpack.c.l.bf16 %v3999_v17  ;;  %v3433_v17 = vunpack.c.l.bf16 %v3363_v49  ;;  %v7195_v49 = vld [vmem:[%s10190_s3 + $0x160] sm:$0xff] }
 0x57c   : > { %5793 = vmatpush.bf16.msrb.mxu1 %v7195_v49 }
 0x57d   : > { %v4134_v8 = vadd.f32 %v9465_v6, %v4069_v11  ;;  %3897 = vmatmul.bf16.gmra.mxu2 %v3736_v38  ;;  %v3499_v11 = vadd.f32 %v9358_v36, %v3434_v21 }
 0x57f   : > { %v4326_v47 = vmax.f32 %v4134_v8, 0.0  ;;  %v3498_v8 = vadd.f32 %v9358_v36, %v3433_v17 }
 0x580   : > { %v3858_v33 = vpop.f32.mrf.mxu2 }
 0x581   : > { %v4384_v52 = vpack.c.bf16 %v4326_v47, %v4325_v40  ;;  %v4000_v27 = vpack.c.bf16 %v3858_v33, %v3858_v33  ;;  %v3691_v47 = vmax.f32 %v3499_v11, 0.0 }
 0x583   : > { %4509 = vmatmul.bf16.gmra.mxu3 %v4384_v52  ;;  %v4070_v29 = vunpack.c.l.bf16 %v4000_v27  ;;  %v3690_v52 = vmax.f32 %v3498_v8, 0.0 }
 0x585   : > { %v4135_v30 = vadd.f32 %v9465_v6, %v4070_v29  ;;  %v3738_v23 = vpack.c.bf16 %v3691_v47, %v3690_v52 }
 0x587   : > { %v4327_v51 = vmax.f32 %v4135_v30, 0.0 }
 0x588   : > { %v3860_v32 = vpop.f32.mrf.mxu2 }
 0x589   : > { %v4001_v1 = vpack.c.bf16 %v3860_v32, %v3860_v32 }
 0x58b   : > { %v4071_v4 = vunpack.c.l.bf16 %v4001_v1  ;;  %v3321_v19 = vpop.f32.mrf.mxu3 }
 0x58c   : > { %v3391_v44 = vpack.c.bf16 %v3321_v19, %v3321_v19 }
 0x58d   : > { %v4136_v0 = vadd.f32 %v9465_v6, %v4071_v4  ;;  %3902 = vmatmul.bf16.gmra.mxu2 %v3737_v45  ;;  %v3436_v4 = vunpack.c.l.bf16 %v3366_v63 }
 0x58e   : > { %v3461_v43 = vunpack.c.l.bf16 %v3391_v44 }
 0x58f   : > { %v4328_v16 = vmax.f32 %v4136_v0, 0.0  ;;  %v3435_v0 = vunpack.c.l.bf16 %v3365_v5  ;;  %v3501_v21 = vadd.f32 %v9358_v36, %v3436_v4 }
 0x590   : > { %v3863_v48 = vpop.f32.mrf.mxu2  ;;  %v3526_v7 = vadd.f32 %v9358_v36, %v3461_v43 }
 0x591   : > { %v4385_v57 = vpack.c.bf16 %v4328_v16, %v4327_v51  ;;  %v4002_v38 = vpack.c.bf16 %v3863_v48, %v3863_v48  ;;  %v3500_v25 = vadd.f32 %v9358_v36, %v3435_v0  ;;  %v3693_v24 = vmax.f32 %v3501_v21, 0.0 }
 0x592   : > { %v3718_v27 = vmax.f32 %v3526_v7, 0.0  ;;  %v3367_v7 = vpack.c.bf16 %v9389_v58, %v9389_v58 }
 0x593   : > { %v3323_v56 = vpop.f32.mrf.mxu3  ;;  %4514 = vmatmul.bf16.gmra.mxu3 %v4385_v57  ;;  %v4072_v15 = vunpack.c.l.bf16 %v4002_v38  ;;  %v3692_v57 = vmax.f32 %v3500_v25, 0.0  ;;  %v3368_v38 = vpack.c.bf16 %v9399_v53, %v9399_v53 }
 0x594   : > { %v3392_v31 = vpack.c.bf16 %v3323_v56, %v3323_v56 }
 0x595   : > { %v4137_v29 = vadd.f32 %v9465_v6, %v4072_v15  ;;  %v3739_v8 = vpack.c.bf16 %v3693_v24, %v3692_v57 }
 0x596   : > { %v3462_v40 = vunpack.c.l.bf16 %v3392_v31 }
 0x597   : > { %v4329_v19 = vmax.f32 %v4137_v29, 0.0 }
 0x598   : > { %v3527_v33 = vadd.f32 %v9358_v36, %v3462_v40  ;;  %v3865_v20 = vpop.f32.mrf.mxu2 }
 0x599   : > { %v4003_v54 = vpack.c.bf16 %v3865_v20, %v3865_v20 }
 0x59a   : > { %v3719_v2 = vmax.f32 %v3527_v33, 0.0  ;;  %v3438_v33 = vunpack.c.l.bf16 %v3368_v38 }
 0x59b   : > { %v4073_v32 = vunpack.c.l.bf16 %v4003_v54 }
 0x59c   : > { %v9547_v1 = vpack.c.bf16 %v3719_v2, %v3718_v27  ;;  %v3437_v2 = vunpack.c.l.bf16 %v3367_v7  ;;  %v3503_v58 = vadd.f32 %v9358_v36, %v3438_v33 }
 0x59d   : > { %v4138_v30 = vadd.f32 %v9465_v6, %v4073_v32  ;;  %3907 = vmatmul.bf16.gmra.mxu2 %v3738_v23  ;;  %v7050_v32 = vld [vmem:[%s10191_s4 + $0x3] sm:$0x1] }
 0x59f   : > { %v4330_v45 = vmax.f32 %v4138_v30, 0.0  ;;  %v3502_v30 = vadd.f32 %v9358_v36, %v3437_v2 }
 0x5a0   : > { %v3868_v62 = vpop.f32.mrf.mxu2 }
 0x5a1   : > { %v4386_v44 = vpack.c.bf16 %v4330_v45, %v4329_v19  ;;  %v4004_v51 = vpack.c.bf16 %v3868_v62, %v3868_v62  ;;  %v4712_v45 = vpack.i.b16 %v7050_v32, %v7050_v32  ;;  %v3695_v62 = vmax.f32 %v3503_v58, 0.0 }
 0x5a3   : > { %4519 = vmatmul.bf16.gmra.mxu3 %v4386_v44  ;;  %v4074_v48 = vunpack.c.l.bf16 %v4004_v51  ;;  %v3694_v51 = vmax.f32 %v3502_v30, 0.0 }
 0x5a5   : > { %v4139_v56 = vadd.f32 %v9465_v6, %v4074_v48  ;;  %v3370_v48 = vpack.c.bf16 %v9408_v41, %v9408_v41  ;;  %v7194_v41 = vld [vmem:[%s10190_s3 + $0x158] sm:$0xff] }
 0x5a6   : > { %v3326_v16 = vpop.f32.mrf.mxu3  ;;  %5794 = vmatpush.bf16.msrb.mxu1 %v7194_v41 }
 0x5a7   : > { %v3393_v43 = vpack.c.bf16 %v3326_v16, %v3326_v16  ;;  %v4331_v20 = vmax.f32 %v4139_v56, 0.0  ;;  %v4714_v16 = vperm.slane %v4712_v45, 0  ;;  %v3440_v7 = vunpack.c.l.bf16 %v3370_v48 }
 0x5a8   : > { %v3870_v17 = vpop.f32.mrf.mxu2 }
 0x5a9   : > { %v4005_v11 = vpack.c.bf16 %v3870_v17, %v3870_v17  ;;  %v3463_v40 = vunpack.c.l.bf16 %v3393_v43  ;;  %v3740_v43 = vpack.c.bf16 %v3695_v62, %v3694_v51  ;;  %v9577_v56 = vunpack.c.l.bf16 %v4714_v16 }
 0x5aa   : > { %v3372_v62 = vpack.c.bf16 %v9423_v10, %v9423_v10 }
 0x5ab   : > { %v4075_v31 = vunpack.c.l.bf16 %v4005_v11  ;;  %v3528_v53 = vadd.f32 %v9358_v36, %v3463_v40  ;;  %v3369_v11 = vpack.c.bf16 %v9403_v26, %v9403_v26 }
 0x5ad   : > { %v4140_v47 = vadd.f32 %v9465_v6, %v4075_v31  ;;  %3912 = vmatmul.bf16.gmra.mxu2 %v3739_v8  ;;  %v3720_v4 = vmax.f32 %v3528_v53, 0.0 }
 0x5ae   : > { %v3328_v15 = vpop.f32.mrf.mxu3 }
 0x5af   : > { %v4332_v52 = vmax.f32 %v4140_v47, 0.0  ;;  %v3394_v54 = vpack.c.bf16 %v3328_v15, %v3328_v15 }
 0x5b0   : > { %v3873_v27 = vpop.f32.mrf.mxu2 }
 0x5b1   : > { %v3464_v63 = vunpack.c.l.bf16 %v3394_v54  ;;  %v4387_v29 = vpack.c.bf16 %v4332_v52, %v4331_v20  ;;  %v4006_v5 = vpack.c.bf16 %v3873_v27, %v3873_v27  ;;  %v3439_v20 = vunpack.c.l.bf16 %v3369_v11 }
 0x5b2   : > { %v3505_v27 = vadd.f32 %v9358_v36, %v3440_v7 }
 0x5b3   : > { %v3529_v23 = vadd.f32 %v9358_v36, %v3464_v63  ;;  %4524 = vmatmul.bf16.gmra.mxu3 %v4387_v29  ;;  %v4076_v0 = vunpack.c.l.bf16 %v4006_v5  ;;  %v3504_v63 = vadd.f32 %v9358_v36, %v3439_v20 }
 0x5b5   : > { %v3721_v19 = vmax.f32 %v3529_v23, 0.0  ;;  %v4141_v17 = vadd.f32 %v9465_v6, %v4076_v0  ;;  %v3697_v23 = vmax.f32 %v3505_v27, 0.0 }
 0x5b6   : > { %v4485_v49 = vpop.f32.mrf.mxu3 }
 0x5b7   : > { %v9570_v44 = vpack.c.bf16 %v3721_v19, %v3720_v4  ;;  %v4645_v25 = vpack.c.bf16 %v4485_v49, %v4485_v49  ;;  %v4333_v40 = vmax.f32 %v4141_v17, 0.0  ;;  %v3696_v19 = vmax.f32 %v3504_v63, 0.0 }
 0x5b8   : > { %v3875_v21 = vpop.f32.mrf.mxu2  ;;  %v3442_v17 = vunpack.c.l.bf16 %v3372_v62 }
 0x5b9   : > { %v4007_v24 = vpack.c.bf16 %v3875_v21, %v3875_v21  ;;  %v4715_v38 = vunpack.c.l.bf16 %v4645_v25  ;;  %v3741_v51 = vpack.c.bf16 %v3697_v23, %v3696_v19  ;;  %v3371_v25 = vpack.c.bf16 %v9417_v46, %v9417_v46 }
 0x5bb   : > { %v4077_v57 = vunpack.c.l.bf16 %v4007_v24  ;;  %v4780_v52 = vadd.f32 %v9577_v56, %v4715_v38 }
 0x5bd   : > { %v4142_v31 = vadd.f32 %v9465_v6, %v4077_v57  ;;  %3917 = vmatmul.bf16.gmra.mxu2 %v3740_v43  ;;  %v4972_v29 = vmax.f32 %v4780_v52, 0.0 }
 0x5be   : > { %v4487_v8 = vpop.f32.mrf.mxu3 }
 0x5bf   : > { %v4334_v47 = vmax.f32 %v4142_v31, 0.0  ;;  %v4646_v15 = vpack.c.bf16 %v4487_v8, %v4487_v8  ;;  %v3441_v31 = vunpack.c.l.bf16 %v3371_v25 }
 0x5c0   : > { %v3878_v33 = vpop.f32.mrf.mxu2 }
 0x5c1   : > { %v4716_v26 = vunpack.c.l.bf16 %v4646_v15  ;;  %v4388_v54 = vpack.c.bf16 %v4334_v47, %v4333_v40  ;;  %v4008_v53 = vpack.c.bf16 %v3878_v33, %v3878_v33  ;;  %v3507_v40 = vadd.f32 %v9358_v36, %v3442_v17 }
 0x5c2   : > { %v3506_v15 = vadd.f32 %v9358_v36, %v3441_v31 }
 0x5c3   : > { %v4781_v2 = vadd.f32 %v9577_v56, %v4716_v26  ;;  %4529 = vmatmul.bf16.gmra.mxu3 %v4388_v54  ;;  %v4078_v30 = vunpack.c.l.bf16 %v4008_v53  ;;  %v3699_v52 = vmax.f32 %v3507_v40, 0.0 }
 0x5c5   : > { %v4973_v32 = vmax.f32 %v4781_v2, 0.0  ;;  %v4143_v0 = vadd.f32 %v9465_v6, %v4078_v30  ;;  %v3698_v2 = vmax.f32 %v3506_v15, 0.0  ;;  %v3376_v15 = vpack.c.bf16 %v9445_v18, %v9445_v18 }
 0x5c6   : > { %v4490_v58 = vpop.f32.mrf.mxu3 }
 0x5c7   : > { %v5036_v5 = vpack.c.bf16 %v4973_v32, %v4972_v29  ;;  %v4647_v45 = vpack.c.bf16 %v4490_v58, %v4490_v58  ;;  %v4335_v57 = vmax.f32 %v4143_v0, 0.0  ;;  %v3374_v29 = vpack.c.bf16 %v9433_v37, %v9433_v37  ;;  %v7193_v37 = vld [vmem:[%s10190_s3 + $0x150] sm:$0xff] }
 0x5c8   : > { %v3880_v4 = vpop.f32.mrf.mxu2  ;;  %v3742_v23 = vpack.c.bf16 %v3699_v52, %v3698_v2  ;;  %5795 = vmatpush.bf16.msrb.mxu1 %v7193_v37  ;;  %v3375_v52 = vpack.c.bf16 %v9439_v60, %v9439_v60  ;;  %v3446_v2 = vunpack.c.l.bf16 %v3376_v15 }
 0x5c9   : > { %v4009_v49 = vpack.c.bf16 %v3880_v4, %v3880_v4  ;;  %5141 = vmatmul.bf16.vlgmr.msrb.gmra.mxu0 %v5036_v5  ;;  %v4717_v16 = vunpack.c.l.bf16 %v4647_v45  ;;  %v3373_v5 = vpack.c.bf16 %v9427_v9, %v9427_v9  ;;  %v3444_v45 = vunpack.c.l.bf16 %v3374_v29 }
 0x5cb   : > { %v4079_v21 = vunpack.c.l.bf16 %v4009_v49  ;;  %v4782_v10 = vadd.f32 %v9577_v56, %v4717_v16  ;;  %v3509_v9 = vadd.f32 %v9358_v36, %v3444_v45 }
 0x5cd   : > { %v4144_v24 = vadd.f32 %v9465_v6, %v4079_v21  ;;  %3922 = vmatmul.bf16.gmra.mxu2 %v3741_v51  ;;  %v4974_v41 = vmax.f32 %v4782_v10, 0.0  ;;  %v3443_v51 = vunpack.c.l.bf16 %v3373_v5  ;;  %v3701_v31 = vmax.f32 %v3509_v9, 0.0 }
 0x5ce   : > { %v4492_v48 = vpop.f32.mrf.mxu3  ;;  %v3378_v9 = vpack.c.bf16 %v9454_v39, %v9454_v39  ;;  %v7192_v39 = vld [vmem:[%s10190_s3 + $0x148] sm:$0xff] }
 0x5cf   : > { %v4336_v43 = vmax.f32 %v4144_v24, 0.0  ;;  %v4648_v11 = vpack.c.bf16 %v4492_v48, %v4492_v48  ;;  %5796 = vmatpush.bf16.msrb.mxu1 %v7192_v39 }
 0x5d0   : > { %v3883_v38 = vpop.f32.mrf.mxu2 }
 0x5d1   : > { %v4718_v8 = vunpack.c.l.bf16 %v4648_v11  ;;  %v4389_v7 = vpack.c.bf16 %v4336_v43, %v4335_v57  ;;  %v4010_v46 = vpack.c.bf16 %v3883_v38, %v3883_v38  ;;  %v3508_v57 = vadd.f32 %v9358_v36, %v3443_v51 }
 0x5d3   : > { %v4783_v47 = vadd.f32 %v9577_v56, %v4718_v8  ;;  %4534 = vmatmul.bf16.gmra.mxu3 %v4389_v7  ;;  %v4080_v26 = vunpack.c.l.bf16 %v4010_v46  ;;  %v3700_v40 = vmax.f32 %v3508_v57, 0.0 }
 0x5d5   : > { %v4975_v33 = vmax.f32 %v4783_v47, 0.0  ;;  %v4145_v32 = vadd.f32 %v9465_v6, %v4080_v26 }
 0x5d6   : > { %v4495_v20 = vpop.f32.mrf.mxu3 }
 0x5d7   : > { %v5037_v54 = vpack.c.bf16 %v4975_v33, %v4974_v41  ;;  %v4649_v53 = vpack.c.bf16 %v4495_v20, %v4495_v20  ;;  %v4337_v49 = vmax.f32 %v4145_v32, 0.0  ;;  %v3743_v20 = vpack.c.bf16 %v3701_v31, %v3700_v40 }
 0x5d8   : > { %v3885_v27 = vpop.f32.mrf.mxu2 }
 0x5d9   : > { %v4011_v63 = vpack.c.bf16 %v3885_v27, %v3885_v27  ;;  %5146 = vmatmul.bf16.gmra.mxu0 %v5037_v54  ;;  %v4719_v30 = vunpack.c.l.bf16 %v4649_v53 }
 0x5db   : > { %v4081_v58 = vunpack.c.l.bf16 %v4011_v63  ;;  %v4784_v25 = vadd.f32 %v9577_v56, %v4719_v30  ;;  %v3511_v30 = vadd.f32 %v9358_v36, %v3446_v2 }
 0x5dd   : > { %v4146_v4 = vadd.f32 %v9465_v6, %v4081_v58  ;;  %3927 = vmatmul.bf16.gmra.mxu2 %v3742_v23  ;;  %v4976_v43 = vmax.f32 %v4784_v25, 0.0  ;;  %v3445_v58 = vunpack.c.l.bf16 %v3375_v52 }
 0x5de   : > { %v4497_v19 = vpop.f32.mrf.mxu3 }
 0x5df   : > { %v4338_v62 = vmax.f32 %v4146_v4, 0.0  ;;  %v4650_v0 = vpack.c.bf16 %v4497_v19, %v4497_v19  ;;  %v3510_v19 = vadd.f32 %v9358_v36, %v3445_v58 }
 0x5e0   : > { %v3888_v21 = vpop.f32.mrf.mxu2 }
 0x5e1   : > { %v4720_v16 = vunpack.c.l.bf16 %v4650_v0  ;;  %v4390_v24 = vpack.c.bf16 %v4338_v62, %v4337_v49  ;;  %v4012_v17 = vpack.c.bf16 %v3888_v21, %v3888_v21  ;;  %v3703_v0 = vmax.f32 %v3511_v30, 0.0 }
 0x5e2   : > { %v3702_v25 = vmax.f32 %v3510_v19, 0.0  ;;  %v3379_v19 = vpack.c.bf16 %v9461_v59, %v9461_v59 }
 0x5e3   : > { %v4785_v48 = vadd.f32 %v9577_v56, %v4720_v16  ;;  %4539 = vmatmul.bf16.gmra.mxu3 %v4390_v24  ;;  %v4082_v10 = vunpack.c.l.bf16 %v4012_v17 }
 0x5e4   : > { %v3744_v57 = vpack.c.bf16 %v3703_v0, %v3702_v25 }
 0x5e5   : > { %v4977_v11 = vmax.f32 %v4785_v48, 0.0  ;;  %v4147_v41 = vadd.f32 %v9465_v6, %v4082_v10  ;;  %v3448_v10 = vunpack.c.l.bf16 %v3378_v9 }
 0x5e6   : > { %v4500_v38 = vpop.f32.mrf.mxu3 }
 0x5e7   : > { %v5038_v8 = vpack.c.bf16 %v4977_v11, %v4976_v43  ;;  %v4651_v47 = vpack.c.bf16 %v4500_v38, %v4500_v38  ;;  %v4339_v53 = vmax.f32 %v4147_v41, 0.0  ;;  %v3377_v43 = vpack.c.bf16 %v9447_v34, %v9447_v34 }
 0x5e8   : > { %v3890_v7 = vpop.f32.mrf.mxu2  ;;  %v3513_v34 = vadd.f32 %v9358_v36, %v3448_v10 }
 0x5e9   : > { %v4013_v46 = vpack.c.bf16 %v3890_v7, %v3890_v7  ;;  %5151 = vmatmul.bf16.gmra.mxu0 %v5038_v8  ;;  %v4721_v26 = vunpack.c.l.bf16 %v4651_v47 }
 0x5eb   : > { %v4083_v33 = vunpack.c.l.bf16 %v4013_v46  ;;  %v4786_v18 = vadd.f32 %v9577_v56, %v4721_v26  ;;  %v3447_v46 = vunpack.c.l.bf16 %v3377_v43 }
 0x5ed   : > { %v4148_v54 = vadd.f32 %v9465_v6, %v4083_v33  ;;  %3932 = vmatmul.bf16.gmra.mxu2 %v3743_v20  ;;  %v4978_v45 = vmax.f32 %v4786_v18, 0.0  ;;  %v3512_v26 = vadd.f32 %v9358_v36, %v3447_v46  ;;  %v3382_v46 = vpack.c.bf16 %v9478_v13, %v9478_v13  ;;  %v7191_v13 = vld [vmem:[%s10190_s3 + $0x140] sm:$0xff] }
 0x5ee   : > { %v4502_v27 = vpop.f32.mrf.mxu3  ;;  %5797 = vmatpush.bf16.msrb.mxu1 %v7191_v13 }
 0x5ef   : > { %v4340_v63 = vmax.f32 %v4148_v54, 0.0  ;;  %v4652_v29 = vpack.c.bf16 %v4502_v27, %v4502_v27  ;;  %v3704_v58 = vmax.f32 %v3512_v26, 0.0 }
 0x5f0   : > { %v3893_v32 = vpop.f32.mrf.mxu2 }
 0x5f1   : > { %v4722_v23 = vunpack.c.l.bf16 %v4652_v29  ;;  %v4391_v5 = vpack.c.bf16 %v4340_v63, %v4339_v53  ;;  %v4014_v60 = vpack.c.bf16 %v3893_v32, %v3893_v32  ;;  %v3705_v53 = vmax.f32 %v3513_v34, 0.0 }
 0x5f2   : > { %v3381_v34 = vpack.c.bf16 %v9474_v35, %v9474_v35 }
 0x5f3   : > { %v4787_v4 = vadd.f32 %v9577_v56, %v4722_v23  ;;  %4544 = vmatmul.bf16.gmra.mxu3 %v4391_v5  ;;  %v4084_v37 = vunpack.c.l.bf16 %v4014_v60  ;;  %v3380_v5 = vpack.c.bf16 %v9467_v55, %v9467_v55  ;;  %v3745_v60 = vpack.c.bf16 %v3705_v53, %v3704_v58 }
 0x5f5   : > { %v4979_v49 = vmax.f32 %v4787_v4, 0.0  ;;  %v4149_v48 = vadd.f32 %v9465_v6, %v4084_v37  ;;  %v3450_v0 = vunpack.c.l.bf16 %v3380_v5 }
 0x5f6   : > { %v4505_v62 = vpop.f32.mrf.mxu3 }
 0x5f7   : > { %v5039_v21 = vpack.c.bf16 %v4979_v49, %v4978_v45  ;;  %v4653_v16 = vpack.c.bf16 %v4505_v62, %v4505_v62  ;;  %v4341_v8 = vmax.f32 %v4149_v48, 0.0  ;;  %v3515_v48 = vadd.f32 %v9358_v36, %v3450_v0 }
 0x5f8   : > { %v3895_v51 = vpop.f32.mrf.mxu2 }
 0x5f9   : > { %v4015_v24 = vpack.c.bf16 %v3895_v51, %v3895_v51  ;;  %5156 = vmatmul.bf16.gmra.mxu0 %v5039_v21  ;;  %v4723_v11 = vunpack.c.l.bf16 %v4653_v16  ;;  %v3449_v16 = vunpack.c.l.bf16 %v3379_v19 }
 0x5fb   : > { %v4085_v17 = vunpack.c.l.bf16 %v4015_v24  ;;  %v4788_v15 = vadd.f32 %v9577_v56, %v4723_v11 }
 0x5fd   : > { %v4150_v38 = vadd.f32 %v9465_v6, %v4085_v17  ;;  %3937 = vmatmul.bf16.gmra.mxu2 %v3744_v57  ;;  %v4980_v54 = vmax.f32 %v4788_v15, 0.0  ;;  %v3514_v57 = vadd.f32 %v9358_v36, %v3449_v16 }
 0x5fe   : > { %v4507_v31 = vpop.f32.mrf.mxu3 }
 0x5ff   : > { %v4342_v7 = vmax.f32 %v4150_v38, 0.0  ;;  %v4654_v40 = vpack.c.bf16 %v4507_v31, %v4507_v31  ;;  %v3707_v31 = vmax.f32 %v3515_v48, 0.0 }
 0x600   : > { %v3898_v47 = vpop.f32.mrf.mxu2 }
 0x601   : > { %v4724_v41 = vunpack.c.l.bf16 %v4654_v40  ;;  %v4392_v33 = vpack.c.bf16 %v4342_v7, %v4341_v8  ;;  %v4016_v52 = vpack.c.bf16 %v3898_v47, %v3898_v47  ;;  %v3706_v40 = vmax.f32 %v3514_v57, 0.0 }
 0x603   : > { %v4789_v20 = vadd.f32 %v9577_v56, %v4724_v41  ;;  %4549 = vmatmul.bf16.gmra.mxu3 %v4392_v33  ;;  %v4086_v63 = vunpack.c.l.bf16 %v4016_v52  ;;  %v3746_v33 = vpack.c.bf16 %v3707_v31, %v3706_v40 }
 0x605   : > { %v4981_v27 = vmax.f32 %v4789_v20, 0.0  ;;  %v4151_v30 = vadd.f32 %v9465_v6, %v4086_v63 }
 0x606   : > { %v4510_v2 = vpop.f32.mrf.mxu3 }
 0x607   : > { %v5040_v29 = vpack.c.bf16 %v4981_v27, %v4980_v54  ;;  %v4655_v18 = vpack.c.bf16 %v4510_v2, %v4510_v2  ;;  %v4343_v37 = vmax.f32 %v4151_v30, 0.0  ;;  %v3452_v54 = vunpack.c.l.bf16 %v3382_v46 }
 0x608   : > { %v3900_v32 = vpop.f32.mrf.mxu2 }
 0x609   : > { %v4017_v23 = vpack.c.bf16 %v3900_v32, %v3900_v32  ;;  %5161 = vmatmul.bf16.gmra.mxu0 %v5040_v29  ;;  %v4725_v45 = vunpack.c.l.bf16 %v4655_v18  ;;  %v3451_v29 = vunpack.c.l.bf16 %v3381_v34  ;;  %v3517_v35 = vadd.f32 %v9358_v36, %v3452_v54 }
 0x60b   : > { %v4087_v4 = vunpack.c.l.bf16 %v4017_v23  ;;  %v4790_v55 = vadd.f32 %v9577_v56, %v4725_v45  ;;  %v3516_v30 = vadd.f32 %v9358_v36, %v3451_v29  ;;  %v3709_v45 = vmax.f32 %v3517_v35, 0.0 }
 0x60c   : > { %v3385_v29 = vpack.c.bf16 %v9498_v28, %v9498_v28 }
 0x60d   : > { %v4152_v49 = vadd.f32 %v9465_v6, %v4087_v4  ;;  %3942 = vmatmul.bf16.gmra.mxu2 %v3745_v60  ;;  %v4982_v43 = vmax.f32 %v4790_v55, 0.0 }
 0x60e   : > { %v4512_v62 = vpop.f32.mrf.mxu3 }
 0x60f   : > { %v4344_v21 = vmax.f32 %v4152_v49, 0.0  ;;  %v4656_v51 = vpack.c.bf16 %v4512_v62, %v4512_v62 }
 0x610   : > { %v3903_v25 = vpop.f32.mrf.mxu2 }
 0x611   : > { %v4726_v24 = vunpack.c.l.bf16 %v4656_v51  ;;  %v4393_v9 = vpack.c.bf16 %v4344_v21, %v4343_v37  ;;  %v4018_v59 = vpack.c.bf16 %v3903_v25, %v3903_v25  ;;  %v3708_v37 = vmax.f32 %v3516_v30, 0.0 }
 0x612   : > { %v3384_v25 = vpack.c.bf16 %v9490_v3, %v9490_v3 }
 0x613   : > { %v4791_v17 = vadd.f32 %v9577_v56, %v4726_v24  ;;  %4554 = vmatmul.bf16.gmra.mxu3 %v4393_v9  ;;  %v4088_v10 = vunpack.c.l.bf16 %v4018_v59  ;;  %v3747_v24 = vpack.c.bf16 %v3709_v45, %v3708_v37  ;;  %v3383_v9 = vpack.c.bf16 %v9486_v50, %v9486_v50 }
 0x614   : > { %v3454_v57 = vunpack.c.l.bf16 %v3384_v25 }
 0x615   : > { %v4983_v11 = vmax.f32 %v4791_v17, 0.0  ;;  %v4153_v15 = vadd.f32 %v9465_v6, %v4088_v10  ;;  %v3453_v10 = vunpack.c.l.bf16 %v3383_v9 }
 0x616   : > { %v4515_v38 = vpop.f32.mrf.mxu3  ;;  %v3519_v40 = vadd.f32 %v9358_v36, %v3454_v57 }
 0x617   : > { %v5041_v8 = vpack.c.bf16 %v4983_v11, %v4982_v43  ;;  %v4657_v39 = vpack.c.bf16 %v4515_v38, %v4515_v38  ;;  %v4345_v27 = vmax.f32 %v4153_v15, 0.0 }
 0x618   : > { %v3905_v7 = vpop.f32.mrf.mxu2 }
 0x619   : > { %v4019_v47 = vpack.c.bf16 %v3905_v7, %v3905_v7  ;;  %5166 = vmatmul.bf16.gmra.mxu0 %v5041_v8  ;;  %v4727_v20 = vunpack.c.l.bf16 %v4657_v39 }
 0x61b   : > { %v4089_v41 = vunpack.c.l.bf16 %v4019_v47  ;;  %v4792_v32 = vadd.f32 %v9577_v56, %v4727_v20  ;;  %v3518_v47 = vadd.f32 %v9358_v36, %v3453_v10 }
 0x61d   : > { %v4154_v52 = vadd.f32 %v9465_v6, %v4089_v41  ;;  %3947 = vmatmul.bf16.gmra.mxu2 %v3746_v33  ;;  %v4984_v4 = vmax.f32 %v4792_v32, 0.0  ;;  %v3711_v33 = vmax.f32 %v3519_v40, 0.0 }
 0x61e   : > { %v4517_v26 = vpop.f32.mrf.mxu3 }
 0x61f   : > { %v4346_v2 = vmax.f32 %v4154_v52, 0.0  ;;  %v4658_v53 = vpack.c.bf16 %v4517_v26, %v4517_v26  ;;  %v3710_v26 = vmax.f32 %v3518_v47, 0.0 }
 0x620   : > { %v3908_v63 = vpop.f32.mrf.mxu2 }
 0x621   : > { %v4728_v58 = vunpack.c.l.bf16 %v4658_v53  ;;  %v4394_v18 = vpack.c.bf16 %v4346_v2, %v4345_v27  ;;  %v4020_v5 = vpack.c.bf16 %v3908_v63, %v3908_v63  ;;  %v3386_v2 = vpack.c.bf16 %v9502_v42, %v9502_v42 }
 0x622   : > { %v3748_v63 = vpack.c.bf16 %v3711_v33, %v3710_v26 }
 0x623   : > { %v4793_v23 = vadd.f32 %v9577_v56, %v4728_v58  ;;  %4559 = vmatmul.bf16.gmra.mxu3 %v4394_v18  ;;  %v4090_v49 = vunpack.c.l.bf16 %v4020_v5  ;;  %v3456_v35 = vunpack.c.l.bf16 %v3386_v2 }
 0x625   : > { %v4985_v60 = vmax.f32 %v4793_v23, 0.0  ;;  %v4155_v16 = vadd.f32 %v9465_v6, %v4090_v49  ;;  %v7099_v49 = vld [vmem:[%s10191_s4 + $0x4] sm:$0x1]  ;;  %v3521_v28 = vadd.f32 %v9358_v36, %v3456_v35 }
 0x626   : > { %v4520_v19 = vpop.f32.mrf.mxu3  ;;  %v5369_v25 = vpack.i.b16 %v7099_v49, %v7099_v49 }
 0x627   : > { %v5042_v62 = vpack.c.bf16 %v4985_v60, %v4984_v4  ;;  %v4659_v21 = vpack.c.bf16 %v4520_v19, %v4520_v19  ;;  %v4347_v43 = vmax.f32 %v4155_v16, 0.0  ;;  %v3455_v60 = vunpack.c.l.bf16 %v3385_v29 }
 0x628   : > { %v3910_v0 = vpop.f32.mrf.mxu2 }
 0x629   : > { %v4021_v51 = vpack.c.bf16 %v3910_v0, %v3910_v0  ;;  %5171 = vmatmul.bf16.gmra.mxu0 %v5042_v62  ;;  %v4729_v48 = vunpack.c.l.bf16 %v4659_v21  ;;  %v3520_v37 = vadd.f32 %v9358_v36, %v3455_v60 }
 0x62b   : > { %v4091_v55 = vunpack.c.l.bf16 %v4021_v51  ;;  %v4794_v3 = vadd.f32 %v9577_v56, %v4729_v48 }
 0x62d   : > { %v4156_v17 = vadd.f32 %v9465_v6, %v4091_v55  ;;  %3952 = vmatmul.bf16.gmra.mxu2 %v3747_v24  ;;  %v4986_v46 = vmax.f32 %v4794_v3, 0.0  ;;  %v3713_v24 = vmax.f32 %v3521_v28, 0.0 }
 0x62e   : > { %v4522_v59 = vpop.f32.mrf.mxu3 }
 0x62f   : > { %v4348_v11 = vmax.f32 %v4156_v17, 0.0  ;;  %v4660_v38 = vpack.c.bf16 %v4522_v59, %v4522_v59  ;;  %v3712_v59 = vmax.f32 %v3520_v37, 0.0  ;;  %v3390_v37 = vpack.c.bf16 %v9528_v22, %v9528_v22 }
 0x630   : > { %v3913_v31 = vpop.f32.mrf.mxu2 }
 0x631   : > { %v4730_v8 = vunpack.c.l.bf16 %v4660_v38  ;;  %v4395_v7 = vpack.c.bf16 %v4348_v11, %v4347_v43  ;;  %v4022_v50 = vpack.c.bf16 %v3913_v31, %v3913_v31  ;;  %v5371_v43 = vperm.slane %v5369_v25, 0 }
 0x632   : > { %v3388_v38 = vpack.c.bf16 %v9516_v12, %v9516_v12 }
 0x633   : > { %v4795_v39 = vadd.f32 %v9577_v56, %v4730_v8  ;;  %4564 = vmatmul.bf16.gmra.mxu3 %v4395_v7  ;;  %v4092_v34 = vunpack.c.l.bf16 %v4022_v50  ;;  %v3749_v8 = vpack.c.bf16 %v3713_v24, %v3712_v59  ;;  %v3387_v7 = vpack.c.bf16 %v9509_v61, %v9509_v61 }
 0x634   : > { %v3458_v47 = vunpack.c.l.bf16 %v3388_v38 }
 0x635   : > { %v4987_v15 = vmax.f32 %v4795_v39, 0.0  ;;  %v4157_v53 = vadd.f32 %v9465_v6, %v4092_v34  ;;  %v9684_v39 = vunpack.c.l.bf16 %v5371_v43 }
 0x636   : > { %v4525_v41 = vpop.f32.mrf.mxu3 }
 0x637   : > { %v5043_v20 = vpack.c.bf16 %v4987_v15, %v4986_v46  ;;  %v4661_v54 = vpack.c.bf16 %v4525_v41, %v4525_v41  ;;  %v4349_v23 = vmax.f32 %v4157_v53, 0.0 }
 0x638   : > { %v3915_v52 = vpop.f32.mrf.mxu2 }
 0x639   : > { %v4023_v27 = vpack.c.bf16 %v3915_v52, %v3915_v52  ;;  %5176 = vmatmul.bf16.gmra.mxu0 %v5043_v20  ;;  %v4731_v32 = vunpack.c.l.bf16 %v4661_v54  ;;  %v3457_v52 = vunpack.c.l.bf16 %v3387_v7 }
 0x63b   : > { %v4093_v13 = vunpack.c.l.bf16 %v4023_v27  ;;  %v4796_v42 = vadd.f32 %v9577_v56, %v4731_v32 }
 0x63d   : > { %v4158_v58 = vadd.f32 %v9465_v6, %v4093_v13  ;;  %3957 = vmatmul.bf16.gmra.mxu2 %v3748_v63  ;;  %v4988_v21 = vmax.f32 %v4796_v42, 0.0  ;;  %v3523_v13 = vadd.f32 %v9358_v36, %v3458_v47 }
 0x63e   : > { %v4527_v18 = vpop.f32.mrf.mxu3 }
 0x63f   : > { %v4350_v5 = vmax.f32 %v4158_v58, 0.0  ;;  %v4662_v30 = vpack.c.bf16 %v4527_v18, %v4527_v18  ;;  %v3522_v58 = vadd.f32 %v9358_v36, %v3457_v52  ;;  %v3715_v60 = vmax.f32 %v3523_v13, 0.0 }
 0x640   : > { %v3918_v4 = vpop.f32.mrf.mxu2 }
 0x641   : > { %v4732_v19 = vunpack.c.l.bf16 %v4662_v30  ;;  %v4396_v45 = vpack.c.bf16 %v4350_v5, %v4349_v23  ;;  %v4024_v0 = vpack.c.bf16 %v3918_v4, %v3918_v4  ;;  %v3714_v28 = vmax.f32 %v3522_v58, 0.0 }
 0x643   : > { %v4797_v62 = vadd.f32 %v9577_v56, %v4732_v19  ;;  %4569 = vmatmul.bf16.gmra.mxu3 %v4396_v45  ;;  %v4094_v9 = vunpack.c.l.bf16 %v4024_v0 }
 0x645   : > { %v4989_v51 = vmax.f32 %v4797_v62, 0.0  ;;  %v4159_v10 = vadd.f32 %v9465_v6, %v4094_v9 }
 0x646   : > { %v4530_v16 = vpop.f32.mrf.mxu3  ;;  %v5142_v55 = vpop.f32.mrf.mxu0 }
 0x647   : > { %v5044_v48 = vpack.c.bf16 %v4989_v51, %v4988_v21  ;;  %v5302_v57 = vpack.c.bf16 %v5142_v55, %v5142_v55  ;;  %v4663_v31 = vpack.c.bf16 %v4530_v16, %v4530_v16  ;;  %v4351_v33 = vmax.f32 %v4159_v10, 0.0 }
 0x648   : > { %v3920_v17 = vpop.f32.mrf.mxu2  ;;  %v3750_v16 = vpack.c.bf16 %v3715_v60, %v3714_v28  ;;  %v3389_v55 = vpack.c.bf16 %v9520_v14, %v9520_v14 }
 0x649   : > { %v4025_v11 = vpack.c.bf16 %v3920_v17, %v3920_v17  ;;  %5181 = vmatmul.bf16.gmra.mxu0 %v5044_v48  ;;  %v5372_v40 = vunpack.c.l.bf16 %v5302_v57  ;;  %v4733_v46 = vunpack.c.l.bf16 %v4663_v31  ;;  %v3460_v48 = vunpack.c.l.bf16 %v3390_v37 }
 0x64a   : > { %v3459_v31 = vunpack.c.l.bf16 %v3389_v55 }
 0x64b   : > { %v4095_v3 = vunpack.c.l.bf16 %v4025_v11  ;;  %v5437_v54 = vadd.f32 %v9684_v39, %v5372_v40  ;;  %v4798_v53 = vadd.f32 %v9577_v56, %v4733_v46 }
 0x64d   : > { %v4160_v50 = vadd.f32 %v9465_v6, %v4095_v3  ;;  %3962 = vmatmul.bf16.gmra.mxu2 %v3749_v8  ;;  %v5629_v18 = vmax.f32 %v5437_v54, 0.0  ;;  %v4990_v5 = vmax.f32 %v4798_v53, 0.0 }
 0x64e   : > { %v4532_v15 = vpop.f32.mrf.mxu3  ;;  %v5144_v41 = vpop.f32.mrf.mxu0 }
 0x64f   : > { %v4352_v12 = vmax.f32 %v4160_v50, 0.0  ;;  %v4664_v34 = vpack.c.bf16 %v4532_v15, %v4532_v15  ;;  %v5303_v20 = vpack.c.bf16 %v5144_v41, %v5144_v41  ;;  %v3525_v50 = vadd.f32 %v9358_v36, %v3460_v48 }
 0x650   : > { %v3923_v26 = vpop.f32.mrf.mxu2  ;;  %v3524_v41 = vadd.f32 %v9358_v36, %v3459_v31 }
 0x651   : > { %v4734_v27 = vunpack.c.l.bf16 %v4664_v34  ;;  %v5373_v61 = vunpack.c.l.bf16 %v5303_v20  ;;  %v4397_v2 = vpack.c.bf16 %v4352_v12, %v4351_v33  ;;  %v4026_v32 = vpack.c.bf16 %v3923_v26, %v3923_v26 }
 0x652   : > { %v3717_v54 = vmax.f32 %v3525_v50, 0.0  ;;  %v3716_v13 = vmax.f32 %v3524_v41, 0.0 }
 0x653   : > { %v4799_v63 = vadd.f32 %v9577_v56, %v4734_v27  ;;  %v5438_v29 = vadd.f32 %v9684_v39, %v5373_v61  ;;  %4574 = vmatmul.bf16.gmra.mxu3 %v4397_v2  ;;  %v4096_v19 = vunpack.c.l.bf16 %v4026_v32 }
 0x655   : > { %v4991_v35 = vmax.f32 %v4799_v63, 0.0  ;;  %v5630_v23 = vmax.f32 %v5438_v29, 0.0  ;;  %v4161_v51 = vadd.f32 %v9465_v6, %v4096_v19 }
 0x656   : > { %v4535_v30 = vpop.f32.mrf.mxu3  ;;  %v5147_v4 = vpop.f32.mrf.mxu0 }
 0x657   : > { %v5693_v42 = vpack.c.bf16 %v5630_v23, %v5629_v18  ;;  %v5045_v49 = vpack.c.bf16 %v4991_v35, %v4990_v5  ;;  %v4665_v62 = vpack.c.bf16 %v4535_v30, %v4535_v30  ;;  %v5304_v21 = vpack.c.bf16 %v5147_v4, %v5147_v4 }
 0x658   : > { %v3925_v45 = vpop.f32.mrf.mxu2  ;;  %v4353_v43 = vmax.f32 %v4161_v51, 0.0  ;;  %v3751_v18 = vpack.c.bf16 %v3717_v54, %v3716_v13 }
 0x659   : > { %v4027_v0 = vpack.c.bf16 %v3925_v45, %v3925_v45  ;;  %5798 = vmatmul.bf16.vlgmr.msrb.gmra.mxu1 %v5693_v42  ;;  %5186 = vmatmul.bf16.gmra.mxu0 %v5045_v49  ;;  %v4735_v24 = vunpack.c.l.bf16 %v4665_v62  ;;  %v5374_v17 = vunpack.c.l.bf16 %v5304_v21 }
 0x65b   : > { %v4097_v25 = vunpack.c.l.bf16 %v4027_v0  ;;  %v4800_v3 = vadd.f32 %v9577_v56, %v4735_v24  ;;  %v5439_v14 = vadd.f32 %v9684_v39, %v5374_v17 }
 0x65d   : > { %v4162_v9 = vadd.f32 %v9465_v6, %v4097_v25  ;;  %3967 = vmatmul.bf16.gmra.mxu2 %v3750_v16  ;;  %v4992_v33 = vmax.f32 %v4800_v3, 0.0  ;;  %v5631_v20 = vmax.f32 %v5439_v14, 0.0 }
 0x65e   : > { %v4537_v59 = vpop.f32.mrf.mxu3  ;;  %v5149_v57 = vpop.f32.mrf.mxu0 }
 0x65f   : > { %v4354_v11 = vmax.f32 %v4162_v9, 0.0  ;;  %v4666_v22 = vpack.c.bf16 %v4537_v59, %v4537_v59  ;;  %v5305_v38 = vpack.c.bf16 %v5149_v57, %v5149_v57 }
 0x660   : > { %v3928_v10 = vpop.f32.mrf.mxu2 }
 0x661   : > { %v4736_v8 = vunpack.c.l.bf16 %v4666_v22  ;;  %v5375_v7 = vunpack.c.l.bf16 %v5305_v38  ;;  %v4398_v40 = vpack.c.bf16 %v4354_v11, %v4353_v43  ;;  %v4028_v15 = vpack.c.bf16 %v3928_v10, %v3928_v10 }
 0x663   : > { %v4801_v47 = vadd.f32 %v9577_v56, %v4736_v8  ;;  %v5440_v46 = vadd.f32 %v9684_v39, %v5375_v7  ;;  %4579 = vmatmul.bf16.gmra.mxu3 %v4398_v40  ;;  %v4098_v27 = vunpack.c.l.bf16 %v4028_v15 }
 0x665   : > { %v4993_v12 = vmax.f32 %v4801_v47, 0.0  ;;  %v5632_v34 = vmax.f32 %v5440_v46, 0.0  ;;  %v4163_v58 = vadd.f32 %v9465_v6, %v4098_v27 }
 0x666   : > { %v4540_v52 = vpop.f32.mrf.mxu3  ;;  %v5152_v26 = vpop.f32.mrf.mxu0 }
 0x667   : > { %v5046_v61 = vpack.c.bf16 %v4993_v12, %v4992_v33  ;;  %v5694_v53 = vpack.c.bf16 %v5632_v34, %v5631_v20  ;;  %v4667_v63 = vpack.c.bf16 %v4540_v52, %v4540_v52  ;;  %v5306_v32 = vpack.c.bf16 %v5152_v26, %v5152_v26 }
 0x668   : > { %v3930_v2 = vpop.f32.mrf.mxu2  ;;  %v4355_v60 = vmax.f32 %v4163_v58, 0.0 }
 0x669   : > { %v4029_v29 = vpack.c.bf16 %v3930_v2, %v3930_v2  ;;  %5191 = vmatmul.bf16.gmra.mxu0 %v5046_v61  ;;  %5803 = vmatmul.bf16.gmra.mxu1 %v5694_v53  ;;  %v4737_v35 = vunpack.c.l.bf16 %v4667_v63  ;;  %v5376_v5 = vunpack.c.l.bf16 %v5306_v32 }
 0x66b   : > { %v4099_v36 = vunpack.c.l.bf16 %v4029_v29  ;;  %v4802_v28 = vadd.f32 %v9577_v56, %v4737_v35  ;;  %v5441_v21 = vadd.f32 %v9684_v39, %v5376_v5 }
 0x66d   : > { %v4164_v23 = vadd.f32 %v9465_v6, %v4099_v36  ;;  %3972 = vmatmul.bf16.gmra.mxu2 %v3751_v18  ;;  %v4994_v55 = vmax.f32 %v4802_v28, 0.0  ;;  %v5633_v48 = vmax.f32 %v5441_v21, 0.0 }
 0x66e   : > { %v4542_v30 = vpop.f32.mrf.mxu3  ;;  %v5154_v4 = vpop.f32.mrf.mxu0 }
 0x66f   : > { %v4356_v42 = vmax.f32 %v4164_v23, 0.0  ;;  %v4668_v19 = vpack.c.bf16 %v4542_v30, %v4542_v30  ;;  %v5307_v45 = vpack.c.bf16 %v5154_v4, %v5154_v4 }
 0x670   : > { %v3933_v49 = vpop.f32.mrf.mxu2 }
 0x671   : > { %v4738_v62 = vunpack.c.l.bf16 %v4668_v19  ;;  %v5377_v0 = vunpack.c.l.bf16 %v5307_v45  ;;  %v4399_v37 = vpack.c.bf16 %v4356_v42, %v4355_v60  ;;  %v4030_v16 = vpack.c.bf16 %v3933_v49, %v3933_v49 }
 0x673   : > { %v4803_v51 = vadd.f32 %v9577_v56, %v4738_v62  ;;  %v5442_v25 = vadd.f32 %v9684_v39, %v5377_v0  ;;  %4584 = vmatmul.bf16.gmra.mxu3 %v4399_v37  ;;  %v4100_v57 = vunpack.c.l.bf16 %v4030_v16 }
 0x675   : > { %v4995_v24 = vmax.f32 %v4803_v51, 0.0  ;;  %v5634_v9 = vmax.f32 %v5442_v25, 0.0  ;;  %v4165_v3 = vadd.f32 %v9465_v6, %v4100_v57 }
 0x676   : > { %v4545_v17 = vpop.f32.mrf.mxu3  ;;  %v5157_v59 = vpop.f32.mrf.mxu0 }
 0x677   : > { %v5047_v43 = vpack.c.bf16 %v4995_v24, %v4994_v55  ;;  %v5695_v22 = vpack.c.bf16 %v5634_v9, %v5633_v48  ;;  %v4669_v38 = vpack.c.bf16 %v4545_v17, %v4545_v17  ;;  %v5308_v10 = vpack.c.bf16 %v5157_v59, %v5157_v59 }
 0x678   : > { %v3935_v11 = vpop.f32.mrf.mxu2  ;;  %v4357_v46 = vmax.f32 %v4165_v3, 0.0 }
 0x679   : > { %v4031_v31 = vpack.c.bf16 %v3935_v11, %v3935_v11  ;;  %5196 = vmatmul.bf16.gmra.mxu0 %v5047_v43  ;;  %5808 = vmatmul.bf16.gmra.mxu1 %v5695_v22  ;;  %v4739_v7 = vunpack.c.l.bf16 %v4669_v38  ;;  %v5378_v14 = vunpack.c.l.bf16 %v5308_v10 }
 0x67b   : > { %v4101_v8 = vunpack.c.l.bf16 %v4031_v31  ;;  %v4804_v34 = vadd.f32 %v9577_v56, %v4739_v7  ;;  %v5443_v54 = vadd.f32 %v9684_v39, %v5378_v14 }
 0x67d   : > { %v4166_v40 = vadd.f32 %v9465_v6, %v4101_v8  ;;  %3977 = vmatmul.bf16.gmra.mxu2 %v9547_v1  ;;  %v4996_v2 = vmax.f32 %v4804_v34, 0.0  ;;  %v5635_v63 = vmax.f32 %v5443_v54, 0.0 }
 0x67e   : > { %v4547_v50 = vpop.f32.mrf.mxu3  ;;  %v5159_v47 = vpop.f32.mrf.mxu0 }
 0x67f   : > { %v4358_v15 = vmax.f32 %v4166_v40, 0.0  ;;  %v4670_v41 = vpack.c.bf16 %v4547_v50, %v4547_v50  ;;  %v5309_v33 = vpack.c.bf16 %v5159_v47, %v5159_v47 }
 0x680   : > { %v3938_v12 = vpop.f32.mrf.mxu2 }
 0x681   : > { %v4740_v20 = vunpack.c.l.bf16 %v4670_v41  ;;  %v5379_v52 = vunpack.c.l.bf16 %v5309_v33  ;;  %v4400_v26 = vpack.c.bf16 %v4358_v15, %v4357_v46  ;;  %v4032_v1 = vpack.c.bf16 %v3938_v12, %v3938_v12 }
 0x683   : > { %v4805_v27 = vadd.f32 %v9577_v56, %v4740_v20  ;;  %v5444_v61 = vadd.f32 %v9684_v39, %v5379_v52  ;;  %4589 = vmatmul.bf16.gmra.mxu3 %v4400_v26  ;;  %v4102_v58 = vunpack.c.l.bf16 %v4032_v1 }
 0x685   : > { %v4997_v53 = vmax.f32 %v4805_v27, 0.0  ;;  %v5636_v13 = vmax.f32 %v5444_v61, 0.0  ;;  %v4167_v4 = vadd.f32 %v9465_v6, %v4102_v58 }
 0x686   : > { %v4550_v29 = vpop.f32.mrf.mxu3  ;;  %v5162_v32 = vpop.f32.mrf.mxu0 }
 0x687   : > { %v5048_v36 = vpack.c.bf16 %v4997_v53, %v4996_v2  ;;  %v5696_v35 = vpack.c.bf16 %v5636_v13, %v5635_v63  ;;  %v4671_v23 = vpack.c.bf16 %v4550_v29, %v4550_v29  ;;  %v5310_v30 = vpack.c.bf16 %v5162_v32, %v5162_v32 }
 0x688   : > { %v3940_v18 = vpop.f32.mrf.mxu2  ;;  %v4359_v62 = vmax.f32 %v4167_v4, 0.0 }
 0x689   : > { %v4033_v5 = vpack.c.bf16 %v3940_v18, %v3940_v18  ;;  %5201 = vmatmul.bf16.gmra.mxu0 %v5048_v36  ;;  %5813 = vmatmul.bf16.gmra.mxu1 %v5696_v35  ;;  %v4741_v42 = vunpack.c.l.bf16 %v4671_v23  ;;  %v5380_v45 = vunpack.c.l.bf16 %v5310_v30 }
 0x68b   : > { %v4103_v60 = vunpack.c.l.bf16 %v4033_v5  ;;  %v4806_v25 = vadd.f32 %v9577_v56, %v4741_v42  ;;  %v5445_v9 = vadd.f32 %v9684_v39, %v5380_v45 }
 0x68d   : > { %v4168_v19 = vadd.f32 %v9465_v6, %v4103_v60  ;;  %3982 = vmatmul.bf16.gmra.mxu2 %v9570_v44  ;;  %v4998_v59 = vmax.f32 %v4806_v25, 0.0  ;;  %v5637_v11 = vmax.f32 %v5445_v9, 0.0 }
 0x68e   : > { %v4552_v49 = vpop.f32.mrf.mxu3  ;;  %v5164_v28 = vpop.f32.mrf.mxu0 }
 0x68f   : > { %v4360_v0 = vmax.f32 %v4168_v19, 0.0  ;;  %v4672_v37 = vpack.c.bf16 %v4552_v49, %v4552_v49  ;;  %v5311_v21 = vpack.c.bf16 %v5164_v28, %v5164_v28 }
 0x690   : > { %v3943_v51 = vpop.f32.mrf.mxu2 }
 0x691   : > { %v4742_v16 = vunpack.c.l.bf16 %v4672_v37  ;;  %v5381_v55 = vunpack.c.l.bf16 %v5311_v21  ;;  %v4401_v24 = vpack.c.bf16 %v4360_v0, %v4359_v62  ;;  %v4034_v44 = vpack.c.bf16 %v3943_v51, %v3943_v51 }
 0x693   : > { %v4807_v48 = vadd.f32 %v9577_v56, %v4742_v16  ;;  %v5446_v17 = vadd.f32 %v9684_v39, %v5381_v55  ;;  %4594 = vmatmul.bf16.gmra.mxu3 %v4401_v24  ;;  %v4104_v31 = vunpack.c.l.bf16 %v4034_v44 }
 0x695   : > { %v4999_v57 = vmax.f32 %v4807_v48, 0.0  ;;  %v5638_v43 = vmax.f32 %v5446_v17, 0.0  ;;  %v4169_v50 = vadd.f32 %v9465_v6, %v4104_v31 }
 0x696   : > { %v4555_v22 = vpop.f32.mrf.mxu3  ;;  %v5167_v38 = vpop.f32.mrf.mxu0 }
 0x697   : > { %v5049_v10 = vpack.c.bf16 %v4999_v57, %v4998_v59  ;;  %v5697_v8 = vpack.c.bf16 %v5638_v43, %v5637_v11  ;;  %v4673_v7 = vpack.c.bf16 %v4555_v22, %v4555_v22  ;;  %v5312_v14 = vpack.c.bf16 %v5167_v38, %v5167_v38 }
 0x698   : > { %v3945_v3 = vpop.f32.mrf.mxu2  ;;  %v4361_v34 = vmax.f32 %v4169_v50, 0.0 }
 0x699   : > { %v4035_v40 = vpack.c.bf16 %v3945_v3, %v3945_v3  ;;  %5206 = vmatmul.bf16.gmra.mxu0 %v5049_v10  ;;  %5818 = vmatmul.bf16.gmra.mxu1 %v5697_v8  ;;  %v4743_v46 = vunpack.c.l.bf16 %v4673_v7  ;;  %v5382_v41 = vunpack.c.l.bf16 %v5312_v14 }
 0x69b   : > { %v4105_v47 = vunpack.c.l.bf16 %v4035_v40  ;;  %v4808_v27 = vadd.f32 %v9577_v56, %v4743_v46  ;;  %v5447_v53 = vadd.f32 %v9684_v39, %v5382_v41 }
 0x69d   : > { %v4170_v15 = vadd.f32 %v9465_v6, %v4105_v47  ;;  %v5000_v32 = vmax.f32 %v4808_v27, 0.0  ;;  %v5639_v18 = vmax.f32 %v5447_v53, 0.0 }
 0x69e   : > { %v4557_v33 = vpop.f32.mrf.mxu3  ;;  %v5169_v12 = vpop.f32.mrf.mxu0 }
 0x69f   : > { %v4362_v20 = vmax.f32 %v4170_v15, 0.0  ;;  %v4674_v52 = vpack.c.bf16 %v4557_v33, %v4557_v33  ;;  %v5313_v26 = vpack.c.bf16 %v5169_v12, %v5169_v12 }
 0x6a0   : > { %v3948_v54 = vpop.f32.mrf.mxu2 }
 0x6a1   : > { %v4744_v61 = vunpack.c.l.bf16 %v4674_v52  ;;  %v5383_v1 = vunpack.c.l.bf16 %v5313_v26  ;;  %v4402_v2 = vpack.c.bf16 %v4362_v20, %v4361_v34  ;;  %v4036_v29 = vpack.c.bf16 %v3948_v54, %v3948_v54 }
 0x6a3   : > { %v4809_v13 = vadd.f32 %v9577_v56, %v4744_v61  ;;  %v5448_v63 = vadd.f32 %v9684_v39, %v5383_v1  ;;  %4599 = vmatmul.bf16.gmra.mxu3 %v4402_v2  ;;  %v4106_v5 = vunpack.c.l.bf16 %v4036_v29 }
 0x6a5   : > { %v5001_v58 = vmax.f32 %v4809_v13, 0.0  ;;  %v5640_v36 = vmax.f32 %v5448_v63, 0.0  ;;  %v4171_v49 = vadd.f32 %v9465_v6, %v4106_v5 }
 0x6a6   : > { %v4560_v35 = vpop.f32.mrf.mxu3  ;;  %v5172_v23 = vpop.f32.mrf.mxu0 }
 0x6a7   : > { %v5050_v30 = vpack.c.bf16 %v5001_v58, %v5000_v32  ;;  %v5698_v60 = vpack.c.bf16 %v5640_v36, %v5639_v18  ;;  %v4675_v42 = vpack.c.bf16 %v4560_v35, %v4560_v35  ;;  %v5314_v45 = vpack.c.bf16 %v5172_v23, %v5172_v23 }
 0x6a8   : > { %v3950_v4 = vpop.f32.mrf.mxu2  ;;  %v4363_v25 = vmax.f32 %v4171_v49, 0.0 }
 0x6a9   : > { %v4037_v19 = vpack.c.bf16 %v3950_v4, %v3950_v4  ;;  %5211 = vmatmul.bf16.gmra.mxu0 %v5050_v30  ;;  %5823 = vmatmul.bf16.gmra.mxu1 %v5698_v60  ;;  %v4745_v62 = vunpack.c.l.bf16 %v4675_v42  ;;  %v5384_v37 = vunpack.c.l.bf16 %v5314_v45 }
 0x6ab   : > { %v4107_v28 = vunpack.c.l.bf16 %v4037_v19  ;;  %v4810_v48 = vadd.f32 %v9577_v56, %v4745_v62  ;;  %v5449_v57 = vadd.f32 %v9684_v39, %v5384_v37 }
 0x6ad   : > { %v4172_v0 = vadd.f32 %v9465_v6, %v4107_v28  ;;  %v5002_v38 = vmax.f32 %v4810_v48, 0.0  ;;  %v5641_v3 = vmax.f32 %v5449_v57, 0.0 }
 0x6ae   : > { %v4562_v21 = vpop.f32.mrf.mxu3  ;;  %v5174_v51 = vpop.f32.mrf.mxu0 }
 0x6af   : > { %v4364_v16 = vmax.f32 %v4172_v0, 0.0  ;;  %v4676_v55 = vpack.c.bf16 %v4562_v21, %v4562_v21  ;;  %v5315_v24 = vpack.c.bf16 %v5174_v51, %v5174_v51 }
 0x6b0   : > { %v3953_v9 = vpop.f32.mrf.mxu2 }
 0x6b1   : > { %v4746_v17 = vunpack.c.l.bf16 %v4676_v55  ;;  %v5385_v44 = vunpack.c.l.bf16 %v5315_v24  ;;  %v4403_v59 = vpack.c.bf16 %v4364_v16, %v4363_v25  ;;  %v4038_v22 = vpack.c.bf16 %v3953_v9, %v3953_v9  ;;  %v7148_v25 = vld [vmem:[%s10191_s4 + $0x5] sm:$0x1] }
 0x6b3   : > { %v4811_v43 = vadd.f32 %v9577_v56, %v4746_v17  ;;  %v5450_v11 = vadd.f32 %v9684_v39, %v5385_v44  ;;  %4604 = vmatmul.bf16.gmra.mxu3 %v4403_v59  ;;  %v4108_v40 = vunpack.c.l.bf16 %v4038_v22  ;;  %v6026_v17 = vpack.i.b16 %v7148_v25, %v7148_v25 }
 0x6b5   : > { %v5003_v31 = vmax.f32 %v4811_v43, 0.0  ;;  %v5642_v10 = vmax.f32 %v5450_v11, 0.0  ;;  %v4173_v33 = vadd.f32 %v9465_v6, %v4108_v40  ;;  %v6028_v40 = vperm.slane %v6026_v17, 0 }
 0x6b6   : > { %v4565_v8 = vpop.f32.mrf.mxu3  ;;  %v5177_v7 = vpop.f32.mrf.mxu0 }
 0x6b7   : > { %v5051_v14 = vpack.c.bf16 %v5003_v31, %v5002_v38  ;;  %v5699_v47 = vpack.c.bf16 %v5642_v10, %v5641_v3  ;;  %v4677_v46 = vpack.c.bf16 %v4565_v8, %v4565_v8  ;;  %v5316_v41 = vpack.c.bf16 %v5177_v7, %v5177_v7 }
 0x6b8   : > { %v3955_v50 = vpop.f32.mrf.mxu2  ;;  %v4365_v27 = vmax.f32 %v4173_v33, 0.0 }
 0x6b9   : > { %v4039_v15 = vpack.c.bf16 %v3955_v50, %v3955_v50  ;;  %5216 = vmatmul.bf16.gmra.mxu0 %v5051_v14  ;;  %5828 = vmatmul.bf16.gmra.mxu1 %v5699_v47  ;;  %v4747_v34 = vunpack.c.l.bf16 %v4677_v46  ;;  %v5386_v52 = vunpack.c.l.bf16 %v5316_v41 }
 0x6bb   : > { %v4109_v12 = vunpack.c.l.bf16 %v4039_v15  ;;  %v4812_v13 = vadd.f32 %v9577_v56, %v4747_v34  ;;  %v5451_v58 = vadd.f32 %v9684_v39, %v5386_v52 }
 0x6bd   : > { %v4174_v20 = vadd.f32 %v9465_v6, %v4109_v12  ;;  %v5004_v23 = vmax.f32 %v4812_v13, 0.0  ;;  %v5643_v4 = vmax.f32 %v5451_v58, 0.0 }
 0x6be   : > { %v4567_v26 = vpop.f32.mrf.mxu3  ;;  %v5179_v54 = vpop.f32.mrf.mxu0 }
 0x6bf   : > { %v4366_v61 = vmax.f32 %v4174_v20, 0.0  ;;  %v4678_v1 = vpack.c.bf16 %v4567_v26, %v4567_v26  ;;  %v5317_v2 = vpack.c.bf16 %v5179_v54, %v5179_v54  ;;  %v9752_v20 = vunpack.c.l.bf16 %v6028_v40 }
 0x6c0   : > { %v3958_v53 = vpop.f32.mrf.mxu2 }
 0x6c1   : > { %v4748_v63 = vunpack.c.l.bf16 %v4678_v1  ;;  %v5387_v29 = vunpack.c.l.bf16 %v5317_v2  ;;  %v4404_v32 = vpack.c.bf16 %v4366_v61, %v4365_v27  ;;  %v4040_v35 = vpack.c.bf16 %v3958_v53, %v3958_v53 }
 0x6c3   : > { %v4813_v36 = vadd.f32 %v9577_v56, %v4748_v63  ;;  %v5452_v18 = vadd.f32 %v9684_v39, %v5387_v29  ;;  %4609 = vmatmul.bf16.gmra.mxu3 %v4404_v32  ;;  %v4110_v19 = vunpack.c.l.bf16 %v4040_v35 }
 0x6c5   : > { %v5005_v5 = vmax.f32 %v4813_v36, 0.0  ;;  %v5644_v30 = vmax.f32 %v5452_v18, 0.0  ;;  %v4175_v21 = vadd.f32 %v9465_v6, %v4110_v19  ;;  %v9760_v19 = vld [vmem:[%s10192_s5] ss:$0 sm:$0xff] }
 0x6c6   : > { %v4570_v60 = vpop.f32.mrf.mxu3  ;;  %v5182_v42 = vpop.f32.mrf.mxu0 }
 0x6c7   : > { %v5052_v45 = vpack.c.bf16 %v5005_v5, %v5004_v23  ;;  %v5700_v28 = vpack.c.bf16 %v5644_v30, %v5643_v4  ;;  %v4679_v62 = vpack.c.bf16 %v4570_v60, %v4570_v60  ;;  %v5318_v37 = vpack.c.bf16 %v5182_v42, %v5182_v42 }
 0x6c8   : > { %v3960_v49 = vpop.f32.mrf.mxu2  ;;  %v4367_v44 = vmax.f32 %v4175_v21, 0.0 }
 0x6c9   : > { %v4041_v0 = vpack.c.bf16 %v3960_v49, %v3960_v49  ;;  %5221 = vmatmul.bf16.gmra.mxu0 %v5052_v45  ;;  %5833 = vmatmul.bf16.gmra.mxu1 %v5700_v28  ;;  %v4749_v16 = vunpack.c.l.bf16 %v4679_v62  ;;  %v5388_v24 = vunpack.c.l.bf16 %v5318_v37 }
 0x6cb   : > { %v4111_v51 = vunpack.c.l.bf16 %v4041_v0  ;;  %v4814_v22 = vadd.f32 %v9577_v56, %v4749_v16  ;;  %v5453_v3 = vadd.f32 %v9684_v39, %v5388_v24 }
 0x6cd   : > { %v4176_v55 = vadd.f32 %v9465_v6, %v4111_v51  ;;  %v5006_v50 = vmax.f32 %v4814_v22, 0.0  ;;  %v5645_v15 = vmax.f32 %v5453_v3, 0.0 }
 0x6ce   : > { %v4572_v9 = vpop.f32.mrf.mxu3  ;;  %v5184_v48 = vpop.f32.mrf.mxu0 }
 0x6cf   : > { %v4368_v59 = vmax.f32 %v4176_v55, 0.0  ;;  %v4680_v57 = vpack.c.bf16 %v4572_v9, %v4572_v9  ;;  %v5319_v43 = vpack.c.bf16 %v5184_v48, %v5184_v48 }
 0x6d0   : > { %v3963_v11 = vpop.f32.mrf.mxu2 }
 0x6d1   : > { %v4750_v38 = vunpack.c.l.bf16 %v4680_v57  ;;  %v5389_v31 = vunpack.c.l.bf16 %v5319_v43  ;;  %v4405_v10 = vpack.c.bf16 %v4368_v59, %v4367_v44  ;;  %v4042_v14 = vpack.c.bf16 %v3963_v11, %v3963_v11 }
 0x6d3   : > { %v4815_v8 = vadd.f32 %v9577_v56, %v4750_v38  ;;  %v5454_v7 = vadd.f32 %v9684_v39, %v5389_v31  ;;  %4614 = vmatmul.bf16.gmra.mxu3 %v4405_v10  ;;  %v4112_v26 = vunpack.c.l.bf16 %v4042_v14 }
 0x6d5   : > { %v5007_v47 = vmax.f32 %v4815_v8, 0.0  ;;  %v5646_v46 = vmax.f32 %v5454_v7, 0.0  ;;  %v4177_v29 = vadd.f32 %v9465_v6, %v4112_v26 }
 0x6d6   : > { %v4575_v41 = vpop.f32.mrf.mxu3  ;;  %v5799_v33 = vpop.f32.mrf.mxu1 }
 0x6d7   : > { %v5187_v12 = vpop.f32.mrf.mxu0  ;;  %v5959_v34 = vpack.c.bf16 %v5799_v33, %v5799_v33  ;;  %v5053_v52 = vpack.c.bf16 %v5007_v47, %v5006_v50  ;;  %v5701_v27 = vpack.c.bf16 %v5646_v46, %v5645_v15  ;;  %v4681_v61 = vpack.c.bf16 %v4575_v41, %v4575_v41 }
 0x6d8   : > { %v3965_v54 = vpop.f32.mrf.mxu2  ;;  %v5320_v53 = vpack.c.bf16 %v5187_v12, %v5187_v12  ;;  %v4369_v45 = vmax.f32 %v4177_v29, 0.0 }
 0x6d9   : > { %v6029_v1 = vunpack.c.l.bf16 %v5959_v34  ;;  %v4043_v2 = vpack.c.bf16 %v3965_v54, %v3965_v54  ;;  %5226 = vmatmul.bf16.gmra.mxu0 %v5053_v52  ;;  %5838 = vmatmul.bf16.gmra.mxu1 %v5701_v27  ;;  %v4751_v32 = vunpack.c.l.bf16 %v4681_v61 }
 0x6da   : > { %v5390_v18 = vunpack.c.l.bf16 %v5320_v53 }
 0x6db   : > { %v6094_v13 = vadd.f32 %v9752_v20, %v6029_v1  ;;  %v4113_v63 = vunpack.c.l.bf16 %v4043_v2  ;;  %v4816_v62 = vadd.f32 %v9577_v56, %v4751_v32 }
 0x6dc   : > { %v5455_v51 = vadd.f32 %v9684_v39, %v5390_v18 }
 0x6dd   : > { %v6286_v58 = vmax.f32 %v6094_v13, 0.0  ;;  %v4178_v36 = vadd.f32 %v9465_v6, %v4113_v63  ;;  %v5008_v44 = vmax.f32 %v4816_v62, 0.0 }
 0x6de   : > { %v4577_v35 = vpop.f32.mrf.mxu3  ;;  %v5801_v23 = vpop.f32.mrf.mxu1  ;;  %v5647_v43 = vmax.f32 %v5455_v51, 0.0 }
 0x6df   : > { %v6350_v5 = vpack.c.bf16 %v6286_v58, %v6286_v58  ;;  %v4370_v30 = vmax.f32 %v4178_v36, 0.0  ;;  %v4682_v4 = vpack.c.bf16 %v4577_v35, %v4577_v35  ;;  %v5189_v60 = vpop.f32.mrf.mxu0  ;;  %v5960_v42 = vpack.c.bf16 %v5801_v23, %v5801_v23 }
 0x6e0   : > { %v5321_v49 = vpack.c.bf16 %v5189_v60, %v5189_v60  ;;  %v3968_v28 = vpop.f32.mrf.mxu2 }
 0x6e1   : > { %v6414_v0 = vunpack.c.l.bf16 %v6350_v5  ;;  %v4752_v37 = vunpack.c.l.bf16 %v4682_v4  ;;  %v6030_v21 = vunpack.c.l.bf16 %v5960_v42  ;;  %v4406_v16 = vpack.c.bf16 %v4370_v30, %v4369_v45 }
 0x6e2   : > { %v5391_v25 = vunpack.c.l.bf16 %v5321_v49  ;;  %v4044_v9 = vpack.c.bf16 %v3968_v28, %v3968_v28 }
 0x6e3   : > { %v4817_v55 = vadd.f32 %v9577_v56, %v4752_v37  ;;  %v6095_v24 = vadd.f32 %v9752_v20, %v6030_v21  ;;  %v6482_v48 = vmul.f32 %v9760_v19, %v6414_v0  ;;  %4619 = vmatmul.bf16.gmra.mxu3 %v4406_v16 }
 0x6e4   : > { %v5456_v17 = vadd.f32 %v9684_v39, %v5391_v25  ;;  %v4114_v31 = vunpack.c.l.bf16 %v4044_v9 }
 0x6e5   : > { %v5009_v59 = vmax.f32 %v4817_v55, 0.0  ;;  %v6287_v57 = vmax.f32 %v6095_v24, 0.0  ;;  %6546 = vadd.xlane.f32.xlu2 %v6482_v48 }
 0x6e6   : > { %v5648_v11 = vmax.f32 %v5456_v17, 0.0  ;;  %v4580_v22 = vpop.f32.mrf.mxu3  ;;  %v5804_v3 = vpop.f32.mrf.mxu1  ;;  %v4179_v33 = vadd.f32 %v9465_v6, %v4114_v31 }
 0x6e7   : > { %v6351_v38 = vpack.c.bf16 %v6287_v57, %v6287_v57  ;;  %v5192_v10 = vpop.f32.mrf.mxu0  ;;  %v5054_v8 = vpack.c.bf16 %v5009_v59, %v5008_v44  ;;  %v5961_v7 = vpack.c.bf16 %v5804_v3, %v5804_v3  ;;  %v4683_v47 = vpack.c.bf16 %v4580_v22, %v4580_v22 }
 0x6e8   : > { %v3970_v40 = vpop.f32.mrf.mxu2  ;;  %v5702_v14 = vpack.c.bf16 %v5648_v11, %v5647_v43  ;;  %v5322_v15 = vpack.c.bf16 %v5192_v10, %v5192_v10  ;;  %v4371_v2 = vmax.f32 %v4179_v33, 0.0 }
 0x6e9   : > { %v6415_v50 = vunpack.c.l.bf16 %v6351_v38  ;;  %v4045_v46 = vpack.c.bf16 %v3970_v40, %v3970_v40  ;;  %v6031_v41 = vunpack.c.l.bf16 %v5961_v7  ;;  %5231 = vmatmul.bf16.gmra.mxu0 %v5054_v8  ;;  %v4753_v26 = vunpack.c.l.bf16 %v4683_v47 }
 0x6ea   : > { %5843 = vmatmul.bf16.gmra.mxu1 %v5702_v14  ;;  %v5392_v27 = vunpack.c.l.bf16 %v5322_v15 }
 0x6eb   : > { %v4115_v12 = vunpack.c.l.bf16 %v4045_v46  ;;  %v6483_v34 = vmul.f32 %v9760_v19, %v6415_v50  ;;  %v6096_v52 = vadd.f32 %v9752_v20, %v6031_v41  ;;  %v4818_v35 = vadd.f32 %v9577_v56, %v4753_v26 }
 0x6ec   : > { %v5457_v30 = vadd.f32 %v9684_v39, %v5392_v27 }
 0x6ed   : > { %v4180_v54 = vadd.f32 %v9465_v6, %v4115_v12  ;;  %6548 = vadd.xlane.f32.xlu1 %v6483_v34  ;;  %v6288_v61 = vmax.f32 %v6096_v52, 0.0  ;;  %v5010_v37 = vmax.f32 %v4818_v35, 0.0 }
 0x6ee   : > { %v4582_v1 = vpop.f32.mrf.mxu3  ;;  %v5806_v29 = vpop.f32.mrf.mxu1  ;;  %v5649_v51 = vmax.f32 %v5457_v30, 0.0 }
 0x6ef   : > { %v4372_v53 = vmax.f32 %v4180_v54, 0.0  ;;  %v4684_v13 = vpack.c.bf16 %v4582_v1, %v4582_v1  ;;  %v5194_v63 = vpop.f32.mrf.mxu0  ;;  %v6352_v32 = vpack.c.bf16 %v6288_v61, %v6288_v61  ;;  %v5962_v36 = vpack.c.bf16 %v5806_v29, %v5806_v29 }
 0x6f0   : > { %v5323_v58 = vpack.c.bf16 %v5194_v63, %v5194_v63  ;;  %v3973_v18 = vpop.f32.mrf.mxu2 }
 0x6f1   : > { %v4754_v23 = vunpack.c.l.bf16 %v4684_v13  ;;  %v4407_v5 = vpack.c.bf16 %v4372_v53, %v4371_v2  ;;  %v6416_v4 = vunpack.c.l.bf16 %v6352_v32  ;;  %v6032_v42 = vunpack.c.l.bf16 %v5962_v36 }
 0x6f2   : > { %v5393_v60 = vunpack.c.l.bf16 %v5323_v58  ;;  %v4046_v49 = vpack.c.bf16 %v3973_v18, %v3973_v18 }
 0x6f3   : > { %v4819_v45 = vadd.f32 %v9577_v56, %v4754_v23  ;;  %v6097_v62 = vadd.f32 %v9752_v20, %v6032_v42  ;;  %4624 = vmatmul.bf16.gmra.mxu3 %v4407_v5  ;;  %v6484_v0 = vmul.f32 %v9760_v19, %v6416_v4 }
 0x6f4   : > { %v5458_v28 = vadd.f32 %v9684_v39, %v5393_v60  ;;  %v4116_v24 = vunpack.c.l.bf16 %v4046_v49 }
 0x6f5   : > { %v5011_v21 = vmax.f32 %v4819_v45, 0.0  ;;  %v6289_v16 = vmax.f32 %v6097_v62, 0.0  ;;  %6550 = vadd.xlane.f32.xlu0 %v6484_v0 }
 0x6f6   : > { %v5650_v25 = vmax.f32 %v5458_v28, 0.0  ;;  %v4585_v55 = vpop.f32.mrf.mxu3  ;;  %v5809_v48 = vpop.f32.mrf.mxu1  ;;  %v4181_v3 = vadd.f32 %v9465_v6, %v4116_v24 }
 0x6f7   : > { %v5197_v9 = vpop.f32.mrf.mxu0  ;;  %v5055_v17 = vpack.c.bf16 %v5011_v21, %v5010_v37  ;;  %v6353_v44 = vpack.c.bf16 %v6289_v16, %v6289_v16  ;;  %v5963_v59 = vpack.c.bf16 %v5809_v48, %v5809_v48  ;;  %v4685_v11 = vpack.c.bf16 %v4585_v55, %v4585_v55 }
 0x6f8   : > { %v3975_v57 = vpop.f32.mrf.mxu2  ;;  %v5703_v43 = vpack.c.bf16 %v5650_v25, %v5649_v51  ;;  %v5324_v31 = vpack.c.bf16 %v5197_v9, %v5197_v9  ;;  %v4373_v41 = vmax.f32 %v4181_v3, 0.0 }
 0x6f9   : > { %v4047_v22 = vpack.c.bf16 %v3975_v57, %v3975_v57  ;;  %v6417_v38 = vunpack.c.l.bf16 %v6353_v44  ;;  %v6033_v10 = vunpack.c.l.bf16 %v5963_v59  ;;  %5236 = vmatmul.bf16.gmra.mxu0 %v5055_v17  ;;  %v4755_v14 = vunpack.c.l.bf16 %v4685_v11 }
 0x6fa   : > { %5848 = vmatmul.bf16.gmra.mxu1 %v5703_v43  ;;  %v5394_v47 = vunpack.c.l.bf16 %v5324_v31 }
 0x6fb   : > { %v4117_v8 = vunpack.c.l.bf16 %v4047_v22  ;;  %v6098_v7 = vadd.f32 %v9752_v20, %v6033_v10  ;;  %v6485_v40 = vmul.f32 %v9760_v19, %v6417_v38  ;;  %v4820_v1 = vadd.f32 %v9577_v56, %v4755_v14 }
 0x6fc   : > { %v5459_v13 = vadd.f32 %v9684_v39, %v5394_v47 }
 0x6fd   : > { %v4182_v50 = vadd.f32 %v9465_v6, %v4117_v8  ;;  %v6290_v46 = vmax.f32 %v6098_v7, 0.0  ;;  %6552 = vadd.xlane.f32.xlu2 %v6485_v40  ;;  %v5012_v5 = vmax.f32 %v4820_v1, 0.0 }
 0x6fe   : > { %v4587_v15 = vpop.f32.mrf.mxu3  ;;  %v5811_v52 = vpop.f32.mrf.mxu1  ;;  %v5651_v4 = vmax.f32 %v5459_v13, 0.0 }
 0x6ff   : > { %v4374_v33 = vmax.f32 %v4182_v50, 0.0  ;;  %v4686_v12 = vpack.c.bf16 %v4587_v15, %v4587_v15  ;;  %v5199_v34 = vpop.f32.mrf.mxu0  ;;  %v6354_v26 = vpack.c.bf16 %v6290_v46, %v6290_v46  ;;  %v5964_v27 = vpack.c.bf16 %v5811_v52, %v5811_v52 }
 0x700   : > { %v5325_v54 = vpack.c.bf16 %v5199_v34, %v5199_v34  ;;  %v3978_v61 = vpop.f32.mrf.mxu2 }
 0x701   : > { %v4756_v2 = vunpack.c.l.bf16 %v4686_v12  ;;  %v4408_v53 = vpack.c.bf16 %v4374_v33, %v4373_v41  ;;  %v6418_v63 = vunpack.c.l.bf16 %v6354_v26  ;;  %v6034_v32 = vunpack.c.l.bf16 %v5964_v27 }
 0x702   : > { %v5395_v29 = vunpack.c.l.bf16 %v5325_v54  ;;  %v4048_v36 = vpack.c.bf16 %v3978_v61, %v3978_v61 }
 0x703   : > { %v4821_v58 = vadd.f32 %v9577_v56, %v4756_v2  ;;  %v6099_v35 = vadd.f32 %v9752_v20, %v6034_v32  ;;  %4629 = vmatmul.bf16.gmra.mxu3 %v4408_v53  ;;  %v6486_v23 = vmul.f32 %v9760_v19, %v6418_v63 }
 0x704   : > { %v5460_v18 = vadd.f32 %v9684_v39, %v5395_v29  ;;  %v4118_v49 = vunpack.c.l.bf16 %v4048_v36 }
 0x705   : > { %v5013_v30 = vmax.f32 %v4821_v58, 0.0  ;;  %v6291_v42 = vmax.f32 %v6099_v35, 0.0  ;;  %6554 = vadd.xlane.f32.xlu2 %v6486_v23 }
 0x706   : > { %v5652_v60 = vmax.f32 %v5460_v18, 0.0  ;;  %v4590_v45 = vpop.f32.mrf.mxu3  ;;  %v5814_v62 = vpop.f32.mrf.mxu1  ;;  %v4183_v17 = vadd.f32 %v9465_v6, %v4118_v49 }
 0x707   : > { %v5202_v28 = vpop.f32.mrf.mxu0  ;;  %v5056_v0 = vpack.c.bf16 %v5013_v30, %v5012_v5  ;;  %v6355_v37 = vpack.c.bf16 %v6291_v42, %v6291_v42  ;;  %v5965_v21 = vpack.c.bf16 %v5814_v62, %v5814_v62  ;;  %v4687_v16 = vpack.c.bf16 %v4590_v45, %v4590_v45 }
 0x708   : > { %v3980_v51 = vpop.f32.mrf.mxu2  ;;  %v5704_v25 = vpack.c.bf16 %v5652_v60, %v5651_v4  ;;  %v5326_v9 = vpack.c.bf16 %v5202_v28, %v5202_v28  ;;  %v4375_v10 = vmax.f32 %v4183_v17, 0.0 }
 0x709   : > { %v4049_v55 = vpack.c.bf16 %v3980_v51, %v3980_v51  ;;  %v6419_v24 = vunpack.c.l.bf16 %v6355_v37  ;;  %v6035_v48 = vunpack.c.l.bf16 %v5965_v21  ;;  %5241 = vmatmul.bf16.gmra.mxu0 %v5056_v0  ;;  %v4757_v43 = vunpack.c.l.bf16 %v4687_v16 }
 0x70a   : > { %5853 = vmatmul.bf16.gmra.mxu1 %v5704_v25  ;;  %v5396_v22 = vunpack.c.l.bf16 %v5326_v9 }
 0x70b   : > { %v4119_v44 = vunpack.c.l.bf16 %v4049_v55  ;;  %v6100_v59 = vadd.f32 %v9752_v20, %v6035_v48  ;;  %v6487_v57 = vmul.f32 %v9760_v19, %v6419_v24  ;;  %v4822_v15 = vadd.f32 %v9577_v56, %v4757_v43 }
 0x70c   : > { %v5461_v12 = vadd.f32 %v9684_v39, %v5396_v22 }
 0x70d   : > { %v4184_v11 = vadd.f32 %v9465_v6, %v4119_v44  ;;  %v6292_v38 = vmax.f32 %v6100_v59, 0.0  ;;  %6556 = vadd.xlane.f32.xlu1 %v6487_v57  ;;  %v5014_v53 = vmax.f32 %v4822_v15, 0.0 }
 0x70e   : > { %v4592_v31 = vpop.f32.mrf.mxu3  ;;  %v5816_v40 = vpop.f32.mrf.mxu1  ;;  %v5653_v63 = vmax.f32 %v5461_v12, 0.0 }
 0x70f   : > { %v4376_v3 = vmax.f32 %v4184_v11, 0.0  ;;  %v4688_v8 = vpack.c.bf16 %v4592_v31, %v4592_v31  ;;  %v5204_v7 = vpop.f32.mrf.mxu0  ;;  %v6356_v14 = vpack.c.bf16 %v6292_v38, %v6292_v38  ;;  %v5966_v47 = vpack.c.bf16 %v5816_v40, %v5816_v40 }
 0x710   : > { %v5327_v50 = vpack.c.bf16 %v5204_v7, %v5204_v7  ;;  %v3983_v46 = vpop.f32.mrf.mxu2 }
 0x711   : > { %v4758_v41 = vunpack.c.l.bf16 %v4688_v8  ;;  %v4409_v33 = vpack.c.bf16 %v4376_v3, %v4375_v10  ;;  %v6420_v34 = vunpack.c.l.bf16 %v6356_v14  ;;  %v6036_v26 = vunpack.c.l.bf16 %v5966_v47 }
 0x712   : > { %v5397_v52 = vunpack.c.l.bf16 %v5327_v50  ;;  %v4050_v27 = vpack.c.bf16 %v3983_v46, %v3983_v46 }
 0x713   : > { %v4823_v54 = vadd.f32 %v9577_v56, %v4758_v41  ;;  %v6101_v1 = vadd.f32 %v9752_v20, %v6036_v26  ;;  %4634 = vmatmul.bf16.gmra.mxu3 %v4409_v33  ;;  %v6488_v2 = vmul.f32 %v9760_v19, %v6420_v34 }
 0x714   : > { %v5462_v61 = vadd.f32 %v9684_v39, %v5397_v52  ;;  %v4120_v36 = vunpack.c.l.bf16 %v4050_v27 }
 0x715   : > { %v5015_v13 = vmax.f32 %v4823_v54, 0.0  ;;  %v6293_v32 = vmax.f32 %v6101_v1, 0.0  ;;  %6558 = vadd.xlane.f32.xlu2 %v6488_v2 }
 0x716   : > { %v5654_v29 = vmax.f32 %v5462_v61, 0.0  ;;  %v4595_v58 = vpop.f32.mrf.mxu3  ;;  %v5819_v35 = vpop.f32.mrf.mxu1  ;;  %v4185_v0 = vadd.f32 %v9465_v6, %v4120_v36 }
 0x717   : > { %v5207_v18 = vpop.f32.mrf.mxu0  ;;  %v5057_v23 = vpack.c.bf16 %v5015_v13, %v5014_v53  ;;  %v6357_v5 = vpack.c.bf16 %v6293_v32, %v6293_v32  ;;  %v5967_v30 = vpack.c.bf16 %v5819_v35, %v5819_v35  ;;  %v4689_v42 = vpack.c.bf16 %v4595_v58, %v4595_v58 }
 0x718   : > { %v3985_v4 = vpop.f32.mrf.mxu2  ;;  %v5705_v60 = vpack.c.bf16 %v5654_v29, %v5653_v63  ;;  %v5328_v28 = vpack.c.bf16 %v5207_v18, %v5207_v18  ;;  %v4377_v48 = vmax.f32 %v4185_v0, 0.0 }
 0x719   : > { %v4051_v45 = vpack.c.bf16 %v3985_v4, %v3985_v4  ;;  %v6421_v49 = vunpack.c.l.bf16 %v6357_v5  ;;  %v6037_v62 = vunpack.c.l.bf16 %v5967_v30  ;;  %5246 = vmatmul.bf16.gmra.mxu0 %v5057_v23  ;;  %v4759_v25 = vunpack.c.l.bf16 %v4689_v42 }
 0x71a   : > { %5858 = vmatmul.bf16.gmra.mxu1 %v5705_v60  ;;  %v5398_v55 = vunpack.c.l.bf16 %v5328_v28 }
 0x71b   : > { %v4121_v37 = vunpack.c.l.bf16 %v4051_v45  ;;  %v6102_v21 = vadd.f32 %v9752_v20, %v6037_v62  ;;  %v6489_v51 = vmul.f32 %v9760_v19, %v6421_v49  ;;  %v4824_v38 = vadd.f32 %v9577_v56, %v4759_v25 }
 0x71c   : > { %v5463_v3 = vadd.f32 %v9684_v39, %v5398_v55 }
 0x71d   : > { %v4186_v16 = vadd.f32 %v9465_v6, %v4121_v37  ;;  %v6294_v24 = vmax.f32 %v6102_v21, 0.0  ;;  %6560 = vadd.xlane.f32.xlu0 %v6489_v51  ;;  %v5016_v46 = vmax.f32 %v4824_v38, 0.0 }
 0x71e   : > { %v4597_v9 = vpop.f32.mrf.mxu3  ;;  %v5821_v57 = vpop.f32.mrf.mxu1  ;;  %v5655_v41 = vmax.f32 %v5463_v3, 0.0 }
 0x71f   : > { %v4378_v17 = vmax.f32 %v4186_v16, 0.0  ;;  %v4690_v44 = vpack.c.bf16 %v4597_v9, %v4597_v9  ;;  %v5209_v59 = vpop.f32.mrf.mxu0  ;;  %v6358_v43 = vpack.c.bf16 %v6294_v24, %v6294_v24  ;;  %v5968_v22 = vpack.c.bf16 %v5821_v57, %v5821_v57 }
 0x720   : > { %v5329_v11 = vpack.c.bf16 %v5209_v59, %v5209_v59 }
 0x721   : > { %v4760_v31 = vunpack.c.l.bf16 %v4690_v44  ;;  %v4410_v10 = vpack.c.bf16 %v4378_v17, %v4377_v48  ;;  %v6422_v8 = vunpack.c.l.bf16 %v6358_v43  ;;  %v6038_v7 = vunpack.c.l.bf16 %v5968_v22 }
 0x722   : > { %v5399_v6 = vunpack.c.l.bf16 %v5329_v11 }
 0x723   : > { %v4825_v40 = vadd.f32 %v9577_v56, %v4760_v31  ;;  %v6103_v50 = vadd.f32 %v9752_v20, %v6038_v7  ;;  %4639 = vmatmul.bf16.gmra.mxu3 %v4410_v10  ;;  %v6490_v47 = vmul.f32 %v9760_v19, %v6422_v8 }
 0x724   : > { %v5464_v14 = vadd.f32 %v9684_v39, %v5399_v6 }
 0x725   : > { %v5017_v15 = vmax.f32 %v4825_v40, 0.0  ;;  %v6295_v12 = vmax.f32 %v6103_v50, 0.0  ;;  %6562 = vadd.xlane.f32.xlu1 %v6490_v47 }
 0x726   : > { %v5656_v33 = vmax.f32 %v5464_v14, 0.0  ;;  %v4600_v34 = vpop.f32.mrf.mxu3  ;;  %v5824_v26 = vpop.f32.mrf.mxu1 }
 0x727   : > { %v5212_v52 = vpop.f32.mrf.mxu0  ;;  %v5058_v54 = vpack.c.bf16 %v5017_v15, %v5016_v46  ;;  %v6359_v27 = vpack.c.bf16 %v6295_v12, %v6295_v12  ;;  %v5969_v61 = vpack.c.bf16 %v5824_v26, %v5824_v26  ;;  %v4691_v2 = vpack.c.bf16 %v4600_v34, %v4600_v34 }
 0x728   : > { %v5706_v1 = vpack.c.bf16 %v5656_v33, %v5655_v41  ;;  %v5330_v13 = vpack.c.bf16 %v5212_v52, %v5212_v52 }
 0x729   : > { %v6423_v53 = vunpack.c.l.bf16 %v6359_v27  ;;  %v6039_v63 = vunpack.c.l.bf16 %v5969_v61  ;;  %5251 = vmatmul.bf16.gmra.mxu0 %v5058_v54  ;;  %v4761_v58 = vunpack.c.l.bf16 %v4691_v2 }
 0x72a   : > { %5863 = vmatmul.bf16.gmra.mxu1 %v5706_v1  ;;  %v5400_v36 = vunpack.c.l.bf16 %v5330_v13 }
 0x72b   : > { %v6104_v29 = vadd.f32 %v9752_v20, %v6039_v63  ;;  %v6491_v32 = vmul.f32 %v9760_v19, %v6423_v53  ;;  %v4826_v45 = vadd.f32 %v9577_v56, %v4761_v58 }
 0x72c   : > { %v5465_v28 = vadd.f32 %v9684_v39, %v5400_v36 }
 0x72d   : > { %v6296_v18 = vmax.f32 %v6104_v29, 0.0  ;;  %6564 = vadd.xlane.f32.xlu2 %v6491_v32  ;;  %v5018_v55 = vmax.f32 %v4826_v45, 0.0 }
 0x72e   : > { %v4602_v35 = vpop.f32.mrf.mxu3  ;;  %v5826_v30 = vpop.f32.mrf.mxu1  ;;  %v5657_v9 = vmax.f32 %v5465_v28, 0.0 }
 0x72f   : > { %v4692_v23 = vpack.c.bf16 %v4602_v35, %v4602_v35  ;;  %v5214_v5 = vpop.f32.mrf.mxu0  ;;  %v6360_v4 = vpack.c.bf16 %v6296_v18, %v6296_v18  ;;  %v5970_v42 = vpack.c.bf16 %v5826_v30, %v5826_v30 }
 0x730   : > { %v5331_v60 = vpack.c.bf16 %v5214_v5, %v5214_v5 }
 0x731   : > { %v4762_v49 = vunpack.c.l.bf16 %v4692_v23  ;;  %v6424_v62 = vunpack.c.l.bf16 %v6360_v4  ;;  %v6040_v37 = vunpack.c.l.bf16 %v5970_v42 }
 0x732   : > { %v5401_v0 = vunpack.c.l.bf16 %v5331_v60 }
 0x733   : > { %v4827_v21 = vadd.f32 %v9577_v56, %v4762_v49  ;;  %v6105_v25 = vadd.f32 %v9752_v20, %v6040_v37  ;;  %v6492_v16 = vmul.f32 %v9760_v19, %v6424_v62 }
 0x734   : > { %v5466_v51 = vadd.f32 %v9684_v39, %v5401_v0 }
 0x735   : > { %v5019_v24 = vmax.f32 %v4827_v21, 0.0  ;;  %v6297_v17 = vmax.f32 %v6105_v25, 0.0  ;;  %6566 = vadd.xlane.f32.xlu0 %v6492_v16 }
 0x736   : > { %v5658_v48 = vmax.f32 %v5466_v51, 0.0  ;;  %v4605_v44 = vpop.f32.mrf.mxu3  ;;  %v5829_v57 = vpop.f32.mrf.mxu1 }
 0x737   : > { %v5217_v59 = vpop.f32.mrf.mxu0  ;;  %v5059_v43 = vpack.c.bf16 %v5019_v24, %v5018_v55  ;;  %v6361_v11 = vpack.c.bf16 %v6297_v17, %v6297_v17  ;;  %v5971_v22 = vpack.c.bf16 %v5829_v57, %v5829_v57  ;;  %v4693_v31 = vpack.c.bf16 %v4605_v44, %v4605_v44 }
 0x738   : > { %v5707_v38 = vpack.c.bf16 %v5658_v48, %v5657_v9  ;;  %v5332_v3 = vpack.c.bf16 %v5217_v59, %v5217_v59 }
 0x739   : > { %v6425_v10 = vunpack.c.l.bf16 %v6361_v11  ;;  %v6041_v8 = vunpack.c.l.bf16 %v5971_v22  ;;  %5256 = vmatmul.bf16.gmra.mxu0 %v5059_v43  ;;  %v4763_v40 = vunpack.c.l.bf16 %v4693_v31 }
 0x73a   : > { %5868 = vmatmul.bf16.gmra.mxu1 %v5707_v38  ;;  %v5402_v14 = vunpack.c.l.bf16 %v5332_v3 }
 0x73b   : > { %v6106_v6 = vadd.f32 %v9752_v20, %v6041_v8  ;;  %v6493_v7 = vmul.f32 %v9760_v19, %v6425_v10  ;;  %v4828_v52 = vadd.f32 %v9577_v56, %v4763_v40  ;;  %v9832_v40 = vld [vmem:[#allocation2] ss:$0 sm:$0xff] }
 0x73c   : > { %v5467_v54 = vadd.f32 %v9684_v39, %v5402_v14 }
 0x73d   : > { %v6298_v50 = vmax.f32 %v6106_v6, 0.0  ;;  %6568 = vadd.xlane.f32.xlu1 %v6493_v7  ;;  %v5020_v29 = vmax.f32 %v4828_v52, 0.0 }
 0x73e   : > { %v4607_v47 = vpop.f32.mrf.mxu3  ;;  %v5831_v41 = vpop.f32.mrf.mxu1  ;;  %v5659_v58 = vmax.f32 %v5467_v54, 0.0 }
 0x73f   : > { %v4694_v46 = vpack.c.bf16 %v4607_v47, %v4607_v47  ;;  %v5219_v15 = vpop.f32.mrf.mxu0  ;;  %v6362_v33 = vpack.c.bf16 %v6298_v50, %v6298_v50  ;;  %v5972_v34 = vpack.c.bf16 %v5831_v41, %v5831_v41 }
 0x740   : > { %v5333_v12 = vpack.c.bf16 %v5219_v15, %v5219_v15 }
 0x741   : > { %v4764_v26 = vunpack.c.l.bf16 %v4694_v46  ;;  %v6426_v27 = vunpack.c.l.bf16 %v6362_v33  ;;  %v6042_v1 = vunpack.c.l.bf16 %v5972_v34 }
 0x742   : > { %v5403_v61 = vunpack.c.l.bf16 %v5333_v12 }
 0x743   : > { %v4829_v2 = vadd.f32 %v9577_v56, %v4764_v26  ;;  %v6107_v13 = vadd.f32 %v9752_v20, %v6042_v1  ;;  %v6494_v63 = vmul.f32 %v9760_v19, %v6426_v27 }
 0x744   : > { %v5468_v53 = vadd.f32 %v9684_v39, %v5403_v61 }
 0x745   : > { %v5021_v32 = vmax.f32 %v4829_v2, 0.0  ;;  %v6299_v18 = vmax.f32 %v6107_v13, 0.0  ;;  %6570 = vadd.xlane.f32.xlu2 %v6494_v63 }
 0x746   : > { %v5660_v36 = vmax.f32 %v5468_v53, 0.0  ;;  %v4610_v35 = vpop.f32.mrf.mxu3  ;;  %v5834_v5 = vpop.f32.mrf.mxu1 }
 0x747   : > { %v5222_v23 = vpop.f32.mrf.mxu0  ;;  %v5060_v30 = vpack.c.bf16 %v5021_v32, %v5020_v29  ;;  %v6363_v4 = vpack.c.bf16 %v6299_v18, %v6299_v18  ;;  %v5973_v60 = vpack.c.bf16 %v5834_v5, %v5834_v5  ;;  %v4695_v45 = vpack.c.bf16 %v4610_v35, %v4610_v35 }
 0x748   : > { %v5708_v42 = vpack.c.bf16 %v5660_v36, %v5659_v58  ;;  %v5334_v28 = vpack.c.bf16 %v5222_v23, %v5222_v23 }
 0x749   : > { %v6427_v49 = vunpack.c.l.bf16 %v6363_v4  ;;  %v6043_v62 = vunpack.c.l.bf16 %v5973_v60  ;;  %5261 = vmatmul.bf16.gmra.mxu0 %v5060_v30  ;;  %v4765_v21 = vunpack.c.l.bf16 %v4695_v45 }
 0x74a   : > { %5873 = vmatmul.bf16.gmra.mxu1 %v5708_v42  ;;  %v5404_v51 = vunpack.c.l.bf16 %v5334_v28 }
 0x74b   : > { %v6108_v0 = vadd.f32 %v9752_v20, %v6043_v62  ;;  %v6495_v37 = vmul.f32 %v9760_v19, %v6427_v49  ;;  %v4830_v59 = vadd.f32 %v9577_v56, %v4765_v21 }
 0x74c   : > { %v5469_v43 = vadd.f32 %v9684_v39, %v5404_v51 }
 0x74d   : > { %v6300_v25 = vmax.f32 %v6108_v0, 0.0  ;;  %6572 = vadd.xlane.f32.xlu0 %v6495_v37  ;;  %v5022_v6 = vmax.f32 %v4830_v59, 0.0 }
 0x74e   : > { %v4612_v16 = vpop.f32.mrf.mxu3  ;;  %v5836_v9 = vpop.f32.mrf.mxu1  ;;  %v5661_v14 = vmax.f32 %v5469_v43, 0.0 }
 0x74f   : > { %v4696_v55 = vpack.c.bf16 %v4612_v16, %v4612_v16  ;;  %v5224_v24 = vpop.f32.mrf.mxu0  ;;  %v6364_v48 = vpack.c.bf16 %v6300_v25, %v6300_v25  ;;  %v5974_v44 = vpack.c.bf16 %v5836_v9, %v5836_v9 }
 0x750   : > { %v5335_v17 = vpack.c.bf16 %v5224_v24, %v5224_v24 }
 0x751   : > { %v4766_v57 = vunpack.c.l.bf16 %v4696_v55  ;;  %v6428_v11 = vunpack.c.l.bf16 %v6364_v48  ;;  %v6044_v38 = vunpack.c.l.bf16 %v5974_v44 }
 0x752   : > { %v5405_v22 = vunpack.c.l.bf16 %v5335_v17 }
 0x753   : > { %v4831_v31 = vadd.f32 %v9577_v56, %v4766_v57  ;;  %v6109_v3 = vadd.f32 %v9752_v20, %v6044_v38  ;;  %v6496_v8 = vmul.f32 %v9760_v19, %v6428_v11 }
 0x754   : > { %v5470_v10 = vadd.f32 %v9684_v39, %v5405_v22 }
 0x755   : > { %v5023_v7 = vmax.f32 %v4831_v31, 0.0  ;;  %v6301_v47 = vmax.f32 %v6109_v3, 0.0  ;;  %6574 = vadd.xlane.f32.xlu1 %v6496_v8 }
 0x756   : > { %v5662_v50 = vmax.f32 %v5470_v10, 0.0  ;;  %v4615_v46 = vpop.f32.mrf.mxu3  ;;  %v5839_v41 = vpop.f32.mrf.mxu1 }
 0x757   : > { %v5227_v15 = vpop.f32.mrf.mxu0  ;;  %v5061_v33 = vpack.c.bf16 %v5023_v7, %v5022_v6  ;;  %v6365_v12 = vpack.c.bf16 %v6301_v47, %v6301_v47  ;;  %v5975_v34 = vpack.c.bf16 %v5839_v41, %v5839_v41  ;;  %v4697_v54 = vpack.c.bf16 %v4615_v46, %v4615_v46 }
 0x758   : > { %v6547_v52 = vpop.xlane.xlu2 %6546  ;;  %v5709_v26 = vpack.c.bf16 %v5662_v50, %v5661_v14  ;;  %v5336_v1 = vpack.c.bf16 %v5227_v15, %v5227_v15 }
 0x759   : > { %v6678_v27 = vadd.f32 %v9832_v40, %v6547_v52  ;;  %v6429_v61 = vunpack.c.l.bf16 %v6365_v12  ;;  %v6045_v2 = vunpack.c.l.bf16 %v5975_v34  ;;  %5266 = vmatmul.bf16.gmra.mxu0 %v5061_v33  ;;  %v4767_v63 = vunpack.c.l.bf16 %v4697_v54 }
 0x75a   : > { %5878 = vmatmul.bf16.gmra.mxu1 %v5709_v26  ;;  %v5406_v29 = vunpack.c.l.bf16 %v5336_v1 }
 0x75b   : > { %6743 = vst.msk [vmem:[%s9839_s25] sm:$0xff] %vm6742_vm0, %v6678_v27  ;;  %v6110_v53 = vadd.f32 %v9752_v20, %v6045_v2  ;;  %v6497_v13 = vmul.f32 %v9760_v19, %v6429_v61  ;;  %v4832_v60 = vadd.f32 %v9577_v56, %v4767_v63 }
 0x75c   : > { %v5471_v49 = vadd.f32 %v9684_v39, %v5406_v29 }
 0x75d   : > { %v6302_v32 = vmax.f32 %v6110_v53, 0.0  ;;  %6576 = vadd.xlane.f32.xlu2 %v6497_v13  ;;  %v5024_v16 = vmax.f32 %v4832_v60, 0.0 }
 0x75e   : > { %v4617_v58 = vpop.f32.mrf.mxu3  ;;  %v5841_v35 = vpop.f32.mrf.mxu1  ;;  %v5663_v24 = vmax.f32 %v5471_v49, 0.0 }
 0x75f   : > { %v4698_v36 = vpack.c.bf16 %v4617_v58, %v4617_v58  ;;  %v5229_v18 = vpop.f32.mrf.mxu0  ;;  %v6366_v23 = vpack.c.bf16 %v6302_v32, %v6302_v32  ;;  %v5976_v30 = vpack.c.bf16 %v5841_v35, %v5841_v35 }
 0x760   : > { %v5337_v5 = vpack.c.bf16 %v5229_v18, %v5229_v18  ;;  %v6549_v4 = vpop.xlane.xlu1 %6548 }
 0x761   : > { %v4768_v42 = vunpack.c.l.bf16 %v4698_v36  ;;  %v6679_v45 = vadd.f32 %v9832_v40, %v6549_v4  ;;  %v6430_v28 = vunpack.c.l.bf16 %v6366_v23  ;;  %v6046_v0 = vunpack.c.l.bf16 %v5976_v30 }
 0x762   : > { %v5407_v62 = vunpack.c.l.bf16 %v5337_v5 }
 0x763   : > { %v4833_v37 = vadd.f32 %v9577_v56, %v4768_v42  ;;  %6744 = vst.msk [vmem:[%s9839_s25 + $0x8] sm:$0xff] %vm6742_vm0, %v6679_v45  ;;  %v6111_v51 = vadd.f32 %v9752_v20, %v6046_v0  ;;  %v6498_v25 = vmul.f32 %v9760_v19, %v6430_v28 }
 0x764   : > { %v5472_v21 = vadd.f32 %v9684_v39, %v5407_v62 }
 0x765   : > { %v5025_v55 = vmax.f32 %v4833_v37, 0.0  ;;  %v6303_v48 = vmax.f32 %v6111_v51, 0.0  ;;  %6578 = vadd.xlane.f32.xlu0 %v6498_v25 }
 0x766   : > { %v5664_v9 = vmax.f32 %v5472_v21, 0.0  ;;  %v4620_v17 = vpop.f32.mrf.mxu3 }
 0x767   : > { %v5232_v44 = vpop.f32.mrf.mxu0  ;;  %v5062_v59 = vpack.c.bf16 %v5025_v55, %v5024_v16  ;;  %v6367_v57 = vpack.c.bf16 %v6303_v48, %v6303_v48  ;;  %v5844_v43 = vpop.f32.mrf.mxu1  ;;  %v4699_v22 = vpack.c.bf16 %v4620_v17, %v4620_v17 }
 0x768   : > { %v5710_v11 = vpack.c.bf16 %v5664_v9, %v5663_v24  ;;  %v5977_v38 = vpack.c.bf16 %v5844_v43, %v5844_v43  ;;  %v6551_v31 = vpop.xlane.xlu0 %6550  ;;  %v5338_v3 = vpack.c.bf16 %v5232_v44, %v5232_v44 }
 0x769   : > { %v6431_v10 = vunpack.c.l.bf16 %v6367_v57  ;;  %v6680_v8 = vadd.f32 %v9832_v40, %v6551_v31  ;;  %5271 = vmatmul.bf16.gmra.mxu0 %v5062_v59  ;;  %v4769_v14 = vunpack.c.l.bf16 %v4699_v22 }
 0x76a   : > { %5883 = vmatmul.bf16.gmra.mxu1 %v5710_v11  ;;  %v6047_v6 = vunpack.c.l.bf16 %v5977_v38  ;;  %v5408_v47 = vunpack.c.l.bf16 %v5338_v3 }
 0x76b   : > { %6745 = vst.msk [vmem:[%s9839_s25 + $0x10] sm:$0xff] %vm6742_vm0, %v6680_v8  ;;  %v6499_v7 = vmul.f32 %v9760_v19, %v6431_v10  ;;  %v4834_v52 = vadd.f32 %v9577_v56, %v4769_v14 }
 0x76c   : > { %v6112_v50 = vadd.f32 %v9752_v20, %v6047_v6  ;;  %v5473_v61 = vadd.f32 %v9684_v39, %v5408_v47 }
 0x76d   : > { %6580 = vadd.xlane.f32.xlu1 %v6499_v7  ;;  %v5026_v18 = vmax.f32 %v4834_v52, 0.0 }
 0x76e   : > { %v6304_v46 = vmax.f32 %v6112_v50, 0.0  ;;  %v4622_v15 = vpop.f32.mrf.mxu3  ;;  %v5665_v35 = vmax.f32 %v5473_v61, 0.0 }
 0x76f   : > { %v5234_v41 = vpop.f32.mrf.mxu0  ;;  %v4700_v33 = vpack.c.bf16 %v4622_v15, %v4622_v15  ;;  %v5846_v34 = vpop.f32.mrf.mxu1 }
 0x770   : > { %v5339_v12 = vpack.c.bf16 %v5234_v41, %v5234_v41  ;;  %v6368_v26 = vpack.c.bf16 %v6304_v46, %v6304_v46  ;;  %v5978_v54 = vpack.c.bf16 %v5846_v34, %v5846_v34  ;;  %v6553_v27 = vpop.xlane.xlu2 %6552 }
 0x771   : > { %v4770_v1 = vunpack.c.l.bf16 %v4700_v33  ;;  %v6681_v53 = vadd.f32 %v9832_v40, %v6553_v27 }
 0x772   : > { %v5409_v2 = vunpack.c.l.bf16 %v5339_v12  ;;  %v6432_v13 = vunpack.c.l.bf16 %v6368_v26  ;;  %v6048_v63 = vunpack.c.l.bf16 %v5978_v54 }
 0x773   : > { %v4835_v29 = vadd.f32 %v9577_v56, %v4770_v1  ;;  %6746 = vst.msk [vmem:[%s9839_s25 + $0x18] sm:$0xff] %vm6742_vm0, %v6681_v53 }
 0x774   : > { %v5474_v32 = vadd.f32 %v9684_v39, %v5409_v2  ;;  %v6113_v58 = vadd.f32 %v9752_v20, %v6048_v63  ;;  %v6500_v36 = vmul.f32 %v9760_v19, %v6432_v13 }
 0x775   : > { %v5027_v23 = vmax.f32 %v4835_v29, 0.0 }
 0x776   : > { %v5666_v5 = vmax.f32 %v5474_v32, 0.0  ;;  %v6305_v30 = vmax.f32 %v6113_v58, 0.0  ;;  %6582 = vadd.xlane.f32.xlu2 %v6500_v36  ;;  %v4625_v4 = vpop.f32.mrf.mxu3 }
 0x777   : > { %v5237_v60 = vpop.f32.mrf.mxu0  ;;  %v5849_v42 = vpop.f32.mrf.mxu1  ;;  %v5063_v45 = vpack.c.bf16 %v5027_v23, %v5026_v18  ;;  %v4701_v62 = vpack.c.bf16 %v4625_v4, %v4625_v4  ;;  %v9890_v23 = vld [vmem:[%s10192_s5] ss:$0 sm:$0xff] }
 0x778   : > { %v5711_v49 = vpack.c.bf16 %v5666_v5, %v5665_v35  ;;  %v6369_v28 = vpack.c.bf16 %v6305_v30, %v6305_v30  ;;  %v5979_v0 = vpack.c.bf16 %v5849_v42, %v5849_v42  ;;  %v6555_v37 = vpop.xlane.xlu2 %6554  ;;  %v5340_v21 = vpack.c.bf16 %v5237_v60, %v5237_v60 }
 0x779   : > { %v6682_v51 = vadd.f32 %v9832_v40, %v6555_v37  ;;  %5276 = vmatmul.bf16.gmra.mxu0 %v5063_v45  ;;  %v4771_v55 = vunpack.c.l.bf16 %v4701_v62 }
 0x77a   : > { %5888 = vmatmul.bf16.gmra.mxu1 %v5711_v49  ;;  %v6433_v25 = vunpack.c.l.bf16 %v6369_v28  ;;  %v6049_v16 = vunpack.c.l.bf16 %v5979_v0  ;;  %v5410_v48 = vunpack.c.l.bf16 %v5340_v21 }
 0x77b   : > { %6747 = vst.msk [vmem:[%s9839_s25 + $0x20] sm:$0xff] %vm6742_vm0, %v6682_v51  ;;  %v4836_v22 = vadd.f32 %v9577_v56, %v4771_v55 }
 0x77c   : > { %v6114_v24 = vadd.f32 %v9752_v20, %v6049_v16  ;;  %v6501_v9 = vmul.f32 %v9760_v19, %v6433_v25  ;;  %v5475_v3 = vadd.f32 %v9684_v39, %v5410_v48 }
 0x77d   : > { %v5028_v33 = vmax.f32 %v4836_v22, 0.0 }
 0x77e   : > { %v6306_v17 = vmax.f32 %v6114_v24, 0.0  ;;  %6584 = vadd.xlane.f32.xlu0 %v6501_v9  ;;  %v4627_v44 = vpop.f32.mrf.mxu3  ;;  %v5667_v12 = vmax.f32 %v5475_v3, 0.0 }
 0x77f   : > { %v5239_v59 = vpop.f32.mrf.mxu0  ;;  %v4702_v57 = vpack.c.bf16 %v4627_v44, %v4627_v44  ;;  %v5851_v11 = vpop.f32.mrf.mxu1 }
 0x780   : > { %v5341_v43 = vpack.c.bf16 %v5239_v59, %v5239_v59  ;;  %v6370_v38 = vpack.c.bf16 %v6306_v17, %v6306_v17  ;;  %v5980_v31 = vpack.c.bf16 %v5851_v11, %v5851_v11  ;;  %v6557_v10 = vpop.xlane.xlu1 %6556 }
 0x781   : > { %v4772_v8 = vunpack.c.l.bf16 %v4702_v57  ;;  %v6683_v7 = vadd.f32 %v9832_v40, %v6557_v10 }
 0x782   : > { %v5411_v6 = vunpack.c.l.bf16 %v5341_v43  ;;  %v6434_v14 = vunpack.c.l.bf16 %v6370_v38  ;;  %v6050_v50 = vunpack.c.l.bf16 %v5980_v31 }
 0x783   : > { %v4837_v47 = vadd.f32 %v9577_v56, %v4772_v8  ;;  %6748 = vst.msk [vmem:[%s9839_s25 + $0x28] sm:$0xff] %vm6742_vm0, %v6683_v7 }
 0x784   : > { %v5476_v46 = vadd.f32 %v9684_v39, %v5411_v6  ;;  %v6115_v15 = vadd.f32 %v9752_v20, %v6050_v50  ;;  %v6502_v41 = vmul.f32 %v9760_v19, %v6434_v14 }
 0x785   : > { %v5029_v34 = vmax.f32 %v4837_v47, 0.0 }
 0x786   : > { %v5668_v52 = vmax.f32 %v5476_v46, 0.0  ;;  %v6307_v26 = vmax.f32 %v6115_v15, 0.0  ;;  %6586 = vadd.xlane.f32.xlu1 %v6502_v41  ;;  %v4630_v54 = vpop.f32.mrf.mxu3 }
 0x787   : > { %v5242_v27 = vpop.f32.mrf.mxu0  ;;  %v5854_v61 = vpop.f32.mrf.mxu1  ;;  %v5064_v1 = vpack.c.bf16 %v5029_v34, %v5028_v33  ;;  %v4703_v13 = vpack.c.bf16 %v4630_v54, %v4630_v54 }
 0x788   : > { %v5712_v2 = vpack.c.bf16 %v5668_v52, %v5667_v12  ;;  %v6371_v53 = vpack.c.bf16 %v6307_v26, %v6307_v26  ;;  %v5981_v63 = vpack.c.bf16 %v5854_v61, %v5854_v61  ;;  %v6559_v29 = vpop.xlane.xlu2 %6558  ;;  %v5342_v32 = vpack.c.bf16 %v5242_v27, %v5242_v27 }
 0x789   : > { %v6684_v58 = vadd.f32 %v9832_v40, %v6559_v29  ;;  %5281 = vmatmul.bf16.gmra.mxu0 %v5064_v1  ;;  %v4773_v18 = vunpack.c.l.bf16 %v4703_v13 }
 0x78a   : > { %5893 = vmatmul.bf16.gmra.mxu1 %v5712_v2  ;;  %v6435_v19 = vunpack.c.l.bf16 %v6371_v53  ;;  %v6051_v36 = vunpack.c.l.bf16 %v5981_v63  ;;  %v5412_v30 = vunpack.c.l.bf16 %v5342_v32 }
 0x78b   : > { %6749 = vst.msk [vmem:[%s9839_s25 + $0x30] sm:$0xff] %vm6742_vm0, %v6684_v58  ;;  %v4838_v62 = vadd.f32 %v9577_v56, %v4773_v18 }
 0x78c   : > { %v6116_v35 = vadd.f32 %v9752_v20, %v6051_v36  ;;  %v6503_v5 = vmul.f32 %v9890_v23, %v6435_v19  ;;  %v5477_v51 = vadd.f32 %v9684_v39, %v5412_v30 }
 0x78d   : > { %v5030_v57 = vmax.f32 %v4838_v62, 0.0 }
 0x78e   : > { %v6308_v4 = vmax.f32 %v6116_v35, 0.0  ;;  %6588 = vadd.xlane.f32.xlu2 %v6503_v5  ;;  %v4632_v60 = vpop.f32.mrf.mxu3  ;;  %v5669_v43 = vmax.f32 %v5477_v51, 0.0 }
 0x78f   : > { %v5244_v42 = vpop.f32.mrf.mxu0  ;;  %v4704_v45 = vpack.c.bf16 %v4632_v60, %v4632_v60  ;;  %v5856_v28 = vpop.f32.mrf.mxu1 }
 0x790   : > { %v5343_v49 = vpack.c.bf16 %v5244_v42, %v5244_v42  ;;  %v6372_v0 = vpack.c.bf16 %v6308_v4, %v6308_v4  ;;  %v5982_v37 = vpack.c.bf16 %v5856_v28, %v5856_v28  ;;  %v6561_v21 = vpop.xlane.xlu0 %6560 }
 0x791   : > { %v4774_v25 = vunpack.c.l.bf16 %v4704_v45  ;;  %v6685_v55 = vadd.f32 %v9832_v40, %v6561_v21 }
 0x792   : > { %v5413_v16 = vunpack.c.l.bf16 %v5343_v49  ;;  %v6436_v24 = vunpack.c.l.bf16 %v6372_v0  ;;  %v6052_v9 = vunpack.c.l.bf16 %v5982_v37 }
 0x793   : > { %v4839_v48 = vadd.f32 %v9577_v56, %v4774_v25  ;;  %6750 = vst.msk [vmem:[%s9839_s25 + $0x38] sm:$0xff] %vm6742_vm0, %v6685_v55 }
 0x794   : > { %v5478_v17 = vadd.f32 %v9684_v39, %v5413_v16  ;;  %v6117_v44 = vadd.f32 %v9752_v20, %v6052_v9  ;;  %v6504_v59 = vmul.f32 %v9890_v23, %v6436_v24 }
 0x795   : > { %v5031_v11 = vmax.f32 %v4839_v48, 0.0 }
 0x796   : > { %v5670_v22 = vmax.f32 %v5478_v17, 0.0  ;;  %v6309_v38 = vmax.f32 %v6117_v44, 0.0  ;;  %6590 = vadd.xlane.f32.xlu0 %v6504_v59  ;;  %v4635_v31 = vpop.f32.mrf.mxu3 }
 0x797   : > { %v5247_v10 = vpop.f32.mrf.mxu0  ;;  %v5859_v3 = vpop.f32.mrf.mxu1  ;;  %v5065_v8 = vpack.c.bf16 %v5031_v11, %v5030_v57  ;;  %v4705_v14 = vpack.c.bf16 %v4635_v31, %v4635_v31 }
 0x798   : > { %v5713_v6 = vpack.c.bf16 %v5670_v22, %v5669_v43  ;;  %v6373_v7 = vpack.c.bf16 %v6309_v38, %v6309_v38  ;;  %v5983_v50 = vpack.c.bf16 %v5859_v3, %v5859_v3  ;;  %v6563_v47 = vpop.xlane.xlu1 %6562  ;;  %v5344_v46 = vpack.c.bf16 %v5247_v10, %v5247_v10 }
 0x799   : > { %v6686_v15 = vadd.f32 %v9832_v40, %v6563_v47  ;;  %5286 = vmatmul.bf16.gmra.mxu0 %v5065_v8  ;;  %v4775_v12 = vunpack.c.l.bf16 %v4705_v14 }
 0x79a   : > { %5898 = vmatmul.bf16.gmra.mxu1 %v5713_v6  ;;  %v6437_v41 = vunpack.c.l.bf16 %v6373_v7  ;;  %v6053_v33 = vunpack.c.l.bf16 %v5983_v50  ;;  %v5414_v26 = vunpack.c.l.bf16 %v5344_v46 }
 0x79b   : > { %6751 = vst.msk [vmem:[%s9839_s25 + $0x40] sm:$0xff] %vm6742_vm0, %v6686_v15  ;;  %v4840_v13 = vadd.f32 %v9577_v56, %v4775_v12 }
 0x79c   : > { %v6118_v34 = vadd.f32 %v9752_v20, %v6053_v33  ;;  %v6505_v52 = vmul.f32 %v9890_v23, %v6437_v41  ;;  %v5479_v58 = vadd.f32 %v9684_v39, %v5414_v26 }
 0x79d   : > { %v5032_v45 = vmax.f32 %v4840_v13, 0.0 }
 0x79e   : > { %v6310_v54 = vmax.f32 %v6118_v34, 0.0  ;;  %6592 = vadd.xlane.f32.xlu1 %v6505_v52  ;;  %v4637_v27 = vpop.f32.mrf.mxu3  ;;  %v5671_v49 = vmax.f32 %v5479_v58, 0.0 }
 0x79f   : > { %v5249_v61 = vpop.f32.mrf.mxu0  ;;  %v4706_v1 = vpack.c.bf16 %v4637_v27, %v4637_v27  ;;  %v5861_v53 = vpop.f32.mrf.mxu1 }
 0x7a0   : > { %v5345_v2 = vpack.c.bf16 %v5249_v61, %v5249_v61  ;;  %v6374_v63 = vpack.c.bf16 %v6310_v54, %v6310_v54  ;;  %v5984_v29 = vpack.c.bf16 %v5861_v53, %v5861_v53  ;;  %v6565_v32 = vpop.xlane.xlu2 %6564 }
 0x7a1   : > { %v4776_v19 = vunpack.c.l.bf16 %v4706_v1  ;;  %v6687_v18 = vadd.f32 %v9832_v40, %v6565_v32 }
 0x7a2   : > { %v5415_v36 = vunpack.c.l.bf16 %v5345_v2  ;;  %v6438_v35 = vunpack.c.l.bf16 %v6374_v63  ;;  %v6054_v5 = vunpack.c.l.bf16 %v5984_v29 }
 0x7a3   : > { %v4841_v30 = vadd.f32 %v9577_v56, %v4776_v19  ;;  %6752 = vst.msk [vmem:[%s9839_s25 + $0x48] sm:$0xff] %vm6742_vm0, %v6687_v18 }
 0x7a4   : > { %v5480_v4 = vadd.f32 %v9684_v39, %v5415_v36  ;;  %v6119_v60 = vadd.f32 %v9752_v20, %v6054_v5  ;;  %v6506_v42 = vmul.f32 %v9890_v23, %v6438_v35 }
 0x7a5   : > { %v5033_v28 = vmax.f32 %v4841_v30, 0.0 }
 0x7a6   : > { %v5672_v62 = vmax.f32 %v5480_v4, 0.0  ;;  %v6311_v0 = vmax.f32 %v6119_v60, 0.0  ;;  %6594 = vadd.xlane.f32.xlu2 %v6506_v42  ;;  %v4640_v37 = vpop.f32.mrf.mxu3 }
 0x7a7   : > { %v5252_v21 = vpop.f32.mrf.mxu0  ;;  %v5864_v51 = vpop.f32.mrf.mxu1  ;;  %v5066_v25 = vpack.c.bf16 %v5033_v28, %v5032_v45  ;;  %v4707_v24 = vpack.c.bf16 %v4640_v37, %v4640_v37 }
 0x7a8   : > { %v5714_v16 = vpack.c.bf16 %v5672_v62, %v5671_v49  ;;  %v6375_v55 = vpack.c.bf16 %v6311_v0, %v6311_v0  ;;  %v5985_v9 = vpack.c.bf16 %v5864_v51, %v5864_v51  ;;  %v6567_v48 = vpop.xlane.xlu0 %6566  ;;  %v5346_v17 = vpack.c.bf16 %v5252_v21, %v5252_v21 }
 0x7a9   : > { %v6688_v44 = vadd.f32 %v9832_v40, %v6567_v48  ;;  %5291 = vmatmul.bf16.gmra.mxu0 %v5066_v25  ;;  %v4777_v43 = vunpack.c.l.bf16 %v4707_v24 }
 0x7aa   : > { %5903 = vmatmul.bf16.gmra.mxu1 %v5714_v16  ;;  %v6439_v59 = vunpack.c.l.bf16 %v6375_v55  ;;  %v6055_v57 = vunpack.c.l.bf16 %v5985_v9  ;;  %v5416_v38 = vunpack.c.l.bf16 %v5346_v17 }
 0x7ab   : > { %6753 = vst.msk [vmem:[%s9839_s25 + $0x50] sm:$0xff] %vm6742_vm0, %v6688_v44  ;;  %v4842_v14 = vadd.f32 %v9577_v56, %v4777_v43 }
 0x7ac   : > { %v6120_v11 = vadd.f32 %v9752_v20, %v6055_v57  ;;  %v6507_v22 = vmul.f32 %v9890_v23, %v6439_v59  ;;  %v5481_v15 = vadd.f32 %v9684_v39, %v5416_v38 }
 0x7ad   : > { %v5034_v1 = vmax.f32 %v4842_v14, 0.0 }
 0x7ae   : > { %v6312_v31 = vmax.f32 %v6120_v11, 0.0  ;;  %6596 = vadd.xlane.f32.xlu0 %v6507_v22  ;;  %v4642_v10 = vpop.f32.mrf.mxu3  ;;  %v5673_v2 = vmax.f32 %v5481_v15, 0.0 }
 0x7af   : > { %v5254_v3 = vpop.f32.mrf.mxu0  ;;  %v4708_v8 = vpack.c.bf16 %v4642_v10, %v4642_v10  ;;  %v5866_v7 = vpop.f32.mrf.mxu1 }
 0x7b0   : > { %v5347_v6 = vpack.c.bf16 %v5254_v3, %v5254_v3  ;;  %v6376_v50 = vpack.c.bf16 %v6312_v31, %v6312_v31  ;;  %v5986_v47 = vpack.c.bf16 %v5866_v7, %v5866_v7  ;;  %v6569_v46 = vpop.xlane.xlu1 %6568 }
 0x7b1   : > { %v4778_v41 = vunpack.c.l.bf16 %v4708_v8  ;;  %v6689_v12 = vadd.f32 %v9832_v40, %v6569_v46 }
 0x7b2   : > { %v5417_v33 = vunpack.c.l.bf16 %v5347_v6  ;;  %v6440_v34 = vunpack.c.l.bf16 %v6376_v50  ;;  %v6056_v52 = vunpack.c.l.bf16 %v5986_v47 }
 0x7b3   : > { %v4843_v26 = vadd.f32 %v9577_v56, %v4778_v41  ;;  %6754 = vst.msk [vmem:[%s9839_s25 + $0x58] sm:$0xff] %vm6742_vm0, %v6689_v12 }
 0x7b4   : > { %v5482_v54 = vadd.f32 %v9684_v39, %v5417_v33  ;;  %v6121_v27 = vadd.f32 %v9752_v20, %v6056_v52  ;;  %v6508_v61 = vmul.f32 %v9890_v23, %v6440_v34 }
 0x7b5   : > { %v5035_v53 = vmax.f32 %v4843_v26, 0.0 }
 0x7b6   : > { %v5674_v13 = vmax.f32 %v5482_v54, 0.0  ;;  %v6313_v63 = vmax.f32 %v6121_v27, 0.0  ;;  %6598 = vadd.xlane.f32.xlu1 %v6508_v61 }
 0x7b7   : > { %v5257_v29 = vpop.f32.mrf.mxu0  ;;  %v5869_v32 = vpop.f32.mrf.mxu1  ;;  %v5067_v58 = vpack.c.bf16 %v5035_v53, %v5034_v1 }
 0x7b8   : > { %v5715_v19 = vpack.c.bf16 %v5674_v13, %v5673_v2  ;;  %v6377_v56 = vpack.c.bf16 %v6313_v63, %v6313_v63  ;;  %v5987_v36 = vpack.c.bf16 %v5869_v32, %v5869_v32  ;;  %v6571_v18 = vpop.xlane.xlu2 %6570  ;;  %v5348_v35 = vpack.c.bf16 %v5257_v29, %v5257_v29 }
 0x7b9   : > { %v6690_v5 = vadd.f32 %v9832_v40, %v6571_v18  ;;  %5296 = vmatmul.bf16.gmra.mxu0 %v5067_v58 }
 0x7ba   : > { %5908 = vmatmul.bf16.gmra.mxu1 %v5715_v19  ;;  %v6441_v30 = vunpack.c.l.bf16 %v6377_v56  ;;  %v6057_v4 = vunpack.c.l.bf16 %v5987_v36  ;;  %v5418_v45 = vunpack.c.l.bf16 %v5348_v35 }
 0x7bb   : > { %6755 = vst.msk [vmem:[%s9839_s25 + $0x60] sm:$0xff] %vm6742_vm0, %v6690_v5 }
 0x7bc   : > { %v6122_v60 = vadd.f32 %v9752_v20, %v6057_v4  ;;  %v6509_v42 = vmul.f32 %v9890_v23, %v6441_v30  ;;  %v5483_v25 = vadd.f32 %v9684_v39, %v5418_v45 }
 0x7be   : > { %v6314_v49 = vmax.f32 %v6122_v60, 0.0  ;;  %6600 = vadd.xlane.f32.xlu2 %v6509_v42  ;;  %v5675_v59 = vmax.f32 %v5483_v25, 0.0 }
 0x7bf   : > { %v5259_v28 = vpop.f32.mrf.mxu0  ;;  %v5871_v0 = vpop.f32.mrf.mxu1 }
 0x7c0   : > { %v5349_v62 = vpack.c.bf16 %v5259_v28, %v5259_v28  ;;  %v6378_v37 = vpack.c.bf16 %v6314_v49, %v6314_v49  ;;  %v5988_v21 = vpack.c.bf16 %v5871_v0, %v5871_v0  ;;  %v6573_v51 = vpop.xlane.xlu0 %6572 }
 0x7c1   : > { %v6691_v55 = vadd.f32 %v9832_v40, %v6573_v51 }
 0x7c2   : > { %v5419_v16 = vunpack.c.l.bf16 %v5349_v62  ;;  %v6442_v24 = vunpack.c.l.bf16 %v6378_v37  ;;  %v6058_v9 = vunpack.c.l.bf16 %v5988_v21 }
 0x7c3   : > { %6756 = vst.msk [vmem:[%s9839_s25 + $0x68] sm:$0xff] %vm6742_vm0, %v6691_v55 }
 0x7c4   : > { %v5484_v48 = vadd.f32 %v9684_v39, %v5419_v16  ;;  %v6123_v17 = vadd.f32 %v9752_v20, %v6058_v9  ;;  %v6510_v44 = vmul.f32 %v9890_v23, %v6442_v24 }
 0x7c6   : > { %v5676_v57 = vmax.f32 %v5484_v48, 0.0  ;;  %v6315_v43 = vmax.f32 %v6123_v17, 0.0  ;;  %6602 = vadd.xlane.f32.xlu0 %v6510_v44 }
 0x7c7   : > { %v5262_v11 = vpop.f32.mrf.mxu0  ;;  %v5874_v22 = vpop.f32.mrf.mxu1 }
 0x7c8   : > { %v5716_v38 = vpack.c.bf16 %v5676_v57, %v5675_v59  ;;  %v6379_v31 = vpack.c.bf16 %v6315_v43, %v6315_v43  ;;  %v5989_v10 = vpack.c.bf16 %v5874_v22, %v5874_v22  ;;  %v6575_v3 = vpop.xlane.xlu1 %6574  ;;  %v5350_v8 = vpack.c.bf16 %v5262_v11, %v5262_v11 }
 0x7c9   : > { %v6692_v6 = vadd.f32 %v9832_v40, %v6575_v3 }
 0x7ca   : > { %5913 = vmatmul.bf16.gmra.mxu1 %v5716_v38  ;;  %v6443_v7 = vunpack.c.l.bf16 %v6379_v31  ;;  %v6059_v14 = vunpack.c.l.bf16 %v5989_v10  ;;  %v5420_v46 = vunpack.c.l.bf16 %v5350_v8 }
 0x7cb   : > { %6757 = vst.msk [vmem:[%s9839_s25 + $0x70] sm:$0xff] %vm6742_vm0, %v6692_v6 }
 0x7cc   : > { %v6124_v50 = vadd.f32 %v9752_v20, %v6059_v14  ;;  %v6511_v47 = vmul.f32 %v9890_v23, %v6443_v7  ;;  %v5485_v54 = vadd.f32 %v9684_v39, %v5420_v46 }
 0x7ce   : > { %v6316_v15 = vmax.f32 %v6124_v50, 0.0  ;;  %6604 = vadd.xlane.f32.xlu1 %v6511_v47  ;;  %v5677_v29 = vmax.f32 %v5485_v54, 0.0 }
 0x7cf   : > { %v5264_v41 = vpop.f32.mrf.mxu0  ;;  %v5876_v12 = vpop.f32.mrf.mxu1 }
 0x7d0   : > { %v5351_v33 = vpack.c.bf16 %v5264_v41, %v5264_v41  ;;  %v6380_v34 = vpack.c.bf16 %v6316_v15, %v6316_v15  ;;  %v5990_v52 = vpack.c.bf16 %v5876_v12, %v5876_v12  ;;  %v6577_v26 = vpop.xlane.xlu2 %6576 }
 0x7d1   : > { %v6693_v61 = vadd.f32 %v9832_v40, %v6577_v26 }
 0x7d2   : > { %v5421_v27 = vunpack.c.l.bf16 %v5351_v33  ;;  %v6444_v1 = vunpack.c.l.bf16 %v6380_v34  ;;  %v6060_v2 = vunpack.c.l.bf16 %v5990_v52 }
 0x7d3   : > { %6758 = vst.msk [vmem:[%s9839_s25 + $0x78] sm:$0xff] %vm6742_vm0, %v6693_v61 }
 0x7d4   : > { %v5486_v53 = vadd.f32 %v9684_v39, %v5421_v27  ;;  %v6125_v13 = vadd.f32 %v9752_v20, %v6060_v2  ;;  %v6512_v63 = vmul.f32 %v9890_v23, %v6444_v1 }
 0x7d6   : > { %v5678_v32 = vmax.f32 %v5486_v53, 0.0  ;;  %v6317_v58 = vmax.f32 %v6125_v13, 0.0  ;;  %6606 = vadd.xlane.f32.xlu2 %v6512_v63 }
 0x7d7   : > { %v5267_v19 = vpop.f32.mrf.mxu0  ;;  %v5879_v56 = vpop.f32.mrf.mxu1 }
 0x7d8   : > { %v5717_v36 = vpack.c.bf16 %v5678_v32, %v5677_v29  ;;  %v6381_v18 = vpack.c.bf16 %v6317_v58, %v6317_v58  ;;  %v5991_v35 = vpack.c.bf16 %v5879_v56, %v5879_v56  ;;  %v6579_v5 = vpop.xlane.xlu0 %6578  ;;  %v5352_v30 = vpack.c.bf16 %v5267_v19, %v5267_v19 }
 0x7d9   : > { %v6694_v4 = vadd.f32 %v9832_v40, %v6579_v5 }
 0x7da   : > { %5918 = vmatmul.bf16.gmra.mxu1 %v5717_v36  ;;  %v6445_v60 = vunpack.c.l.bf16 %v6381_v18  ;;  %v6061_v42 = vunpack.c.l.bf16 %v5991_v35  ;;  %v5422_v28 = vunpack.c.l.bf16 %v5352_v30 }
 0x7db   : > { %6759 = vst.msk [vmem:[%s9839_s25 + $0x80] sm:$0xff] %vm6742_vm0, %v6694_v4 }
 0x7dc   : > { %v6126_v45 = vadd.f32 %v9752_v20, %v6061_v42  ;;  %v6513_v49 = vmul.f32 %v9890_v23, %v6445_v60  ;;  %v5487_v55 = vadd.f32 %v9684_v39, %v5422_v28 }
 0x7de   : > { %v6318_v62 = vmax.f32 %v6126_v45, 0.0  ;;  %6608 = vadd.xlane.f32.xlu0 %v6513_v49  ;;  %v5679_v43 = vmax.f32 %v5487_v55, 0.0 }
 0x7df   : > { %v5269_v0 = vpop.f32.mrf.mxu0  ;;  %v5881_v21 = vpop.f32.mrf.mxu1 }
 0x7e0   : > { %v5353_v37 = vpack.c.bf16 %v5269_v0, %v5269_v0  ;;  %v6382_v51 = vpack.c.bf16 %v6318_v62, %v6318_v62  ;;  %v5992_v25 = vpack.c.bf16 %v5881_v21, %v5881_v21  ;;  %v6581_v16 = vpop.xlane.xlu1 %6580 }
 0x7e1   : > { %v6695_v9 = vadd.f32 %v9832_v40, %v6581_v16 }
 0x7e2   : > { %v5423_v24 = vunpack.c.l.bf16 %v5353_v37  ;;  %v6446_v48 = vunpack.c.l.bf16 %v6382_v51  ;;  %v6062_v17 = vunpack.c.l.bf16 %v5992_v25 }
 0x7e3   : > { %6760 = vst.msk [vmem:[%s9839_s25 + $0x88] sm:$0xff] %vm6742_vm0, %v6695_v9 }
 0x7e4   : > { %v5488_v44 = vadd.f32 %v9684_v39, %v5423_v24  ;;  %v6127_v59 = vadd.f32 %v9752_v20, %v6062_v17  ;;  %v6514_v57 = vmul.f32 %v9890_v23, %v6446_v48 }
 0x7e6   : > { %v5680_v11 = vmax.f32 %v5488_v44, 0.0  ;;  %v6319_v22 = vmax.f32 %v6127_v59, 0.0  ;;  %6610 = vadd.xlane.f32.xlu1 %v6514_v57 }
 0x7e7   : > { %v5272_v38 = vpop.f32.mrf.mxu0  ;;  %v5884_v31 = vpop.f32.mrf.mxu1 }
 0x7e8   : > { %v5718_v10 = vpack.c.bf16 %v5680_v11, %v5679_v43  ;;  %v6383_v3 = vpack.c.bf16 %v6319_v22, %v6319_v22  ;;  %v5993_v8 = vpack.c.bf16 %v5884_v31, %v5884_v31  ;;  %v5354_v6 = vpack.c.bf16 %v5272_v38, %v5272_v38 }
 0x7e9   : > { %v6583_v7 = vpop.xlane.xlu2 %6582 }
 0x7ea   : > { %5923 = vmatmul.bf16.gmra.mxu1 %v5718_v10  ;;  %v6447_v14 = vunpack.c.l.bf16 %v6383_v3  ;;  %v6063_v50 = vunpack.c.l.bf16 %v5993_v8  ;;  %v6696_v47 = vadd.f32 %v9832_v40, %v6583_v7  ;;  %v5424_v41 = vunpack.c.l.bf16 %v5354_v6 }
 0x7ec   : > { %v6128_v46 = vadd.f32 %v9752_v20, %v6063_v50  ;;  %6761 = vst.msk [vmem:[%s9839_s25 + $0x90] sm:$0xff] %vm6742_vm0, %v6696_v47  ;;  %v6515_v15 = vmul.f32 %v9890_v23, %v6447_v14  ;;  %v5489_v27 = vadd.f32 %v9684_v39, %v5424_v41 }
 0x7ee   : > { %v6320_v33 = vmax.f32 %v6128_v46, 0.0  ;;  %6612 = vadd.xlane.f32.xlu2 %v6515_v15  ;;  %v5681_v58 = vmax.f32 %v5489_v27, 0.0 }
 0x7ef   : > { %v5274_v12 = vpop.f32.mrf.mxu0  ;;  %v5886_v52 = vpop.f32.mrf.mxu1 }
 0x7f0   : > { %v5355_v34 = vpack.c.bf16 %v5274_v12, %v5274_v12  ;;  %v6384_v26 = vpack.c.bf16 %v6320_v33, %v6320_v33  ;;  %v5994_v54 = vpack.c.bf16 %v5886_v52, %v5886_v52 }
 0x7f1   : > { %v6585_v1 = vpop.xlane.xlu0 %6584 }
 0x7f2   : > { %v5425_v61 = vunpack.c.l.bf16 %v5355_v34  ;;  %v6448_v2 = vunpack.c.l.bf16 %v6384_v26  ;;  %v6064_v53 = vunpack.c.l.bf16 %v5994_v54  ;;  %v6697_v13 = vadd.f32 %v9832_v40, %v6585_v1 }
 0x7f4   : > { %v5490_v63 = vadd.f32 %v9684_v39, %v5425_v61  ;;  %v6129_v29 = vadd.f32 %v9752_v20, %v6064_v53  ;;  %6762 = vst.msk [vmem:[%s9839_s25 + $0x98] sm:$0xff] %vm6742_vm0, %v6697_v13  ;;  %v6516_v32 = vmul.f32 %v9890_v23, %v6448_v2 }
 0x7f6   : > { %v5682_v19 = vmax.f32 %v5490_v63, 0.0  ;;  %v6321_v56 = vmax.f32 %v6129_v29, 0.0  ;;  %6614 = vadd.xlane.f32.xlu0 %v6516_v32 }
 0x7f7   : > { %v5277_v36 = vpop.f32.mrf.mxu0  ;;  %v5889_v18 = vpop.f32.mrf.mxu1 }
 0x7f8   : > { %v5719_v35 = vpack.c.bf16 %v5682_v19, %v5681_v58  ;;  %v6385_v5 = vpack.c.bf16 %v6321_v56, %v6321_v56  ;;  %v5995_v30 = vpack.c.bf16 %v5889_v18, %v5889_v18  ;;  %v5356_v4 = vpack.c.bf16 %v5277_v36, %v5277_v36 }
 0x7f9   : > { %v6587_v60 = vpop.xlane.xlu1 %6586 }
 0x7fa   : > { %5928 = vmatmul.bf16.gmra.mxu1 %v5719_v35  ;;  %v6449_v42 = vunpack.c.l.bf16 %v6385_v5  ;;  %v6065_v45 = vunpack.c.l.bf16 %v5995_v30  ;;  %v6698_v49 = vadd.f32 %v9832_v40, %v6587_v60  ;;  %v5426_v0 = vunpack.c.l.bf16 %v5356_v4 }
 0x7fc   : > { %v6130_v28 = vadd.f32 %v9752_v20, %v6065_v45  ;;  %6763 = vst.msk [vmem:[%s9839_s25 + $0xa0] sm:$0xff] %vm6742_vm0, %v6698_v49  ;;  %v6517_v62 = vmul.f32 %v9890_v23, %v6449_v42  ;;  %v5491_v24 = vadd.f32 %v9684_v39, %v5426_v0 }
 0x7fe   : > { %v6322_v37 = vmax.f32 %v6130_v28, 0.0  ;;  %6616 = vadd.xlane.f32.xlu1 %v6517_v62  ;;  %v5683_v22 = vmax.f32 %v5491_v24, 0.0  ;;  %v10002_v28 = vld [vmem:[#allocation2] ss:$0 sm:$0xff] }
 0x7ff   : > { %v5279_v21 = vpop.f32.mrf.mxu0  ;;  %v5891_v25 = vpop.f32.mrf.mxu1 }
 0x800   : > { %v5357_v51 = vpack.c.bf16 %v5279_v21, %v5279_v21  ;;  %v6386_v16 = vpack.c.bf16 %v6322_v37, %v6322_v37  ;;  %v5996_v55 = vpack.c.bf16 %v5891_v25, %v5891_v25 }
 0x801   : > { %v6589_v48 = vpop.xlane.xlu2 %6588 }
 0x802   : > { %v5427_v9 = vunpack.c.l.bf16 %v5357_v51  ;;  %v6450_v17 = vunpack.c.l.bf16 %v6386_v16  ;;  %v6066_v44 = vunpack.c.l.bf16 %v5996_v55  ;;  %v6699_v59 = vadd.f32 %v9832_v40, %v6589_v48 }
 0x804   : > { %v5492_v57 = vadd.f32 %v9684_v39, %v5427_v9  ;;  %v6131_v43 = vadd.f32 %v9752_v20, %v6066_v44  ;;  %6764 = vst.msk [vmem:[%s9839_s25 + $0xa8] sm:$0xff] %vm6742_vm0, %v6699_v59  ;;  %v6518_v11 = vmul.f32 %v9890_v23, %v6450_v17 }
 0x806   : > { %v5684_v38 = vmax.f32 %v5492_v57, 0.0  ;;  %v6323_v31 = vmax.f32 %v6131_v43, 0.0  ;;  %6618 = vadd.xlane.f32.xlu2 %v6518_v11 }
 0x807   : > { %v5282_v10 = vpop.f32.mrf.mxu0  ;;  %v5894_v3 = vpop.f32.mrf.mxu1 }
 0x808   : > { %v5720_v8 = vpack.c.bf16 %v5684_v38, %v5683_v22  ;;  %v6387_v6 = vpack.c.bf16 %v6323_v31, %v6323_v31  ;;  %v5997_v7 = vpack.c.bf16 %v5894_v3, %v5894_v3  ;;  %v5358_v14 = vpack.c.bf16 %v5282_v10, %v5282_v10 }
 0x809   : > { %v6591_v50 = vpop.xlane.xlu0 %6590 }
 0x80a   : > { %5933 = vmatmul.bf16.gmra.mxu1 %v5720_v8  ;;  %v6451_v47 = vunpack.c.l.bf16 %v6387_v6  ;;  %v6067_v46 = vunpack.c.l.bf16 %v5997_v7  ;;  %v6700_v15 = vadd.f32 %v9832_v40, %v6591_v50  ;;  %v5428_v12 = vunpack.c.l.bf16 %v5358_v14 }
 0x80c   : > { %v6132_v41 = vadd.f32 %v9752_v20, %v6067_v46  ;;  %6765 = vst.msk [vmem:[%s9839_s25 + $0xb0] sm:$0xff] %vm6742_vm0, %v6700_v15  ;;  %v6519_v33 = vmul.f32 %v9890_v23, %v6451_v47  ;;  %v5493_v1 = vadd.f32 %v9684_v39, %v5428_v12 }
 0x80e   : > { %v6324_v34 = vmax.f32 %v6132_v41, 0.0  ;;  %6620 = vadd.xlane.f32.xlu0 %v6519_v33  ;;  %v5685_v56 = vmax.f32 %v5493_v1, 0.0 }
 0x80f   : > { %v5284_v52 = vpop.f32.mrf.mxu0  ;;  %v5896_v54 = vpop.f32.mrf.mxu1 }
 0x810   : > { %v5359_v26 = vpack.c.bf16 %v5284_v52, %v5284_v52  ;;  %v6388_v27 = vpack.c.bf16 %v6324_v34, %v6324_v34  ;;  %v5998_v61 = vpack.c.bf16 %v5896_v54, %v5896_v54 }
 0x811   : > { %v6593_v53 = vpop.xlane.xlu1 %6592 }
 0x812   : > { %v5429_v2 = vunpack.c.l.bf16 %v5359_v26  ;;  %v6452_v13 = vunpack.c.l.bf16 %v6388_v27  ;;  %v6068_v63 = vunpack.c.l.bf16 %v5998_v61  ;;  %v6701_v29 = vadd.f32 %v9832_v40, %v6593_v53 }
 0x814   : > { %v5494_v32 = vadd.f32 %v9684_v39, %v5429_v2  ;;  %v6133_v58 = vadd.f32 %v9752_v20, %v6068_v63  ;;  %6766 = vst.msk [vmem:[%s9839_s25 + $0xb8] sm:$0xff] %vm6742_vm0, %v6701_v29  ;;  %v6520_v19 = vmul.f32 %v9890_v23, %v6452_v13 }
 0x816   : > { %v5686_v36 = vmax.f32 %v5494_v32, 0.0  ;;  %v6325_v18 = vmax.f32 %v6133_v58, 0.0  ;;  %6622 = vadd.xlane.f32.xlu1 %v6520_v19 }
 0x817   : > { %v5287_v35 = vpop.f32.mrf.mxu0  ;;  %v5899_v5 = vpop.f32.mrf.mxu1 }
 0x818   : > { %v5721_v30 = vpack.c.bf16 %v5686_v36, %v5685_v56  ;;  %v6389_v4 = vpack.c.bf16 %v6325_v18, %v6325_v18  ;;  %v5999_v60 = vpack.c.bf16 %v5899_v5, %v5899_v5  ;;  %v5360_v42 = vpack.c.bf16 %v5287_v35, %v5287_v35 }
 0x819   : > { %v6595_v40 = vpop.xlane.xlu2 %6594 }
 0x81a   : > { %5938 = vmatmul.bf16.gmra.mxu1 %v5721_v30  ;;  %v6453_v45 = vunpack.c.l.bf16 %v6389_v4  ;;  %v6069_v49 = vunpack.c.l.bf16 %v5999_v60  ;;  %v6702_v62 = vadd.f32 %v10002_v28, %v6595_v40  ;;  %v5430_v21 = vunpack.c.l.bf16 %v5360_v42 }
 0x81c   : > { %v6134_v0 = vadd.f32 %v9752_v20, %v6069_v49  ;;  %6767 = vst.msk [vmem:[%s9839_s25 + $0xc0] sm:$0xff] %vm6742_vm0, %v6702_v62  ;;  %v6521_v37 = vmul.f32 %v9890_v23, %v6453_v45  ;;  %v5495_v48 = vadd.f32 %v9684_v39, %v5430_v21 }
 0x81e   : > { %v6326_v51 = vmax.f32 %v6134_v0, 0.0  ;;  %6624 = vadd.xlane.f32.xlu2 %v6521_v37  ;;  %v5687_v31 = vmax.f32 %v5495_v48, 0.0 }
 0x81f   : > { %v5289_v25 = vpop.f32.mrf.mxu0  ;;  %v5901_v55 = vpop.f32.mrf.mxu1 }
 0x820   : > { %v5361_v16 = vpack.c.bf16 %v5289_v25, %v5289_v25  ;;  %v6390_v24 = vpack.c.bf16 %v6326_v51, %v6326_v51  ;;  %v6000_v9 = vpack.c.bf16 %v5901_v55, %v5901_v55 }
 0x821   : > { %v6597_v44 = vpop.xlane.xlu0 %6596 }
 0x822   : > { %v5431_v17 = vunpack.c.l.bf16 %v5361_v16  ;;  %v6454_v59 = vunpack.c.l.bf16 %v6390_v24  ;;  %v6070_v57 = vunpack.c.l.bf16 %v6000_v9  ;;  %v6703_v43 = vadd.f32 %v10002_v28, %v6597_v44 }
 0x824   : > { %v5496_v11 = vadd.f32 %v9684_v39, %v5431_v17  ;;  %v6135_v22 = vadd.f32 %v9752_v20, %v6070_v57  ;;  %6768 = vst.msk [vmem:[%s9839_s25 + $0xc8] sm:$0xff] %vm6742_vm0, %v6703_v43  ;;  %v6522_v38 = vmul.f32 %v9890_v23, %v6454_v59 }
 0x826   : > { %v5688_v10 = vmax.f32 %v5496_v11, 0.0  ;;  %v6327_v3 = vmax.f32 %v6135_v22, 0.0  ;;  %6626 = vadd.xlane.f32.xlu0 %v6522_v38 }
 0x827   : > { %v5292_v8 = vpop.f32.mrf.mxu0  ;;  %v5904_v6 = vpop.f32.mrf.mxu1 }
 0x828   : > { %v5722_v7 = vpack.c.bf16 %v5688_v10, %v5687_v31  ;;  %v6391_v14 = vpack.c.bf16 %v6327_v3, %v6327_v3  ;;  %v6001_v50 = vpack.c.bf16 %v5904_v6, %v5904_v6  ;;  %v5362_v47 = vpack.c.bf16 %v5292_v8, %v5292_v8 }
 0x829   : > { %v6599_v46 = vpop.xlane.xlu1 %6598 }
 0x82a   : > { %5943 = vmatmul.bf16.gmra.mxu1 %v5722_v7  ;;  %v6455_v15 = vunpack.c.l.bf16 %v6391_v14  ;;  %v6071_v41 = vunpack.c.l.bf16 %v6001_v50  ;;  %v6704_v33 = vadd.f32 %v10002_v28, %v6599_v46  ;;  %v5432_v52 = vunpack.c.l.bf16 %v5362_v47 }
 0x82c   : > { %v6136_v12 = vadd.f32 %v9752_v20, %v6071_v41  ;;  %6769 = vst.msk [vmem:[%s9839_s25 + $0xd0] sm:$0xff] %vm6742_vm0, %v6704_v33  ;;  %v6523_v34 = vmul.f32 %v9890_v23, %v6455_v15  ;;  %v5497_v53 = vadd.f32 %v9684_v39, %v5432_v52 }
 0x82e   : > { %v6328_v26 = vmax.f32 %v6136_v12, 0.0  ;;  %6628 = vadd.xlane.f32.xlu1 %v6523_v34  ;;  %v5689_v18 = vmax.f32 %v5497_v53, 0.0 }
 0x82f   : > { %v5294_v54 = vpop.f32.mrf.mxu0  ;;  %v5906_v61 = vpop.f32.mrf.mxu1 }
 0x830   : > { %v5363_v27 = vpack.c.bf16 %v5294_v54, %v5294_v54  ;;  %v6392_v1 = vpack.c.bf16 %v6328_v26, %v6328_v26  ;;  %v6002_v2 = vpack.c.bf16 %v5906_v61, %v5906_v61 }
 0x831   : > { %v6601_v63 = vpop.xlane.xlu2 %6600 }
 0x832   : > { %v5433_v13 = vunpack.c.l.bf16 %v5363_v27  ;;  %v6456_v29 = vunpack.c.l.bf16 %v6392_v1  ;;  %v6072_v32 = vunpack.c.l.bf16 %v6002_v2  ;;  %v6705_v58 = vadd.f32 %v10002_v28, %v6601_v63 }
 0x834   : > { %v5498_v19 = vadd.f32 %v9684_v39, %v5433_v13  ;;  %v6137_v56 = vadd.f32 %v9752_v20, %v6072_v32  ;;  %6770 = vst.msk [vmem:[%s9839_s25 + $0xd8] sm:$0xff] %vm6742_vm0, %v6705_v58  ;;  %v6524_v36 = vmul.f32 %v9890_v23, %v6456_v29 }
 0x836   : > { %v5690_v35 = vmax.f32 %v5498_v19, 0.0  ;;  %v6329_v5 = vmax.f32 %v6137_v56, 0.0  ;;  %6630 = vadd.xlane.f32.xlu2 %v6524_v36 }
 0x837   : > { %v5297_v30 = vpop.f32.mrf.mxu0  ;;  %v5909_v4 = vpop.f32.mrf.mxu1 }
 0x838   : > { %v5723_v60 = vpack.c.bf16 %v5690_v35, %v5689_v18  ;;  %v6393_v42 = vpack.c.bf16 %v6329_v5, %v6329_v5  ;;  %v6003_v40 = vpack.c.bf16 %v5909_v4, %v5909_v4  ;;  %v5364_v45 = vpack.c.bf16 %v5297_v30, %v5297_v30 }
 0x839   : > { %v6603_v49 = vpop.xlane.xlu0 %6602 }
 0x83a   : > { %5948 = vmatmul.bf16.gmra.mxu1 %v5723_v60  ;;  %v6457_v62 = vunpack.c.l.bf16 %v6393_v42  ;;  %v6073_v0 = vunpack.c.l.bf16 %v6003_v40  ;;  %v6706_v37 = vadd.f32 %v10002_v28, %v6603_v49  ;;  %v5434_v25 = vunpack.c.l.bf16 %v5364_v45 }
 0x83c   : > { %v6138_v21 = vadd.f32 %v9752_v20, %v6073_v0  ;;  %6771 = vst.msk [vmem:[%s9839_s25 + $0xe0] sm:$0xff] %vm6742_vm0, %v6706_v37  ;;  %v6525_v51 = vmul.f32 %v9890_v23, %v6457_v62  ;;  %v5499_v44 = vadd.f32 %v9684_v39, %v5434_v25 }
 0x83e   : > { %v6330_v16 = vmax.f32 %v6138_v21, 0.0  ;;  %6632 = vadd.xlane.f32.xlu0 %v6525_v51  ;;  %v5691_v3 = vmax.f32 %v5499_v44, 0.0 }
 0x83f   : > { %v5299_v55 = vpop.f32.mrf.mxu0  ;;  %v5911_v9 = vpop.f32.mrf.mxu1 }
 0x840   : > { %v5365_v24 = vpack.c.bf16 %v5299_v55, %v5299_v55  ;;  %v6394_v48 = vpack.c.bf16 %v6330_v16, %v6330_v16  ;;  %v6004_v17 = vpack.c.bf16 %v5911_v9, %v5911_v9 }
 0x841   : > { %v6605_v57 = vpop.xlane.xlu1 %6604 }
 0x842   : > { %v5435_v59 = vunpack.c.l.bf16 %v5365_v24  ;;  %v6458_v43 = vunpack.c.l.bf16 %v6394_v48  ;;  %v6074_v11 = vunpack.c.l.bf16 %v6004_v17  ;;  %v6707_v22 = vadd.f32 %v10002_v28, %v6605_v57 }
 0x844   : > { %v5500_v38 = vadd.f32 %v9684_v39, %v5435_v59  ;;  %v6139_v31 = vadd.f32 %v9752_v20, %v6074_v11  ;;  %6772 = vst.msk [vmem:[%s9839_s25 + $0xe8] sm:$0xff] %vm6742_vm0, %v6707_v22  ;;  %v6526_v10 = vmul.f32 %v9890_v23, %v6458_v43 }
 0x846   : > { %v5692_v8 = vmax.f32 %v5500_v38, 0.0  ;;  %v6331_v6 = vmax.f32 %v6139_v31, 0.0  ;;  %6634 = vadd.xlane.f32.xlu1 %v6526_v10 }
 0x847   : > { %v5914_v7 = vpop.f32.mrf.mxu1 }
 0x848   : > { %v5724_v14 = vpack.c.bf16 %v5692_v8, %v5691_v3  ;;  %v6395_v50 = vpack.c.bf16 %v6331_v6, %v6331_v6  ;;  %v6005_v47 = vpack.c.bf16 %v5914_v7, %v5914_v7  ;;  %v10072_v8 = vld [vmem:[%s10192_s5] ss:$0 sm:$0xff] }
 0x849   : > { %v6607_v46 = vpop.xlane.xlu2 %6606 }
 0x84a   : > { %5953 = vmatmul.bf16.gmra.mxu1 %v5724_v14  ;;  %v6459_v15 = vunpack.c.l.bf16 %v6395_v50  ;;  %v6075_v39 = vunpack.c.l.bf16 %v6005_v47  ;;  %v6708_v41 = vadd.f32 %v10002_v28, %v6607_v46 }
 0x84c   : > { %v6140_v33 = vadd.f32 %v9752_v20, %v6075_v39  ;;  %6773 = vst.msk [vmem:[%s9839_s25 + $0xf0] sm:$0xff] %vm6742_vm0, %v6708_v41  ;;  %v6527_v12 = vmul.f32 %v9890_v23, %v6459_v15 }
 0x84e   : > { %v6332_v34 = vmax.f32 %v6140_v33, 0.0  ;;  %6636 = vadd.xlane.f32.xlu2 %v6527_v12 }
 0x84f   : > { %v5916_v52 = vpop.f32.mrf.mxu1 }
 0x850   : > { %v6396_v26 = vpack.c.bf16 %v6332_v34, %v6332_v34  ;;  %v6006_v54 = vpack.c.bf16 %v5916_v52, %v5916_v52 }
 0x851   : > { %v6609_v27 = vpop.xlane.xlu0 %6608 }
 0x852   : > { %v6460_v61 = vunpack.c.l.bf16 %v6396_v26  ;;  %v6076_v1 = vunpack.c.l.bf16 %v6006_v54  ;;  %v6709_v2 = vadd.f32 %v10002_v28, %v6609_v27 }
 0x854   : > { %v6141_v53 = vadd.f32 %v9752_v20, %v6076_v1  ;;  %6774 = vst.msk [vmem:[%s9839_s25 + $0xf8] sm:$0xff] %vm6742_vm0, %v6709_v2  ;;  %v6528_v13 = vmul.f32 %v9890_v23, %v6460_v61 }
 0x856   : > { %v6333_v63 = vmax.f32 %v6141_v53, 0.0  ;;  %6638 = vadd.xlane.f32.xlu0 %v6528_v13 }
 0x857   : > { %v5919_v29 = vpop.f32.mrf.mxu1 }
 0x858   : > { %v6397_v32 = vpack.c.bf16 %v6333_v63, %v6333_v63  ;;  %v6007_v58 = vpack.c.bf16 %v5919_v29, %v5919_v29 }
 0x859   : > { %v6611_v19 = vpop.xlane.xlu1 %6610 }
 0x85a   : > { %v6461_v56 = vunpack.c.l.bf16 %v6397_v32  ;;  %v6077_v36 = vunpack.c.l.bf16 %v6007_v58  ;;  %v6710_v18 = vadd.f32 %v10002_v28, %v6611_v19 }
 0x85c   : > { %v6142_v35 = vadd.f32 %v9752_v20, %v6077_v36  ;;  %6775 = vst.msk [vmem:[%s9839_s25 + $0x100] sm:$0xff] %vm6742_vm0, %v6710_v18  ;;  %v6529_v5 = vmul.f32 %v9890_v23, %v6461_v56 }
 0x85e   : > { %v6334_v30 = vmax.f32 %v6142_v35, 0.0  ;;  %6640 = vadd.xlane.f32.xlu1 %v6529_v5 }
 0x85f   : > { %v5921_v4 = vpop.f32.mrf.mxu1 }
 0x860   : > { %v6398_v60 = vpack.c.bf16 %v6334_v30, %v6334_v30  ;;  %v6008_v42 = vpack.c.bf16 %v5921_v4, %v5921_v4 }
 0x861   : > { %v6613_v40 = vpop.xlane.xlu2 %6612 }
 0x862   : > { %v6462_v45 = vunpack.c.l.bf16 %v6398_v60  ;;  %v6078_v49 = vunpack.c.l.bf16 %v6008_v42  ;;  %v6711_v62 = vadd.f32 %v10002_v28, %v6613_v40 }
 0x864   : > { %v6143_v0 = vadd.f32 %v9752_v20, %v6078_v49  ;;  %6776 = vst.msk [vmem:[%s9839_s25 + $0x108] sm:$0xff] %vm6742_vm0, %v6711_v62  ;;  %v6530_v37 = vmul.f32 %v9890_v23, %v6462_v45 }
 0x866   : > { %v6335_v21 = vmax.f32 %v6143_v0, 0.0  ;;  %6642 = vadd.xlane.f32.xlu2 %v6530_v37 }
 0x867   : > { %v5924_v51 = vpop.f32.mrf.mxu1 }
 0x868   : > { %v6399_v25 = vpack.c.bf16 %v6335_v21, %v6335_v21  ;;  %v6009_v16 = vpack.c.bf16 %v5924_v51, %v5924_v51 }
 0x869   : > { %v6615_v55 = vpop.xlane.xlu0 %6614 }
 0x86a   : > { %v6463_v24 = vunpack.c.l.bf16 %v6399_v25  ;;  %v6079_v9 = vunpack.c.l.bf16 %v6009_v16  ;;  %v6712_v48 = vadd.f32 %v10002_v28, %v6615_v55 }
 0x86c   : > { %v6144_v17 = vadd.f32 %v9752_v20, %v6079_v9  ;;  %6777 = vst.msk [vmem:[%s9839_s25 + $0x110] sm:$0xff] %vm6742_vm0, %v6712_v48  ;;  %v6531_v44 = vmul.f32 %v9890_v23, %v6463_v24 }
 0x86e   : > { %v6336_v59 = vmax.f32 %v6144_v17, 0.0  ;;  %6644 = vadd.xlane.f32.xlu0 %v6531_v44 }
 0x86f   : > { %v5926_v57 = vpop.f32.mrf.mxu1 }
 0x870   : > { %v6400_v43 = vpack.c.bf16 %v6336_v59, %v6336_v59  ;;  %v6010_v11 = vpack.c.bf16 %v5926_v57, %v5926_v57 }
 0x871   : > { %v6617_v22 = vpop.xlane.xlu1 %6616 }
 0x872   : > { %v6464_v38 = vunpack.c.l.bf16 %v6400_v43  ;;  %v6080_v31 = vunpack.c.l.bf16 %v6010_v11  ;;  %v6713_v10 = vadd.f32 %v10002_v28, %v6617_v22 }
 0x874   : > { %v6145_v3 = vadd.f32 %v9752_v20, %v6080_v31  ;;  %6778 = vst.msk [vmem:[%s9839_s25 + $0x118] sm:$0xff] %vm6742_vm0, %v6713_v10  ;;  %v6532_v23 = vmul.f32 %v10072_v8, %v6464_v38 }
 0x876   : > { %v6337_v6 = vmax.f32 %v6145_v3, 0.0  ;;  %6646 = vadd.xlane.f32.xlu1 %v6532_v23 }
 0x877   : > { %v5929_v7 = vpop.f32.mrf.mxu1 }
 0x878   : > { %v6401_v14 = vpack.c.bf16 %v6337_v6, %v6337_v6  ;;  %v6011_v50 = vpack.c.bf16 %v5929_v7, %v5929_v7 }
 0x879   : > { %v6619_v47 = vpop.xlane.xlu2 %6618 }
 0x87a   : > { %v6465_v46 = vunpack.c.l.bf16 %v6401_v14  ;;  %v6081_v15 = vunpack.c.l.bf16 %v6011_v50  ;;  %v6714_v39 = vadd.f32 %v10002_v28, %v6619_v47 }
 0x87c   : > { %v6146_v41 = vadd.f32 %v9752_v20, %v6081_v15  ;;  %6779 = vst.msk [vmem:[%s9839_s25 + $0x120] sm:$0xff] %vm6742_vm0, %v6714_v39  ;;  %v6533_v33 = vmul.f32 %v10072_v8, %v6465_v46 }
 0x87e   : > { %v6338_v12 = vmax.f32 %v6146_v41, 0.0  ;;  %6648 = vadd.xlane.f32.xlu2 %v6533_v33 }
 0x87f   : > { %v5931_v34 = vpop.f32.mrf.mxu1 }
 0x880   : > { %v6402_v52 = vpack.c.bf16 %v6338_v12, %v6338_v12  ;;  %v6012_v26 = vpack.c.bf16 %v5931_v34, %v5931_v34 }
 0x881   : > { %v6621_v54 = vpop.xlane.xlu0 %6620 }
 0x882   : > { %v6466_v27 = vunpack.c.l.bf16 %v6402_v52  ;;  %v6082_v61 = vunpack.c.l.bf16 %v6012_v26  ;;  %v6715_v1 = vadd.f32 %v10002_v28, %v6621_v54 }
 0x884   : > { %v6147_v2 = vadd.f32 %v9752_v20, %v6082_v61  ;;  %6780 = vst.msk [vmem:[%s9839_s25 + $0x128] sm:$0xff] %vm6742_vm0, %v6715_v1  ;;  %v6534_v53 = vmul.f32 %v10072_v8, %v6466_v27 }
 0x886   : > { %v6339_v13 = vmax.f32 %v6147_v2, 0.0  ;;  %6650 = vadd.xlane.f32.xlu0 %v6534_v53 }
 0x887   : > { %v5934_v63 = vpop.f32.mrf.mxu1 }
 0x888   : > { %v6403_v29 = vpack.c.bf16 %v6339_v13, %v6339_v13  ;;  %v6013_v32 = vpack.c.bf16 %v5934_v63, %v5934_v63 }
 0x889   : > { %v6623_v58 = vpop.xlane.xlu1 %6622 }
 0x88a   : > { %v6467_v19 = vunpack.c.l.bf16 %v6403_v29  ;;  %v6083_v56 = vunpack.c.l.bf16 %v6013_v32  ;;  %v6716_v36 = vadd.f32 %v10002_v28, %v6623_v58 }
 0x88c   : > { %v6148_v18 = vadd.f32 %v9752_v20, %v6083_v56  ;;  %6781 = vst.msk [vmem:[%s9839_s25 + $0x130] sm:$0xff] %vm6742_vm0, %v6716_v36  ;;  %v6535_v35 = vmul.f32 %v10072_v8, %v6467_v19 }
 0x88e   : > { %v6340_v5 = vmax.f32 %v6148_v18, 0.0  ;;  %6652 = vadd.xlane.f32.xlu1 %v6535_v35 }
 0x88f   : > { %v5936_v30 = vpop.f32.mrf.mxu1 }
 0x890   : > { %v6404_v4 = vpack.c.bf16 %v6340_v5, %v6340_v5  ;;  %v6014_v60 = vpack.c.bf16 %v5936_v30, %v5936_v30 }
 0x891   : > { %v6625_v42 = vpop.xlane.xlu2 %6624 }
 0x892   : > { %v6468_v40 = vunpack.c.l.bf16 %v6404_v4  ;;  %v6084_v45 = vunpack.c.l.bf16 %v6014_v60  ;;  %v6717_v49 = vadd.f32 %v10002_v28, %v6625_v42 }
 0x894   : > { %v6149_v62 = vadd.f32 %v9752_v20, %v6084_v45  ;;  %6782 = vst.msk [vmem:[%s9839_s25 + $0x138] sm:$0xff] %vm6742_vm0, %v6717_v49  ;;  %v6536_v0 = vmul.f32 %v10072_v8, %v6468_v40 }
 0x896   : > { %v6341_v37 = vmax.f32 %v6149_v62, 0.0  ;;  %6654 = vadd.xlane.f32.xlu2 %v6536_v0 }
 0x897   : > { %v5939_v21 = vpop.f32.mrf.mxu1 }
 0x898   : > { %v6405_v51 = vpack.c.bf16 %v6341_v37, %v6341_v37  ;;  %v6015_v25 = vpack.c.bf16 %v5939_v21, %v5939_v21 }
 0x899   : > { %v6627_v16 = vpop.xlane.xlu0 %6626 }
 0x89a   : > { %v6469_v55 = vunpack.c.l.bf16 %v6405_v51  ;;  %v6085_v24 = vunpack.c.l.bf16 %v6015_v25  ;;  %v6718_v9 = vadd.f32 %v10002_v28, %v6627_v16 }
 0x89c   : > { %v6150_v48 = vadd.f32 %v9752_v20, %v6085_v24  ;;  %6783 = vst.msk [vmem:[%s9839_s25 + $0x140] sm:$0xff] %vm6742_vm0, %v6718_v9  ;;  %v6537_v17 = vmul.f32 %v10072_v8, %v6469_v55 }
 0x89e   : > { %v6342_v44 = vmax.f32 %v6150_v48, 0.0  ;;  %6656 = vadd.xlane.f32.xlu0 %v6537_v17 }
 0x89f   : > { %v5941_v59 = vpop.f32.mrf.mxu1 }
 0x8a0   : > { %v6406_v57 = vpack.c.bf16 %v6342_v44, %v6342_v44  ;;  %v6016_v43 = vpack.c.bf16 %v5941_v59, %v5941_v59 }
 0x8a1   : > { %v6629_v11 = vpop.xlane.xlu1 %6628 }
 0x8a2   : > { %v6470_v22 = vunpack.c.l.bf16 %v6406_v57  ;;  %v6086_v38 = vunpack.c.l.bf16 %v6016_v43  ;;  %v6719_v31 = vadd.f32 %v10002_v28, %v6629_v11 }
 0x8a4   : > { %v6151_v10 = vadd.f32 %v9752_v20, %v6086_v38  ;;  %6784 = vst.msk [vmem:[%s9839_s25 + $0x148] sm:$0xff] %vm6742_vm0, %v6719_v31  ;;  %v6538_v3 = vmul.f32 %v10072_v8, %v6470_v22 }
 0x8a6   : > { %v6343_v23 = vmax.f32 %v6151_v10, 0.0  ;;  %6658 = vadd.xlane.f32.xlu1 %v6538_v3 }
 0x8a7   : > { %v5944_v6 = vpop.f32.mrf.mxu1 }
 0x8a8   : > { %v6407_v7 = vpack.c.bf16 %v6343_v23, %v6343_v23  ;;  %v6017_v14 = vpack.c.bf16 %v5944_v6, %v5944_v6 }
 0x8a9   : > { %v6631_v50 = vpop.xlane.xlu2 %6630 }
 0x8aa   : > { %v6471_v47 = vunpack.c.l.bf16 %v6407_v7  ;;  %v6087_v46 = vunpack.c.l.bf16 %v6017_v14  ;;  %v6720_v15 = vadd.f32 %v10002_v28, %v6631_v50 }
 0x8ac   : > { %v6152_v39 = vadd.f32 %v9752_v20, %v6087_v46  ;;  %6785 = vst.msk [vmem:[%s9839_s25 + $0x150] sm:$0xff] %vm6742_vm0, %v6720_v15  ;;  %v6539_v41 = vmul.f32 %v10072_v8, %v6471_v47 }
 0x8ae   : > { %v6344_v33 = vmax.f32 %v6152_v39, 0.0  ;;  %6660 = vadd.xlane.f32.xlu2 %v6539_v41 }
 0x8af   : > { %v5946_v12 = vpop.f32.mrf.mxu1 }
 0x8b0   : > { %v6408_v34 = vpack.c.bf16 %v6344_v33, %v6344_v33  ;;  %v6018_v52 = vpack.c.bf16 %v5946_v12, %v5946_v12 }
 0x8b1   : > { %v6633_v26 = vpop.xlane.xlu0 %6632 }
 0x8b2   : > { %v6472_v54 = vunpack.c.l.bf16 %v6408_v34  ;;  %v6088_v27 = vunpack.c.l.bf16 %v6018_v52  ;;  %v6721_v61 = vadd.f32 %v10002_v28, %v6633_v26 }
 0x8b4   : > { %v6153_v1 = vadd.f32 %v9752_v20, %v6088_v27  ;;  %6786 = vst.msk [vmem:[%s9839_s25 + $0x158] sm:$0xff] %vm6742_vm0, %v6721_v61  ;;  %v6540_v2 = vmul.f32 %v10072_v8, %v6472_v54 }
 0x8b6   : > { %v6345_v53 = vmax.f32 %v6153_v1, 0.0  ;;  %6662 = vadd.xlane.f32.xlu0 %v6540_v2 }
 0x8b7   : > { %v5949_v13 = vpop.f32.mrf.mxu1 }
 0x8b8   : > { %v6409_v63 = vpack.c.bf16 %v6345_v53, %v6345_v53  ;;  %v6019_v29 = vpack.c.bf16 %v5949_v13, %v5949_v13 }
 0x8b9   : > { %v6635_v32 = vpop.xlane.xlu1 %6634 }
 0x8ba   : > { %v6473_v58 = vunpack.c.l.bf16 %v6409_v63  ;;  %v6089_v19 = vunpack.c.l.bf16 %v6019_v29  ;;  %v6722_v56 = vadd.f32 %v10002_v28, %v6635_v32 }
 0x8bc   : > { %v6154_v36 = vadd.f32 %v9752_v20, %v6089_v19  ;;  %6787 = vst.msk [vmem:[%s9839_s25 + $0x160] sm:$0xff] %vm6742_vm0, %v6722_v56  ;;  %v6541_v18 = vmul.f32 %v10072_v8, %v6473_v58 }
 0x8be   : > { %v6346_v35 = vmax.f32 %v6154_v36, 0.0  ;;  %6664 = vadd.xlane.f32.xlu1 %v6541_v18 }
 0x8bf   : > { %v5951_v5 = vpop.f32.mrf.mxu1 }
 0x8c0   : > { %v6410_v30 = vpack.c.bf16 %v6346_v35, %v6346_v35  ;;  %v6020_v4 = vpack.c.bf16 %v5951_v5, %v5951_v5 }
 0x8c1   : > { %v6637_v60 = vpop.xlane.xlu2 %6636 }
 0x8c2   : > { %v6474_v42 = vunpack.c.l.bf16 %v6410_v30  ;;  %v6090_v40 = vunpack.c.l.bf16 %v6020_v4  ;;  %v6723_v45 = vadd.f32 %v10002_v28, %v6637_v60 }
 0x8c4   : > { %v6155_v49 = vadd.f32 %v9752_v20, %v6090_v40  ;;  %6788 = vst.msk [vmem:[%s9839_s25 + $0x168] sm:$0xff] %vm6742_vm0, %v6723_v45  ;;  %v6542_v62 = vmul.f32 %v10072_v8, %v6474_v42 }
 0x8c6   : > { %v6347_v0 = vmax.f32 %v6155_v49, 0.0  ;;  %6666 = vadd.xlane.f32.xlu2 %v6542_v62 }
 0x8c7   : > { %v5954_v37 = vpop.f32.mrf.mxu1 }
 0x8c8   : > { %v6411_v21 = vpack.c.bf16 %v6347_v0, %v6347_v0  ;;  %v6021_v51 = vpack.c.bf16 %v5954_v37, %v5954_v37 }
 0x8c9   : > { %v6639_v25 = vpop.xlane.xlu0 %6638 }
 0x8ca   : > { %v6475_v16 = vunpack.c.l.bf16 %v6411_v21  ;;  %v6091_v55 = vunpack.c.l.bf16 %v6021_v51  ;;  %v6724_v24 = vadd.f32 %v10002_v28, %v6639_v25 }
 0x8cc   : > { %v6156_v9 = vadd.f32 %v9752_v20, %v6091_v55  ;;  %6789 = vst.msk [vmem:[%s9839_s25 + $0x170] sm:$0xff] %vm6742_vm0, %v6724_v24  ;;  %v6543_v48 = vmul.f32 %v10072_v8, %v6475_v16 }
 0x8ce   : > { %v6348_v17 = vmax.f32 %v6156_v9, 0.0  ;;  %6668 = vadd.xlane.f32.xlu0 %v6543_v48 }
 0x8cf   : > { %v5956_v44 = vpop.f32.mrf.mxu1 }
 0x8d0   : > { %v6412_v59 = vpack.c.bf16 %v6348_v17, %v6348_v17  ;;  %v6022_v57 = vpack.c.bf16 %v5956_v44, %v5956_v44 }
 0x8d1   : > { %v6641_v43 = vpop.xlane.xlu1 %6640 }
 0x8d2   : > { %v6476_v11 = vunpack.c.l.bf16 %v6412_v59  ;;  %v6092_v22 = vunpack.c.l.bf16 %v6022_v57  ;;  %v6725_v38 = vadd.f32 %v10002_v28, %v6641_v43 }
 0x8d4   : > { %v6157_v31 = vadd.f32 %v9752_v20, %v6092_v22  ;;  %6790 = vst.msk [vmem:[%s9839_s25 + $0x178] sm:$0xff] %vm6742_vm0, %v6725_v38  ;;  %v6544_v10 = vmul.f32 %v10072_v8, %v6476_v11 }
 0x8d6   : > { %v6349_v3 = vmax.f32 %v6157_v31, 0.0  ;;  %6670 = vadd.xlane.f32.xlu1 %v6544_v10 }
 0x8d8   : > { %v6413_v23 = vpack.c.bf16 %v6349_v3, %v6349_v3 }
 0x8d9   : > { %v6643_v6 = vpop.xlane.xlu2 %6642 }
 0x8da   : > { %v6477_v7 = vunpack.c.l.bf16 %v6413_v23  ;;  %v6726_v14 = vadd.f32 %v10002_v28, %v6643_v6 }
 0x8dc   : > { %6791 = vst.msk [vmem:[%s9839_s25 + $0x180] sm:$0xff] %vm6742_vm0, %v6726_v14  ;;  %v6545_v50 = vmul.f32 %v10072_v8, %v6477_v7 }
 0x8de   : > { %6672 = vadd.xlane.f32.xlu2 %v6545_v50 }
 0x8e1   : > { %v6645_v20 = vpop.xlane.xlu0 %6644 }
 0x8e2   : > { %v6727_v47 = vadd.f32 %v10002_v28, %v6645_v20 }
 0x8e4   : > { %6792 = vst.msk [vmem:[%s9839_s25 + $0x188] sm:$0xff] %vm6742_vm0, %v6727_v47 }
 0x8e9   : > { %v6647_v46 = vpop.xlane.xlu1 %6646 }
 0x8ea   : > { %v6728_v15 = vadd.f32 %v10002_v28, %v6647_v46 }
 0x8ec   : > { %6793 = vst.msk [vmem:[%s9839_s25 + $0x190] sm:$0xff] %vm6742_vm0, %v6728_v15 }
 0x8f1   : > { %v6649_v39 = vpop.xlane.xlu2 %6648 }
 0x8f2   : > { %v6729_v41 = vadd.f32 %v10002_v28, %v6649_v39 }
 0x8f4   : > { %6794 = vst.msk [vmem:[%s9839_s25 + $0x198] sm:$0xff] %vm6742_vm0, %v6729_v41 }
 0x8f9   : > { %v6651_v8 = vpop.xlane.xlu0 %6650 }
 0x8fa   : > { %v6730_v33 = vadd.f32 %v10002_v28, %v6651_v8 }
 0x8fc   : > { %6795 = vst.msk [vmem:[%s9839_s25 + $0x1a0] sm:$0xff] %vm6742_vm0, %v6730_v33 }
 0x901   : > { %v6653_v12 = vpop.xlane.xlu1 %6652 }
 0x902   : > { %v6731_v34 = vadd.f32 %v10002_v28, %v6653_v12 }
 0x904   : > { %6796 = vst.msk [vmem:[%s9839_s25 + $0x1a8] sm:$0xff] %vm6742_vm0, %v6731_v34 }
 0x909   : > { %v6655_v52 = vpop.xlane.xlu2 %6654 }
 0x90a   : > { %v6732_v26 = vadd.f32 %v10002_v28, %v6655_v52 }
 0x90c   : > { %6797 = vst.msk [vmem:[%s9839_s25 + $0x1b0] sm:$0xff] %vm6742_vm0, %v6732_v26 }
 0x911   : > { %v6657_v54 = vpop.xlane.xlu0 %6656 }
 0x912   : > { %v6733_v27 = vadd.f32 %v10002_v28, %v6657_v54 }
 0x914   : > { %6798 = vst.msk [vmem:[%s9839_s25 + $0x1b8] sm:$0xff] %vm6742_vm0, %v6733_v27 }
 0x919   : > { %v6659_v61 = vpop.xlane.xlu1 %6658 }
 0x91a   : > { %v6734_v1 = vadd.f32 %v10002_v28, %v6659_v61 }
 0x91c   : > { %6799 = vst.msk [vmem:[%s9839_s25 + $0x1c0] sm:$0xff] %vm6742_vm0, %v6734_v1 }
 0x921   : > { %v6661_v2 = vpop.xlane.xlu2 %6660 }
 0x922   : > { %v6735_v53 = vadd.f32 %v10002_v28, %v6661_v2 }
 0x924   : > { %6800 = vst.msk [vmem:[%s9839_s25 + $0x1c8] sm:$0xff] %vm6742_vm0, %v6735_v53 }
 0x929   : > { %v6663_v13 = vpop.xlane.xlu0 %6662 }
 0x92a   : > { %v6736_v63 = vadd.f32 %v10002_v28, %v6663_v13 }
 0x92c   : > { %6801 = vst.msk [vmem:[%s9839_s25 + $0x1d0] sm:$0xff] %vm6742_vm0, %v6736_v63 }
 0x931   : > { %v6665_v29 = vpop.xlane.xlu1 %6664 }
 0x932   : > { %v6737_v32 = vadd.f32 %v10002_v28, %v6665_v29 }
 0x934   : > { %6802 = vst.msk [vmem:[%s9839_s25 + $0x1d8] sm:$0xff] %vm6742_vm0, %v6737_v32 }
 0x939   : > { %v6667_v58 = vpop.xlane.xlu2 %6666 }
 0x93a   : > { %v6738_v19 = vadd.f32 %v10002_v28, %v6667_v58 }
 0x93c   : > { %6803 = vst.msk [vmem:[%s9839_s25 + $0x1e0] sm:$0xff] %vm6742_vm0, %v6738_v19 }
 0x941   : > { %v6669_v56 = vpop.xlane.xlu0 %6668 }
 0x942   : > { %v6739_v36 = vadd.f32 %v10002_v28, %v6669_v56 }
 0x944   : > { %6804 = vst.msk [vmem:[%s9839_s25 + $0x1e8] sm:$0xff] %vm6742_vm0, %v6739_v36 }
 0x949   : > { %v6671_v18 = vpop.xlane.xlu1 %6670 }
 0x94a   : > { %v6740_v35 = vadd.f32 %v10002_v28, %v6671_v18 }
 0x94c   : > { %6805 = vst.msk [vmem:[%s9839_s25 + $0x1f0] sm:$0xff] %vm6742_vm0, %v6740_v35 }
 0x951   : > { %v6673_v5 = vpop.xlane.xlu2 %6672 }
 0x952   : > { %v6741_v30 = vadd.f32 %v10002_v28, %v6673_v5 }
 0x954   : > { %6806 = vst.msk [vmem:[%s9839_s25 + $0x1f8] sm:$0xff] %vm6742_vm0, %v6741_v30 }
 0x955 PF: > { %s19_s26 = sadd.s32 1, %s7456_s26  }
 0x956   : > { %p16_p4 = scmp.ge.s32.totalorder %s19_s26, 4  }
 0x958   :  { %18 = sbr.rel (!%p16_p4) target bundleno = 3 (0x3), region = 88 }

</bundles_post_ra>
